<compile_context>
chip_gen: v5e
topology: v5e:2x2
jax: 0.10.0
libtpu: 0.0.40
codegen_flags: <defaults>
</compile_context>

<pallas_src>
import numpy as np
import jax
import jax.numpy as jnp
from jax.experimental import pallas as pl
from jax.experimental.pallas import tpu as pltpu


# ---------------------------------------------------------------------------
# The single fused kernel (one sample per grid step)
# ---------------------------------------------------------------------------
def _fused_ae_kernel(
    x_ref,                       # [1, 34, 96]   f32  padded input rows (col = x*3+c)
    m1_ref, b1_ref,              # [3, 96, 512]  bf16, [1, 512] f32
    m2_ref, b2_ref,              # [3, 496, 512] bf16, [1, 512] f32
    m3_ref, b3_ref,              # [3, 480, 32]  bf16, [1, 32]  f32
    wf1_ref, bf1_ref,            # [256, 512]    bf16, [1, 512] f32
    wf2_ref, bf2_ref,            # [512, 256]    bf16, [1, 256] f32
    wd4_ref, bd4_ref,            # [256, 512]    bf16, [1, 512] f32
    wd5_ref, bd5_ref,            # [512, 256]    bf16, [1, 256] f32
    g_ref, bg_ref,               # [256, 2048]   bf16, [1, 256] f32
    wt2_ref, bt2_ref,            # [256, 512]    bf16, [1, 512] f32
    wt3_ref, bt3_ref,            # [4, 512, 96]  bf16, [1, 96]  f32
    xc_ref,                      # out [1, 1, 512] f32   (x_comp)
    rec_ref,                     # out [1, 4, 8, 96] f32 (reconstruction sub-rows)
    h1_ref, h2_ref, a2_ref, a3_ref, d1_ref,   # VMEM scratch
):
    f32, bf16 = jnp.float32, jnp.bfloat16

    # ---- conv1 (3x3, pad=1) + ReLU : rows [32, 32*16=512] -------------------
    xv = x_ref[0]                                             # [34, 96] f32
    acc = jnp.zeros((32, 512), f32)
    for dy in range(3):
        acc += jnp.dot(xv[dy:dy + 32, :].astype(bf16), m1_ref[dy],
                       preferred_element_type=f32)
    h1_ref[...] = jnp.maximum(acc + b1_ref[...], 0.0)

    # ---- maxpool 2x2: vertical pair-max + horizontal pair-max ---------------
    # (horizontal compaction is folded into m2; a2 rows 0/17 are the zero pad)
    a2_ref[0:1, :] = jnp.zeros((1, 496), f32)
    a2_ref[17:18, :] = jnp.zeros((1, 496), f32)
    for y in range(16):
        v = jnp.maximum(h1_ref[2 * y:2 * y + 1, :], h1_ref[2 * y + 1:2 * y + 2, :])
        a2_ref[y + 1:y + 2, :] = jnp.maximum(v[:, 0:496], v[:, 16:512])

    # ---- conv2 (3x3, pad=1, pool compaction folded in) + ReLU ---------------
    acc = jnp.zeros((16, 512), f32)
    for dy in range(3):
        acc += jnp.dot(a2_ref[dy:dy + 16, :].astype(bf16), m2_ref[dy],
                       preferred_element_type=f32)
    h2_ref[...] = jnp.maximum(acc + b2_ref[...], 0.0)

    # ---- maxpool 2x2 -> conv3 input ------------------------------------------
    a3_ref[0:1, :] = jnp.zeros((1, 480), f32)
    a3_ref[9:10, :] = jnp.zeros((1, 480), f32)
    for y in range(8):
        v = jnp.maximum(h2_ref[2 * y:2 * y + 1, :], h2_ref[2 * y + 1:2 * y + 2, :])
        a3_ref[y + 1:y + 2, :] = jnp.maximum(v[:, 0:480], v[:, 32:512])

    # ---- conv3 (3x3, pad=1) + ReLU : [8, 8*4=32] ------------------------------
    acc = jnp.zeros((8, 32), f32)
    for dy in range(3):
        acc += jnp.dot(a3_ref[dy:dy + 8, :].astype(bf16), m3_ref[dy],
                       preferred_element_type=f32)
    c3 = jnp.maximum(acc + b3_ref[...], 0.0).astype(bf16)      # [8, 32]

    # ---- fc1 (256 -> 512) + ReLU ; NCHW-flatten permutation folded into wf1 --
    acc = jnp.zeros((1, 512), f32)
    for r in range(8):
        acc += jnp.dot(c3[r:r + 1, :], wf1_ref[r * 32:(r + 1) * 32, :],
                       preferred_element_type=f32)
    z1 = jnp.maximum(acc + bf1_ref[...], 0.0).astype(bf16)     # [1, 512]

    # ---- fc2 (512 -> 256) + ReLU ---------------------------------------------
    z2 = jnp.maximum(jnp.dot(z1, wf2_ref[...], preferred_element_type=f32)
                     + bf2_ref[...], 0.0).astype(bf16)         # [1, 256]

    # ---- dec_linear_4 (256 -> 512), no activation -> x_comp output -----------
    xc = jnp.dot(z2, wd4_ref[...], preferred_element_type=f32) + bd4_ref[...]
    xc_ref[0] = xc                                             # [1, 512]

    # ---- dec_linear_5 (512 -> 256), no activation ----------------------------
    z4 = (jnp.dot(xc.astype(bf16), wd5_ref[...], preferred_element_type=f32)
          + bd5_ref[...])                                      # [1, 256]

    # ---- t_conv1 (1x1) + ReLU ; view(-1,4,8,8) reordering folded into g ------
    q = jnp.dot(z4.astype(bf16), g_ref[...], preferred_element_type=f32)  # [1, 2048]
    for y in range(8):
        d1_ref[y:y + 1, :] = jnp.maximum(
            q[:, y * 256:(y + 1) * 256] + bg_ref[...], 0.0)

    # ---- t_conv2 (2x2, stride 2) as block-diagonal matmul + ReLU -------------
    p2 = jnp.maximum(
        jnp.dot(d1_ref[...].astype(bf16), wt2_ref[...], preferred_element_type=f32)
        + bt2_ref[...], 0.0).astype(bf16)                      # [8, 512]

    # ---- t_conv3 (2x2, stride 2) + sigmoid; one matmul per output sub-row s --
    # rec_ref[0, s, y, :] holds final image row 4*y + s (pixel-major, col=X*3+c)
    for s in range(4):
        o = jax.nn.sigmoid(
            jnp.dot(p2, wt3_ref[s], preferred_element_type=f32) + bt3_ref[...])
        rec_ref[0, s] = o                                      # [8, 96]


# ---------------------------------------------------------------------------
# One-time weight repacking (all transposes / folds hoisted out of forward)
# ---------------------------------------------------------------------------
def prepare_params(raw):
    f32, bf16 = jnp.float32, jnp.bfloat16

    w1, b1 = raw["conv1_w"], raw["conv1_b"]        # [16,3,3,3]
    w2, b2 = raw["conv2_w"], raw["conv2_b"]        # [32,16,3,3]
    w3, b3 = raw["conv3_w"], raw["conv3_b"]        # [4,32,3,3]
    fw1, fb1 = raw["fc1_w"], raw["fc1_b"]          # [512,256]  (PyTorch [out,in])
    fw2, fb2 = raw["fc2_w"], raw["fc2_b"]          # [256,512]
    dw4, db4 = raw["dec4_w"], raw["dec4_b"]        # [512,256]
    dw5, db5 = raw["dec5_w"], raw["dec5_b"]        # [256,512]
    t1, tb1 = raw["tconv1_w"], raw["tconv1_b"]     # [4,32,1,1] ([in,out,k,k])
    t2, tb2 = raw["tconv2_w"], raw["tconv2_b"]     # [32,16,2,2]
    t3, tb3 = raw["tconv3_w"], raw["tconv3_b"]     # [16,3,2,2]

    def sel_first(gsize, xsize):    # plain 3x3 conv, horizontal pad folded in
        g = np.arange(gsize)[:, None, None]
        k = np.arange(3)[None, :, None]
        x = np.arange(xsize)[None, None, :]
        return jnp.asarray((g == (x + k - 1)).astype(np.float32))

    def sel_pool(gsize, xsize):     # conv after 2x2 pool: pick even pixel groups
        g = np.arange(gsize)[:, None, None]
        k = np.arange(3)[None, :, None]
        x = np.arange(xsize)[None, None, :]
        return jnp.asarray((g == 2 * (x + k - 1)).astype(np.float32))

    # banded conv matrices, one per vertical tap dy: [3, W_in*Cin, W_out*Cout]
    m1 = jnp.einsum("gkx,oidk->dgixo", sel_first(32, 32), w1).reshape(3, 96, 512)
    m2 = jnp.einsum("gkx,oidk->dgixo", sel_pool(31, 16), w2).reshape(3, 496, 512)
    m3 = jnp.einsum("gkx,oidk->dgixo", sel_pool(15, 8), w3).reshape(3, 480, 32)

    # fc1 with PyTorch NCHW flatten order folded into the weight
    wf1 = jnp.transpose(fw1.reshape(512, 4, 8, 8), (2, 3, 1, 0)).reshape(256, 512)
    wf2, wd4, wd5 = fw2.T, dw4.T, dw5.T

    eye8 = jnp.asarray(np.eye(8, dtype=np.float32))
    eye2 = jnp.asarray(np.eye(2, dtype=np.float32))

    # t_conv1 (1x1) + view(-1,4,8,8) reordering -> [256, 8*256]
    g = jnp.einsum("cC,yY,xX->cyxYXC", t1[:, :, 0, 0], eye8, eye8).reshape(256, 2048)

    # t_conv2 (2x2, s2) as block-diagonal over the 8 pixels of a row
    blk2 = jnp.transpose(t2, (0, 2, 3, 1)).reshape(32, 64)
    wt2 = jnp.einsum("xX,ab->xaXb", eye8, blk2).reshape(256, 512)

    # t_conv3 (2x2, s2): one matrix per output sub-row s = 2*dy + ey,
    # columns already in final image-row order (X*3 + c)
    wt3_list = []
    for s in range(4):
        dy, ey = s // 2, s % 2
        oh = jnp.asarray(np.eye(2, dtype=np.float32)[dy])
        w3e = jnp.transpose(t3[:, :, ey, :], (0, 2, 1))                 # [16,2,3]
        bs = jnp.einsum("d,xX,ceC->dxcXeC", oh, eye2, w3e).reshape(64, 12)
        wt3_list.append(jnp.einsum("xX,ab->xaXb", eye8, bs).reshape(512, 96))
    wt3 = jnp.stack(wt3_list, axis=0)                                   # [4,512,96]

    def row(v):
        return v.reshape(1, -1).astype(f32)

    return dict(
        m1=m1.astype(bf16), b1=row(jnp.tile(b1, 32)),
        m2=m2.astype(bf16), b2=row(jnp.tile(b2, 16)),
        m3=m3.astype(bf16), b3=row(jnp.tile(b3, 8)),
        wf1=wf1.astype(bf16), bf1=row(fb1),
        wf2=wf2.astype(bf16), bf2=row(fb2),
        wd4=wd4.astype(bf16), bd4=row(db4),
        wd5=wd5.astype(bf16), bd5=row(db5),
        g=g.astype(bf16), bg=row(jnp.tile(tb1, 8)),
        wt2=wt2.astype(bf16), bt2=row(jnp.tile(tb2, 32)),
        wt3=wt3.astype(bf16), bt3=row(jnp.tile(tb3, 32)),
    )


_PREP_ORDER = ["m1", "b1", "m2", "b2", "m3", "b3", "wf1", "bf1", "wf2", "bf2",
               "wd4", "bd4", "wd5", "bd5", "g", "bg", "wt2", "bt2", "wt3", "bt3"]


# ---------------------------------------------------------------------------
# Forward pass (matches ConvAutoencoderCIFAR.forward with return_comp=True)
# ---------------------------------------------------------------------------
def forward(x_nchw, prep):
    n = x_nchw.shape[0]
    # NCHW -> pixel-major rows [N, 32, 32*3], then vertical zero pad -> [N,34,96]
    xr = jnp.transpose(x_nchw, (0, 2, 3, 1)).reshape(n, 32, 96)
    xr = jnp.pad(xr, ((0, 0), (1, 1), (0, 0)))

    args = [xr] + [prep[k] for k in _PREP_ORDER]

    def full_spec(a):
        shp = tuple(a.shape)
        return pl.BlockSpec(shp, lambda b, _nd=len(shp): (0,) * _nd)

    in_specs = ([pl.BlockSpec((1, 34, 96), lambda b: (b, 0, 0))]
                + [full_spec(prep[k]) for k in _PREP_ORDER])

    out_shape = (jax.ShapeDtypeStruct((n, 1, 512), jnp.float32),
                 jax.ShapeDtypeStruct((n, 4, 8, 96), jnp.float32))
    out_specs = (pl.BlockSpec((1, 1, 512), lambda b: (b, 0, 0)),
                 pl.BlockSpec((1, 4, 8, 96), lambda b: (b, 0, 0, 0)))

    scratch = [
        pltpu.VMEM((32, 512), jnp.float32),   # h1 (conv1 out)
        pltpu.VMEM((16, 512), jnp.float32),   # h2 (conv2 out)
        pltpu.VMEM((18, 496), jnp.float32),   # a2 (pooled, padded conv2 input)
        pltpu.VMEM((10, 480), jnp.float32),   # a3 (pooled, padded conv3 input)
        pltpu.VMEM((8, 256), jnp.float32),    # d1 (t_conv1 output rows)
    ]

    xc, rec = pl.pallas_call(
        _fused_ae_kernel,
        out_shape=out_shape,
        grid=(n,),
        in_specs=in_specs,
        out_specs=out_specs,
        scratch_shapes=scratch,
        compiler_params=pltpu.CompilerParams(
            dimension_semantics=("parallel",),
            vmem_limit_bytes=32 * 1024 * 1024,
        ),
    )(*args)

    x_comp = xc.reshape(n, 512)
    # rec[n, s, y, X*3+c] = image[n, 4*y+s, X, c]  ->  NCHW
    img = jnp.transpose(rec, (0, 2, 1, 3)).reshape(n, 32, 32, 3)
    x_rec = jnp.transpose(img, (0, 3, 1, 2))
    return x_comp, x_rec


# ---------------------------------------------------------------------------
# Deterministic synthetic init (PyTorch layouts, fan-in uniform)
# ---------------------------------------------------------------------------
def init_params(key):
    def layer(k, w_shape, b_shape, fan_in):
        kw, kb = jax.random.split(k)
        bound = 1.0 / jnp.sqrt(float(fan_in))
        return (jax.random.uniform(kw, w_shape, jnp.float32, -bound, bound),
                jax.random.uniform(kb, b_shape, jnp.float32, -bound, bound))

    ks = jax.random.split(key, 10)
    p = {}
    p["conv1_w"], p["conv1_b"] = layer(ks[0], (16, 3, 3, 3), (16,), 3 * 9)
    p["conv2_w"], p["conv2_b"] = layer(ks[1], (32, 16, 3, 3), (32,), 16 * 9)
    p["conv3_w"], p["conv3_b"] = layer(ks[2], (4, 32, 3, 3), (4,), 32 * 9)
    p["fc1_w"], p["fc1_b"] = layer(ks[3], (512, 256), (512,), 256)
    p["fc2_w"], p["fc2_b"] = layer(ks[4], (256, 512), (256,), 512)
    p["dec4_w"], p["dec4_b"] = layer(ks[5], (512, 256), (512,), 256)
    p["dec5_w"], p["dec5_b"] = layer(ks[6], (256, 512), (256,), 512)
    p["tconv1_w"], p["tconv1_b"] = layer(ks[7], (4, 32, 1, 1), (32,), 4)
    p["tconv2_w"], p["tconv2_b"] = layer(ks[8], (32, 16, 2, 2), (16,), 32 * 4)
    p["tconv3_w"], p["tconv3_b"] = layer(ks[9], (16, 3, 2, 2), (3,), 16 * 4)
    return p


# ---------------------------------------------------------------------------
# Pure-JAX reference (f32) for a numerical sanity check
# ---------------------------------------------------------------------------
def reference_forward(x, raw):
    def conv(h, w, b):
        y = jax.lax.conv_general_dilated(
            h, w, window_strides=(1, 1), padding=((1, 1), (1, 1)),
            dimension_numbers=("NCHW", "OIHW", "NCHW"))
        return y + b[None, :, None, None]

    def pool(h):
        return jax.lax.reduce_window(h, -jnp.inf, jax.lax.max,
                                     (1, 1, 2, 2), (1, 1, 2, 2), "VALID")

    def tconv2x2(h, w, b):   # ConvTranspose2d(k=2, s=2); w: [in, out, 2, 2]
        y = jnp.einsum("nihw,iode->nohdwe", h, w)
        nb, co, hh, _, ww, _ = y.shape
        return y.reshape(nb, co, 2 * hh, 2 * ww) + b[None, :, None, None]

    h = jax.nn.relu(conv(x, raw["conv1_w"], raw["conv1_b"])); h = pool(h)
    h = jax.nn.relu(conv(h, raw["conv2_w"], raw["conv2_b"])); h = pool(h)
    h = jax.nn.relu(conv(h, raw["conv3_w"], raw["conv3_b"]))
    n = x.shape[0]
    flat = h.reshape(n, 256)
    z1 = jax.nn.relu(flat @ raw["fc1_w"].T + raw["fc1_b"])
    z2 = jax.nn.relu(z1 @ raw["fc2_w"].T + raw["fc2_b"])
    xc = z2 @ raw["dec4_w"].T + raw["dec4_b"]
    z4 = xc @ raw["dec5_w"].T + raw["dec5_b"]
    d = z4.reshape(n, 4, 8, 8)
    a = jax.nn.relu(jnp.einsum("ncyx,co->noyx", d, raw["tconv1_w"][:, :, 0, 0])
                    + raw["tconv1_b"][None, :, None, None])
    a = jax.nn.relu(tconv2x2(a, raw["tconv2_w"], raw["tconv2_b"]))
    rec = jax.nn.sigmoid(tconv2x2(a, raw["tconv3_w"], raw["tconv3_b"]))
    return xc, rec


if __name__ == "__main__":
    key = jax.random.PRNGKey(0)
    pkey, xkey = jax.random.split(key)
    raw = init_params(pkey)
    prep = prepare_params(raw)
    x = jax.random.uniform(xkey, (2, 3, 32, 32), dtype=jnp.float32)

    fwd = jax.jit(forward)
    x_comp, x_rec = fwd(x, prep)
    jax.block_until_ready((x_comp, x_rec))

    assert x_comp.shape == (2, 512) and x_comp.dtype == jnp.float32
    assert x_rec.shape == (2, 3, 32, 32) and x_rec.dtype == jnp.float32
    assert bool(jnp.all((x_rec >= 0.0) & (x_rec <= 1.0)))

    xc_ref, rec_ref = reference_forward(x, raw)
    err_c = float(jnp.max(jnp.abs(x_comp - xc_ref)))
    err_r = float(jnp.max(jnp.abs(x_rec - rec_ref)))
    assert err_c < 0.1 and err_r < 0.05, (err_c, err_r)

    print("KERNEL_OK")
</pallas_src>

<mosaic_0001>
module attributes {stable_mosaic.version = 11 : i64} {
  func.func @_fused_ae_kernel(%arg0: i32, %arg1: memref<1x34x96xf32, #tpu.memory_space<vmem>>, %arg2: memref<3x96x512xbf16, #tpu.memory_space<vmem>>, %arg3: memref<1x512xf32, #tpu.memory_space<vmem>>, %arg4: memref<3x496x512xbf16, #tpu.memory_space<vmem>>, %arg5: memref<1x512xf32, #tpu.memory_space<vmem>>, %arg6: memref<3x480x32xbf16, #tpu.memory_space<vmem>>, %arg7: memref<1x32xf32, #tpu.memory_space<vmem>>, %arg8: memref<256x512xbf16, #tpu.memory_space<vmem>>, %arg9: memref<1x512xf32, #tpu.memory_space<vmem>>, %arg10: memref<512x256xbf16, #tpu.memory_space<vmem>>, %arg11: memref<1x256xf32, #tpu.memory_space<vmem>>, %arg12: memref<256x512xbf16, #tpu.memory_space<vmem>>, %arg13: memref<1x512xf32, #tpu.memory_space<vmem>>, %arg14: memref<512x256xbf16, #tpu.memory_space<vmem>>, %arg15: memref<1x256xf32, #tpu.memory_space<vmem>>, %arg16: memref<256x2048xbf16, #tpu.memory_space<vmem>>, %arg17: memref<1x256xf32, #tpu.memory_space<vmem>>, %arg18: memref<256x512xbf16, #tpu.memory_space<vmem>>, %arg19: memref<1x512xf32, #tpu.memory_space<vmem>>, %arg20: memref<4x512x96xbf16, #tpu.memory_space<vmem>>, %arg21: memref<1x96xf32, #tpu.memory_space<vmem>>, %arg22: memref<1x1x512xf32, #tpu.memory_space<vmem>>, %arg23: memref<1x4x8x96xf32, #tpu.memory_space<vmem>>, %arg24: memref<32x512xf32, #tpu.memory_space<vmem>>, %arg25: memref<16x512xf32, #tpu.memory_space<vmem>>, %arg26: memref<18x496xf32, #tpu.memory_space<vmem>>, %arg27: memref<10x480xf32, #tpu.memory_space<vmem>>, %arg28: memref<8x256xf32, #tpu.memory_space<vmem>>) attributes {dimension_semantics = [#tpu.dimension_semantics<parallel>], iteration_bounds = array<i64: 2>, scalar_prefetch = 0 : i64, scratch_operands = 5 : i64, tpu.core_type = #tpu.core_type<tc>, window_params = [{transform_indices = @transform_0, window_bounds = array<i64: 1, 34, 96>}, {pipeline_mode = #tpu.pipeline_mode<synchronous>, transform_indices = @transform_1, window_bounds = array<i64: 3, 96, 512>}, {pipeline_mode = #tpu.pipeline_mode<synchronous>, transform_indices = @transform_2, window_bounds = array<i64: 1, 512>}, {pipeline_mode = #tpu.pipeline_mode<synchronous>, transform_indices = @transform_3, window_bounds = array<i64: 3, 496, 512>}, {pipeline_mode = #tpu.pipeline_mode<synchronous>, transform_indices = @transform_4, window_bounds = array<i64: 1, 512>}, {pipeline_mode = #tpu.pipeline_mode<synchronous>, transform_indices = @transform_5, window_bounds = array<i64: 3, 480, 32>}, {pipeline_mode = #tpu.pipeline_mode<synchronous>, transform_indices = @transform_6, window_bounds = array<i64: 1, 32>}, {pipeline_mode = #tpu.pipeline_mode<synchronous>, transform_indices = @transform_7, window_bounds = array<i64: 256, 512>}, {pipeline_mode = #tpu.pipeline_mode<synchronous>, transform_indices = @transform_8, window_bounds = array<i64: 1, 512>}, {pipeline_mode = #tpu.pipeline_mode<synchronous>, transform_indices = @transform_9, window_bounds = array<i64: 512, 256>}, {pipeline_mode = #tpu.pipeline_mode<synchronous>, transform_indices = @transform_10, window_bounds = array<i64: 1, 256>}, {pipeline_mode = #tpu.pipeline_mode<synchronous>, transform_indices = @transform_11, window_bounds = array<i64: 256, 512>}, {pipeline_mode = #tpu.pipeline_mode<synchronous>, transform_indices = @transform_12, window_bounds = array<i64: 1, 512>}, {pipeline_mode = #tpu.pipeline_mode<synchronous>, transform_indices = @transform_13, window_bounds = array<i64: 512, 256>}, {pipeline_mode = #tpu.pipeline_mode<synchronous>, transform_indices = @transform_14, window_bounds = array<i64: 1, 256>}, {pipeline_mode = #tpu.pipeline_mode<synchronous>, transform_indices = @transform_15, window_bounds = array<i64: 256, 2048>}, {pipeline_mode = #tpu.pipeline_mode<synchronous>, transform_indices = @transform_16, window_bounds = array<i64: 1, 256>}, {pipeline_mode = #tpu.pipeline_mode<synchronous>, transform_indices = @transform_17, window_bounds = array<i64: 256, 512>}, {pipeline_mode = #tpu.pipeline_mode<synchronous>, transform_indices = @transform_18, window_bounds = array<i64: 1, 512>}, {pipeline_mode = #tpu.pipeline_mode<synchronous>, transform_indices = @transform_19, window_bounds = array<i64: 4, 512, 96>}, {pipeline_mode = #tpu.pipeline_mode<synchronous>, transform_indices = @transform_20, window_bounds = array<i64: 1, 96>}, {transform_indices = @transform_21, window_bounds = array<i64: 1, 1, 512>}, {transform_indices = @transform_22, window_bounds = array<i64: 1, 4, 8, 96>}]} {
    %c0 = arith.constant 0 : index
    %c0_0 = arith.constant 0 : index
    %c0_1 = arith.constant 0 : index
    %0 = vector.load %arg1[%c0, %c0_0, %c0_1] : memref<1x34x96xf32, #tpu.memory_space<vmem>>, vector<1x34x96xf32>
    %1 = vector.shape_cast %0 : vector<1x34x96xf32> to vector<34x96xf32>
    %cst = arith.constant 0.000000e+00 : f32
    %2 = vector.broadcast %cst : f32 to vector<32x512xf32>
    %3 = vector.extract_strided_slice %1 {offsets = [0, 0], sizes = [32, 96], strides = [1, 1]} : vector<34x96xf32> to vector<32x96xf32>
    %4 = arith.truncf %3 : vector<32x96xf32> to vector<32x96xbf16>
    %c0_2 = arith.constant 0 : index
    %c0_3 = arith.constant 0 : index
    %c0_4 = arith.constant 0 : index
    %5 = vector.load %arg2[%c0_2, %c0_3, %c0_4] : memref<3x96x512xbf16, #tpu.memory_space<vmem>>, vector<1x96x512xbf16>
    %6 = vector.shape_cast %5 : vector<1x96x512xbf16> to vector<96x512xbf16>
    %cst_5 = arith.constant dense<0.000000e+00> : vector<32x512xf32>
    %7 = tpu.matmul %4, %6, %cst_5 {dimension_numbers = #tpu.dot_dimension_numbers<[1], [0], [0], [1], [0, 0, 1, 1], [], []>} : vector<32x96xbf16>, vector<96x512xbf16>, vector<32x512xf32> -> vector<32x512xf32>
    %8 = arith.addf %2, %7 : vector<32x512xf32>
    %9 = vector.extract_strided_slice %1 {offsets = [1, 0], sizes = [32, 96], strides = [1, 1]} : vector<34x96xf32> to vector<32x96xf32>
    %10 = arith.truncf %9 : vector<32x96xf32> to vector<32x96xbf16>
    %c1 = arith.constant 1 : index
    %c0_6 = arith.constant 0 : index
    %c0_7 = arith.constant 0 : index
    %11 = vector.load %arg2[%c1, %c0_6, %c0_7] : memref<3x96x512xbf16, #tpu.memory_space<vmem>>, vector<1x96x512xbf16>
    %12 = vector.shape_cast %11 : vector<1x96x512xbf16> to vector<96x512xbf16>
    %cst_8 = arith.constant dense<0.000000e+00> : vector<32x512xf32>
    %13 = tpu.matmul %10, %12, %cst_8 {dimension_numbers = #tpu.dot_dimension_numbers<[1], [0], [0], [1], [0, 0, 1, 1], [], []>} : vector<32x96xbf16>, vector<96x512xbf16>, vector<32x512xf32> -> vector<32x512xf32>
    %14 = arith.addf %8, %13 : vector<32x512xf32>
    %15 = vector.extract_strided_slice %1 {offsets = [2, 0], sizes = [32, 96], strides = [1, 1]} : vector<34x96xf32> to vector<32x96xf32>
    %16 = arith.truncf %15 : vector<32x96xf32> to vector<32x96xbf16>
    %c2 = arith.constant 2 : index
    %c0_9 = arith.constant 0 : index
    %c0_10 = arith.constant 0 : index
    %17 = vector.load %arg2[%c2, %c0_9, %c0_10] : memref<3x96x512xbf16, #tpu.memory_space<vmem>>, vector<1x96x512xbf16>
    %18 = vector.shape_cast %17 : vector<1x96x512xbf16> to vector<96x512xbf16>
    %cst_11 = arith.constant dense<0.000000e+00> : vector<32x512xf32>
    %19 = tpu.matmul %16, %18, %cst_11 {dimension_numbers = #tpu.dot_dimension_numbers<[1], [0], [0], [1], [0, 0, 1, 1], [], []>} : vector<32x96xbf16>, vector<96x512xbf16>, vector<32x512xf32> -> vector<32x512xf32>
    %20 = arith.addf %14, %19 : vector<32x512xf32>
    %c0_12 = arith.constant 0 : index
    %c0_13 = arith.constant 0 : index
    %21 = vector.load %arg3[%c0_12, %c0_13] : memref<1x512xf32, #tpu.memory_space<vmem>>, vector<1x512xf32>
    %22 = vector.broadcast %21 : vector<1x512xf32> to vector<32x512xf32>
    %23 = arith.addf %20, %22 : vector<32x512xf32>
    %cst_14 = arith.constant 0.000000e+00 : f32
    %24 = vector.broadcast %cst_14 : f32 to vector<32x512xf32>
    %25 = arith.maximumf %23, %24 : vector<32x512xf32>
    %c0_15 = arith.constant 0 : index
    %c0_16 = arith.constant 0 : index
    %26 = vector.load %arg24[%c0_15, %c0_16] : memref<32x512xf32, #tpu.memory_space<vmem>>, vector<32x512xf32>
    tpu.vector_store %arg24[%c0_15, %c0_16], %25 {strides = array<i32>} : memref<32x512xf32, #tpu.memory_space<vmem>>, vector<32x512xf32>,
    %cst_17 = arith.constant 0.000000e+00 : f32
    %27 = vector.broadcast %cst_17 : f32 to vector<1x496xf32>
    %c0_18 = arith.constant 0 : index
    %c0_19 = arith.constant 0 : index
    %28 = vector.load %arg26[%c0_18, %c0_19] : memref<18x496xf32, #tpu.memory_space<vmem>>, vector<1x496xf32>
    tpu.vector_store %arg26[%c0_18, %c0_19], %27 {strides = array<i32>} : memref<18x496xf32, #tpu.memory_space<vmem>>, vector<1x496xf32>,
    %cst_20 = arith.constant 0.000000e+00 : f32
    %29 = vector.broadcast %cst_20 : f32 to vector<1x496xf32>
    %c17 = arith.constant 17 : index
    %c0_21 = arith.constant 0 : index
    %30 = vector.load %arg26[%c17, %c0_21] : memref<18x496xf32, #tpu.memory_space<vmem>>, vector<1x496xf32>
    tpu.vector_store %arg26[%c17, %c0_21], %29 {strides = array<i32>} : memref<18x496xf32, #tpu.memory_space<vmem>>, vector<1x496xf32>,
    %c0_22 = arith.constant 0 : index
    %c0_23 = arith.constant 0 : index
    %31 = vector.load %arg24[%c0_22, %c0_23] : memref<32x512xf32, #tpu.memory_space<vmem>>, vector<1x512xf32>
    %c1_24 = arith.constant 1 : index
    %c0_25 = arith.constant 0 : index
    %32 = vector.load %arg24[%c1_24, %c0_25] : memref<32x512xf32, #tpu.memory_space<vmem>>, vector<1x512xf32>
    %33 = arith.maximumf %31, %32 : vector<1x512xf32>
    %34 = vector.extract_strided_slice %33 {offsets = [0, 0], sizes = [1, 496], strides = [1, 1]} : vector<1x512xf32> to vector<1x496xf32>
    %35 = vector.extract_strided_slice %33 {offsets = [0, 16], sizes = [1, 496], strides = [1, 1]} : vector<1x512xf32> to vector<1x496xf32>
    %36 = arith.maximumf %34, %35 : vector<1x496xf32>
    %c1_26 = arith.constant 1 : index
    %c0_27 = arith.constant 0 : index
    %37 = vector.load %arg26[%c1_26, %c0_27] : memref<18x496xf32, #tpu.memory_space<vmem>>, vector<1x496xf32>
    tpu.vector_store %arg26[%c1_26, %c0_27], %36 {strides = array<i32>} : memref<18x496xf32, #tpu.memory_space<vmem>>, vector<1x496xf32>,
    %c2_28 = arith.constant 2 : index
    %c0_29 = arith.constant 0 : index
    %38 = vector.load %arg24[%c2_28, %c0_29] : memref<32x512xf32, #tpu.memory_space<vmem>>, vector<1x512xf32>
    %c3 = arith.constant 3 : index
    %c0_30 = arith.constant 0 : index
    %39 = vector.load %arg24[%c3, %c0_30] : memref<32x512xf32, #tpu.memory_space<vmem>>, vector<1x512xf32>
    %40 = arith.maximumf %38, %39 : vector<1x512xf32>
    %41 = vector.extract_strided_slice %40 {offsets = [0, 0], sizes = [1, 496], strides = [1, 1]} : vector<1x512xf32> to vector<1x496xf32>
    %42 = vector.extract_strided_slice %40 {offsets = [0, 16], sizes = [1, 496], strides = [1, 1]} : vector<1x512xf32> to vector<1x496xf32>
    %43 = arith.maximumf %41, %42 : vector<1x496xf32>
    %c2_31 = arith.constant 2 : index
    %c0_32 = arith.constant 0 : index
    %44 = vector.load %arg26[%c2_31, %c0_32] : memref<18x496xf32, #tpu.memory_space<vmem>>, vector<1x496xf32>
    tpu.vector_store %arg26[%c2_31, %c0_32], %43 {strides = array<i32>} : memref<18x496xf32, #tpu.memory_space<vmem>>, vector<1x496xf32>,
    %c4 = arith.constant 4 : index
    %c0_33 = arith.constant 0 : index
    %45 = vector.load %arg24[%c4, %c0_33] : memref<32x512xf32, #tpu.memory_space<vmem>>, vector<1x512xf32>
    %c5 = arith.constant 5 : index
    %c0_34 = arith.constant 0 : index
    %46 = vector.load %arg24[%c5, %c0_34] : memref<32x512xf32, #tpu.memory_space<vmem>>, vector<1x512xf32>
    %47 = arith.maximumf %45, %46 : vector<1x512xf32>
    %48 = vector.extract_strided_slice %47 {offsets = [0, 0], sizes = [1, 496], strides = [1, 1]} : vector<1x512xf32> to vector<1x496xf32>
    %49 = vector.extract_strided_slice %47 {offsets = [0, 16], sizes = [1, 496], strides = [1, 1]} : vector<1x512xf32> to vector<1x496xf32>
    %50 = arith.maximumf %48, %49 : vector<1x496xf32>
    %c3_35 = arith.constant 3 : index
    %c0_36 = arith.constant 0 : index
    %51 = vector.load %arg26[%c3_35, %c0_36] : memref<18x496xf32, #tpu.memory_space<vmem>>, vector<1x496xf32>
    tpu.vector_store %arg26[%c3_35, %c0_36], %50 {strides = array<i32>} : memref<18x496xf32, #tpu.memory_space<vmem>>, vector<1x496xf32>,
    %c6 = arith.constant 6 : index
    %c0_37 = arith.constant 0 : index
    %52 = vector.load %arg24[%c6, %c0_37] : memref<32x512xf32, #tpu.memory_space<vmem>>, vector<1x512xf32>
    %c7 = arith.constant 7 : index
    %c0_38 = arith.constant 0 : index
    %53 = vector.load %arg24[%c7, %c0_38] : memref<32x512xf32, #tpu.memory_space<vmem>>, vector<1x512xf32>
    %54 = arith.maximumf %52, %53 : vector<1x512xf32>
    %55 = vector.extract_strided_slice %54 {offsets = [0, 0], sizes = [1, 496], strides = [1, 1]} : vector<1x512xf32> to vector<1x496xf32>
    %56 = vector.extract_strided_slice %54 {offsets = [0, 16], sizes = [1, 496], strides = [1, 1]} : vector<1x512xf32> to vector<1x496xf32>
    %57 = arith.maximumf %55, %56 : vector<1x496xf32>
    %c4_39 = arith.constant 4 : index
    %c0_40 = arith.constant 0 : index
    %58 = vector.load %arg26[%c4_39, %c0_40] : memref<18x496xf32, #tpu.memory_space<vmem>>, vector<1x496xf32>
    tpu.vector_store %arg26[%c4_39, %c0_40], %57 {strides = array<i32>} : memref<18x496xf32, #tpu.memory_space<vmem>>, vector<1x496xf32>,
    %c8 = arith.constant 8 : index
    %c0_41 = arith.constant 0 : index
    %59 = vector.load %arg24[%c8, %c0_41] : memref<32x512xf32, #tpu.memory_space<vmem>>, vector<1x512xf32>
    %c9 = arith.constant 9 : index
    %c0_42 = arith.constant 0 : index
    %60 = vector.load %arg24[%c9, %c0_42] : memref<32x512xf32, #tpu.memory_space<vmem>>, vector<1x512xf32>
    %61 = arith.maximumf %59, %60 : vector<1x512xf32>
    %62 = vector.extract_strided_slice %61 {offsets = [0, 0], sizes = [1, 496], strides = [1, 1]} : vector<1x512xf32> to vector<1x496xf32>
    %63 = vector.extract_strided_slice %61 {offsets = [0, 16], sizes = [1, 496], strides = [1, 1]} : vector<1x512xf32> to vector<1x496xf32>
    %64 = arith.maximumf %62, %63 : vector<1x496xf32>
    %c5_43 = arith.constant 5 : index
    %c0_44 = arith.constant 0 : index
    %65 = vector.load %arg26[%c5_43, %c0_44] : memref<18x496xf32, #tpu.memory_space<vmem>>, vector<1x496xf32>
    tpu.vector_store %arg26[%c5_43, %c0_44], %64 {strides = array<i32>} : memref<18x496xf32, #tpu.memory_space<vmem>>, vector<1x496xf32>,
    %c10 = arith.constant 10 : index
    %c0_45 = arith.constant 0 : index
    %66 = vector.load %arg24[%c10, %c0_45] : memref<32x512xf32, #tpu.memory_space<vmem>>, vector<1x512xf32>
    %c11 = arith.constant 11 : index
    %c0_46 = arith.constant 0 : index
    %67 = vector.load %arg24[%c11, %c0_46] : memref<32x512xf32, #tpu.memory_space<vmem>>, vector<1x512xf32>
    %68 = arith.maximumf %66, %67 : vector<1x512xf32>
    %69 = vector.extract_strided_slice %68 {offsets = [0, 0], sizes = [1, 496], strides = [1, 1]} : vector<1x512xf32> to vector<1x496xf32>
    %70 = vector.extract_strided_slice %68 {offsets = [0, 16], sizes = [1, 496], strides = [1, 1]} : vector<1x512xf32> to vector<1x496xf32>
    %71 = arith.maximumf %69, %70 : vector<1x496xf32>
    %c6_47 = arith.constant 6 : index
    %c0_48 = arith.constant 0 : index
    %72 = vector.load %arg26[%c6_47, %c0_48] : memref<18x496xf32, #tpu.memory_space<vmem>>, vector<1x496xf32>
    tpu.vector_store %arg26[%c6_47, %c0_48], %71 {strides = array<i32>} : memref<18x496xf32, #tpu.memory_space<vmem>>, vector<1x496xf32>,
    %c12 = arith.constant 12 : index
    %c0_49 = arith.constant 0 : index
    %73 = vector.load %arg24[%c12, %c0_49] : memref<32x512xf32, #tpu.memory_space<vmem>>, vector<1x512xf32>
    %c13 = arith.constant 13 : index
    %c0_50 = arith.constant 0 : index
    %74 = vector.load %arg24[%c13, %c0_50] : memref<32x512xf32, #tpu.memory_space<vmem>>, vector<1x512xf32>
    %75 = arith.maximumf %73, %74 : vector<1x512xf32>
    %76 = vector.extract_strided_slice %75 {offsets = [0, 0], sizes = [1, 496], strides = [1, 1]} : vector<1x512xf32> to vector<1x496xf32>
    %77 = vector.extract_strided_slice %75 {offsets = [0, 16], sizes = [1, 496], strides = [1, 1]} : vector<1x512xf32> to vector<1x496xf32>
    %78 = arith.maximumf %76, %77 : vector<1x496xf32>
    %c7_51 = arith.constant 7 : index
    %c0_52 = arith.constant 0 : index
    %79 = vector.load %arg26[%c7_51, %c0_52] : memref<18x496xf32, #tpu.memory_space<vmem>>, vector<1x496xf32>
    tpu.vector_store %arg26[%c7_51, %c0_52], %78 {strides = array<i32>} : memref<18x496xf32, #tpu.memory_space<vmem>>, vector<1x496xf32>,
    %c14 = arith.constant 14 : index
    %c0_53 = arith.constant 0 : index
    %80 = vector.load %arg24[%c14, %c0_53] : memref<32x512xf32, #tpu.memory_space<vmem>>, vector<1x512xf32>
    %c15 = arith.constant 15 : index
    %c0_54 = arith.constant 0 : index
    %81 = vector.load %arg24[%c15, %c0_54] : memref<32x512xf32, #tpu.memory_space<vmem>>, vector<1x512xf32>
    %82 = arith.maximumf %80, %81 : vector<1x512xf32>
    %83 = vector.extract_strided_slice %82 {offsets = [0, 0], sizes = [1, 496], strides = [1, 1]} : vector<1x512xf32> to vector<1x496xf32>
    %84 = vector.extract_strided_slice %82 {offsets = [0, 16], sizes = [1, 496], strides = [1, 1]} : vector<1x512xf32> to vector<1x496xf32>
    %85 = arith.maximumf %83, %84 : vector<1x496xf32>
    %c8_55 = arith.constant 8 : index
    %c0_56 = arith.constant 0 : index
    %86 = vector.load %arg26[%c8_55, %c0_56] : memref<18x496xf32, #tpu.memory_space<vmem>>, vector<1x496xf32>
    tpu.vector_store %arg26[%c8_55, %c0_56], %85 {strides = array<i32>} : memref<18x496xf32, #tpu.memory_space<vmem>>, vector<1x496xf32>,
    %c16 = arith.constant 16 : index
    %c0_57 = arith.constant 0 : index
    %87 = vector.load %arg24[%c16, %c0_57] : memref<32x512xf32, #tpu.memory_space<vmem>>, vector<1x512xf32>
    %c17_58 = arith.constant 17 : index
    %c0_59 = arith.constant 0 : index
    %88 = vector.load %arg24[%c17_58, %c0_59] : memref<32x512xf32, #tpu.memory_space<vmem>>, vector<1x512xf32>
    %89 = arith.maximumf %87, %88 : vector<1x512xf32>
    %90 = vector.extract_strided_slice %89 {offsets = [0, 0], sizes = [1, 496], strides = [1, 1]} : vector<1x512xf32> to vector<1x496xf32>
    %91 = vector.extract_strided_slice %89 {offsets = [0, 16], sizes = [1, 496], strides = [1, 1]} : vector<1x512xf32> to vector<1x496xf32>
    %92 = arith.maximumf %90, %91 : vector<1x496xf32>
    %c9_60 = arith.constant 9 : index
    %c0_61 = arith.constant 0 : index
    %93 = vector.load %arg26[%c9_60, %c0_61] : memref<18x496xf32, #tpu.memory_space<vmem>>, vector<1x496xf32>
    tpu.vector_store %arg26[%c9_60, %c0_61], %92 {strides = array<i32>} : memref<18x496xf32, #tpu.memory_space<vmem>>, vector<1x496xf32>,
    %c18 = arith.constant 18 : index
    %c0_62 = arith.constant 0 : index
    %94 = vector.load %arg24[%c18, %c0_62] : memref<32x512xf32, #tpu.memory_space<vmem>>, vector<1x512xf32>
    %c19 = arith.constant 19 : index
    %c0_63 = arith.constant 0 : index
    %95 = vector.load %arg24[%c19, %c0_63] : memref<32x512xf32, #tpu.memory_space<vmem>>, vector<1x512xf32>
    %96 = arith.maximumf %94, %95 : vector<1x512xf32>
    %97 = vector.extract_strided_slice %96 {offsets = [0, 0], sizes = [1, 496], strides = [1, 1]} : vector<1x512xf32> to vector<1x496xf32>
    %98 = vector.extract_strided_slice %96 {offsets = [0, 16], sizes = [1, 496], strides = [1, 1]} : vector<1x512xf32> to vector<1x496xf32>
    %99 = arith.maximumf %97, %98 : vector<1x496xf32>
    %c10_64 = arith.constant 10 : index
    %c0_65 = arith.constant 0 : index
    %100 = vector.load %arg26[%c10_64, %c0_65] : memref<18x496xf32, #tpu.memory_space<vmem>>, vector<1x496xf32>
    tpu.vector_store %arg26[%c10_64, %c0_65], %99 {strides = array<i32>} : memref<18x496xf32, #tpu.memory_space<vmem>>, vector<1x496xf32>,
    %c20 = arith.constant 20 : index
    %c0_66 = arith.constant 0 : index
    %101 = vector.load %arg24[%c20, %c0_66] : memref<32x512xf32, #tpu.memory_space<vmem>>, vector<1x512xf32>
    %c21 = arith.constant 21 : index
    %c0_67 = arith.constant 0 : index
    %102 = vector.load %arg24[%c21, %c0_67] : memref<32x512xf32, #tpu.memory_space<vmem>>, vector<1x512xf32>
    %103 = arith.maximumf %101, %102 : vector<1x512xf32>
    %104 = vector.extract_strided_slice %103 {offsets = [0, 0], sizes = [1, 496], strides = [1, 1]} : vector<1x512xf32> to vector<1x496xf32>
    %105 = vector.extract_strided_slice %103 {offsets = [0, 16], sizes = [1, 496], strides = [1, 1]} : vector<1x512xf32> to vector<1x496xf32>
    %106 = arith.maximumf %104, %105 : vector<1x496xf32>
    %c11_68 = arith.constant 11 : index
    %c0_69 = arith.constant 0 : index
    %107 = vector.load %arg26[%c11_68, %c0_69] : memref<18x496xf32, #tpu.memory_space<vmem>>, vector<1x496xf32>
    tpu.vector_store %arg26[%c11_68, %c0_69], %106 {strides = array<i32>} : memref<18x496xf32, #tpu.memory_space<vmem>>, vector<1x496xf32>,
    %c22 = arith.constant 22 : index
    %c0_70 = arith.constant 0 : index
    %108 = vector.load %arg24[%c22, %c0_70] : memref<32x512xf32, #tpu.memory_space<vmem>>, vector<1x512xf32>
    %c23 = arith.constant 23 : index
    %c0_71 = arith.constant 0 : index
    %109 = vector.load %arg24[%c23, %c0_71] : memref<32x512xf32, #tpu.memory_space<vmem>>, vector<1x512xf32>
    %110 = arith.maximumf %108, %109 : vector<1x512xf32>
    %111 = vector.extract_strided_slice %110 {offsets = [0, 0], sizes = [1, 496], strides = [1, 1]} : vector<1x512xf32> to vector<1x496xf32>
    %112 = vector.extract_strided_slice %110 {offsets = [0, 16], sizes = [1, 496], strides = [1, 1]} : vector<1x512xf32> to vector<1x496xf32>
    %113 = arith.maximumf %111, %112 : vector<1x496xf32>
    %c12_72 = arith.constant 12 : index
    %c0_73 = arith.constant 0 : index
    %114 = vector.load %arg26[%c12_72, %c0_73] : memref<18x496xf32, #tpu.memory_space<vmem>>, vector<1x496xf32>
    tpu.vector_store %arg26[%c12_72, %c0_73], %113 {strides = array<i32>} : memref<18x496xf32, #tpu.memory_space<vmem>>, vector<1x496xf32>,
    %c24 = arith.constant 24 : index
    %c0_74 = arith.constant 0 : index
    %115 = vector.load %arg24[%c24, %c0_74] : memref<32x512xf32, #tpu.memory_space<vmem>>, vector<1x512xf32>
    %c25 = arith.constant 25 : index
    %c0_75 = arith.constant 0 : index
    %116 = vector.load %arg24[%c25, %c0_75] : memref<32x512xf32, #tpu.memory_space<vmem>>, vector<1x512xf32>
    %117 = arith.maximumf %115, %116 : vector<1x512xf32>
    %118 = vector.extract_strided_slice %117 {offsets = [0, 0], sizes = [1, 496], strides = [1, 1]} : vector<1x512xf32> to vector<1x496xf32>
    %119 = vector.extract_strided_slice %117 {offsets = [0, 16], sizes = [1, 496], strides = [1, 1]} : vector<1x512xf32> to vector<1x496xf32>
    %120 = arith.maximumf %118, %119 : vector<1x496xf32>
    %c13_76 = arith.constant 13 : index
    %c0_77 = arith.constant 0 : index
    %121 = vector.load %arg26[%c13_76, %c0_77] : memref<18x496xf32, #tpu.memory_space<vmem>>, vector<1x496xf32>
    tpu.vector_store %arg26[%c13_76, %c0_77], %120 {strides = array<i32>} : memref<18x496xf32, #tpu.memory_space<vmem>>, vector<1x496xf32>,
    %c26 = arith.constant 26 : index
    %c0_78 = arith.constant 0 : index
    %122 = vector.load %arg24[%c26, %c0_78] : memref<32x512xf32, #tpu.memory_space<vmem>>, vector<1x512xf32>
    %c27 = arith.constant 27 : index
    %c0_79 = arith.constant 0 : index
    %123 = vector.load %arg24[%c27, %c0_79] : memref<32x512xf32, #tpu.memory_space<vmem>>, vector<1x512xf32>
    %124 = arith.maximumf %122, %123 : vector<1x512xf32>
    %125 = vector.extract_strided_slice %124 {offsets = [0, 0], sizes = [1, 496], strides = [1, 1]} : vector<1x512xf32> to vector<1x496xf32>
    %126 = vector.extract_strided_slice %124 {offsets = [0, 16], sizes = [1, 496], strides = [1, 1]} : vector<1x512xf32> to vector<1x496xf32>
    %127 = arith.maximumf %125, %126 : vector<1x496xf32>
    %c14_80 = arith.constant 14 : index
    %c0_81 = arith.constant 0 : index
    %128 = vector.load %arg26[%c14_80, %c0_81] : memref<18x496xf32, #tpu.memory_space<vmem>>, vector<1x496xf32>
    tpu.vector_store %arg26[%c14_80, %c0_81], %127 {strides = array<i32>} : memref<18x496xf32, #tpu.memory_space<vmem>>, vector<1x496xf32>,
    %c28 = arith.constant 28 : index
    %c0_82 = arith.constant 0 : index
    %129 = vector.load %arg24[%c28, %c0_82] : memref<32x512xf32, #tpu.memory_space<vmem>>, vector<1x512xf32>
    %c29 = arith.constant 29 : index
    %c0_83 = arith.constant 0 : index
    %130 = vector.load %arg24[%c29, %c0_83] : memref<32x512xf32, #tpu.memory_space<vmem>>, vector<1x512xf32>
    %131 = arith.maximumf %129, %130 : vector<1x512xf32>
    %132 = vector.extract_strided_slice %131 {offsets = [0, 0], sizes = [1, 496], strides = [1, 1]} : vector<1x512xf32> to vector<1x496xf32>
    %133 = vector.extract_strided_slice %131 {offsets = [0, 16], sizes = [1, 496], strides = [1, 1]} : vector<1x512xf32> to vector<1x496xf32>
    %134 = arith.maximumf %132, %133 : vector<1x496xf32>
    %c15_84 = arith.constant 15 : index
    %c0_85 = arith.constant 0 : index
    %135 = vector.load %arg26[%c15_84, %c0_85] : memref<18x496xf32, #tpu.memory_space<vmem>>, vector<1x496xf32>
    tpu.vector_store %arg26[%c15_84, %c0_85], %134 {strides = array<i32>} : memref<18x496xf32, #tpu.memory_space<vmem>>, vector<1x496xf32>,
    %c30 = arith.constant 30 : index
    %c0_86 = arith.constant 0 : index
    %136 = vector.load %arg24[%c30, %c0_86] : memref<32x512xf32, #tpu.memory_space<vmem>>, vector<1x512xf32>
    %c31 = arith.constant 31 : index
    %c0_87 = arith.constant 0 : index
    %137 = vector.load %arg24[%c31, %c0_87] : memref<32x512xf32, #tpu.memory_space<vmem>>, vector<1x512xf32>
    %138 = arith.maximumf %136, %137 : vector<1x512xf32>
    %139 = vector.extract_strided_slice %138 {offsets = [0, 0], sizes = [1, 496], strides = [1, 1]} : vector<1x512xf32> to vector<1x496xf32>
    %140 = vector.extract_strided_slice %138 {offsets = [0, 16], sizes = [1, 496], strides = [1, 1]} : vector<1x512xf32> to vector<1x496xf32>
    %141 = arith.maximumf %139, %140 : vector<1x496xf32>
    %c16_88 = arith.constant 16 : index
    %c0_89 = arith.constant 0 : index
    %142 = vector.load %arg26[%c16_88, %c0_89] : memref<18x496xf32, #tpu.memory_space<vmem>>, vector<1x496xf32>
    tpu.vector_store %arg26[%c16_88, %c0_89], %141 {strides = array<i32>} : memref<18x496xf32, #tpu.memory_space<vmem>>, vector<1x496xf32>,
    %cst_90 = arith.constant 0.000000e+00 : f32
    %143 = vector.broadcast %cst_90 : f32 to vector<16x512xf32>
    %c0_91 = arith.constant 0 : index
    %c0_92 = arith.constant 0 : index
    %144 = vector.load %arg26[%c0_91, %c0_92] : memref<18x496xf32, #tpu.memory_space<vmem>>, vector<16x496xf32>
    %145 = arith.truncf %144 : vector<16x496xf32> to vector<16x496xbf16>
    %c0_93 = arith.constant 0 : index
    %c0_94 = arith.constant 0 : index
    %c0_95 = arith.constant 0 : index
    %146 = vector.load %arg4[%c0_93, %c0_94, %c0_95] : memref<3x496x512xbf16, #tpu.memory_space<vmem>>, vector<1x496x512xbf16>
    %147 = vector.shape_cast %146 : vector<1x496x512xbf16> to vector<496x512xbf16>
    %cst_96 = arith.constant dense<0.000000e+00> : vector<16x512xf32>
    %148 = tpu.matmul %145, %147, %cst_96 {dimension_numbers = #tpu.dot_dimension_numbers<[1], [0], [0], [1], [0, 0, 1, 1], [], []>} : vector<16x496xbf16>, vector<496x512xbf16>, vector<16x512xf32> -> vector<16x512xf32>
    %149 = arith.addf %143, %148 : vector<16x512xf32>
    %c1_97 = arith.constant 1 : index
    %c0_98 = arith.constant 0 : index
    %150 = vector.load %arg26[%c1_97, %c0_98] : memref<18x496xf32, #tpu.memory_space<vmem>>, vector<16x496xf32>
    %151 = arith.truncf %150 : vector<16x496xf32> to vector<16x496xbf16>
    %c1_99 = arith.constant 1 : index
    %c0_100 = arith.constant 0 : index
    %c0_101 = arith.constant 0 : index
    %152 = vector.load %arg4[%c1_99, %c0_100, %c0_101] : memref<3x496x512xbf16, #tpu.memory_space<vmem>>, vector<1x496x512xbf16>
    %153 = vector.shape_cast %152 : vector<1x496x512xbf16> to vector<496x512xbf16>
    %cst_102 = arith.constant dense<0.000000e+00> : vector<16x512xf32>
    %154 = tpu.matmul %151, %153, %cst_102 {dimension_numbers = #tpu.dot_dimension_numbers<[1], [0], [0], [1], [0, 0, 1, 1], [], []>} : vector<16x496xbf16>, vector<496x512xbf16>, vector<16x512xf32> -> vector<16x512xf32>
    %155 = arith.addf %149, %154 : vector<16x512xf32>
    %c2_103 = arith.constant 2 : index
    %c0_104 = arith.constant 0 : index
    %156 = vector.load %arg26[%c2_103, %c0_104] : memref<18x496xf32, #tpu.memory_space<vmem>>, vector<16x496xf32>
    %157 = arith.truncf %156 : vector<16x496xf32> to vector<16x496xbf16>
    %c2_105 = arith.constant 2 : index
    %c0_106 = arith.constant 0 : index
    %c0_107 = arith.constant 0 : index
    %158 = vector.load %arg4[%c2_105, %c0_106, %c0_107] : memref<3x496x512xbf16, #tpu.memory_space<vmem>>, vector<1x496x512xbf16>
    %159 = vector.shape_cast %158 : vector<1x496x512xbf16> to vector<496x512xbf16>
    %cst_108 = arith.constant dense<0.000000e+00> : vector<16x512xf32>
    %160 = tpu.matmul %157, %159, %cst_108 {dimension_numbers = #tpu.dot_dimension_numbers<[1], [0], [0], [1], [0, 0, 1, 1], [], []>} : vector<16x496xbf16>, vector<496x512xbf16>, vector<16x512xf32> -> vector<16x512xf32>
    %161 = arith.addf %155, %160 : vector<16x512xf32>
    %c0_109 = arith.constant 0 : index
    %c0_110 = arith.constant 0 : index
    %162 = vector.load %arg5[%c0_109, %c0_110] : memref<1x512xf32, #tpu.memory_space<vmem>>, vector<1x512xf32>
    %163 = vector.broadcast %162 : vector<1x512xf32> to vector<16x512xf32>
    %164 = arith.addf %161, %163 : vector<16x512xf32>
    %cst_111 = arith.constant 0.000000e+00 : f32
    %165 = vector.broadcast %cst_111 : f32 to vector<16x512xf32>
    %166 = arith.maximumf %164, %165 : vector<16x512xf32>
    %c0_112 = arith.constant 0 : index
    %c0_113 = arith.constant 0 : index
    %167 = vector.load %arg25[%c0_112, %c0_113] : memref<16x512xf32, #tpu.memory_space<vmem>>, vector<16x512xf32>
    tpu.vector_store %arg25[%c0_112, %c0_113], %166 {strides = array<i32>} : memref<16x512xf32, #tpu.memory_space<vmem>>, vector<16x512xf32>,
    %cst_114 = arith.constant 0.000000e+00 : f32
    %168 = vector.broadcast %cst_114 : f32 to vector<1x480xf32>
    %c0_115 = arith.constant 0 : index
    %c0_116 = arith.constant 0 : index
    %169 = vector.load %arg27[%c0_115, %c0_116] : memref<10x480xf32, #tpu.memory_space<vmem>>, vector<1x480xf32>
    tpu.vector_store %arg27[%c0_115, %c0_116], %168 {strides = array<i32>} : memref<10x480xf32, #tpu.memory_space<vmem>>, vector<1x480xf32>,
    %cst_117 = arith.constant 0.000000e+00 : f32
    %170 = vector.broadcast %cst_117 : f32 to vector<1x480xf32>
    %c9_118 = arith.constant 9 : index
    %c0_119 = arith.constant 0 : index
    %171 = vector.load %arg27[%c9_118, %c0_119] : memref<10x480xf32, #tpu.memory_space<vmem>>, vector<1x480xf32>
    tpu.vector_store %arg27[%c9_118, %c0_119], %170 {strides = array<i32>} : memref<10x480xf32, #tpu.memory_space<vmem>>, vector<1x480xf32>,
    %c0_120 = arith.constant 0 : index
    %c0_121 = arith.constant 0 : index
    %172 = vector.load %arg25[%c0_120, %c0_121] : memref<16x512xf32, #tpu.memory_space<vmem>>, vector<1x512xf32>
    %c1_122 = arith.constant 1 : index
    %c0_123 = arith.constant 0 : index
    %173 = vector.load %arg25[%c1_122, %c0_123] : memref<16x512xf32, #tpu.memory_space<vmem>>, vector<1x512xf32>
    %174 = arith.maximumf %172, %173 : vector<1x512xf32>
    %175 = vector.extract_strided_slice %174 {offsets = [0, 0], sizes = [1, 480], strides = [1, 1]} : vector<1x512xf32> to vector<1x480xf32>
    %176 = vector.extract_strided_slice %174 {offsets = [0, 32], sizes = [1, 480], strides = [1, 1]} : vector<1x512xf32> to vector<1x480xf32>
    %177 = arith.maximumf %175, %176 : vector<1x480xf32>
    %c1_124 = arith.constant 1 : index
    %c0_125 = arith.constant 0 : index
    %178 = vector.load %arg27[%c1_124, %c0_125] : memref<10x480xf32, #tpu.memory_space<vmem>>, vector<1x480xf32>
    tpu.vector_store %arg27[%c1_124, %c0_125], %177 {strides = array<i32>} : memref<10x480xf32, #tpu.memory_space<vmem>>, vector<1x480xf32>,
    %c2_126 = arith.constant 2 : index
    %c0_127 = arith.constant 0 : index
    %179 = vector.load %arg25[%c2_126, %c0_127] : memref<16x512xf32, #tpu.memory_space<vmem>>, vector<1x512xf32>
    %c3_128 = arith.constant 3 : index
    %c0_129 = arith.constant 0 : index
    %180 = vector.load %arg25[%c3_128, %c0_129] : memref<16x512xf32, #tpu.memory_space<vmem>>, vector<1x512xf32>
    %181 = arith.maximumf %179, %180 : vector<1x512xf32>
    %182 = vector.extract_strided_slice %181 {offsets = [0, 0], sizes = [1, 480], strides = [1, 1]} : vector<1x512xf32> to vector<1x480xf32>
    %183 = vector.extract_strided_slice %181 {offsets = [0, 32], sizes = [1, 480], strides = [1, 1]} : vector<1x512xf32> to vector<1x480xf32>
    %184 = arith.maximumf %182, %183 : vector<1x480xf32>
    %c2_130 = arith.constant 2 : index
    %c0_131 = arith.constant 0 : index
    %185 = vector.load %arg27[%c2_130, %c0_131] : memref<10x480xf32, #tpu.memory_space<vmem>>, vector<1x480xf32>
    tpu.vector_store %arg27[%c2_130, %c0_131], %184 {strides = array<i32>} : memref<10x480xf32, #tpu.memory_space<vmem>>, vector<1x480xf32>,
    %c4_132 = arith.constant 4 : index
    %c0_133 = arith.constant 0 : index
    %186 = vector.load %arg25[%c4_132, %c0_133] : memref<16x512xf32, #tpu.memory_space<vmem>>, vector<1x512xf32>
    %c5_134 = arith.constant 5 : index
    %c0_135 = arith.constant 0 : index
    %187 = vector.load %arg25[%c5_134, %c0_135] : memref<16x512xf32, #tpu.memory_space<vmem>>, vector<1x512xf32>
    %188 = arith.maximumf %186, %187 : vector<1x512xf32>
    %189 = vector.extract_strided_slice %188 {offsets = [0, 0], sizes = [1, 480], strides = [1, 1]} : vector<1x512xf32> to vector<1x480xf32>
    %190 = vector.extract_strided_slice %188 {offsets = [0, 32], sizes = [1, 480], strides = [1, 1]} : vector<1x512xf32> to vector<1x480xf32>
    %191 = arith.maximumf %189, %190 : vector<1x480xf32>
    %c3_136 = arith.constant 3 : index
    %c0_137 = arith.constant 0 : index
    %192 = vector.load %arg27[%c3_136, %c0_137] : memref<10x480xf32, #tpu.memory_space<vmem>>, vector<1x480xf32>
    tpu.vector_store %arg27[%c3_136, %c0_137], %191 {strides = array<i32>} : memref<10x480xf32, #tpu.memory_space<vmem>>, vector<1x480xf32>,
    %c6_138 = arith.constant 6 : index
    %c0_139 = arith.constant 0 : index
    %193 = vector.load %arg25[%c6_138, %c0_139] : memref<16x512xf32, #tpu.memory_space<vmem>>, vector<1x512xf32>
    %c7_140 = arith.constant 7 : index
    %c0_141 = arith.constant 0 : index
    %194 = vector.load %arg25[%c7_140, %c0_141] : memref<16x512xf32, #tpu.memory_space<vmem>>, vector<1x512xf32>
    %195 = arith.maximumf %193, %194 : vector<1x512xf32>
    %196 = vector.extract_strided_slice %195 {offsets = [0, 0], sizes = [1, 480], strides = [1, 1]} : vector<1x512xf32> to vector<1x480xf32>
    %197 = vector.extract_strided_slice %195 {offsets = [0, 32], sizes = [1, 480], strides = [1, 1]} : vector<1x512xf32> to vector<1x480xf32>
    %198 = arith.maximumf %196, %197 : vector<1x480xf32>
    %c4_142 = arith.constant 4 : index
    %c0_143 = arith.constant 0 : index
    %199 = vector.load %arg27[%c4_142, %c0_143] : memref<10x480xf32, #tpu.memory_space<vmem>>, vector<1x480xf32>
    tpu.vector_store %arg27[%c4_142, %c0_143], %198 {strides = array<i32>} : memref<10x480xf32, #tpu.memory_space<vmem>>, vector<1x480xf32>,
    %c8_144 = arith.constant 8 : index
    %c0_145 = arith.constant 0 : index
    %200 = vector.load %arg25[%c8_144, %c0_145] : memref<16x512xf32, #tpu.memory_space<vmem>>, vector<1x512xf32>
    %c9_146 = arith.constant 9 : index
    %c0_147 = arith.constant 0 : index
    %201 = vector.load %arg25[%c9_146, %c0_147] : memref<16x512xf32, #tpu.memory_space<vmem>>, vector<1x512xf32>
    %202 = arith.maximumf %200, %201 : vector<1x512xf32>
    %203 = vector.extract_strided_slice %202 {offsets = [0, 0], sizes = [1, 480], strides = [1, 1]} : vector<1x512xf32> to vector<1x480xf32>
    %204 = vector.extract_strided_slice %202 {offsets = [0, 32], sizes = [1, 480], strides = [1, 1]} : vector<1x512xf32> to vector<1x480xf32>
    %205 = arith.maximumf %203, %204 : vector<1x480xf32>
    %c5_148 = arith.constant 5 : index
    %c0_149 = arith.constant 0 : index
    %206 = vector.load %arg27[%c5_148, %c0_149] : memref<10x480xf32, #tpu.memory_space<vmem>>, vector<1x480xf32>
    tpu.vector_store %arg27[%c5_148, %c0_149], %205 {strides = array<i32>} : memref<10x480xf32, #tpu.memory_space<vmem>>, vector<1x480xf32>,
    %c10_150 = arith.constant 10 : index
    %c0_151 = arith.constant 0 : index
    %207 = vector.load %arg25[%c10_150, %c0_151] : memref<16x512xf32, #tpu.memory_space<vmem>>, vector<1x512xf32>
    %c11_152 = arith.constant 11 : index
    %c0_153 = arith.constant 0 : index
    %208 = vector.load %arg25[%c11_152, %c0_153] : memref<16x512xf32, #tpu.memory_space<vmem>>, vector<1x512xf32>
    %209 = arith.maximumf %207, %208 : vector<1x512xf32>
    %210 = vector.extract_strided_slice %209 {offsets = [0, 0], sizes = [1, 480], strides = [1, 1]} : vector<1x512xf32> to vector<1x480xf32>
    %211 = vector.extract_strided_slice %209 {offsets = [0, 32], sizes = [1, 480], strides = [1, 1]} : vector<1x512xf32> to vector<1x480xf32>
    %212 = arith.maximumf %210, %211 : vector<1x480xf32>
    %c6_154 = arith.constant 6 : index
    %c0_155 = arith.constant 0 : index
    %213 = vector.load %arg27[%c6_154, %c0_155] : memref<10x480xf32, #tpu.memory_space<vmem>>, vector<1x480xf32>
    tpu.vector_store %arg27[%c6_154, %c0_155], %212 {strides = array<i32>} : memref<10x480xf32, #tpu.memory_space<vmem>>, vector<1x480xf32>,
    %c12_156 = arith.constant 12 : index
    %c0_157 = arith.constant 0 : index
    %214 = vector.load %arg25[%c12_156, %c0_157] : memref<16x512xf32, #tpu.memory_space<vmem>>, vector<1x512xf32>
    %c13_158 = arith.constant 13 : index
    %c0_159 = arith.constant 0 : index
    %215 = vector.load %arg25[%c13_158, %c0_159] : memref<16x512xf32, #tpu.memory_space<vmem>>, vector<1x512xf32>
    %216 = arith.maximumf %214, %215 : vector<1x512xf32>
    %217 = vector.extract_strided_slice %216 {offsets = [0, 0], sizes = [1, 480], strides = [1, 1]} : vector<1x512xf32> to vector<1x480xf32>
    %218 = vector.extract_strided_slice %216 {offsets = [0, 32], sizes = [1, 480], strides = [1, 1]} : vector<1x512xf32> to vector<1x480xf32>
    %219 = arith.maximumf %217, %218 : vector<1x480xf32>
    %c7_160 = arith.constant 7 : index
    %c0_161 = arith.constant 0 : index
    %220 = vector.load %arg27[%c7_160, %c0_161] : memref<10x480xf32, #tpu.memory_space<vmem>>, vector<1x480xf32>
    tpu.vector_store %arg27[%c7_160, %c0_161], %219 {strides = array<i32>} : memref<10x480xf32, #tpu.memory_space<vmem>>, vector<1x480xf32>,
    %c14_162 = arith.constant 14 : index
    %c0_163 = arith.constant 0 : index
    %221 = vector.load %arg25[%c14_162, %c0_163] : memref<16x512xf32, #tpu.memory_space<vmem>>, vector<1x512xf32>
    %c15_164 = arith.constant 15 : index
    %c0_165 = arith.constant 0 : index
    %222 = vector.load %arg25[%c15_164, %c0_165] : memref<16x512xf32, #tpu.memory_space<vmem>>, vector<1x512xf32>
    %223 = arith.maximumf %221, %222 : vector<1x512xf32>
    %224 = vector.extract_strided_slice %223 {offsets = [0, 0], sizes = [1, 480], strides = [1, 1]} : vector<1x512xf32> to vector<1x480xf32>
    %225 = vector.extract_strided_slice %223 {offsets = [0, 32], sizes = [1, 480], strides = [1, 1]} : vector<1x512xf32> to vector<1x480xf32>
    %226 = arith.maximumf %224, %225 : vector<1x480xf32>
    %c8_166 = arith.constant 8 : index
    %c0_167 = arith.constant 0 : index
    %227 = vector.load %arg27[%c8_166, %c0_167] : memref<10x480xf32, #tpu.memory_space<vmem>>, vector<1x480xf32>
    tpu.vector_store %arg27[%c8_166, %c0_167], %226 {strides = array<i32>} : memref<10x480xf32, #tpu.memory_space<vmem>>, vector<1x480xf32>,
    %cst_168 = arith.constant 0.000000e+00 : f32
    %228 = vector.broadcast %cst_168 : f32 to vector<8x32xf32>
    %c0_169 = arith.constant 0 : index
    %c0_170 = arith.constant 0 : index
    %229 = vector.load %arg27[%c0_169, %c0_170] : memref<10x480xf32, #tpu.memory_space<vmem>>, vector<8x480xf32>
    %230 = arith.truncf %229 : vector<8x480xf32> to vector<8x480xbf16>
    %c0_171 = arith.constant 0 : index
    %c0_172 = arith.constant 0 : index
    %c0_173 = arith.constant 0 : index
    %231 = vector.load %arg6[%c0_171, %c0_172, %c0_173] : memref<3x480x32xbf16, #tpu.memory_space<vmem>>, vector<1x480x32xbf16>
    %232 = vector.shape_cast %231 : vector<1x480x32xbf16> to vector<480x32xbf16>
    %cst_174 = arith.constant dense<0.000000e+00> : vector<8x32xf32>
    %233 = tpu.matmul %230, %232, %cst_174 {dimension_numbers = #tpu.dot_dimension_numbers<[1], [0], [0], [1], [0, 0, 1, 1], [], []>} : vector<8x480xbf16>, vector<480x32xbf16>, vector<8x32xf32> -> vector<8x32xf32>
    %234 = arith.addf %228, %233 : vector<8x32xf32>
    %c1_175 = arith.constant 1 : index
    %c0_176 = arith.constant 0 : index
    %235 = vector.load %arg27[%c1_175, %c0_176] : memref<10x480xf32, #tpu.memory_space<vmem>>, vector<8x480xf32>
    %236 = arith.truncf %235 : vector<8x480xf32> to vector<8x480xbf16>
    %c1_177 = arith.constant 1 : index
    %c0_178 = arith.constant 0 : index
    %c0_179 = arith.constant 0 : index
    %237 = vector.load %arg6[%c1_177, %c0_178, %c0_179] : memref<3x480x32xbf16, #tpu.memory_space<vmem>>, vector<1x480x32xbf16>
    %238 = vector.shape_cast %237 : vector<1x480x32xbf16> to vector<480x32xbf16>
    %cst_180 = arith.constant dense<0.000000e+00> : vector<8x32xf32>
    %239 = tpu.matmul %236, %238, %cst_180 {dimension_numbers = #tpu.dot_dimension_numbers<[1], [0], [0], [1], [0, 0, 1, 1], [], []>} : vector<8x480xbf16>, vector<480x32xbf16>, vector<8x32xf32> -> vector<8x32xf32>
    %240 = arith.addf %234, %239 : vector<8x32xf32>
    %c2_181 = arith.constant 2 : index
    %c0_182 = arith.constant 0 : index
    %241 = vector.load %arg27[%c2_181, %c0_182] : memref<10x480xf32, #tpu.memory_space<vmem>>, vector<8x480xf32>
    %242 = arith.truncf %241 : vector<8x480xf32> to vector<8x480xbf16>
    %c2_183 = arith.constant 2 : index
    %c0_184 = arith.constant 0 : index
    %c0_185 = arith.constant 0 : index
    %243 = vector.load %arg6[%c2_183, %c0_184, %c0_185] : memref<3x480x32xbf16, #tpu.memory_space<vmem>>, vector<1x480x32xbf16>
    %244 = vector.shape_cast %243 : vector<1x480x32xbf16> to vector<480x32xbf16>
    %cst_186 = arith.constant dense<0.000000e+00> : vector<8x32xf32>
    %245 = tpu.matmul %242, %244, %cst_186 {dimension_numbers = #tpu.dot_dimension_numbers<[1], [0], [0], [1], [0, 0, 1, 1], [], []>} : vector<8x480xbf16>, vector<480x32xbf16>, vector<8x32xf32> -> vector<8x32xf32>
    %246 = arith.addf %240, %245 : vector<8x32xf32>
    %c0_187 = arith.constant 0 : index
    %c0_188 = arith.constant 0 : index
    %247 = vector.load %arg7[%c0_187, %c0_188] : memref<1x32xf32, #tpu.memory_space<vmem>>, vector<1x32xf32>
    %248 = vector.broadcast %247 : vector<1x32xf32> to vector<8x32xf32>
    %249 = arith.addf %246, %248 : vector<8x32xf32>
    %cst_189 = arith.constant 0.000000e+00 : f32
    %250 = vector.broadcast %cst_189 : f32 to vector<8x32xf32>
    %251 = arith.maximumf %249, %250 : vector<8x32xf32>
    %252 = arith.truncf %251 : vector<8x32xf32> to vector<8x32xbf16>
    %cst_190 = arith.constant 0.000000e+00 : f32
    %253 = vector.broadcast %cst_190 : f32 to vector<1x512xf32>
    %254 = vector.extract_strided_slice %252 {offsets = [0, 0], sizes = [1, 32], strides = [1, 1]} : vector<8x32xbf16> to vector<1x32xbf16>
    %c0_191 = arith.constant 0 : index
    %c0_192 = arith.constant 0 : index
    %255 = vector.load %arg8[%c0_191, %c0_192] : memref<256x512xbf16, #tpu.memory_space<vmem>>, vector<32x512xbf16>
    %cst_193 = arith.constant dense<0.000000e+00> : vector<1x512xf32>
    %256 = tpu.matmul %254, %255, %cst_193 {dimension_numbers = #tpu.dot_dimension_numbers<[1], [0], [0], [1], [0, 0, 1, 1], [], []>} : vector<1x32xbf16>, vector<32x512xbf16>, vector<1x512xf32> -> vector<1x512xf32>
    %257 = arith.addf %253, %256 : vector<1x512xf32>
    %258 = vector.extract_strided_slice %252 {offsets = [1, 0], sizes = [1, 32], strides = [1, 1]} : vector<8x32xbf16> to vector<1x32xbf16>
    %c32 = arith.constant 32 : index
    %c0_194 = arith.constant 0 : index
    %259 = vector.load %arg8[%c32, %c0_194] : memref<256x512xbf16, #tpu.memory_space<vmem>>, vector<32x512xbf16>
    %cst_195 = arith.constant dense<0.000000e+00> : vector<1x512xf32>
    %260 = tpu.matmul %258, %259, %cst_195 {dimension_numbers = #tpu.dot_dimension_numbers<[1], [0], [0], [1], [0, 0, 1, 1], [], []>} : vector<1x32xbf16>, vector<32x512xbf16>, vector<1x512xf32> -> vector<1x512xf32>
    %261 = arith.addf %257, %260 : vector<1x512xf32>
    %262 = vector.extract_strided_slice %252 {offsets = [2, 0], sizes = [1, 32], strides = [1, 1]} : vector<8x32xbf16> to vector<1x32xbf16>
    %c64 = arith.constant 64 : index
    %c0_196 = arith.constant 0 : index
    %263 = vector.load %arg8[%c64, %c0_196] : memref<256x512xbf16, #tpu.memory_space<vmem>>, vector<32x512xbf16>
    %cst_197 = arith.constant dense<0.000000e+00> : vector<1x512xf32>
    %264 = tpu.matmul %262, %263, %cst_197 {dimension_numbers = #tpu.dot_dimension_numbers<[1], [0], [0], [1], [0, 0, 1, 1], [], []>} : vector<1x32xbf16>, vector<32x512xbf16>, vector<1x512xf32> -> vector<1x512xf32>
    %265 = arith.addf %261, %264 : vector<1x512xf32>
    %266 = vector.extract_strided_slice %252 {offsets = [3, 0], sizes = [1, 32], strides = [1, 1]} : vector<8x32xbf16> to vector<1x32xbf16>
    %c96 = arith.constant 96 : index
    %c0_198 = arith.constant 0 : index
    %267 = vector.load %arg8[%c96, %c0_198] : memref<256x512xbf16, #tpu.memory_space<vmem>>, vector<32x512xbf16>
    %cst_199 = arith.constant dense<0.000000e+00> : vector<1x512xf32>
    %268 = tpu.matmul %266, %267, %cst_199 {dimension_numbers = #tpu.dot_dimension_numbers<[1], [0], [0], [1], [0, 0, 1, 1], [], []>} : vector<1x32xbf16>, vector<32x512xbf16>, vector<1x512xf32> -> vector<1x512xf32>
    %269 = arith.addf %265, %268 : vector<1x512xf32>
    %270 = vector.extract_strided_slice %252 {offsets = [4, 0], sizes = [1, 32], strides = [1, 1]} : vector<8x32xbf16> to vector<1x32xbf16>
    %c128 = arith.constant 128 : index
    %c0_200 = arith.constant 0 : index
    %271 = vector.load %arg8[%c128, %c0_200] : memref<256x512xbf16, #tpu.memory_space<vmem>>, vector<32x512xbf16>
    %cst_201 = arith.constant dense<0.000000e+00> : vector<1x512xf32>
    %272 = tpu.matmul %270, %271, %cst_201 {dimension_numbers = #tpu.dot_dimension_numbers<[1], [0], [0], [1], [0, 0, 1, 1], [], []>} : vector<1x32xbf16>, vector<32x512xbf16>, vector<1x512xf32> -> vector<1x512xf32>
    %273 = arith.addf %269, %272 : vector<1x512xf32>
    %274 = vector.extract_strided_slice %252 {offsets = [5, 0], sizes = [1, 32], strides = [1, 1]} : vector<8x32xbf16> to vector<1x32xbf16>
    %c160 = arith.constant 160 : index
    %c0_202 = arith.constant 0 : index
    %275 = vector.load %arg8[%c160, %c0_202] : memref<256x512xbf16, #tpu.memory_space<vmem>>, vector<32x512xbf16>
    %cst_203 = arith.constant dense<0.000000e+00> : vector<1x512xf32>
    %276 = tpu.matmul %274, %275, %cst_203 {dimension_numbers = #tpu.dot_dimension_numbers<[1], [0], [0], [1], [0, 0, 1, 1], [], []>} : vector<1x32xbf16>, vector<32x512xbf16>, vector<1x512xf32> -> vector<1x512xf32>
    %277 = arith.addf %273, %276 : vector<1x512xf32>
    %278 = vector.extract_strided_slice %252 {offsets = [6, 0], sizes = [1, 32], strides = [1, 1]} : vector<8x32xbf16> to vector<1x32xbf16>
    %c192 = arith.constant 192 : index
    %c0_204 = arith.constant 0 : index
    %279 = vector.load %arg8[%c192, %c0_204] : memref<256x512xbf16, #tpu.memory_space<vmem>>, vector<32x512xbf16>
    %cst_205 = arith.constant dense<0.000000e+00> : vector<1x512xf32>
    %280 = tpu.matmul %278, %279, %cst_205 {dimension_numbers = #tpu.dot_dimension_numbers<[1], [0], [0], [1], [0, 0, 1, 1], [], []>} : vector<1x32xbf16>, vector<32x512xbf16>, vector<1x512xf32> -> vector<1x512xf32>
    %281 = arith.addf %277, %280 : vector<1x512xf32>
    %282 = vector.extract_strided_slice %252 {offsets = [7, 0], sizes = [1, 32], strides = [1, 1]} : vector<8x32xbf16> to vector<1x32xbf16>
    %c224 = arith.constant 224 : index
    %c0_206 = arith.constant 0 : index
    %283 = vector.load %arg8[%c224, %c0_206] : memref<256x512xbf16, #tpu.memory_space<vmem>>, vector<32x512xbf16>
    %cst_207 = arith.constant dense<0.000000e+00> : vector<1x512xf32>
    %284 = tpu.matmul %282, %283, %cst_207 {dimension_numbers = #tpu.dot_dimension_numbers<[1], [0], [0], [1], [0, 0, 1, 1], [], []>} : vector<1x32xbf16>, vector<32x512xbf16>, vector<1x512xf32> -> vector<1x512xf32>
    %285 = arith.addf %281, %284 : vector<1x512xf32>
    %c0_208 = arith.constant 0 : index
    %c0_209 = arith.constant 0 : index
    %286 = vector.load %arg9[%c0_208, %c0_209] : memref<1x512xf32, #tpu.memory_space<vmem>>, vector<1x512xf32>
    %287 = arith.addf %285, %286 : vector<1x512xf32>
    %cst_210 = arith.constant 0.000000e+00 : f32
    %288 = vector.broadcast %cst_210 : f32 to vector<1x512xf32>
    %289 = arith.maximumf %287, %288 : vector<1x512xf32>
    %290 = arith.truncf %289 : vector<1x512xf32> to vector<1x512xbf16>
    %c0_211 = arith.constant 0 : index
    %c0_212 = arith.constant 0 : index
    %291 = vector.load %arg10[%c0_211, %c0_212] : memref<512x256xbf16, #tpu.memory_space<vmem>>, vector<512x256xbf16>
    %cst_213 = arith.constant dense<0.000000e+00> : vector<1x256xf32>
    %292 = tpu.matmul %290, %291, %cst_213 {dimension_numbers = #tpu.dot_dimension_numbers<[1], [0], [0], [1], [0, 0, 1, 1], [], []>} : vector<1x512xbf16>, vector<512x256xbf16>, vector<1x256xf32> -> vector<1x256xf32>
    %c0_214 = arith.constant 0 : index
    %c0_215 = arith.constant 0 : index
    %293 = vector.load %arg11[%c0_214, %c0_215] : memref<1x256xf32, #tpu.memory_space<vmem>>, vector<1x256xf32>
    %294 = arith.addf %292, %293 : vector<1x256xf32>
    %cst_216 = arith.constant 0.000000e+00 : f32
    %295 = vector.broadcast %cst_216 : f32 to vector<1x256xf32>
    %296 = arith.maximumf %294, %295 : vector<1x256xf32>
    %297 = arith.truncf %296 : vector<1x256xf32> to vector<1x256xbf16>
    %c0_217 = arith.constant 0 : index
    %c0_218 = arith.constant 0 : index
    %298 = vector.load %arg12[%c0_217, %c0_218] : memref<256x512xbf16, #tpu.memory_space<vmem>>, vector<256x512xbf16>
    %cst_219 = arith.constant dense<0.000000e+00> : vector<1x512xf32>
    %299 = tpu.matmul %297, %298, %cst_219 {dimension_numbers = #tpu.dot_dimension_numbers<[1], [0], [0], [1], [0, 0, 1, 1], [], []>} : vector<1x256xbf16>, vector<256x512xbf16>, vector<1x512xf32> -> vector<1x512xf32>
    %c0_220 = arith.constant 0 : index
    %c0_221 = arith.constant 0 : index
    %300 = vector.load %arg13[%c0_220, %c0_221] : memref<1x512xf32, #tpu.memory_space<vmem>>, vector<1x512xf32>
    %301 = arith.addf %299, %300 : vector<1x512xf32>
    %c0_222 = arith.constant 0 : index
    %c0_223 = arith.constant 0 : index
    %c0_224 = arith.constant 0 : index
    %302 = vector.load %arg22[%c0_222, %c0_223, %c0_224] : memref<1x1x512xf32, #tpu.memory_space<vmem>>, vector<1x1x512xf32>
    %303 = vector.shape_cast %302 : vector<1x1x512xf32> to vector<1x512xf32>
    %304 = vector.shape_cast %301 : vector<1x512xf32> to vector<1x1x512xf32>
    tpu.vector_store %arg22[%c0_222, %c0_223, %c0_224], %304 {strides = array<i32>} : memref<1x1x512xf32, #tpu.memory_space<vmem>>, vector<1x1x512xf32>,
    %305 = arith.truncf %301 : vector<1x512xf32> to vector<1x512xbf16>
    %c0_225 = arith.constant 0 : index
    %c0_226 = arith.constant 0 : index
    %306 = vector.load %arg14[%c0_225, %c0_226] : memref<512x256xbf16, #tpu.memory_space<vmem>>, vector<512x256xbf16>
    %cst_227 = arith.constant dense<0.000000e+00> : vector<1x256xf32>
    %307 = tpu.matmul %305, %306, %cst_227 {dimension_numbers = #tpu.dot_dimension_numbers<[1], [0], [0], [1], [0, 0, 1, 1], [], []>} : vector<1x512xbf16>, vector<512x256xbf16>, vector<1x256xf32> -> vector<1x256xf32>
    %c0_228 = arith.constant 0 : index
    %c0_229 = arith.constant 0 : index
    %308 = vector.load %arg15[%c0_228, %c0_229] : memref<1x256xf32, #tpu.memory_space<vmem>>, vector<1x256xf32>
    %309 = arith.addf %307, %308 : vector<1x256xf32>
    %310 = arith.truncf %309 : vector<1x256xf32> to vector<1x256xbf16>
    %c0_230 = arith.constant 0 : index
    %c0_231 = arith.constant 0 : index
    %311 = vector.load %arg16[%c0_230, %c0_231] : memref<256x2048xbf16, #tpu.memory_space<vmem>>, vector<256x2048xbf16>
    %cst_232 = arith.constant dense<0.000000e+00> : vector<1x2048xf32>
    %312 = tpu.matmul %310, %311, %cst_232 {dimension_numbers = #tpu.dot_dimension_numbers<[1], [0], [0], [1], [0, 0, 1, 1], [], []>} : vector<1x256xbf16>, vector<256x2048xbf16>, vector<1x2048xf32> -> vector<1x2048xf32>
    %313 = vector.extract_strided_slice %312 {offsets = [0, 0], sizes = [1, 256], strides = [1, 1]} : vector<1x2048xf32> to vector<1x256xf32>
    %c0_233 = arith.constant 0 : index
    %c0_234 = arith.constant 0 : index
    %314 = vector.load %arg17[%c0_233, %c0_234] : memref<1x256xf32, #tpu.memory_space<vmem>>, vector<1x256xf32>
    %315 = arith.addf %313, %314 : vector<1x256xf32>
    %cst_235 = arith.constant 0.000000e+00 : f32
    %316 = vector.broadcast %cst_235 : f32 to vector<1x256xf32>
    %317 = arith.maximumf %315, %316 : vector<1x256xf32>
    %c0_236 = arith.constant 0 : index
    %c0_237 = arith.constant 0 : index
    %318 = vector.load %arg28[%c0_236, %c0_237] : memref<8x256xf32, #tpu.memory_space<vmem>>, vector<1x256xf32>
    tpu.vector_store %arg28[%c0_236, %c0_237], %317 {strides = array<i32>} : memref<8x256xf32, #tpu.memory_space<vmem>>, vector<1x256xf32>,
    %319 = vector.extract_strided_slice %312 {offsets = [0, 256], sizes = [1, 256], strides = [1, 1]} : vector<1x2048xf32> to vector<1x256xf32>
    %c0_238 = arith.constant 0 : index
    %c0_239 = arith.constant 0 : index
    %320 = vector.load %arg17[%c0_238, %c0_239] : memref<1x256xf32, #tpu.memory_space<vmem>>, vector<1x256xf32>
    %321 = arith.addf %319, %320 : vector<1x256xf32>
    %cst_240 = arith.constant 0.000000e+00 : f32
    %322 = vector.broadcast %cst_240 : f32 to vector<1x256xf32>
    %323 = arith.maximumf %321, %322 : vector<1x256xf32>
    %c1_241 = arith.constant 1 : index
    %c0_242 = arith.constant 0 : index
    %324 = vector.load %arg28[%c1_241, %c0_242] : memref<8x256xf32, #tpu.memory_space<vmem>>, vector<1x256xf32>
    tpu.vector_store %arg28[%c1_241, %c0_242], %323 {strides = array<i32>} : memref<8x256xf32, #tpu.memory_space<vmem>>, vector<1x256xf32>,
    %325 = vector.extract_strided_slice %312 {offsets = [0, 512], sizes = [1, 256], strides = [1, 1]} : vector<1x2048xf32> to vector<1x256xf32>
    %c0_243 = arith.constant 0 : index
    %c0_244 = arith.constant 0 : index
    %326 = vector.load %arg17[%c0_243, %c0_244] : memref<1x256xf32, #tpu.memory_space<vmem>>, vector<1x256xf32>
    %327 = arith.addf %325, %326 : vector<1x256xf32>
    %cst_245 = arith.constant 0.000000e+00 : f32
    %328 = vector.broadcast %cst_245 : f32 to vector<1x256xf32>
    %329 = arith.maximumf %327, %328 : vector<1x256xf32>
    %c2_246 = arith.constant 2 : index
    %c0_247 = arith.constant 0 : index
    %330 = vector.load %arg28[%c2_246, %c0_247] : memref<8x256xf32, #tpu.memory_space<vmem>>, vector<1x256xf32>
    tpu.vector_store %arg28[%c2_246, %c0_247], %329 {strides = array<i32>} : memref<8x256xf32, #tpu.memory_space<vmem>>, vector<1x256xf32>,
    %331 = vector.extract_strided_slice %312 {offsets = [0, 768], sizes = [1, 256], strides = [1, 1]} : vector<1x2048xf32> to vector<1x256xf32>
    %c0_248 = arith.constant 0 : index
    %c0_249 = arith.constant 0 : index
    %332 = vector.load %arg17[%c0_248, %c0_249] : memref<1x256xf32, #tpu.memory_space<vmem>>, vector<1x256xf32>
    %333 = arith.addf %331, %332 : vector<1x256xf32>
    %cst_250 = arith.constant 0.000000e+00 : f32
    %334 = vector.broadcast %cst_250 : f32 to vector<1x256xf32>
    %335 = arith.maximumf %333, %334 : vector<1x256xf32>
    %c3_251 = arith.constant 3 : index
    %c0_252 = arith.constant 0 : index
    %336 = vector.load %arg28[%c3_251, %c0_252] : memref<8x256xf32, #tpu.memory_space<vmem>>, vector<1x256xf32>
    tpu.vector_store %arg28[%c3_251, %c0_252], %335 {strides = array<i32>} : memref<8x256xf32, #tpu.memory_space<vmem>>, vector<1x256xf32>,
    %337 = vector.extract_strided_slice %312 {offsets = [0, 1024], sizes = [1, 256], strides = [1, 1]} : vector<1x2048xf32> to vector<1x256xf32>
    %c0_253 = arith.constant 0 : index
    %c0_254 = arith.constant 0 : index
    %338 = vector.load %arg17[%c0_253, %c0_254] : memref<1x256xf32, #tpu.memory_space<vmem>>, vector<1x256xf32>
    %339 = arith.addf %337, %338 : vector<1x256xf32>
    %cst_255 = arith.constant 0.000000e+00 : f32
    %340 = vector.broadcast %cst_255 : f32 to vector<1x256xf32>
    %341 = arith.maximumf %339, %340 : vector<1x256xf32>
    %c4_256 = arith.constant 4 : index
    %c0_257 = arith.constant 0 : index
    %342 = vector.load %arg28[%c4_256, %c0_257] : memref<8x256xf32, #tpu.memory_space<vmem>>, vector<1x256xf32>
    tpu.vector_store %arg28[%c4_256, %c0_257], %341 {strides = array<i32>} : memref<8x256xf32, #tpu.memory_space<vmem>>, vector<1x256xf32>,
    %343 = vector.extract_strided_slice %312 {offsets = [0, 1280], sizes = [1, 256], strides = [1, 1]} : vector<1x2048xf32> to vector<1x256xf32>
    %c0_258 = arith.constant 0 : index
    %c0_259 = arith.constant 0 : index
    %344 = vector.load %arg17[%c0_258, %c0_259] : memref<1x256xf32, #tpu.memory_space<vmem>>, vector<1x256xf32>
    %345 = arith.addf %343, %344 : vector<1x256xf32>
    %cst_260 = arith.constant 0.000000e+00 : f32
    %346 = vector.broadcast %cst_260 : f32 to vector<1x256xf32>
    %347 = arith.maximumf %345, %346 : vector<1x256xf32>
    %c5_261 = arith.constant 5 : index
    %c0_262 = arith.constant 0 : index
    %348 = vector.load %arg28[%c5_261, %c0_262] : memref<8x256xf32, #tpu.memory_space<vmem>>, vector<1x256xf32>
    tpu.vector_store %arg28[%c5_261, %c0_262], %347 {strides = array<i32>} : memref<8x256xf32, #tpu.memory_space<vmem>>, vector<1x256xf32>,
    %349 = vector.extract_strided_slice %312 {offsets = [0, 1536], sizes = [1, 256], strides = [1, 1]} : vector<1x2048xf32> to vector<1x256xf32>
    %c0_263 = arith.constant 0 : index
    %c0_264 = arith.constant 0 : index
    %350 = vector.load %arg17[%c0_263, %c0_264] : memref<1x256xf32, #tpu.memory_space<vmem>>, vector<1x256xf32>
    %351 = arith.addf %349, %350 : vector<1x256xf32>
    %cst_265 = arith.constant 0.000000e+00 : f32
    %352 = vector.broadcast %cst_265 : f32 to vector<1x256xf32>
    %353 = arith.maximumf %351, %352 : vector<1x256xf32>
    %c6_266 = arith.constant 6 : index
    %c0_267 = arith.constant 0 : index
    %354 = vector.load %arg28[%c6_266, %c0_267] : memref<8x256xf32, #tpu.memory_space<vmem>>, vector<1x256xf32>
    tpu.vector_store %arg28[%c6_266, %c0_267], %353 {strides = array<i32>} : memref<8x256xf32, #tpu.memory_space<vmem>>, vector<1x256xf32>,
    %355 = vector.extract_strided_slice %312 {offsets = [0, 1792], sizes = [1, 256], strides = [1, 1]} : vector<1x2048xf32> to vector<1x256xf32>
    %c0_268 = arith.constant 0 : index
    %c0_269 = arith.constant 0 : index
    %356 = vector.load %arg17[%c0_268, %c0_269] : memref<1x256xf32, #tpu.memory_space<vmem>>, vector<1x256xf32>
    %357 = arith.addf %355, %356 : vector<1x256xf32>
    %cst_270 = arith.constant 0.000000e+00 : f32
    %358 = vector.broadcast %cst_270 : f32 to vector<1x256xf32>
    %359 = arith.maximumf %357, %358 : vector<1x256xf32>
    %c7_271 = arith.constant 7 : index
    %c0_272 = arith.constant 0 : index
    %360 = vector.load %arg28[%c7_271, %c0_272] : memref<8x256xf32, #tpu.memory_space<vmem>>, vector<1x256xf32>
    tpu.vector_store %arg28[%c7_271, %c0_272], %359 {strides = array<i32>} : memref<8x256xf32, #tpu.memory_space<vmem>>, vector<1x256xf32>,
    %c0_273 = arith.constant 0 : index
    %c0_274 = arith.constant 0 : index
    %361 = vector.load %arg28[%c0_273, %c0_274] : memref<8x256xf32, #tpu.memory_space<vmem>>, vector<8x256xf32>
    %362 = arith.truncf %361 : vector<8x256xf32> to vector<8x256xbf16>
    %c0_275 = arith.constant 0 : index
    %c0_276 = arith.constant 0 : index
    %363 = vector.load %arg18[%c0_275, %c0_276] : memref<256x512xbf16, #tpu.memory_space<vmem>>, vector<256x512xbf16>
    %cst_277 = arith.constant dense<0.000000e+00> : vector<8x512xf32>
    %364 = tpu.matmul %362, %363, %cst_277 {dimension_numbers = #tpu.dot_dimension_numbers<[1], [0], [0], [1], [0, 0, 1, 1], [], []>} : vector<8x256xbf16>, vector<256x512xbf16>, vector<8x512xf32> -> vector<8x512xf32>
    %c0_278 = arith.constant 0 : index
    %c0_279 = arith.constant 0 : index
    %365 = vector.load %arg19[%c0_278, %c0_279] : memref<1x512xf32, #tpu.memory_space<vmem>>, vector<1x512xf32>
    %366 = vector.broadcast %365 : vector<1x512xf32> to vector<8x512xf32>
    %367 = arith.addf %364, %366 : vector<8x512xf32>
    %cst_280 = arith.constant 0.000000e+00 : f32
    %368 = vector.broadcast %cst_280 : f32 to vector<8x512xf32>
    %369 = arith.maximumf %367, %368 : vector<8x512xf32>
    %370 = arith.truncf %369 : vector<8x512xf32> to vector<8x512xbf16>
    %c0_281 = arith.constant 0 : index
    %c0_282 = arith.constant 0 : index
    %c0_283 = arith.constant 0 : index
    %371 = vector.load %arg20[%c0_281, %c0_282, %c0_283] : memref<4x512x96xbf16, #tpu.memory_space<vmem>>, vector<1x512x96xbf16>
    %372 = vector.shape_cast %371 : vector<1x512x96xbf16> to vector<512x96xbf16>
    %cst_284 = arith.constant dense<0.000000e+00> : vector<8x96xf32>
    %373 = tpu.matmul %370, %372, %cst_284 {dimension_numbers = #tpu.dot_dimension_numbers<[1], [0], [0], [1], [0, 0, 1, 1], [], []>} : vector<8x512xbf16>, vector<512x96xbf16>, vector<8x96xf32> -> vector<8x96xf32>
    %c0_285 = arith.constant 0 : index
    %c0_286 = arith.constant 0 : index
    %374 = vector.load %arg21[%c0_285, %c0_286] : memref<1x96xf32, #tpu.memory_space<vmem>>, vector<1x96xf32>
    %375 = vector.broadcast %374 : vector<1x96xf32> to vector<8x96xf32>
    %376 = arith.addf %373, %375 : vector<8x96xf32>
    %377 = arith.negf %376 : vector<8x96xf32>
    %378 = math.exp %377 : vector<8x96xf32>
    %cst_287 = arith.constant 1.000000e+00 : f32
    %379 = vector.broadcast %cst_287 : f32 to vector<8x96xf32>
    %380 = arith.addf %379, %378 : vector<8x96xf32>
    %381 = arith.divf %379, %380 : vector<8x96xf32>
    %c0_288 = arith.constant 0 : index
    %c0_289 = arith.constant 0 : index
    %c0_290 = arith.constant 0 : index
    %c0_291 = arith.constant 0 : index
    %382 = vector.load %arg23[%c0_288, %c0_289, %c0_290, %c0_291] : memref<1x4x8x96xf32, #tpu.memory_space<vmem>>, vector<1x1x8x96xf32>
    %383 = vector.shape_cast %382 : vector<1x1x8x96xf32> to vector<8x96xf32>
    %384 = vector.shape_cast %381 : vector<8x96xf32> to vector<1x1x8x96xf32>
    tpu.vector_store %arg23[%c0_288, %c0_289, %c0_290, %c0_291], %384 {strides = array<i32>} : memref<1x4x8x96xf32, #tpu.memory_space<vmem>>, vector<1x1x8x96xf32>,
    %c1_292 = arith.constant 1 : index
    %c0_293 = arith.constant 0 : index
    %c0_294 = arith.constant 0 : index
    %385 = vector.load %arg20[%c1_292, %c0_293, %c0_294] : memref<4x512x96xbf16, #tpu.memory_space<vmem>>, vector<1x512x96xbf16>
    %386 = vector.shape_cast %385 : vector<1x512x96xbf16> to vector<512x96xbf16>
    %cst_295 = arith.constant dense<0.000000e+00> : vector<8x96xf32>
    %387 = tpu.matmul %370, %386, %cst_295 {dimension_numbers = #tpu.dot_dimension_numbers<[1], [0], [0], [1], [0, 0, 1, 1], [], []>} : vector<8x512xbf16>, vector<512x96xbf16>, vector<8x96xf32> -> vector<8x96xf32>
    %c0_296 = arith.constant 0 : index
    %c0_297 = arith.constant 0 : index
    %388 = vector.load %arg21[%c0_296, %c0_297] : memref<1x96xf32, #tpu.memory_space<vmem>>, vector<1x96xf32>
    %389 = vector.broadcast %388 : vector<1x96xf32> to vector<8x96xf32>
    %390 = arith.addf %387, %389 : vector<8x96xf32>
    %391 = arith.negf %390 : vector<8x96xf32>
    %392 = math.exp %391 : vector<8x96xf32>
    %cst_298 = arith.constant 1.000000e+00 : f32
    %393 = vector.broadcast %cst_298 : f32 to vector<8x96xf32>
    %394 = arith.addf %393, %392 : vector<8x96xf32>
    %395 = arith.divf %393, %394 : vector<8x96xf32>
    %c0_299 = arith.constant 0 : index
    %c1_300 = arith.constant 1 : index
    %c0_301 = arith.constant 0 : index
    %c0_302 = arith.constant 0 : index
    %396 = vector.load %arg23[%c0_299, %c1_300, %c0_301, %c0_302] : memref<1x4x8x96xf32, #tpu.memory_space<vmem>>, vector<1x1x8x96xf32>
    %397 = vector.shape_cast %396 : vector<1x1x8x96xf32> to vector<8x96xf32>
    %398 = vector.shape_cast %395 : vector<8x96xf32> to vector<1x1x8x96xf32>
    tpu.vector_store %arg23[%c0_299, %c1_300, %c0_301, %c0_302], %398 {strides = array<i32>} : memref<1x4x8x96xf32, #tpu.memory_space<vmem>>, vector<1x1x8x96xf32>,
    %c2_303 = arith.constant 2 : index
    %c0_304 = arith.constant 0 : index
    %c0_305 = arith.constant 0 : index
    %399 = vector.load %arg20[%c2_303, %c0_304, %c0_305] : memref<4x512x96xbf16, #tpu.memory_space<vmem>>, vector<1x512x96xbf16>
    %400 = vector.shape_cast %399 : vector<1x512x96xbf16> to vector<512x96xbf16>
    %cst_306 = arith.constant dense<0.000000e+00> : vector<8x96xf32>
    %401 = tpu.matmul %370, %400, %cst_306 {dimension_numbers = #tpu.dot_dimension_numbers<[1], [0], [0], [1], [0, 0, 1, 1], [], []>} : vector<8x512xbf16>, vector<512x96xbf16>, vector<8x96xf32> -> vector<8x96xf32>
    %c0_307 = arith.constant 0 : index
    %c0_308 = arith.constant 0 : index
    %402 = vector.load %arg21[%c0_307, %c0_308] : memref<1x96xf32, #tpu.memory_space<vmem>>, vector<1x96xf32>
    %403 = vector.broadcast %402 : vector<1x96xf32> to vector<8x96xf32>
    %404 = arith.addf %401, %403 : vector<8x96xf32>
    %405 = arith.negf %404 : vector<8x96xf32>
    %406 = math.exp %405 : vector<8x96xf32>
    %cst_309 = arith.constant 1.000000e+00 : f32
    %407 = vector.broadcast %cst_309 : f32 to vector<8x96xf32>
    %408 = arith.addf %407, %406 : vector<8x96xf32>
    %409 = arith.divf %407, %408 : vector<8x96xf32>
    %c0_310 = arith.constant 0 : index
    %c2_311 = arith.constant 2 : index
    %c0_312 = arith.constant 0 : index
    %c0_313 = arith.constant 0 : index
    %410 = vector.load %arg23[%c0_310, %c2_311, %c0_312, %c0_313] : memref<1x4x8x96xf32, #tpu.memory_space<vmem>>, vector<1x1x8x96xf32>
    %411 = vector.shape_cast %410 : vector<1x1x8x96xf32> to vector<8x96xf32>
    %412 = vector.shape_cast %409 : vector<8x96xf32> to vector<1x1x8x96xf32>
    tpu.vector_store %arg23[%c0_310, %c2_311, %c0_312, %c0_313], %412 {strides = array<i32>} : memref<1x4x8x96xf32, #tpu.memory_space<vmem>>, vector<1x1x8x96xf32>,
    %c3_314 = arith.constant 3 : index
    %c0_315 = arith.constant 0 : index
    %c0_316 = arith.constant 0 : index
    %413 = vector.load %arg20[%c3_314, %c0_315, %c0_316] : memref<4x512x96xbf16, #tpu.memory_space<vmem>>, vector<1x512x96xbf16>
    %414 = vector.shape_cast %413 : vector<1x512x96xbf16> to vector<512x96xbf16>
    %cst_317 = arith.constant dense<0.000000e+00> : vector<8x96xf32>
    %415 = tpu.matmul %370, %414, %cst_317 {dimension_numbers = #tpu.dot_dimension_numbers<[1], [0], [0], [1], [0, 0, 1, 1], [], []>} : vector<8x512xbf16>, vector<512x96xbf16>, vector<8x96xf32> -> vector<8x96xf32>
    %c0_318 = arith.constant 0 : index
    %c0_319 = arith.constant 0 : index
    %416 = vector.load %arg21[%c0_318, %c0_319] : memref<1x96xf32, #tpu.memory_space<vmem>>, vector<1x96xf32>
    %417 = vector.broadcast %416 : vector<1x96xf32> to vector<8x96xf32>
    %418 = arith.addf %415, %417 : vector<8x96xf32>
    %419 = arith.negf %418 : vector<8x96xf32>
    %420 = math.exp %419 : vector<8x96xf32>
    %cst_320 = arith.constant 1.000000e+00 : f32
    %421 = vector.broadcast %cst_320 : f32 to vector<8x96xf32>
    %422 = arith.addf %421, %420 : vector<8x96xf32>
    %423 = arith.divf %421, %422 : vector<8x96xf32>
    %c0_321 = arith.constant 0 : index
    %c3_322 = arith.constant 3 : index
    %c0_323 = arith.constant 0 : index
    %c0_324 = arith.constant 0 : index
    %424 = vector.load %arg23[%c0_321, %c3_322, %c0_323, %c0_324] : memref<1x4x8x96xf32, #tpu.memory_space<vmem>>, vector<1x1x8x96xf32>
    %425 = vector.shape_cast %424 : vector<1x1x8x96xf32> to vector<8x96xf32>
    %426 = vector.shape_cast %423 : vector<8x96xf32> to vector<1x1x8x96xf32>
    tpu.vector_store %arg23[%c0_321, %c3_322, %c0_323, %c0_324], %426 {strides = array<i32>} : memref<1x4x8x96xf32, #tpu.memory_space<vmem>>, vector<1x1x8x96xf32>,
    return
  }
  func.func @transform_0(%arg0: i32) -> (i32, i32, i32) {
    %c0_i32 = arith.constant 0 : i32
    %c0_i32_0 = arith.constant 0 : i32
    %c0_i32_1 = arith.constant 0 : i32
    return %arg0, %c0_i32, %c0_i32_0 : i32, i32, i32
  }
  func.func @transform_1(%arg0: i32) -> (i32, i32, i32) {
    %c0_i32 = arith.constant 0 : i32
    %c0_i32_0 = arith.constant 0 : i32
    %c0_i32_1 = arith.constant 0 : i32
    %c0_i32_2 = arith.constant 0 : i32
    return %c0_i32, %c0_i32_0, %c0_i32_1 : i32, i32, i32
  }
  func.func @transform_2(%arg0: i32) -> (i32, i32) {
    %c0_i32 = arith.constant 0 : i32
    %c0_i32_0 = arith.constant 0 : i32
    %c0_i32_1 = arith.constant 0 : i32
    return %c0_i32, %c0_i32_0 : i32, i32
  }
  func.func @transform_3(%arg0: i32) -> (i32, i32, i32) {
    %c0_i32 = arith.constant 0 : i32
    %c0_i32_0 = arith.constant 0 : i32
    %c0_i32_1 = arith.constant 0 : i32
    %c0_i32_2 = arith.constant 0 : i32
    return %c0_i32, %c0_i32_0, %c0_i32_1 : i32, i32, i32
  }
  func.func @transform_4(%arg0: i32) -> (i32, i32) {
    %c0_i32 = arith.constant 0 : i32
    %c0_i32_0 = arith.constant 0 : i32
    %c0_i32_1 = arith.constant 0 : i32
    return %c0_i32, %c0_i32_0 : i32, i32
  }
  func.func @transform_5(%arg0: i32) -> (i32, i32, i32) {
    %c0_i32 = arith.constant 0 : i32
    %c0_i32_0 = arith.constant 0 : i32
    %c0_i32_1 = arith.constant 0 : i32
    %c0_i32_2 = arith.constant 0 : i32
    return %c0_i32, %c0_i32_0, %c0_i32_1 : i32, i32, i32
  }
  func.func @transform_6(%arg0: i32) -> (i32, i32) {
    %c0_i32 = arith.constant 0 : i32
    %c0_i32_0 = arith.constant 0 : i32
    %c0_i32_1 = arith.constant 0 : i32
    return %c0_i32, %c0_i32_0 : i32, i32
  }
  func.func @transform_7(%arg0: i32) -> (i32, i32) {
    %c0_i32 = arith.constant 0 : i32
    %c0_i32_0 = arith.constant 0 : i32
    %c0_i32_1 = arith.constant 0 : i32
    return %c0_i32, %c0_i32_0 : i32, i32
  }
  func.func @transform_8(%arg0: i32) -> (i32, i32) {
    %c0_i32 = arith.constant 0 : i32
    %c0_i32_0 = arith.constant 0 : i32
    %c0_i32_1 = arith.constant 0 : i32
    return %c0_i32, %c0_i32_0 : i32, i32
  }
  func.func @transform_9(%arg0: i32) -> (i32, i32) {
    %c0_i32 = arith.constant 0 : i32
    %c0_i32_0 = arith.constant 0 : i32
    %c0_i32_1 = arith.constant 0 : i32
    return %c0_i32, %c0_i32_0 : i32, i32
  }
  func.func @transform_10(%arg0: i32) -> (i32, i32) {
    %c0_i32 = arith.constant 0 : i32
    %c0_i32_0 = arith.constant 0 : i32
    %c0_i32_1 = arith.constant 0 : i32
    return %c0_i32, %c0_i32_0 : i32, i32
  }
  func.func @transform_11(%arg0: i32) -> (i32, i32) {
    %c0_i32 = arith.constant 0 : i32
    %c0_i32_0 = arith.constant 0 : i32
    %c0_i32_1 = arith.constant 0 : i32
    return %c0_i32, %c0_i32_0 : i32, i32
  }
  func.func @transform_12(%arg0: i32) -> (i32, i32) {
    %c0_i32 = arith.constant 0 : i32
    %c0_i32_0 = arith.constant 0 : i32
    %c0_i32_1 = arith.constant 0 : i32
    return %c0_i32, %c0_i32_0 : i32, i32
  }
  func.func @transform_13(%arg0: i32) -> (i32, i32) {
    %c0_i32 = arith.constant 0 : i32
    %c0_i32_0 = arith.constant 0 : i32
    %c0_i32_1 = arith.constant 0 : i32
    return %c0_i32, %c0_i32_0 : i32, i32
  }
  func.func @transform_14(%arg0: i32) -> (i32, i32) {
    %c0_i32 = arith.constant 0 : i32
    %c0_i32_0 = arith.constant 0 : i32
    %c0_i32_1 = arith.constant 0 : i32
    return %c0_i32, %c0_i32_0 : i32, i32
  }
  func.func @transform_15(%arg0: i32) -> (i32, i32) {
    %c0_i32 = arith.constant 0 : i32
    %c0_i32_0 = arith.constant 0 : i32
    %c0_i32_1 = arith.constant 0 : i32
    return %c0_i32, %c0_i32_0 : i32, i32
  }
  func.func @transform_16(%arg0: i32) -> (i32, i32) {
    %c0_i32 = arith.constant 0 : i32
    %c0_i32_0 = arith.constant 0 : i32
    %c0_i32_1 = arith.constant 0 : i32
    return %c0_i32, %c0_i32_0 : i32, i32
  }
  func.func @transform_17(%arg0: i32) -> (i32, i32) {
    %c0_i32 = arith.constant 0 : i32
    %c0_i32_0 = arith.constant 0 : i32
    %c0_i32_1 = arith.constant 0 : i32
    return %c0_i32, %c0_i32_0 : i32, i32
  }
  func.func @transform_18(%arg0: i32) -> (i32, i32) {
    %c0_i32 = arith.constant 0 : i32
    %c0_i32_0 = arith.constant 0 : i32
    %c0_i32_1 = arith.constant 0 : i32
    return %c0_i32, %c0_i32_0 : i32, i32
  }
  func.func @transform_19(%arg0: i32) -> (i32, i32, i32) {
    %c0_i32 = arith.constant 0 : i32
    %c0_i32_0 = arith.constant 0 : i32
    %c0_i32_1 = arith.constant 0 : i32
    %c0_i32_2 = arith.constant 0 : i32
    return %c0_i32, %c0_i32_0, %c0_i32_1 : i32, i32, i32
  }
  func.func @transform_20(%arg0: i32) -> (i32, i32) {
    %c0_i32 = arith.constant 0 : i32
    %c0_i32_0 = arith.constant 0 : i32
    %c0_i32_1 = arith.constant 0 : i32
    return %c0_i32, %c0_i32_0 : i32, i32
  }
  func.func @transform_21(%arg0: i32) -> (i32, i32, i32) {
    %c0_i32 = arith.constant 0 : i32
    %c0_i32_0 = arith.constant 0 : i32
    %c0_i32_1 = arith.constant 0 : i32
    return %arg0, %c0_i32, %c0_i32_0 : i32, i32, i32
  }
  func.func @transform_22(%arg0: i32) -> (i32, i32, i32, i32) {
    %c0_i32 = arith.constant 0 : i32
    %c0_i32_0 = arith.constant 0 : i32
    %c0_i32_1 = arith.constant 0 : i32
    %c0_i32_2 = arith.constant 0 : i32
    return %arg0, %c0_i32, %c0_i32_0, %c0_i32_1 : i32, i32, i32, i32
  }
}

</mosaic_0001>

<bundles_post_ra>
// kernel: forward.1
= control target key start
LH: loop header
LB: loop body
LE: loop exit
PB: predicated region body
PF: predicated region fallthrough
CT: control target
= control target key end

     0   :  { %s24372_s0 = inlined_call_operand.vmem [shape: f32[2,34,96], index: 0, kind: input, shape index: {}]   ;;  %s24373_s1 = inlined_call_operand.hbm [shape: bf16[3,96,512], index: 1, kind: input, shape index: {}]   ;;  %s24374_s2 = inlined_call_operand.vmem [shape: f32[1,512], index: 2, kind: input, shape index: {}]   ;;  %s24375_s3 = inlined_call_operand.vmem [shape: bf16[3,496,512], index: 3, kind: input, shape index: {}]   ;;  %s24376_s4 = inlined_call_operand.vmem [shape: f32[1,512], index: 4, kind: input, shape index: {}]   ;;  %s24377_s5 = inlined_call_operand.vmem [shape: bf16[3,480,32], index: 5, kind: input, shape index: {}]   ;;  %s24378_s6 = inlined_call_operand.vmem [shape: f32[1,32], index: 6, kind: input, shape index: {}]   ;;  %s24379_s7 = inlined_call_operand.vmem [shape: bf16[256,512], index: 7, kind: input, shape index: {}]   ;;  %s24380_s8 = inlined_call_operand.vmem [shape: f32[1,512], index: 8, kind: input, shape index: {}]   ;;  %s24381_s9 = inlined_call_operand.hbm [shape: bf16[512,256], index: 9, kind: input, shape index: {}]   ;;  %s24382_s10 = inlined_call_operand.vmem [shape: f32[1,256], index: 10, kind: input, shape index: {}]   ;;  %s24383_s11 = inlined_call_operand.hbm [shape: bf16[256,512], index: 11, kind: input, shape index: {}]   ;;  %s24384_s12 = inlined_call_operand.vmem [shape: f32[1,512], index: 12, kind: input, shape index: {}]   ;;  %s24385_s13 = inlined_call_operand.hbm [shape: bf16[512,256], index: 13, kind: input, shape index: {}]   ;;  %s24386_s14 = inlined_call_operand.hbm [shape: f32[1,256], index: 14, kind: input, shape index: {}]   ;;  %s24387_s15 = inlined_call_operand.hbm [shape: bf16[256,2048], index: 15, kind: input, shape index: {}]   ;;  %s24388_s16 = inlined_call_operand.hbm [shape: f32[1,256], index: 16, kind: input, shape index: {}]   ;;  %s24389_s17 = inlined_call_operand.hbm [shape: bf16[256,512], index: 17, kind: input, shape index: {}]   ;;  %s24390_s18 = inlined_call_operand.hbm [shape: f32[1,512], index: 18, kind: input, shape index: {}]   ;;  %s24391_s19 = inlined_call_operand.vmem [shape: bf16[4,512,96], index: 19, kind: input, shape index: {}]   ;;  %s24392_s20 = inlined_call_operand.hbm [shape: f32[1,96], index: 20, kind: input, shape index: {}]   ;;  %s24393_s21 = inlined_call_operand.vmem [shape: f32[2,1,512], index: 21, kind: output, shape index: {0}]   ;;  %s24394_s22 = inlined_call_operand.vmem [shape: f32[2,4,8,96], index: 22, kind: output, shape index: {1}]  }
   0x1   :  { %24398 = sst [smem:[#allocation30_spill]] %s24372_s0 }
   0x2   :  { %24399 = sst [smem:[#allocation31_spill]] %s24373_s1 }
   0x3   :  { %24400 = sst [smem:[#allocation32_spill]] %s24374_s2 }
   0x4   :  { %24401 = sst [smem:[#allocation33_spill]] %s24375_s3 }
   0x5   :  { %24402 = sst [smem:[#allocation34_spill]] %s24376_s4 }
   0x6   :  { %24403 = sst [smem:[#allocation35_spill]] %s24377_s5 }
   0x7   :  { %24404 = sst [smem:[#allocation36_spill]] %s24378_s6 }
   0x8   :  { %24405 = sst [smem:[#allocation37_spill]] %s24381_s9 }
   0x9   :  { %24406 = sst [smem:[#allocation38_spill]] %s24385_s13 }
   0xa   :  { %24407 = sst [smem:[#allocation39_spill]] %s24387_s15 }
   0xb   :  { %24408 = sst [smem:[#allocation40_spill]] %s24394_s22 }
   0xc   :  { %28 = vsyncpa [#allocation8], 0 }
   0xd   :  { %29 = vsyncpa [#allocation10], 0 }
   0xe   :  { %30 = vsyncpa [#allocation13], 0 }
   0xf   :  { %31 = vsyncpa [#allocation16], 0 }
  0x10   :  { %32 = vsyncpa [#allocation19], 0 }
  0x11   :  { %33 = vsyncpa [#allocation22], 0  ;;  %s20055_s3 = smov 0  }
  0x12 LB: > { %24409 = sst [smem:[#allocation29_spill]] %s19919_s3  ;;  %s20064_s4 = sadd.s32 4294967295, %s19919_s3   ;;  %s19919_s3 = sphi %s20055_s3, %s39_s3  }
  0x13   : > { %s24410_s9 = sld [smem:[#allocation37_spill]]  ;;  %p12587_p0 = scmp.ge.s32.totalorder %s19919_s3, 1 }
  0x14   : > { %p542_p1 = scmp.lt.s32.totalorder %s19919_s3, 3  ;;  %p19517_p2 = scmp.eq.s32.totalorder %s20064_s4, 0 }
  0x15   : > { %s19921_s23 = smov [#allocation9]   ;;  %s24412_s13 = sld [smem:[#allocation38_spill]] }
  0x16   : > { %p20069_p3 = pnand %p12587_p0, %p542_p1  ;;  %s590_s1 = sshll.u32 %s19921_s23, 4  ;;  %s591_s1 = int_to_ptr.vmem [resolvable:$true] %s590_s1 }
  0x17   : > { %s19922_s26 = smov [#allocation12]   ;;  %s24414_s15 = sld [smem:[#allocation39_spill]] }
  0x18   : > { %p19486_p4 = pneg %p20069_p3  ;;  %s624_s2 = sshll.u32 %s19922_s26, 4  ;;  %s625_s2 = int_to_ptr.vmem [resolvable:$true] %s624_s2 }
  0x19   : > { %s588_s30 = sshll.u32 %s24410_s9, 4  ;;  %s19923_s23 = smov 128   ;;  %s589_s30 = int_to_ptr.hbm [resolvable:$true] %s588_s30 }
  0x1a   : > { %p20080_p5 = pnand %p19517_p2, %p19486_p4  ;;  %s19924_s9 = smov 8  }
  0x1b   : > { %s622_s6 = sshll.u32 %s24412_s13, 4  ;;  %s19925_s5 = smov [#allocation15]   ;;  %s623_s6 = int_to_ptr.hbm [resolvable:$true] %s622_s6 }
  0x1c   : > { %19492 = dma.hbm_to_vmem [thread:$0]  (!%p20080_p5), %s589_s30, 8192, %s591_s1, [#allocation10], %s19923_s23, %s19923_s23, %s19924_s9  }
  0x1d   : > { %s648_s29 = sshll.u32 %s24414_s15, 4  ;;  %s650_s24 = sshll.u32 %s19925_s5, 4  ;;  %s649_s29 = int_to_ptr.hbm [resolvable:$true] %s648_s29  ;;  %s651_s24 = int_to_ptr.vmem [resolvable:$true] %s650_s24 }
  0x1e   : > { %19498 = dma.hbm_to_vmem [thread:$0]  (!%p20080_p5), %s623_s6, 8192, %s625_s2, [#allocation13], %s19923_s23, %s19923_s23, %s19924_s9  }
  0x1f   : > { %s19926_s13 = smov 1024   ;;  %s19927_s3 = smov 64  }
  0x20   : > { %19504 = dma.hbm_to_vmem [thread:$0]  (!%p20080_p5), %s649_s29, 32768, %s651_s24, [#allocation16], %s19926_s13, %s19926_s13, %s19927_s3  }
  0x21   : > { %s674_s27 = sshll.u32 %s24389_s17, 4  ;;  %s19928_s28 = smov [#allocation18]   ;;  %s675_s27 = int_to_ptr.hbm [resolvable:$true] %s674_s27 }
  0x22   : > { %s676_s15 = sshll.u32 %s19928_s28, 4  ;;  %s24415_s1 = sld [smem:[#allocation31_spill]]  ;;  %s677_s15 = int_to_ptr.vmem [resolvable:$true] %s676_s15 }
  0x23   : > { %s19929_s2 = smov 256   ;;  %s19930_s23 = smov 16  }
  0x24   : > { %19510 = dma.hbm_to_vmem [thread:$0]  (!%p20080_p5), %s675_s27, 8192, %s677_s15, [#allocation19], %s19929_s2, %s19929_s2, %s19930_s23  }
  0x25   : > { %s19931_s13 = smov [#allocation7]   ;;  %s605_s5 = sshll.u32 %s24383_s11, 4  ;;  %s606_s5 = int_to_ptr.hbm [resolvable:$true] %s605_s5 }
  0x26   : > { %s555_s3 = sshll.u32 %s19931_s13, 4  ;;  %s637_s28 = sshll.u32 %s24386_s14, 4  ;;  %s556_s3 = int_to_ptr.vmem [resolvable:$true] %s555_s3  ;;  %s638_s28 = int_to_ptr.hbm [resolvable:$true] %s637_s28 }
  0x27   : > { %s19932_s30 = smov [#allocation11]   ;;  %s19933_s15 = smov [#allocation14]  }
  0x28   : > { %s553_s6 = sshll.u32 %s24415_s1, 4  ;;  %s607_s9 = sshll.u32 %s19932_s30, 4  ;;  %s554_s6 = int_to_ptr.hbm [resolvable:$true] %s553_s6  ;;  %s608_s9 = int_to_ptr.vmem [resolvable:$true] %s607_s9 }
  0x29   : > { %19489 = dma.hbm_to_vmem [thread:$0]  (!%p20080_p5), %s554_s6, 9216, %s556_s3, [#allocation8], %s19929_s2, %s19929_s2, %s19930_s23  }
  0x2a   : > { %19495 = dma.hbm_to_vmem [thread:$0]  (!%p20080_p5), %s606_s5, 8192, %s608_s9, [#allocation10], %s19929_s2, %s19929_s2, %s19930_s23  }
  0x2b   : > { %s639_s27 = sshll.u32 %s19933_s15, 4  ;;  %s663_s29 = sshll.u32 %s24388_s16, 4  ;;  %s640_s27 = int_to_ptr.vmem [resolvable:$true] %s639_s27  ;;  %s664_s29 = int_to_ptr.hbm [resolvable:$true] %s663_s29 }
  0x2c   : > { %19501 = dma.hbm_to_vmem [thread:$0]  (!%p20080_p5), %s638_s28, 32, %s640_s27, [#allocation13]  }
  0x2d   : > { %s689_s22 = sshll.u32 %s24390_s18, 4  ;;  %s19934_s24 = smov [#allocation17]   ;;  %s690_s22 = int_to_ptr.hbm [resolvable:$true] %s689_s22 }
  0x2e   : > { %s665_s26 = sshll.u32 %s19934_s24, 4  ;;  %s19935_s2 = smov [#allocation20]   ;;  %s666_s26 = int_to_ptr.vmem [resolvable:$true] %s665_s26 }
  0x2f   : > { %19507 = dma.hbm_to_vmem [thread:$0]  (!%p20080_p5), %s664_s29, 32, %s666_s26, [#allocation16]  }
  0x30   : > { %s691_s23 = sshll.u32 %s19935_s2, 4  ;;  %s704_s9 = sshll.u32 %s24392_s20, 4  ;;  %s692_s23 = int_to_ptr.vmem [resolvable:$true] %s691_s23  ;;  %s705_s9 = int_to_ptr.hbm [resolvable:$true] %s704_s9 }
  0x31   : > { %19513 = dma.hbm_to_vmem [thread:$0]  (!%p20080_p5), %s690_s22, 64, %s692_s23, [#allocation19]  }
  0x32   : > { %s19936_s28 = smov [#allocation21]   ;;  %727 = sbr.rel (%p20069_p3) target bundleno = 2730 (0xaaa), region = 104 }
  0x33   : > { %s706_s15 = sshll.u32 %s19936_s28, 4  ;;  %s707_s15 = int_to_ptr.vmem [resolvable:$true] %s706_s15 }
  0x34   : > { %19516 = dma.hbm_to_vmem [thread:$0]  (!%p20080_p5), %s705_s9, 16, %s707_s15, [#allocation22]  }
  0x37   : > { %19894 = dma.done.wait (%p19517_p2), [#allocation8], 9216  }
  0x38   : > { %19896 = vsyncadd (%p19517_p2), [#allocation8], 4294958080 }
  0x39   : > { %19898 = dma.done.wait (%p19517_p2), [#allocation10], 16384  }
  0x3a   : > { %19900 = vsyncadd (%p19517_p2), [#allocation10], 4294950912 }
  0x3b   : > { %19902 = dma.done.wait (%p19517_p2), [#allocation13], 8224  }
  0x3c   : > { %19904 = vsyncadd (%p19517_p2), [#allocation13], 4294959072 }
  0x3d   : > { %19906 = dma.done.wait (%p19517_p2), [#allocation16], 32800  }
  0x3e   : > { %19908 = vsyncadd (%p19517_p2), [#allocation16], 4294934496 }
  0x3f   : > { %19910 = dma.done.wait (%p19517_p2), [#allocation19], 8256  }
  0x40   : > { %19912 = vsyncadd (%p19517_p2), [#allocation19], 4294959040 }
  0x41   : > { %19914 = dma.done.wait (%p19517_p2), [#allocation22], 16  }
  0x42   : > { %19916 = vsyncadd (%p19517_p2), [#allocation22], 4294967280  ;;  %p839_p6 = scmp.lt.s32.totalorder %s20064_s4, 1  ;;  %v12696_v0 = vld [vmem:[#allocation7 + $0x160] sm:$0xf]  ;;  %s24416_s1 = sld [smem:[#allocation30_spill]] }
  0x43   : > { %v18253_v1 = vld [vmem:[#allocation7 + $0x16c] sm:$0xf0]  ;;  %v18251_v2 = vld [vmem:[#allocation7 + $0x164] sm:$0xf]  ;;  %v12698_v4 = vld [vmem:[#allocation7 + $0x170] sm:$0xf0] }
  0x44   : > { %s24434_s4 = smov (!%p839_p6, %s20064_s4), 1  ;;  %v12697_v3 = vor.u32 %v18253_v1, %v12696_v0  ;;  %v12704_v5 = vld [vmem:[#allocation7 + $0x168] sm:$0xf]  ;;  %v18254_v6 = vld [vmem:[#allocation7 + $0x174] sm:$0xf0]  ;;  %v12701_v7 = vor.u32 %v18251_v2, %v12698_v4  ;;  %vm1052_vm1 = vcmask 785408  }
  0x45   : > { %s19445_s0 = smul.u32 40, %s24434_s4  ;;  %v12705_v8 = vor.u32 %v18254_v6, %v12704_v5  ;;  %v18252_v9 = vld [vmem:[#allocation7 + $0x16c] sm:$0xf]  ;;  %v12706_v10 = vld [vmem:[#allocation7 + $0x178] sm:$0xf0]  ;;  %vm1363_vm2 = vcmask 1046528  }
  0x46   : > { %v12680_v11 = vld [vmem:[#allocation7 + $0x140] sm:$0xf]  ;;  %1061 = vmatpush.bf16.msra.mxu0 %v12697_v3  ;;  %v12709_v12 = vor.u32 %v18252_v9, %v12706_v10  ;;  %v18249_v13 = vld [vmem:[#allocation7 + $0x14c] sm:$0xf0]  ;;  %v18247_v14 = vld [vmem:[#allocation7 + $0x144] sm:$0xf]  ;;  %1080 = vmatpush.bf16.msra.mxu1 %v12701_v7 }
  0x47   : > { %v12682_v15 = vld [vmem:[#allocation7 + $0x150] sm:$0xf0]  ;;  %1099 = vmatpush.bf16.msra.mxu2 %v12705_v8  ;;  %v12681_v16 = vor.u32 %v18249_v13, %v12680_v11  ;;  %v12688_v18 = vld [vmem:[#allocation7 + $0x148] sm:$0xf]  ;;  %v18250_v19 = vld [vmem:[#allocation7 + $0x154] sm:$0xf0] }
  0x48   : > { %v12685_v17 = vor.u32 %v18247_v14, %v12682_v15  ;;  %v18248_v20 = vld [vmem:[#allocation7 + $0x14c] sm:$0xf]  ;;  %1118 = vmatpush.bf16.msra.mxu3 %v12709_v12  ;;  %v12689_v21 = vor.u32 %v18250_v19, %v12688_v18  ;;  %v12690_v22 = vld [vmem:[#allocation7 + $0x158] sm:$0xf0]  ;;  %v12664_v23 = vld [vmem:[#allocation7 + $0x120] sm:$0xf]  ;;  %s20164_s13 = scalar_lea.vmem %s24416_s1, %s19445_s0 }
  0x49   : > { %v18245_v24 = vld [vmem:[#allocation7 + $0x12c] sm:$0xf0]  ;;  %v12693_v25 = vor.u32 %v18248_v20, %v12690_v22  ;;  %v18243_v26 = vld [vmem:[#allocation7 + $0x124] sm:$0xf]  ;;  %v12666_v27 = vld [vmem:[#allocation7 + $0x130] sm:$0xf0] }
  0x4a   : > { %v12672_v28 = vld [vmem:[#allocation7 + $0x128] sm:$0xf]  ;;  %1062 = vmatpush.bf16.msra.mxu0 %v12681_v16  ;;  %v12665_v29 = vor.u32 %v18245_v24, %v12664_v23  ;;  %v18246_v30 = vld [vmem:[#allocation7 + $0x134] sm:$0xf0]  ;;  %v18244_v31 = vld [vmem:[#allocation7 + $0x12c] sm:$0xf]  ;;  %1081 = vmatpush.bf16.msra.mxu1 %v12685_v17  ;;  %v12669_v33 = vor.u32 %v18243_v26, %v12666_v27 }
  0x4b   : > { %v12674_v32 = vld [vmem:[#allocation7 + $0x138] sm:$0xf0]  ;;  %1100 = vmatpush.bf16.msra.mxu2 %v12689_v21  ;;  %v12673_v34 = vor.u32 %v18246_v30, %v12672_v28  ;;  %v12648_v35 = vld [vmem:[#allocation7 + $0x100] sm:$0xf]  ;;  %v18241_v36 = vld [vmem:[#allocation7 + $0x10c] sm:$0xf0] }
  0x4c   : > { %v18239_v37 = vld [vmem:[#allocation7 + $0x104] sm:$0xf]  ;;  %1119 = vmatpush.bf16.msra.mxu3 %v12693_v25  ;;  %v12677_v38 = vor.u32 %v18244_v31, %v12674_v32  ;;  %v12650_v39 = vld [vmem:[#allocation7 + $0x110] sm:$0xf0]  ;;  %v12656_v40 = vld [vmem:[#allocation7 + $0x108] sm:$0xf]  ;;  %v12649_v44 = vor.u32 %v18241_v36, %v12648_v35 }
  0x4d   : > { %v18242_v41 = vld [vmem:[#allocation7 + $0x114] sm:$0xf0]  ;;  %v18240_v42 = vld [vmem:[#allocation7 + $0x10c] sm:$0xf]  ;;  %v12658_v43 = vld [vmem:[#allocation7 + $0x118] sm:$0xf0]  ;;  %v12653_v46 = vor.u32 %v18239_v37, %v12650_v39 }
  0x4e   : > { %1063 = vmatpush.bf16.msra.mxu0 %v12665_v29  ;;  %v12632_v45 = vld [vmem:[#allocation7 + $0xe0] sm:$0xf]  ;;  %1082 = vmatpush.bf16.msra.mxu1 %v12669_v33  ;;  %v12657_v47 = vor.u32 %v18242_v41, %v12656_v40  ;;  %v18237_v48 = vld [vmem:[#allocation7 + $0xec] sm:$0xf0]  ;;  %v18235_v49 = vld [vmem:[#allocation7 + $0xe4] sm:$0xf]  ;;  %v12661_v51 = vor.u32 %v18240_v42, %v12658_v43 }
  0x4f   : > { %1101 = vmatpush.bf16.msra.mxu2 %v12673_v34  ;;  %v12634_v50 = vld [vmem:[#allocation7 + $0xf0] sm:$0xf0]  ;;  %v12640_v52 = vld [vmem:[#allocation7 + $0xe8] sm:$0xf]  ;;  %v18238_v53 = vld [vmem:[#allocation7 + $0xf4] sm:$0xf0]  ;;  %v12633_v58 = vor.u32 %v18237_v48, %v12632_v45 }
  0x50   : > { %1120 = vmatpush.bf16.msra.mxu3 %v12677_v38  ;;  %v18236_v54 = vld [vmem:[#allocation7 + $0xec] sm:$0xf]  ;;  %v12642_v55 = vld [vmem:[#allocation7 + $0xf8] sm:$0xf0]  ;;  %v12616_v56 = vld [vmem:[#allocation7 + $0xc0] sm:$0xf]  ;;  %v12637_v62 = vor.u32 %v18235_v49, %v12634_v50  ;;  %v12641_v63 = vor.u32 %v18238_v53, %v12640_v52 }
  0x51   : > { %v18233_v57 = vld [vmem:[#allocation7 + $0xcc] sm:$0xf0]  ;;  %v18231_v59 = vld [vmem:[#allocation7 + $0xc4] sm:$0xf]  ;;  %v12618_v60 = vld [vmem:[#allocation7 + $0xd0] sm:$0xf0]  ;;  %v12645_v3 = vor.u32 %v18236_v54, %v12642_v55 }
  0x52   : > { %1064 = vmatpush.bf16.msra.mxu0 %v12649_v44  ;;  %v12624_v61 = vld [vmem:[#allocation7 + $0xc8] sm:$0xf]  ;;  %1083 = vmatpush.bf16.msra.mxu1 %v12653_v46  ;;  %v854_v0 = vld [vmem:[%s20164_s13] sm:$0xff]  ;;  %v855_v1 = vld [vmem:[%s20164_s13 + $0x8] sm:$0xff]  ;;  %vm911_vm0 = vsmask.f32 7424  ;;  %v12617_v12 = vor.u32 %v18233_v57, %v12616_v56  ;;  %v12621_v17 = vor.u32 %v18231_v59, %v12618_v60 }
  0x53   : > { %1102 = vmatpush.bf16.msra.mxu2 %v12657_v47  ;;  %v856_v2 = vld [vmem:[%s20164_s13 + $0x10] sm:$0xff]  ;;  %v18234_v4 = vld [vmem:[#allocation7 + $0xd4] sm:$0xf0]  ;;  %v18232_v5 = vld [vmem:[#allocation7 + $0xcc] sm:$0xf]  ;;  %v20170_v7 = vpack.c.bf16 %v855_v1, %v854_v0  ;;  %s24417_s3 = sld [smem:[#allocation32_spill]] }
  0x54   : > { %1121 = vmatpush.bf16.msra.mxu3 %v12661_v51  ;;  %v857_v6 = vld [vmem:[%s20164_s13 + $0x18] sm:$0xff]  ;;  %v12626_v8 = vld [vmem:[#allocation7 + $0xd8] sm:$0xf0]  ;;  %v12800_v10 = vld [vmem:[#allocation7 + $0xa0] sm:$0xf]  ;;  %v12625_v18 = vor.u32 %v18234_v4, %v12624_v61  ;;  %s19937_s22 = smov 112  }
  0x55   : > { %v20172_v9 = vpack.c.bf16 %v857_v6, %v856_v2  ;;  %v18229_v11 = vld [vmem:[#allocation7 + $0xac] sm:$0xf0]  ;;  %v913_v13 = vshrl.u32 %v20170_v7, 16  ;;  %v915_v14 = vshll.u32 %v20170_v7, 16  ;;  %v18227_v15 = vld [vmem:[#allocation7 + $0xa4] sm:$0xf]  ;;  %v12629_v22 = vor.u32 %v18232_v5, %v12626_v8 }
  0x56   : > { %1065 = vmatpush.bf16.msra.mxu0 %v12633_v58  ;;  %v12802_v16 = vld [vmem:[#allocation7 + $0xb0] sm:$0xf0]  ;;  %1084 = vmatpush.bf16.msra.mxu1 %v12637_v62  ;;  %v12808_v20 = vld [vmem:[#allocation7 + $0xa8] sm:$0xf]  ;;  %v18230_v21 = vld [vmem:[#allocation7 + $0xb4] sm:$0xf0]  ;;  %v12801_v24 = vor.u32 %v18229_v11, %v12800_v10 }
  0x57   : > { %1103 = vmatpush.bf16.msra.mxu2 %v12641_v63  ;;  %v920_v19 = vshll.u32 %v20172_v9, 16  ;;  %v917_v23 = vrot.slane %v915_v14, 1  ;;  %v18228_v25 = vld [vmem:[#allocation7 + $0xac] sm:$0xf]  ;;  %v12810_v26 = vld [vmem:[#allocation7 + $0xb8] sm:$0xf0]  ;;  %v12805_v28 = vor.u32 %v18227_v15, %v12802_v16  ;;  %v12809_v34 = vor.u32 %v18230_v21, %v12808_v20 }
  0x58   : > { %1122 = vmatpush.bf16.msra.mxu3 %v12645_v3  ;;  %v12784_v29 = vld [vmem:[#allocation7 + $0x80] sm:$0xf]  ;;  %v18225_v30 = vld [vmem:[#allocation7 + $0x8c] sm:$0xf0]  ;;  %v18223_v32 = vld [vmem:[#allocation7 + $0x84] sm:$0xf]  ;;  %v12813_v37 = vor.u32 %v18228_v25, %v12810_v26 }
  0x59   : > { %v20177_v27 = vrot.slane %v920_v19, 1  ;;  %v918_v31 = vor.u32 %v917_v23, %v913_v13  ;;  %v12786_v33 = vld [vmem:[#allocation7 + $0x90] sm:$0xf0]  ;;  %v858_v35 = vld [vmem:[%s20164_s13 + $0x20] sm:$0x3]  ;;  %v12785_v38 = vor.u32 %v18225_v30, %v12784_v29  ;;  %v924_v59 = vshrl.u32 %v20172_v9, 16 }
  0x5a   : > { %1066 = vmatpush.bf16.msra.mxu0 %v12617_v12  ;;  %1085 = vmatpush.bf16.msra.mxu1 %v12621_v17  ;;  %v12792_v39 = vld [vmem:[#allocation7 + $0x88] sm:$0xf]  ;;  %v18226_v40 = vld [vmem:[#allocation7 + $0x94] sm:$0xf0]  ;;  %v18224_v41 = vld [vmem:[#allocation7 + $0x8c] sm:$0xf]  ;;  %v12789_v42 = vor.u32 %v18223_v32, %v12786_v33  ;;  %v20185_v46 = vpack.c.bf16 %v858_v35, %v858_v35 }
  0x5b   : > { %1104 = vmatpush.bf16.msra.mxu2 %v12625_v18  ;;  %v923_v36 = vsel %vm911_vm0, %v918_v31, %v20177_v27  ;;  %v12794_v43 = vld [vmem:[#allocation7 + $0x98] sm:$0xf0]  ;;  %v12768_v44 = vld [vmem:[#allocation7 + $0x60] sm:$0xf]  ;;  %v18221_v45 = vld [vmem:[#allocation7 + $0x6c] sm:$0xf0]  ;;  %v12793_v49 = vor.u32 %v18226_v40, %v12792_v39  ;;  %v926_v11 = vor.u32 %v924_v59, %v20177_v27 }
  0x5c   : > { %1123 = vmatpush.bf16.msra.mxu3 %v12629_v22  ;;  %v18219_v47 = vld [vmem:[#allocation7 + $0x64] sm:$0xf]  ;;  %v12770_v48 = vld [vmem:[#allocation7 + $0x70] sm:$0xf0]  ;;  %v12797_v50 = vor.u32 %v18224_v41, %v12794_v43  ;;  %v12769_v51 = vor.u32 %v18221_v45, %v12768_v44  ;;  %v12776_v52 = vld [vmem:[#allocation7 + $0x68] sm:$0xf] }
  0x5d   : > { %12710 = vmatmul.msk.bf16.vlgmr.msra.gmra.mxu0 %vm1052_vm1, %v923_v36  ;;  %12712 = vmatmul.msk.bf16.vlgmr.msra.gmra.mxu1 %vm1052_vm1, %v923_v36  ;;  %v18222_v53 = vld [vmem:[#allocation7 + $0x74] sm:$0xf0]  ;;  %v18220_v54 = vld [vmem:[#allocation7 + $0x6c] sm:$0xf]  ;;  %v12773_v55 = vor.u32 %v18219_v47, %v12770_v48  ;;  %v12778_v56 = vld [vmem:[#allocation7 + $0x78] sm:$0xf0] }
  0x5e   : > { %1261 = vmatpush.bf16.msrb.mxu0 %v12801_v24  ;;  %1280 = vmatpush.bf16.msrb.mxu1 %v12805_v28  ;;  %v12752_v57 = vld [vmem:[#allocation7 + $0x40] sm:$0xf]  ;;  %v18217_v58 = vld [vmem:[#allocation7 + $0x4c] sm:$0xf0]  ;;  %v928_v60 = vshll.u32 %v20185_v46, 16  ;;  %v12777_v63 = vor.u32 %v18222_v53, %v12776_v52  ;;  %v12781_v0 = vor.u32 %v18220_v54, %v12778_v56  ;;  %s24418_s2 = sld [smem:[#allocation33_spill]] }
  0x5f   : > { %12714 = vmatmul.msk.bf16.vlgmr.msra.gmra.mxu2 %vm1052_vm1, %v923_v36  ;;  %12716 = vmatmul.msk.bf16.vlgmr.msra.gmra.mxu3 %vm1052_vm1, %v923_v36  ;;  %v18215_v61 = vld [vmem:[#allocation7 + $0x44] sm:$0xf]  ;;  %v12754_v62 = vld [vmem:[#allocation7 + $0x50] sm:$0xf0]  ;;  %v12753_v1 = vor.u32 %v18217_v58, %v12752_v57  ;;  %v12760_v2 = vld [vmem:[#allocation7 + $0x48] sm:$0xf] }
  0x60   : > { %1299 = vmatpush.bf16.msrb.mxu2 %v12809_v34  ;;  %1318 = vmatpush.bf16.msrb.mxu3 %v12813_v37  ;;  %v18218_v3 = vld [vmem:[#allocation7 + $0x54] sm:$0xf0]  ;;  %v18216_v4 = vld [vmem:[#allocation7 + $0x4c] sm:$0xf]  ;;  %v12757_v5 = vor.u32 %v18215_v61, %v12754_v62  ;;  %v12762_v6 = vld [vmem:[#allocation7 + $0x58] sm:$0xf0] }
  0x61   : > { %v12736_v8 = vld [vmem:[#allocation7 + $0x20] sm:$0xf]  ;;  %v18213_v10 = vld [vmem:[#allocation7 + $0x2c] sm:$0xf0]  ;;  %v930_v12 = vrot.slane %v928_v60, 1  ;;  %v12761_v15 = vor.u32 %v18218_v3, %v12760_v2  ;;  %v12765_v18 = vor.u32 %v18216_v4, %v12762_v6  ;;  %vm1662_vm3 = vcmask 916480  }
  0x62   : > { %1262 = vmatpush.bf16.msrb.mxu0 %v12785_v38  ;;  %1281 = vmatpush.bf16.msrb.mxu1 %v12789_v42  ;;  %v18211_v13 = vld [vmem:[#allocation7 + $0x24] sm:$0xf]  ;;  %v12738_v14 = vld [vmem:[#allocation7 + $0x30] sm:$0xf0]  ;;  %v12744_v16 = vld [vmem:[#allocation7 + $0x28] sm:$0xf]  ;;  %v12737_v19 = vor.u32 %v18213_v10, %v12736_v8 }
  0x63   : > { %v18214_v17 = vld [vmem:[#allocation7 + $0x34] sm:$0xf0]  ;;  %v18212_v20 = vld [vmem:[#allocation7 + $0x2c] sm:$0xf]  ;;  %v12746_v21 = vld [vmem:[#allocation7 + $0x38] sm:$0xf0]  ;;  %v12741_v23 = vor.u32 %v18211_v13, %v12738_v14  ;;  %v931_v27 = vsel %vm911_vm0, %v926_v11, %v930_v12 }
  0x64   : > { %1300 = vmatpush.bf16.msrb.mxu2 %v12793_v49  ;;  %1319 = vmatpush.bf16.msrb.mxu3 %v12797_v50  ;;  %v12720_v22 = vld [vmem:[#allocation7] sm:$0xf]  ;;  %v18209_v24 = vld [vmem:[#allocation7 + $0xc] sm:$0xf0]  ;;  %v18207_v25 = vld [vmem:[#allocation7 + $0x4] sm:$0xf]  ;;  %v12745_v32 = vor.u32 %v18214_v17, %v12744_v16  ;;  %v12749_v37 = vor.u32 %v18212_v20, %v12746_v21 }
  0x65   : > { %v12722_v26 = vld [vmem:[#allocation7 + $0x10] sm:$0xf0]  ;;  %v12728_v28 = vld [vmem:[#allocation7 + $0x8] sm:$0xf]  ;;  %v18210_v29 = vld [vmem:[#allocation7 + $0x14] sm:$0xf0]  ;;  %v12721_v38 = vor.u32 %v18209_v24, %v12720_v22 }
  0x66   : > { %1263 = vmatpush.bf16.msrb.mxu0 %v12769_v51  ;;  %1282 = vmatpush.bf16.msrb.mxu1 %v12773_v55  ;;  %v12904_v30 = vld [vmem:[#allocation7 + $0x220] sm:$0xf]  ;;  %v18277_v31 = vld [vmem:[#allocation7 + $0x22c] sm:$0xf0]  ;;  %v18208_v33 = vld [vmem:[#allocation7 + $0xc] sm:$0xf]  ;;  %v12725_v39 = vor.u32 %v18207_v25, %v12722_v26  ;;  %v12729_v49 = vor.u32 %v18210_v29, %v12728_v28 }
  0x67   : > { %v12730_v34 = vld [vmem:[#allocation7 + $0x18] sm:$0xf0]  ;;  %v18275_v35 = vld [vmem:[#allocation7 + $0x224] sm:$0xf]  ;;  %v12906_v36 = vld [vmem:[#allocation7 + $0x230] sm:$0xf0]  ;;  %v12905_v40 = vor.u32 %v18277_v31, %v12904_v30 }
  0x68   : > { %1301 = vmatpush.bf16.msrb.mxu2 %v12777_v63  ;;  %1320 = vmatpush.bf16.msrb.mxu3 %v12781_v0  ;;  %v12912_v41 = vld [vmem:[#allocation7 + $0x228] sm:$0xf]  ;;  %v18278_v42 = vld [vmem:[#allocation7 + $0x234] sm:$0xf0]  ;;  %v18276_v43 = vld [vmem:[#allocation7 + $0x22c] sm:$0xf]  ;;  %v12909_v44 = vor.u32 %v18275_v35, %v12906_v36  ;;  %v12733_v52 = vor.u32 %v18208_v33, %v12730_v34 }
  0x69   : > { %v12914_v45 = vld [vmem:[#allocation7 + $0x238] sm:$0xf0]  ;;  %v12888_v47 = vld [vmem:[#allocation7 + $0x200] sm:$0xf]  ;;  %v18273_v48 = vld [vmem:[#allocation7 + $0x20c] sm:$0xf0]  ;;  %v12913_v53 = vor.u32 %v18278_v42, %v12912_v41 }
  0x6a   : > { %1264 = vmatpush.bf16.msrb.mxu0 %v12753_v1  ;;  %1283 = vmatpush.bf16.msrb.mxu1 %v12757_v5  ;;  %v18271_v50 = vld [vmem:[#allocation7 + $0x204] sm:$0xf]  ;;  %v12890_v51 = vld [vmem:[#allocation7 + $0x210] sm:$0xf0]  ;;  %v12917_v54 = vor.u32 %v18276_v43, %v12914_v45  ;;  %v12889_v55 = vor.u32 %v18273_v48, %v12888_v47  ;;  %v12896_v56 = vld [vmem:[#allocation7 + $0x208] sm:$0xf] }
  0x6b   : > { %v18274_v57 = vld [vmem:[#allocation7 + $0x214] sm:$0xf0]  ;;  %v18272_v58 = vld [vmem:[#allocation7 + $0x20c] sm:$0xf]  ;;  %v12893_v59 = vor.u32 %v18271_v50, %v12890_v51  ;;  %v12898_v60 = vld [vmem:[#allocation7 + $0x218] sm:$0xf0] }
  0x6c   : > { %1302 = vmatpush.bf16.msrb.mxu2 %v12761_v15  ;;  %1321 = vmatpush.bf16.msrb.mxu3 %v12765_v18  ;;  %v12872_v61 = vld [vmem:[#allocation7 + $0x1e0] sm:$0xf]  ;;  %v18269_v62 = vld [vmem:[#allocation7 + $0x1ec] sm:$0xf0]  ;;  %v18267_v63 = vld [vmem:[#allocation7 + $0x1e4] sm:$0xf]  ;;  %v12897_v1 = vor.u32 %v18274_v57, %v12896_v56  ;;  %v12901_v2 = vor.u32 %v18272_v58, %v12898_v60 }
  0x6d   : > { %12711 = vmatmul.msk.bf16.gmra.mxu0 %vm1052_vm1, %v931_v27  ;;  %12713 = vmatmul.msk.bf16.gmra.mxu1 %vm1052_vm1, %v931_v27  ;;  %v12874_v0 = vld [vmem:[#allocation7 + $0x1f0] sm:$0xf0]  ;;  %v12873_v3 = vor.u32 %v18269_v62, %v12872_v61  ;;  %v12880_v4 = vld [vmem:[#allocation7 + $0x1e8] sm:$0xf]  ;;  %v18270_v5 = vld [vmem:[#allocation7 + $0x1f4] sm:$0xf0] }
  0x6e   : > { %1265 = vmatpush.bf16.msrb.mxu0 %v12737_v19  ;;  %1284 = vmatpush.bf16.msrb.mxu1 %v12741_v23  ;;  %v12877_v6 = vor.u32 %v18267_v63, %v12874_v0  ;;  %v18268_v8 = vld [vmem:[#allocation7 + $0x1ec] sm:$0xf]  ;;  %v12882_v10 = vld [vmem:[#allocation7 + $0x1f8] sm:$0xf0]  ;;  %v12856_v11 = vld [vmem:[#allocation7 + $0x1c0] sm:$0xf]  ;;  %v12881_v15 = vor.u32 %v18270_v5, %v12880_v4 }
  0x6f   : > { %12715 = vmatmul.msk.bf16.gmra.mxu2 %vm1052_vm1, %v931_v27  ;;  %12717 = vmatmul.msk.bf16.gmra.mxu3 %vm1052_vm1, %v931_v27  ;;  %v18265_v12 = vld [vmem:[#allocation7 + $0x1cc] sm:$0xf0]  ;;  %v18263_v13 = vld [vmem:[#allocation7 + $0x1c4] sm:$0xf]  ;;  %v1364_v14 = vrot.slane %v20170_v7, 1  ;;  %v1365_v16 = vrot.slane %v20172_v9, 1  ;;  %v12885_v17 = vor.u32 %v18268_v8, %v12882_v10 }
  0x70   : > { %1303 = vmatpush.bf16.msrb.mxu2 %v12745_v32  ;;  %1322 = vmatpush.bf16.msrb.mxu3 %v12749_v37  ;;  %v12858_v18 = vld [vmem:[#allocation7 + $0x1d0] sm:$0xf0]  ;;  %v12864_v19 = vld [vmem:[#allocation7 + $0x1c8] sm:$0xf]  ;;  %v18266_v20 = vld [vmem:[#allocation7 + $0x1d4] sm:$0xf0]  ;;  %v12857_v24 = vor.u32 %v18265_v12, %v12856_v11 }
  0x71   : > { %v18264_v21 = vld [vmem:[#allocation7 + $0x1cc] sm:$0xf]  ;;  %v12866_v22 = vld [vmem:[#allocation7 + $0x1d8] sm:$0xf0]  ;;  %v1366_v23 = vsel %vm1363_vm2, %v1364_v14, %v1365_v16  ;;  %v12861_v25 = vor.u32 %v18263_v13, %v12858_v18  ;;  %v12865_v26 = vor.u32 %v18266_v20, %v12864_v19  ;;  %v12840_v27 = vld [vmem:[#allocation7 + $0x1a0] sm:$0xf] }
  0x72   : > { %1266 = vmatpush.bf16.msrb.mxu0 %v12721_v38  ;;  %1285 = vmatpush.bf16.msrb.mxu1 %v12725_v39  ;;  %v18261_v28 = vld [vmem:[#allocation7 + $0x1ac] sm:$0xf0]  ;;  %v18259_v29 = vld [vmem:[#allocation7 + $0x1a4] sm:$0xf]  ;;  %v12869_v30 = vor.u32 %v18264_v21, %v12866_v22  ;;  %v12842_v31 = vld [vmem:[#allocation7 + $0x1b0] sm:$0xf0] }
  0x73   : > { %v12848_v32 = vld [vmem:[#allocation7 + $0x1a8] sm:$0xf]  ;;  %v18262_v33 = vld [vmem:[#allocation7 + $0x1b4] sm:$0xf0]  ;;  %v18260_v34 = vld [vmem:[#allocation7 + $0x1ac] sm:$0xf]  ;;  %v12841_v36 = vor.u32 %v18261_v28, %v12840_v27  ;;  %v12845_v38 = vor.u32 %v18259_v29, %v12842_v31 }
  0x74   : > { %1304 = vmatpush.bf16.msrb.mxu2 %v12729_v49  ;;  %1323 = vmatpush.bf16.msrb.mxu3 %v12733_v52  ;;  %v12850_v35 = vld [vmem:[#allocation7 + $0x1b8] sm:$0xf0]  ;;  %v1367_v37 = vrot.slane %v20185_v46, 1  ;;  %v12849_v39 = vor.u32 %v18262_v33, %v12848_v32  ;;  %v18257_v41 = vld [vmem:[#allocation7 + $0x18c] sm:$0xf0]  ;;  %s24421_s1 = sld [smem:[#allocation34_spill]] }
  0x75   : > { %v18255_v42 = vld [vmem:[#allocation7 + $0x184] sm:$0xf]  ;;  %v12853_v43 = vor.u32 %v18260_v34, %v12850_v35  ;;  %v12832_v45 = vld [vmem:[#allocation7 + $0x188] sm:$0xf]  ;;  %v18258_v47 = vld [vmem:[#allocation7 + $0x194] sm:$0xf0] }
  0x76   : > { %1497 = vmatpush.bf16.msra.mxu0 %v12905_v40  ;;  %1516 = vmatpush.bf16.msra.mxu1 %v12909_v44  ;;  %v12824_v40 = vld [vmem:[#allocation7 + $0x180] sm:$0xf]  ;;  %v12826_v44 = vld [vmem:[#allocation7 + $0x190] sm:$0xf0]  ;;  %v1368_v48 = vsel %vm1363_vm2, %v1365_v16, %v1367_v37  ;;  %v18256_v49 = vld [vmem:[#allocation7 + $0x18c] sm:$0xf]  ;;  %v12833_v51 = vor.u32 %v18258_v47, %v12832_v45 }
  0x77   : > { %v12825_v50 = vor.u32 %v18257_v41, %v12824_v40  ;;  %v12829_v46 = vor.u32 %v18255_v42, %v12826_v44  ;;  %v1587_v20 = vld [vmem:[%s24417_s3] sm:$0xf]  ;;  %s19939_s13 = smov 96   ;;  %s24424_s3 = sld [smem:[#allocation35_spill]]  ;;  %vm6126_vm6 = vcmask 261120   ;;  %vm7950_vm7 = vcmask 1040384  }
  0x78   : > { %1535 = vmatpush.bf16.msra.mxu2 %v12913_v53  ;;  %1554 = vmatpush.bf16.msra.mxu3 %v12917_v54  ;;  %v20260_v27 = vperm.slane %v1587_v20, 1  ;;  %v20266_v40 = vperm.slane %v1587_v20, 3  ;;  %s24426_s30 = sld [smem:[#allocation36_spill]]  ;;  %vm7952_vm8 = vcmask 1042434   ;;  %vm7954_vm9 = vcmask 1041408  }
  0x79   : > { %s24431_s23 = sld [smem:[#allocation40_spill]] }
  0x7a   : > { %1498 = vmatpush.bf16.msra.mxu0 %v12889_v55  ;;  %1517 = vmatpush.bf16.msra.mxu1 %v12893_v59 }
  0x7c   : > { %1536 = vmatpush.bf16.msra.mxu2 %v12897_v1  ;;  %1555 = vmatpush.bf16.msra.mxu3 %v12901_v2 }
  0x7d   : > { %12814 = vmatmul.msk.bf16.vlgmr.msrb.gmra.mxu0 %vm1052_vm1, %v20170_v7  ;;  %12816 = vmatmul.msk.bf16.vlgmr.msrb.gmra.mxu1 %vm1052_vm1, %v20170_v7 }
  0x7e   : > { %1499 = vmatpush.bf16.msra.mxu0 %v12873_v3  ;;  %1518 = vmatpush.bf16.msra.mxu1 %v12877_v6 }
  0x7f   : > { %12818 = vmatmul.msk.bf16.vlgmr.msrb.gmra.mxu2 %vm1052_vm1, %v20170_v7  ;;  %12820 = vmatmul.msk.bf16.vlgmr.msrb.gmra.mxu3 %vm1052_vm1, %v20170_v7  ;;  %v12834_v7 = vld [vmem:[#allocation7 + $0x198] sm:$0xf0] }
  0x80   : > { %1537 = vmatpush.bf16.msra.mxu2 %v12881_v15  ;;  %1556 = vmatpush.bf16.msra.mxu3 %v12885_v17  ;;  %v12837_v52 = vor.u32 %v18256_v49, %v12834_v7 }
  0x82   : > { %1500 = vmatpush.bf16.msra.mxu0 %v12857_v24  ;;  %1519 = vmatpush.bf16.msra.mxu1 %v12861_v25 }
  0x84   : > { %1538 = vmatpush.bf16.msra.mxu2 %v12865_v26  ;;  %1557 = vmatpush.bf16.msra.mxu3 %v12869_v30 }
  0x86   : > { %1501 = vmatpush.bf16.msra.mxu0 %v12841_v36  ;;  %1520 = vmatpush.bf16.msra.mxu1 %v12845_v38  ;;  %v20264_v36 = vperm.slane %v1587_v20, 2 }
  0x88   : > { %1539 = vmatpush.bf16.msra.mxu2 %v12849_v39  ;;  %1558 = vmatpush.bf16.msra.mxu3 %v12853_v43 }
  0x8a   : > { %1502 = vmatpush.bf16.msra.mxu0 %v12825_v50  ;;  %1521 = vmatpush.bf16.msra.mxu1 %v12829_v46 }
  0x8c   : > { %1540 = vmatpush.bf16.msra.mxu2 %v12833_v51  ;;  %1559 = vmatpush.bf16.msra.mxu3 %v12837_v52 }
  0x8d   : > { %12815 = vmatmul.msk.bf16.gmra.mxu0 %vm1052_vm1, %v20172_v9  ;;  %12817 = vmatmul.msk.bf16.gmra.mxu1 %vm1052_vm1, %v20172_v9 }
  0x8f   : > { %12819 = vmatmul.msk.bf16.gmra.mxu2 %vm1052_vm1, %v20172_v9  ;;  %12821 = vmatmul.msk.bf16.gmra.mxu3 %vm1052_vm1, %v20172_v9 }
  0x9d   : > { %12918 = vmatmul.msk.bf16.vlgmr.msra.gmra.mxu0 %vm1052_vm1, %v1366_v23  ;;  %12920 = vmatmul.msk.bf16.vlgmr.msra.gmra.mxu1 %vm1052_vm1, %v1366_v23 }
  0x9f   : > { %12922 = vmatmul.msk.bf16.vlgmr.msra.gmra.mxu2 %vm1052_vm1, %v1366_v23  ;;  %12924 = vmatmul.msk.bf16.vlgmr.msra.gmra.mxu3 %vm1052_vm1, %v1366_v23  ;;  %v20256_v23 = vperm.slane %v1587_v20, 0 }
  0xad   : > { %12919 = vmatmul.msk.bf16.gmra.mxu0 %vm1052_vm1, %v1368_v48  ;;  %12921 = vmatmul.msk.bf16.gmra.mxu1 %vm1052_vm1, %v1368_v48 }
  0xaf   : > { %12923 = vmatmul.msk.bf16.gmra.mxu2 %vm1052_vm1, %v1368_v48  ;;  %12925 = vmatmul.msk.bf16.gmra.mxu3 %vm1052_vm1, %v1368_v48 }
  0xda   : > { %v1068_v53 = vpop.f32.mrf.mxu0  ;;  %v1087_v54 = vpop.f32.mrf.mxu1 }
  0xe2   : > { %v1106_v55 = vpop.f32.mrf.mxu2  ;;  %v1125_v9 = vpop.f32.mrf.mxu3 }
  0xe3   : > { %v1070_v56 = vpop.f32.mrf.mxu0  ;;  %v1089_v57 = vpop.f32.mrf.mxu1 }
  0xea   : > { %v1108_v58 = vpop.f32.mrf.mxu2  ;;  %v20225_v59 = vpop.f32.mrf.mxu3 }
  0xeb   : > { %v20227_v60 = vpop.f32.mrf.mxu0  ;;  %v20229_v61 = vpop.f32.mrf.mxu1 }
  0xf2   : > { %v20231_v62 = vpop.f32.mrf.mxu2  ;;  %v20233_v63 = vpop.f32.mrf.mxu3 }
  0xf3   : > { %v20235_v0 = vpop.f32.mrf.mxu0  ;;  %v20237_v1 = vpop.f32.mrf.mxu1 }
  0xfa   : > { %v20239_v2 = vpop.f32.mrf.mxu2  ;;  %v20241_v3 = vpop.f32.mrf.mxu3 }
  0xfb   : > { %v1268_v4 = vpop.f32.mrf.mxu0  ;;  %v1287_v5 = vpop.f32.mrf.mxu1 }
  0xfc   : > { %v1269_v21 = vadd.f32 %v1268_v4, %v1068_v53  ;;  %v1288_v24 = vadd.f32 %v1287_v5, %v1087_v54 }
 0x102   : > { %v1306_v6 = vpop.f32.mrf.mxu2  ;;  %v1325_v8 = vpop.f32.mrf.mxu3 }
 0x103   : > { %v1270_v10 = vpop.f32.mrf.mxu0  ;;  %v1289_v11 = vpop.f32.mrf.mxu1  ;;  %v1307_v34 = vadd.f32 %v1306_v6, %v1106_v55  ;;  %v1326_v37 = vadd.f32 %v1325_v8, %v1125_v9 }
 0x104   : > { %v1271_v38 = vadd.f32 %v1270_v10, %v1070_v56  ;;  %v1290_v41 = vadd.f32 %v1289_v11, %v1089_v57 }
 0x10a   : > { %v1308_v12 = vpop.f32.mrf.mxu2  ;;  %v1327_v13 = vpop.f32.mrf.mxu3 }
 0x10b   : > { %v1273_v14 = vpop.f32.mrf.mxu0  ;;  %v1292_v15 = vpop.f32.mrf.mxu1  ;;  %v1309_v55 = vadd.f32 %v1308_v12, %v1108_v58  ;;  %v1328_v56 = vadd.f32 %v1327_v13, %v20225_v59 }
 0x10c   : > { %v1274_v57 = vadd.f32 %v1273_v14, %v20227_v60  ;;  %v1293_v5 = vadd.f32 %v1292_v15, %v20229_v61 }
 0x112   : > { %v20243_v16 = vpop.f32.mrf.mxu2  ;;  %v20245_v17 = vpop.f32.mrf.mxu3 }
 0x113   : > { %v20247_v18 = vpop.f32.mrf.mxu0  ;;  %v20249_v19 = vpop.f32.mrf.mxu1  ;;  %v1312_v15 = vadd.f32 %v20243_v16, %v20231_v62 }
 0x11a   : > { %v20254_v22 = vpop.f32.mrf.mxu2  ;;  %v20258_v25 = vpop.f32.mrf.mxu3 }
 0x11b   : > { %v1504_v26 = vpop.f32.mrf.mxu0  ;;  %v1523_v29 = vpop.f32.mrf.mxu1 }
 0x11c   : > { %v1571_v28 = vadd.f32 %v1504_v26, %v1269_v21  ;;  %v1572_v30 = vadd.f32 %v1523_v29, %v1288_v24  ;;  %v1331_v29 = vadd.f32 %v20245_v17, %v20233_v63 }
 0x11e   : > { %v1597_v31 = vadd.f32 %v20256_v23, %v1571_v28  ;;  %v1598_v32 = vadd.f32 %v20260_v27, %v1572_v30  ;;  %v1276_v30 = vadd.f32 %v20247_v18, %v20235_v0 }
 0x120   : > { %v1613_v33 = vmax.f32 %v1597_v31, 0.0  ;;  %v1614_v35 = vmax.f32 %v1598_v32, 0.0 }
 0x122   : > { %1629 = vst [vmem:[#allocation2] sm:$0xff] %v1613_v33  ;;  %v1542_v39 = vpop.f32.mrf.mxu2  ;;  %v1561_v43 = vpop.f32.mrf.mxu3  ;;  %v1295_v33 = vadd.f32 %v20249_v19, %v20237_v1 }
 0x123   : > { %1630 = vst [vmem:[#allocation2 + $0x8] sm:$0xff] %v1614_v35  ;;  %v1573_v42 = vadd.f32 %v1542_v39, %v1307_v34  ;;  %v1506_v44 = vpop.f32.mrf.mxu0  ;;  %v1574_v45 = vadd.f32 %v1561_v43, %v1326_v37  ;;  %v1525_v48 = vpop.f32.mrf.mxu1 }
 0x124   : > { %v1575_v47 = vadd.f32 %v1506_v44, %v1271_v38  ;;  %v1576_v7 = vadd.f32 %v1525_v48, %v1290_v41 }
 0x125   : > { %v1599_v49 = vadd.f32 %v20264_v36, %v1573_v42  ;;  %v1600_v50 = vadd.f32 %v20266_v40, %v1574_v45 }
 0x126   : > { %v1601_v46 = vadd.f32 %v20256_v23, %v1575_v47  ;;  %v1602_v52 = vadd.f32 %v20260_v27, %v1576_v7 }
 0x127   : > { %v1615_v51 = vmax.f32 %v1599_v49, 0.0  ;;  %v1616_v53 = vmax.f32 %v1600_v50, 0.0  ;;  %v1314_v50 = vadd.f32 %v20254_v22, %v20239_v2 }
 0x128   : > { %v1617_v54 = vmax.f32 %v1601_v46, 0.0  ;;  %v1618_v9 = vmax.f32 %v1602_v52, 0.0 }
 0x129   : > { %1631 = vst [vmem:[#allocation2 + $0x10] sm:$0xff] %v1615_v51 }
 0x12a   : > { %1632 = vst [vmem:[#allocation2 + $0x18] sm:$0xff] %v1616_v53  ;;  %v1544_v4 = vpop.f32.mrf.mxu2  ;;  %v1563_v8 = vpop.f32.mrf.mxu3 }
 0x12b   : > { %1633 = vst [vmem:[#allocation2 + $0x20] sm:$0xff] %v1617_v54  ;;  %v1577_v6 = vadd.f32 %v1544_v4, %v1309_v55  ;;  %v1509_v10 = vpop.f32.mrf.mxu0  ;;  %v1578_v11 = vadd.f32 %v1563_v8, %v1328_v56  ;;  %v1528_v21 = vpop.f32.mrf.mxu1 }
 0x12c   : > { %1634 = vst [vmem:[#allocation2 + $0x28] sm:$0xff] %v1618_v9  ;;  %v1579_v20 = vadd.f32 %v1509_v10, %v1274_v57  ;;  %v1580_v12 = vadd.f32 %v1528_v21, %v1293_v5 }
 0x12d   : > { %v1603_v58 = vadd.f32 %v20264_v36, %v1577_v6  ;;  %v1604_v24 = vadd.f32 %v20266_v40, %v1578_v11 }
 0x12e   : > { %v1605_v59 = vadd.f32 %v20256_v23, %v1579_v20  ;;  %v1606_v13 = vadd.f32 %v20260_v27, %v1580_v12 }
 0x12f   : > { %v1619_v60 = vmax.f32 %v1603_v58, 0.0  ;;  %v1620_v14 = vmax.f32 %v1604_v24, 0.0 }
 0x130   : > { %v1621_v61 = vmax.f32 %v1605_v59, 0.0  ;;  %v1622_v26 = vmax.f32 %v1606_v13, 0.0 }
 0x131   : > { %1635 = vst [vmem:[#allocation2 + $0x30] sm:$0xff] %v1619_v60  ;;  %v1685_v28 = vld [vmem:[#allocation2 + $0x4] ss:$8 sm:$0xf] }
 0x132   : > { %1636 = vst [vmem:[#allocation2 + $0x38] sm:$0xff] %v1620_v14  ;;  %v1547_v31 = vpop.f32.mrf.mxu2  ;;  %v1687_v32 = vld [vmem:[#allocation2 + $0x5] ss:$8 sm:$0xf]  ;;  %v1566_v35 = vpop.f32.mrf.mxu3 }
 0x133   : > { %1637 = vst [vmem:[#allocation2 + $0x40] sm:$0xff] %v1621_v61  ;;  %v1581_v34 = vadd.f32 %v1547_v31, %v1312_v15  ;;  %v20287_v37 = vmax.f32 %v1685_v28, %v1687_v32  ;;  %v1654_v62 = vld [vmem:[#allocation2] ss:$8 sm:$0xf]  ;;  %v1511_v16 = vpop.f32.mrf.mxu0  ;;  %v1582_v38 = vadd.f32 %v1566_v35, %v1331_v29  ;;  %v1530_v17 = vpop.f32.mrf.mxu1 }
 0x134   : > { %1638 = vst [vmem:[#allocation2 + $0x48] sm:$0xff] %v1622_v26  ;;  %v1656_v39 = vld [vmem:[#allocation2 + $0x1] ss:$8 sm:$0xf]  ;;  %v1583_v63 = vadd.f32 %v1511_v16, %v1276_v30  ;;  %v1584_v1 = vadd.f32 %v1530_v17, %v1295_v33 }
 0x135   : > { %v1607_v0 = vadd.f32 %v20264_v36, %v1581_v34  ;;  %1690 = vrot.lane.b32.xlu1 %v20287_v37, %s19937_s22  ;;  %v20292_v18 = vmax.f32 %v1654_v62, %v1656_v39  ;;  %v1608_v19 = vadd.f32 %v20266_v40, %v1582_v38  ;;  %v1700_v42 = vld [vmem:[#allocation2 + $0x6] ss:$8 sm:$0xf]  ;;  %v1702_v45 = vld [vmem:[#allocation2 + $0x7] ss:$8 sm:$0xf] }
 0x136   : > { %v1609_v41 = vadd.f32 %v20256_v23, %v1583_v63  ;;  %v1610_v44 = vadd.f32 %v20260_v27, %v1584_v1  ;;  %v1670_v49 = vld [vmem:[#allocation2 + $0x2] ss:$8 sm:$0xf]  ;;  %v1672_v7 = vld [vmem:[#allocation2 + $0x3] ss:$8 sm:$0xf]  ;;  %v1333_v23 = vadd.f32 %v20258_v25, %v20241_v3  ;;  %v20305_v9 = vmax.f32 %v1700_v42, %v1702_v45 }
 0x137   : > { %v1623_v43 = vmax.f32 %v1607_v0, 0.0  ;;  %1659 = vrot.lane.b32.xlu0 %v20292_v18, %s19937_s22  ;;  %v1624_v47 = vmax.f32 %v1608_v19, 0.0  ;;  %v20312_v3 = vmax.f32 %v1670_v49, %v1672_v7  ;;  %v13164_v17 = vld [vmem:[%s24418_s2 + $0x4c0] sm:$0xf]  ;;  %v18433_v0 = vld [vmem:[%s24418_s2 + $0x4cc] sm:$0xf0] }
 0x138   : > { %v1625_v48 = vmax.f32 %v1609_v41, 0.0  ;;  %v1626_v46 = vmax.f32 %v1610_v44, 0.0  ;;  %v13292_v1 = vld [vmem:[%s24418_s2 + $0x5c0] sm:$0xf]  ;;  %v13165_v19 = vor.u32 %v18433_v0, %v13164_v17  ;;  %v18465_v41 = vld [vmem:[%s24418_s2 + $0x5cc] sm:$0xf0] }
 0x139   : > { %1639 = vst [vmem:[#allocation2 + $0x50] sm:$0xff] %v1623_v43  ;;  %v1715_v51 = vld [vmem:[#allocation2 + $0x20] ss:$8 sm:$0xf]  ;;  %v13293_v44 = vor.u32 %v18465_v41, %v13292_v1 }
 0x13a   : > { %1640 = vst [vmem:[#allocation2 + $0x58] sm:$0xff] %v1624_v47  ;;  %v1549_v52 = vpop.f32.mrf.mxu2  ;;  %v1717_v53 = vld [vmem:[#allocation2 + $0x21] ss:$8 sm:$0xf]  ;;  %v1568_v27 = vpop.f32.mrf.mxu3  ;;  %2845 = vmatpush.bf16.msrb.mxu0 %v13165_v19 }
 0x13b   : > { %1641 = vst [vmem:[#allocation2 + $0x60] sm:$0xff] %v1625_v48  ;;  %v1585_v54 = vadd.f32 %v1549_v52, %v1314_v50  ;;  %v20303_v55 = vmax.f32 %v1715_v51, %v1717_v53  ;;  %v1586_v56 = vadd.f32 %v1568_v27, %v1333_v23  ;;  %v1730_v25 = vld [vmem:[#allocation2 + $0x22] ss:$8 sm:$0xf]  ;;  %2859 = vmatpush.bf16.msrb.mxu1 %v13293_v44 }
 0x13c   : > { %1642 = vst [vmem:[#allocation2 + $0x68] sm:$0xff] %v1626_v46  ;;  %v1732_v57 = vld [vmem:[#allocation2 + $0x23] ss:$8 sm:$0xf] }
 0x13d   : > { %v1611_v2 = vadd.f32 %v20264_v36, %v1585_v54  ;;  %1720 = vrot.lane.b32.xlu2 %v20303_v55, %s19937_s22  ;;  %1705 = vrot.lane.b32.xlu1 %v20305_v9, %s19937_s22  ;;  %v1612_v22 = vadd.f32 %v20266_v40, %v1586_v56  ;;  %v1760_v5 = vld [vmem:[#allocation2 + $0x26] ss:$8 sm:$0xf]  ;;  %v1762_v8 = vld [vmem:[#allocation2 + $0x27] ss:$8 sm:$0xf]  ;;  %v20317_v11 = vmax.f32 %v1730_v25, %v1732_v57 }
 0x13e   : > { %v1745_v36 = vld [vmem:[#allocation2 + $0x24] ss:$8 sm:$0xf]  ;;  %v1747_v10 = vld [vmem:[#allocation2 + $0x25] ss:$8 sm:$0xf]  ;;  %v20319_v20 = vmax.f32 %v1760_v5, %v1762_v8  ;;  %v1645_v8 = vlaneseq }
 0x13f   : > { %v1627_v4 = vmax.f32 %v1611_v2, 0.0  ;;  %1675 = vrot.lane.b32.xlu0 %v20312_v3, %s19937_s22  ;;  %v1628_v6 = vmax.f32 %v1612_v22, 0.0  ;;  %v20325_v40 = vmax.f32 %v1745_v36, %v1747_v10  ;;  %v13420_v42 = vld [vmem:[%s24418_s2 + $0x6c0] sm:$0xf]  ;;  %v18497_v43 = vld [vmem:[%s24418_s2 + $0x6cc] sm:$0xf0] }
 0x140   : > { %v13421_v45 = vor.u32 %v18497_v43, %v13420_v42  ;;  %v13148_v47 = vld [vmem:[%s24418_s2 + $0x4a0] sm:$0xf]  ;;  %v18429_v48 = vld [vmem:[%s24418_s2 + $0x4ac] sm:$0xf0]  ;;  %vm20446_vm4 = vcmp.lt.s32.totalorder %v1645_v8, 496  ;;  %vm22917_vm5 = vcmp.lt.s32.totalorder %v1645_v8, 480 }
 0x141   : > { %1643 = vst [vmem:[#allocation2 + $0x70] sm:$0xff] %v1627_v4  ;;  %v1775_v21 = vld [vmem:[#allocation2 + $0x40] ss:$8 sm:$0xf]  ;;  %v13149_v7 = vor.u32 %v18429_v48, %v13148_v47  ;;  %vm23829_vm10 = vcmp.lt.s32.totalorder %v1645_v8, 512  ;;  %vm23886_vm11 = vcmp.lt.s32.totalorder %v1645_v8, 256 }
 0x142   : > { %1644 = vst [vmem:[#allocation2 + $0x78] sm:$0xff] %v1628_v6  ;;  %v1777_v58 = vld [vmem:[#allocation2 + $0x41] ss:$8 sm:$0xf]  ;;  %2873 = vmatpush.bf16.msrb.mxu2 %v13421_v45  ;;  %v16591_v8 = vld [vmem:[#allocation15 + $0x2b8] sm:$0xf] }
 0x143   : > { %v1805_v12 = vld [vmem:[#allocation2 + $0x44] ss:$8 sm:$0xf]  ;;  %v1807_v24 = vld [vmem:[#allocation2 + $0x45] ss:$8 sm:$0xf]  ;;  %v20329_v13 = vmax.f32 %v1775_v21, %v1777_v58  ;;  %2846 = vmatpush.bf16.msrb.mxu0 %v13149_v7 }
 0x144   : > { %v1790_v59 = vld [vmem:[#allocation2 + $0x42] ss:$8 sm:$0xf]  ;;  %v1792_v60 = vld [vmem:[#allocation2 + $0x43] ss:$8 sm:$0xf]  ;;  %v20331_v14 = vmax.f32 %v1805_v12, %v1807_v24 }
 0x145   : > { %1735 = vrot.lane.b32.xlu2 %v20317_v11, %s19937_s22  ;;  %1765 = vrot.lane.b32.xlu1 %v20319_v20, %s19937_s22  ;;  %v20337_v61 = vmax.f32 %v1790_v59, %v1792_v60  ;;  %v1820_v15 = vld [vmem:[#allocation2 + $0x46] ss:$8 sm:$0xf]  ;;  %v1822_v26 = vld [vmem:[#allocation2 + $0x47] ss:$8 sm:$0xf] }
 0x146   : > { %v20341_v32 = vmax.f32 %v1820_v15, %v1822_v26  ;;  %v13276_v49 = vld [vmem:[%s24418_s2 + $0x5a0] sm:$0xf]  ;;  %v18461_v50 = vld [vmem:[%s24418_s2 + $0x5ac] sm:$0xf0] }
 0x147   : > { %1750 = vrot.lane.b32.xlu0 %v20325_v40, %s19937_s22  ;;  %v13404_v46 = vld [vmem:[%s24418_s2 + $0x6a0] sm:$0xf]  ;;  %v18493_v51 = vld [vmem:[%s24418_s2 + $0x6ac] sm:$0xf0]  ;;  %v13277_v23 = vor.u32 %v18461_v50, %v13276_v49 }
 0x148   : > { %v13405_v52 = vor.u32 %v18493_v51, %v13404_v46  ;;  %v13132_v53 = vld [vmem:[%s24418_s2 + $0x480] sm:$0xf]  ;;  %v18425_v54 = vld [vmem:[%s24418_s2 + $0x48c] sm:$0xf0] }
 0x149   : > { %v1850_v28 = vld [vmem:[#allocation2 + $0x62] ss:$8 sm:$0xf]  ;;  %v1852_v29 = vld [vmem:[#allocation2 + $0x63] ss:$8 sm:$0xf]  ;;  %2860 = vmatpush.bf16.msrb.mxu1 %v13277_v23  ;;  %v13133_v56 = vor.u32 %v18425_v54, %v13132_v53 }
 0x14a   : > { %v1835_v30 = vld [vmem:[#allocation2 + $0x60] ss:$8 sm:$0xf]  ;;  %v1837_v31 = vld [vmem:[#allocation2 + $0x61] ss:$8 sm:$0xf]  ;;  %v20343_v33 = vmax.f32 %v1850_v28, %v1852_v29  ;;  %2874 = vmatpush.bf16.msrb.mxu2 %v13405_v52 }
 0x14b   : > { %v20349_v34 = vmax.f32 %v1835_v30, %v1837_v31  ;;  %v1865_v35 = vld [vmem:[#allocation2 + $0x64] ss:$8 sm:$0xf]  ;;  %v1867_v62 = vld [vmem:[#allocation2 + $0x65] ss:$8 sm:$0xf]  ;;  %2847 = vmatpush.bf16.msrb.mxu0 %v13133_v56 }
 0x14c   : > { %v1880_v16 = vld [vmem:[#allocation2 + $0x66] ss:$8 sm:$0xf]  ;;  %v1882_v38 = vld [vmem:[#allocation2 + $0x67] ss:$8 sm:$0xf]  ;;  %v20353_v39 = vmax.f32 %v1865_v35, %v1867_v62 }
 0x14d   : > { %1780 = vrot.lane.b32.xlu2 %v20329_v13, %s19937_s22  ;;  %1810 = vrot.lane.b32.xlu1 %v20331_v14, %s19937_s22  ;;  %v20357_v63 = vmax.f32 %v1880_v16, %v1882_v38  ;;  %v13260_v27 = vld [vmem:[%s24418_s2 + $0x580] sm:$0xf]  ;;  %v18457_v2 = vld [vmem:[%s24418_s2 + $0x58c] sm:$0xf0] }
 0x14e   : > { %v13388_v22 = vld [vmem:[%s24418_s2 + $0x680] sm:$0xf]  ;;  %v18489_v25 = vld [vmem:[%s24418_s2 + $0x68c] sm:$0xf0]  ;;  %v13261_v57 = vor.u32 %v18457_v2, %v13260_v27  ;;  %v18434_v31 = vld [vmem:[%s24418_s2 + $0x4d4] sm:$0xf0] }
 0x14f   : > { %1795 = vrot.lane.b32.xlu0 %v20337_v61, %s19937_s22  ;;  %v13389_v4 = vor.u32 %v18489_v25, %v13388_v22  ;;  %v13532_v5 = vld [vmem:[%s24418_s2 + $0x7a0] sm:$0xf]  ;;  %v18525_v6 = vld [vmem:[%s24418_s2 + $0x7ac] sm:$0xf0] }
 0x150   : > { %v13533_v36 = vor.u32 %v18525_v6, %v13532_v5  ;;  %2861 = vmatpush.bf16.msrb.mxu1 %v13261_v57  ;;  %v13116_v21 = vld [vmem:[%s24418_s2 + $0x460] sm:$0xf]  ;;  %v18421_v58 = vld [vmem:[%s24418_s2 + $0x46c] sm:$0xf0] }
 0x151   : > { %2875 = vmatpush.bf16.msrb.mxu2 %v13389_v4  ;;  %v13244_v12 = vld [vmem:[%s24418_s2 + $0x560] sm:$0xf]  ;;  %v13117_v59 = vor.u32 %v18421_v58, %v13116_v21  ;;  %v18453_v60 = vld [vmem:[%s24418_s2 + $0x56c] sm:$0xf0] }
 0x152   : > { %2888 = vmatpush.bf16.msrb.mxu3 %v13533_v36  ;;  %v13372_v15 = vld [vmem:[%s24418_s2 + $0x660] sm:$0xf]  ;;  %v13245_v26 = vor.u32 %v18453_v60, %v13244_v12  ;;  %v18485_v28 = vld [vmem:[%s24418_s2 + $0x66c] sm:$0xf0] }
 0x153   : > { %v13516_v29 = vld [vmem:[%s24418_s2 + $0x780] sm:$0xf]  ;;  %v18521_v30 = vld [vmem:[%s24418_s2 + $0x78c] sm:$0xf0]  ;;  %2848 = vmatpush.bf16.msrb.mxu0 %v13117_v59  ;;  %v13373_v62 = vor.u32 %v18485_v28, %v13372_v15  ;;  %v19938_v15 = vmov 0.0  }
 0x154   : > { %v13517_v16 = vor.u32 %v18521_v30, %v13516_v29  ;;  %2862 = vmatpush.bf16.msrb.mxu1 %v13245_v26  ;;  %v13100_v17 = vld [vmem:[%s24418_s2 + $0x440] sm:$0xf]  ;;  %v18417_v0 = vld [vmem:[%s24418_s2 + $0x44c] sm:$0xf0] }
 0x155   : > { %1825 = vrot.lane.b32.xlu2 %v20341_v32, %s19937_s22  ;;  %1855 = vrot.lane.b32.xlu1 %v20343_v33, %s19937_s22  ;;  %v13228_v1 = vld [vmem:[%s24418_s2 + $0x540] sm:$0xf]  ;;  %v13101_v19 = vor.u32 %v18417_v0, %v13100_v17  ;;  %v18481_v42 = vld [vmem:[%s24418_s2 + $0x64c] sm:$0xf0] }
 0x156   : > { %2876 = vmatpush.bf16.msrb.mxu2 %v13373_v62  ;;  %2889 = vmatpush.bf16.msrb.mxu3 %v13517_v16  ;;  %v13356_v41 = vld [vmem:[%s24418_s2 + $0x640] sm:$0xf]  ;;  %v18517_v47 = vld [vmem:[%s24418_s2 + $0x76c] sm:$0xf0] }
 0x157   : > { %1840 = vrot.lane.b32.xlu0 %v20349_v34, %s19937_s22  ;;  %v13357_v44 = vor.u32 %v18481_v42, %v13356_v41  ;;  %v13500_v45 = vld [vmem:[%s24418_s2 + $0x760] sm:$0xf]  ;;  %2849 = vmatpush.bf16.msrb.mxu0 %v13101_v19  ;;  %v18413_v50 = vld [vmem:[%s24418_s2 + $0x42c] sm:$0xf0] }
 0x158   : > { %v13501_v49 = vor.u32 %v18517_v47, %v13500_v45  ;;  %v13084_v7 = vld [vmem:[%s24418_s2 + $0x420] sm:$0xf]  ;;  %v18445_v52 = vld [vmem:[%s24418_s2 + $0x52c] sm:$0xf0] }
 0x159   : > { %v13212_v46 = vld [vmem:[%s24418_s2 + $0x520] sm:$0xf]  ;;  %v13085_v23 = vor.u32 %v18413_v50, %v13084_v7  ;;  %v18477_v27 = vld [vmem:[%s24418_s2 + $0x62c] sm:$0xf0]  ;;  %v13166_v7 = vld [vmem:[%s24418_s2 + $0x4d0] sm:$0xf0] }
 0x15a   : > { %2877 = vmatpush.bf16.msrb.mxu2 %v13357_v44  ;;  %v13340_v53 = vld [vmem:[%s24418_s2 + $0x620] sm:$0xf]  ;;  %2890 = vmatpush.bf16.msrb.mxu3 %v13501_v49  ;;  %v13213_v54 = vor.u32 %v18445_v52, %v13212_v46  ;;  %v18513_v2 = vld [vmem:[%s24418_s2 + $0x74c] sm:$0xf0]  ;;  %v18431_v49 = vld [vmem:[%s24418_s2 + $0x4c4] sm:$0xf] }
 0x15b   : > { %v13484_v56 = vld [vmem:[%s24418_s2 + $0x740] sm:$0xf]  ;;  %2850 = vmatpush.bf16.msrb.mxu0 %v13085_v23  ;;  %v13341_v25 = vor.u32 %v18477_v27, %v13340_v53  ;;  %v18409_v6 = vld [vmem:[%s24418_s2 + $0x40c] sm:$0xf0]  ;;  %v13169_v23 = vor.u32 %v18431_v49, %v13166_v7  ;;  %v18463_v52 = vld [vmem:[%s24418_s2 + $0x5c4] sm:$0xf] }
 0x15c   : > { %v13485_v57 = vor.u32 %v18513_v2, %v13484_v56  ;;  %v13068_v5 = vld [vmem:[%s24418_s2 + $0x400] sm:$0xf]  ;;  %v18441_v21 = vld [vmem:[%s24418_s2 + $0x50c] sm:$0xf0]  ;;  %v13294_v53 = vld [vmem:[%s24418_s2 + $0x5d0] sm:$0xf0] }
 0x15d   : > { %1870 = vrot.lane.b32.xlu2 %v20353_v39, %s19937_s22  ;;  %v13196_v36 = vld [vmem:[%s24418_s2 + $0x500] sm:$0xf]  ;;  %v18473_v58 = vld [vmem:[%s24418_s2 + $0x60c] sm:$0xf0]  ;;  %v18419_v7 = vld [vmem:[%s24418_s2 + $0x464] sm:$0xf] }
 0x15e   : > { %2878 = vmatpush.bf16.msrb.mxu2 %v13341_v25  ;;  %2891 = vmatpush.bf16.msrb.mxu3 %v13485_v57  ;;  %v13197_v12 = vor.u32 %v18441_v21, %v13196_v36  ;;  %v13468_v59 = vld [vmem:[%s24418_s2 + $0x720] sm:$0xf]  ;;  %v18509_v60 = vld [vmem:[%s24418_s2 + $0x72c] sm:$0xf0] }
 0x15f   : > { %1885 = vrot.lane.b32.xlu0 %v20357_v63, %s19937_s22  ;;  %1649 = vst.msk [vmem:[#allocation4] ss:$8 sm:$0xf] %vm20446_vm4, %v19938_v15  ;;  %v13469_v29 = vor.u32 %v18509_v60, %v13468_v59  ;;  %v13052_v30 = vld [vmem:[%s24418_s2 + $0x3e0] sm:$0xf]  ;;  %s24425_s22 = smov %s24424_s3 }
 0x160   : > { %v13180_v62 = vld [vmem:[%s24418_s2 + $0x4e0] sm:$0xf]  ;;  %v18437_v0 = vld [vmem:[%s24418_s2 + $0x4ec] sm:$0xf0]  ;;  %v13406_v60 = vld [vmem:[%s24418_s2 + $0x6b0] sm:$0xf0] }
 0x161   : > { %v18469_v41 = vld [vmem:[%s24418_s2 + $0x5ec] sm:$0xf0]  ;;  %v13452_v42 = vld [vmem:[%s24418_s2 + $0x700] sm:$0xf] }
 0x162   : > { %2892 = vmatpush.bf16.msrb.mxu3 %v13469_v29  ;;  %v13436_v56 = vld [vmem:[%s24418_s2 + $0x6e0] sm:$0xf]  ;;  %v18501_v2 = vld [vmem:[%s24418_s2 + $0x6ec] sm:$0xf0] }
 0x163   : > { %v13437_v57 = vor.u32 %v18501_v2, %v13436_v56  ;;  %v13374_v56 = vld [vmem:[%s24418_s2 + $0x670] sm:$0xf0]  ;;  %v18515_v2 = vld [vmem:[%s24418_s2 + $0x764] sm:$0xf] }
 0x164   : > { %1652 = vst.msk [vmem:[#allocation4 + $0x41] ss:$8 sm:$0xf] %vm20446_vm4, %v19938_v15 }
 0x165   : > { %4971 = vst.msk [vmem:[#allocation5] ss:$8 sm:$0xf] %vm22917_vm5, %v19938_v15 }
 0x166   : > { %4974 = vst.msk [vmem:[#allocation5 + $0x21] ss:$8 sm:$0xf] %vm22917_vm5, %v19938_v15 }
 0x197   : > { %v1721_v10 = vpop.permute.xlu2 %1720 }
 0x198   : > { %v1722_v24 = vrot.slane %v1721_v10, 1 }
 0x19a   : > { %v1723_v35 = vsel %vm1662_vm3, %v1721_v10, %v1722_v24  ;;  %v13069_v10 = vor.u32 %v18409_v6, %v13068_v5  ;;  %v13150_v5 = vld [vmem:[%s24418_s2 + $0x4b0] sm:$0xf0] }
 0x19b   : > { %v1725_v38 = vmax.f32 %v20303_v55, %v1723_v35  ;;  %v18449_v55 = vld [vmem:[%s24418_s2 + $0x54c] sm:$0xf0] }
 0x19c   : > { %v13229_v43 = vor.u32 %v18449_v55, %v13228_v1  ;;  %2851 = vmatpush.bf16.msrb.mxu0 %v13069_v10  ;;  %v18405_v35 = vld [vmem:[%s24418_s2 + $0x3ec] sm:$0xf0]  ;;  %v13308_v1 = vld [vmem:[%s24418_s2 + $0x5e0] sm:$0xf]  ;;  %v13181_v55 = vor.u32 %v18437_v0, %v13180_v62  ;;  %v18459_v10 = vld [vmem:[%s24418_s2 + $0x5a4] sm:$0xf] }
 0x19d   : > { %1727 = vst.msk [vmem:[#allocation4 + $0x5] ss:$8 sm:$0xf] %vm20446_vm4, %v1725_v38  ;;  %v13053_v17 = vor.u32 %v18405_v35, %v13052_v30 }
 0x19e   : > { %2863 = vmatpush.bf16.msrb.mxu1 %v13229_v43  ;;  %v18505_v43 = vld [vmem:[%s24418_s2 + $0x70c] sm:$0xf0] }
 0x19f   : > { %v1736_v48 = vpop.permute.xlu2 %1735 }
 0x1a0   : > { %v1737_v51 = vrot.slane %v1736_v48, 1  ;;  %2852 = vmatpush.bf16.msrb.mxu0 %v13053_v17 }
 0x1a2   : > { %v1738_v22 = vsel %vm1662_vm3, %v1736_v48, %v1737_v51  ;;  %2864 = vmatpush.bf16.msrb.mxu1 %v13213_v54  ;;  %v13309_v48 = vor.u32 %v18469_v41, %v13308_v1  ;;  %v13453_v51 = vor.u32 %v18505_v43, %v13452_v42  ;;  %v18495_v54 = vld [vmem:[%s24418_s2 + $0x6c4] sm:$0xf]  ;;  %v13262_v41 = vld [vmem:[%s24418_s2 + $0x590] sm:$0xf0] }
 0x1a3   : > { %v1740_v4 = vmax.f32 %v20317_v11, %v1738_v22  ;;  %v13324_v11 = vld [vmem:[%s24418_s2 + $0x600] sm:$0xf]  ;;  %v18487_v42 = vld [vmem:[%s24418_s2 + $0x684] sm:$0xf] }
 0x1a4   : > { %v13325_v24 = vor.u32 %v18473_v58, %v13324_v11  ;;  %2893 = vmatpush.bf16.msrb.mxu3 %v13453_v51  ;;  %2901 = vmatpush.bf16.msra.mxu0 %v13169_v23  ;;  %v13278_v58 = vld [vmem:[%s24418_s2 + $0x5b0] sm:$0xf0]  ;;  %v18451_v23 = vld [vmem:[%s24418_s2 + $0x564] sm:$0xf] }
 0x1a5   : > { %1742 = vst.msk [vmem:[#allocation4 + $0x6] ss:$8 sm:$0xf] %vm20446_vm4, %v1740_v4  ;;  %v18427_v4 = vld [vmem:[%s24418_s2 + $0x4a4] sm:$0xf]  ;;  %v13281_v59 = vor.u32 %v18459_v10, %v13278_v58 }
 0x1a6   : > { %2865 = vmatpush.bf16.msrb.mxu1 %v13197_v12  ;;  %2879 = vmatpush.bf16.msrb.mxu2 %v13325_v24  ;;  %v13153_v36 = vor.u32 %v18427_v4, %v13150_v5  ;;  %v18491_v12 = vld [vmem:[%s24418_s2 + $0x6a4] sm:$0xf] }
 0x1a7   : > { %v1781_v26 = vpop.permute.xlu2 %1780  ;;  %v1691_v28 = vpop.permute.xlu1 %1690  ;;  %v13409_v62 = vor.u32 %v18491_v12, %v13406_v60  ;;  %v18447_v58 = vld [vmem:[%s24418_s2 + $0x544] sm:$0xf]  ;;  %v13230_v12 = vld [vmem:[%s24418_s2 + $0x550] sm:$0xf0] }
 0x1a8   : > { %v1782_v16 = vrot.slane %v1781_v26, 1  ;;  %v1692_v38 = vrot.slane %v1691_v28, 1  ;;  %2894 = vmatpush.bf16.msrb.mxu3 %v13437_v57  ;;  %2902 = vmatpush.bf16.msra.mxu0 %v13153_v36  ;;  %v18511_v60 = vld [vmem:[%s24418_s2 + $0x744] sm:$0xf] }
 0x1a9   : > { %v1660_v19 = vpop.permute.xlu0 %1659 }
 0x1aa   : > { %v1783_v44 = vsel %vm1662_vm3, %v1781_v26, %v1782_v16  ;;  %v1693_v45 = vsel %vm1662_vm3, %v1691_v28, %v1692_v38  ;;  %v1661_v47 = vrot.slane %v1660_v19, 1  ;;  %2866 = vmatpush.bf16.msrb.mxu1 %v13181_v55  ;;  %2880 = vmatpush.bf16.msrb.mxu2 %v13309_v48  ;;  %v18523_v26 = vld [vmem:[%s24418_s2 + $0x7a4] sm:$0xf]  ;;  %v13534_v28 = vld [vmem:[%s24418_s2 + $0x7b0] sm:$0xf0] }
 0x1ab   : > { %v1785_v50 = vmax.f32 %v20329_v13, %v1783_v44  ;;  %v1695_v46 = vmax.f32 %v20287_v37, %v1693_v45  ;;  %v13297_v13 = vor.u32 %v18463_v52, %v13294_v53  ;;  %v13422_v37 = vld [vmem:[%s24418_s2 + $0x6d0] sm:$0xf0]  ;;  %v18423_v16 = vld [vmem:[%s24418_s2 + $0x484] sm:$0xf]  ;;  %v13537_v1 = vor.u32 %v18523_v26, %v13534_v28 }
 0x1ac   : > { %v1663_v27 = vsel %vm1662_vm3, %v1660_v19, %v1661_v47  ;;  %v13425_v25 = vor.u32 %v18495_v54, %v13422_v37  ;;  %v13134_v38 = vld [vmem:[%s24418_s2 + $0x490] sm:$0xf0]  ;;  %v18455_v55 = vld [vmem:[%s24418_s2 + $0x584] sm:$0xf] }
 0x1ad   : > { %1787 = vst.msk [vmem:[#allocation4 + $0x21] ss:$8 sm:$0xf] %vm20446_vm4, %v1785_v50  ;;  %v1665_v22 = vmax.f32 %v20292_v18, %v1663_v27  ;;  %v13137_v19 = vor.u32 %v18423_v16, %v13134_v38  ;;  %v18519_v44 = vld [vmem:[%s24418_s2 + $0x784] sm:$0xf]  ;;  %2944 = vmatpush.bf16.msra.mxu3 %v13537_v1 }
 0x1ae   : > { %1697 = vst.msk [vmem:[#allocation4 + $0x3] ss:$8 sm:$0xf] %vm20446_vm4, %v1695_v46  ;;  %2915 = vmatpush.bf16.msra.mxu1 %v13297_v13  ;;  %2929 = vmatpush.bf16.msra.mxu2 %v13425_v25  ;;  %v13518_v45 = vld [vmem:[%s24418_s2 + $0x790] sm:$0xf0] }
 0x1af   : > { %1667 = vst.msk [vmem:[#allocation4 + $0x1] ss:$8 sm:$0xf] %vm20446_vm4, %v1665_v22  ;;  %v1826_v18 = vpop.permute.xlu2 %1825  ;;  %v1706_v6 = vpop.permute.xlu1 %1705  ;;  %2903 = vmatpush.bf16.msra.mxu0 %v13137_v19  ;;  %v13521_v49 = vor.u32 %v18519_v44, %v13518_v45  ;;  %v13118_v50 = vld [vmem:[%s24418_s2 + $0x470] sm:$0xf0] }
 0x1b0   : > { %v1827_v21 = vrot.slane %v1826_v18, 1  ;;  %v1707_v11 = vrot.slane %v1706_v6, 1  ;;  %v13121_v51 = vor.u32 %v18419_v7, %v13118_v50  ;;  %v13246_v54 = vld [vmem:[%s24418_s2 + $0x570] sm:$0xf0]  ;;  %v18483_v27 = vld [vmem:[%s24418_s2 + $0x664] sm:$0xf] }
 0x1b1   : > { %v1676_v24 = vpop.permute.xlu0 %1675  ;;  %2945 = vmatpush.bf16.msra.mxu3 %v13521_v49  ;;  %v13249_v37 = vor.u32 %v18451_v23, %v13246_v54  ;;  %v13502_v22 = vld [vmem:[%s24418_s2 + $0x770] sm:$0xf0]  ;;  %v13377_v5 = vor.u32 %v18483_v27, %v13374_v56  ;;  %v18443_v38 = vld [vmem:[%s24418_s2 + $0x524] sm:$0xf] }
 0x1b2   : > { %v1828_v29 = vsel %vm1662_vm3, %v1826_v18, %v1827_v21  ;;  %v1708_v30 = vsel %vm1662_vm3, %v1706_v6, %v1707_v11  ;;  %v1677_v35 = vrot.slane %v1676_v24, 1  ;;  %2916 = vmatpush.bf16.msra.mxu1 %v13281_v59  ;;  %2930 = vmatpush.bf16.msra.mxu2 %v13409_v62  ;;  %v18415_v18 = vld [vmem:[%s24418_s2 + $0x444] sm:$0xf]  ;;  %v13102_v6 = vld [vmem:[%s24418_s2 + $0x450] sm:$0xf0]  ;;  %v13505_v21 = vor.u32 %v18515_v2, %v13502_v22 }
 0x1b3   : > { %v1830_v17 = vmax.f32 %v20341_v32, %v1828_v29  ;;  %v1710_v0 = vmax.f32 %v20305_v9, %v1708_v30  ;;  %v13265_v32 = vor.u32 %v18455_v55, %v13262_v41  ;;  %v13390_v9 = vld [vmem:[%s24418_s2 + $0x690] sm:$0xf0]  ;;  %2904 = vmatpush.bf16.msra.mxu0 %v13121_v51  ;;  %v13105_v11 = vor.u32 %v18415_v18, %v13102_v6  ;;  %v18475_v1 = vld [vmem:[%s24418_s2 + $0x624] sm:$0xf] }
 0x1b4   : > { %v1678_v43 = vsel %vm1662_vm3, %v1676_v24, %v1677_v35  ;;  %v13393_v48 = vor.u32 %v18487_v42, %v13390_v9  ;;  %v18479_v24 = vld [vmem:[%s24418_s2 + $0x644] sm:$0xf]  ;;  %v13486_v26 = vld [vmem:[%s24418_s2 + $0x750] sm:$0xf0] }
 0x1b5   : > { %1832 = vst.msk [vmem:[#allocation4 + $0x24] ss:$8 sm:$0xf] %vm20446_vm4, %v1830_v17  ;;  %v1680_v47 = vmax.f32 %v20312_v3, %v1678_v43  ;;  %2946 = vmatpush.bf16.msra.mxu3 %v13505_v21  ;;  %v13489_v30 = vor.u32 %v18511_v60, %v13486_v26  ;;  %v18411_v35 = vld [vmem:[%s24418_s2 + $0x424] sm:$0xf] }
 0x1b6   : > { %1712 = vst.msk [vmem:[#allocation4 + $0x4] ss:$8 sm:$0xf] %vm20446_vm4, %v1710_v0  ;;  %2917 = vmatpush.bf16.msra.mxu1 %v13265_v32  ;;  %2931 = vmatpush.bf16.msra.mxu2 %v13393_v48  ;;  %v13086_v62 = vld [vmem:[%s24418_s2 + $0x430] sm:$0xf0] }
 0x1b7   : > { %1682 = vst.msk [vmem:[#allocation4 + $0x2] ss:$8 sm:$0xf] %vm20446_vm4, %v1680_v47  ;;  %v1871_v46 = vpop.permute.xlu2 %1870  ;;  %v1766_v3 = vpop.permute.xlu1 %1765  ;;  %2905 = vmatpush.bf16.msra.mxu0 %v13105_v11  ;;  %v13214_v0 = vld [vmem:[%s24418_s2 + $0x530] sm:$0xf0] }
 0x1b8   : > { %v1872_v52 = vrot.slane %v1871_v46, 1  ;;  %v1767_v53 = vrot.slane %v1766_v3, 1  ;;  %v13217_v55 = vor.u32 %v18443_v38, %v13214_v0  ;;  %v13342_v41 = vld [vmem:[%s24418_s2 + $0x630] sm:$0xf0]  ;;  %v18507_v42 = vld [vmem:[%s24418_s2 + $0x724] sm:$0xf] }
 0x1b9   : > { %v1751_v13 = vpop.permute.xlu0 %1750  ;;  %2947 = vmatpush.bf16.msra.mxu3 %v13489_v30  ;;  %v13470_v43 = vld [vmem:[%s24418_s2 + $0x730] sm:$0xf0]  ;;  %v13345_v44 = vor.u32 %v18475_v1, %v13342_v41  ;;  %v18407_v47 = vld [vmem:[%s24418_s2 + $0x404] sm:$0xf]  ;;  %v13172_v41 = vld [vmem:[%s24418_s2 + $0x4c8] sm:$0xf] }
 0x1ba   : > { %v1873_v25 = vsel %vm1662_vm3, %v1871_v46, %v1872_v52  ;;  %v1768_v57 = vsel %vm1662_vm3, %v1766_v3, %v1767_v53  ;;  %v1752_v4 = vrot.slane %v1751_v13, 1  ;;  %2918 = vmatpush.bf16.msra.mxu1 %v13249_v37  ;;  %2932 = vmatpush.bf16.msra.mxu2 %v13377_v5  ;;  %v13473_v45 = vor.u32 %v18507_v42, %v13470_v43  ;;  %v13070_v48 = vld [vmem:[%s24418_s2 + $0x410] sm:$0xf0]  ;;  %v18439_v50 = vld [vmem:[%s24418_s2 + $0x504] sm:$0xf] }
 0x1bb   : > { %v1875_v36 = vmax.f32 %v20353_v39, %v1873_v25  ;;  %v1770_v10 = vmax.f32 %v20319_v20, %v1768_v57  ;;  %v13233_v39 = vor.u32 %v18447_v58, %v13230_v12  ;;  %v13358_v20 = vld [vmem:[%s24418_s2 + $0x650] sm:$0xf0]  ;;  %v13073_v7 = vor.u32 %v18407_v47, %v13070_v48  ;;  %v18471_v3 = vld [vmem:[%s24418_s2 + $0x604] sm:$0xf] }
 0x1bc   : > { %v1753_v59 = vsel %vm1662_vm3, %v1751_v13, %v1752_v4  ;;  %v13361_v29 = vor.u32 %v18479_v24, %v13358_v20  ;;  %v13198_v46 = vld [vmem:[%s24418_s2 + $0x510] sm:$0xf0]  ;;  %v18503_v52 = vld [vmem:[%s24418_s2 + $0x704] sm:$0xf]  ;;  %v13173_v47 = vor.u32 %v18434_v31, %v13172_v41  ;;  %v13268_v31 = vld [vmem:[%s24418_s2 + $0x588] sm:$0xf] }
 0x1bd   : > { %1877 = vst.msk [vmem:[#allocation4 + $0x27] ss:$8 sm:$0xf] %vm20446_vm4, %v1875_v36  ;;  %v1755_v28 = vmax.f32 %v20325_v40, %v1753_v59  ;;  %v13089_v40 = vor.u32 %v18411_v35, %v13086_v62  ;;  %v13201_v23 = vor.u32 %v18439_v50, %v13198_v46  ;;  %v13454_v53 = vld [vmem:[%s24418_s2 + $0x710] sm:$0xf0]  ;;  %2948 = vmatpush.bf16.msra.mxu3 %v13473_v45 }
 0x1be   : > { %1772 = vst.msk [vmem:[#allocation4 + $0x20] ss:$8 sm:$0xf] %vm20446_vm4, %v1770_v10  ;;  %2919 = vmatpush.bf16.msra.mxu1 %v13233_v39  ;;  %2933 = vmatpush.bf16.msra.mxu2 %v13361_v29  ;;  %v13457_v13 = vor.u32 %v18503_v52, %v13454_v53  ;;  %v18403_v37 = vld [vmem:[%s24418_s2 + $0x3e4] sm:$0xf] }
 0x1bf   : > { %1757 = vst.msk [vmem:[#allocation4 + $0x7] ss:$8 sm:$0xf] %vm20446_vm4, %v1755_v28  ;;  %v1811_v16 = vpop.permute.xlu1 %1810  ;;  %2906 = vmatpush.bf16.msra.mxu0 %v13089_v40  ;;  %v13054_v56 = vld [vmem:[%s24418_s2 + $0x3f0] sm:$0xf0] }
 0x1c0   : > { %v1812_v17 = vrot.slane %v1811_v16, 1  ;;  %v18435_v2 = vld [vmem:[%s24418_s2 + $0x4e4] sm:$0xf]  ;;  %v13057_v25 = vor.u32 %v18403_v37, %v13054_v56  ;;  %v13310_v18 = vld [vmem:[%s24418_s2 + $0x5f0] sm:$0xf0] }
 0x1c1   : > { %v1796_v19 = vpop.permute.xlu0 %1795  ;;  %v18467_v4 = vld [vmem:[%s24418_s2 + $0x5e4] sm:$0xf]  ;;  %2949 = vmatpush.bf16.msra.mxu3 %v13457_v13  ;;  %v13438_v21 = vld [vmem:[%s24418_s2 + $0x6f0] sm:$0xf0] }
 0x1c2   : > { %v1813_v32 = vsel %vm1662_vm3, %v1811_v16, %v1812_v17  ;;  %v1797_v9 = vrot.slane %v1796_v19, 1  ;;  %2920 = vmatpush.bf16.msra.mxu1 %v13217_v55  ;;  %2934 = vmatpush.bf16.msra.mxu2 %v13345_v44  ;;  %v18499_v6 = vld [vmem:[%s24418_s2 + $0x6e4] sm:$0xf]  ;;  %v13313_v10 = vor.u32 %v18467_v4, %v13310_v18  ;;  %v13540_v4 = vld [vmem:[%s24418_s2 + $0x7a8] sm:$0xf] }
 0x1c3   : > { %v1815_v49 = vmax.f32 %v20331_v14, %v1813_v32  ;;  %v13326_v14 = vld [vmem:[%s24418_s2 + $0x610] sm:$0xf0]  ;;  %2907 = vmatpush.bf16.msra.mxu0 %v13073_v7  ;;  %v13441_v12 = vor.u32 %v18499_v6, %v13438_v21 }
 0x1c4   : > { %v1798_v51 = vsel %vm1662_vm3, %v1796_v19, %v1797_v9  ;;  %v13329_v27 = vor.u32 %v18471_v3, %v13326_v14  ;;  %v13300_v3 = vld [vmem:[%s24418_s2 + $0x5c8] sm:$0xf] }
 0x1c5   : > { %1817 = vst.msk [vmem:[#allocation4 + $0x23] ss:$8 sm:$0xf] %vm20446_vm4, %v1815_v49  ;;  %v1800_v54 = vmax.f32 %v20337_v61, %v1798_v51  ;;  %v13182_v61 = vld [vmem:[%s24418_s2 + $0x4f0] sm:$0xf0]  ;;  %2950 = vmatpush.bf16.msra.mxu3 %v13441_v12 }
 0x1c6   : > { %2921 = vmatpush.bf16.msra.mxu1 %v13201_v23  ;;  %v13185_v57 = vor.u32 %v18435_v2, %v13182_v61  ;;  %2935 = vmatpush.bf16.msra.mxu2 %v13329_v27  ;;  %v2031_v29 = vld [vmem:[#allocation4 + $0x8] sm:$0xfe]  ;;  %v2032_v30 = vld [vmem:[#allocation4 + $0x10] sm:$0xfe]  ;;  %v2033_v17 = vld [vmem:[#allocation4 + $0x18] sm:$0xfe] }
 0x1c7   : > { %1802 = vst.msk [vmem:[#allocation4 + $0x22] ss:$8 sm:$0xf] %vm20446_vm4, %v1800_v54  ;;  %v1856_v22 = vpop.permute.xlu1 %1855  ;;  %2908 = vmatpush.bf16.msra.mxu0 %v13057_v25  ;;  %v18466_v51 = vld [vmem:[%s24418_s2 + $0x5d4] sm:$0xf0] }
 0x1c8   : > { %v1857_v5 = vrot.slane %v1856_v22, 1  ;;  %v13428_v54 = vld [vmem:[%s24418_s2 + $0x6c8] sm:$0xf]  ;;  %v18498_v2 = vld [vmem:[%s24418_s2 + $0x6d4] sm:$0xf0] }
 0x1c9   : > { %v1841_v36 = vpop.permute.xlu0 %1840  ;;  %v13429_v12 = vor.u32 %v18498_v2, %v13428_v54  ;;  %v13236_v2 = vld [vmem:[%s24418_s2 + $0x548] sm:$0xf] }
 0x1ca   : > { %v1858_v11 = vsel %vm1662_vm3, %v1856_v22, %v1857_v5  ;;  %v1842_v58 = vrot.slane %v1841_v36, 1  ;;  %2922 = vmatpush.bf16.msra.mxu1 %v13185_v57  ;;  %2936 = vmatpush.bf16.msra.mxu2 %v13313_v10  ;;  %v18526_v5 = vld [vmem:[%s24418_s2 + $0x7b4] sm:$0xf0] }
 0x1cb   : > { %v1860_v24 = vmax.f32 %v20343_v33, %v1858_v11  ;;  %v2030_v33 = vld [vmem:[#allocation4] sm:$0xfe] }
 0x1cc   : > { %v1843_v59 = vsel %vm1662_vm3, %v1841_v36, %v1842_v58  ;;  %v13301_v58 = vor.u32 %v18466_v51, %v13300_v3  ;;  %v18454_v3 = vld [vmem:[%s24418_s2 + $0x574] sm:$0xf0]  ;;  %v13380_v51 = vld [vmem:[%s24418_s2 + $0x668] sm:$0xf] }
 0x1cd   : > { %1862 = vst.msk [vmem:[#allocation4 + $0x26] ss:$8 sm:$0xf] %vm20446_vm4, %v1860_v24  ;;  %v1845_v39 = vmax.f32 %v20349_v34, %v1843_v59  ;;  %v13156_v24 = vld [vmem:[%s24418_s2 + $0x4a8] sm:$0xf] }
 0x1ce   : > { %v18430_v59 = vld [vmem:[%s24418_s2 + $0x4b4] sm:$0xf0] }
 0x1cf   : > { %1847 = vst.msk [vmem:[#allocation4 + $0x25] ss:$8 sm:$0xf] %vm20446_vm4, %v1845_v39 }
 0x1d1   : > { %v1886_v20 = vpop.permute.xlu0 %1885 }
 0x1d2   : > { %v1887_v60 = vrot.slane %v1886_v20, 1 }
 0x1d4   : > { %v1888_v26 = vsel %vm1662_vm3, %v1886_v20, %v1887_v60 }
 0x1d5   : > { %v1890_v28 = vmax.f32 %v20357_v63, %v1888_v26  ;;  %v13541_v26 = vor.u32 %v18526_v5, %v13540_v4  ;;  %v18510_v4 = vld [vmem:[%s24418_s2 + $0x734] sm:$0xf0] }
 0x1d6   : > { %v20803_v35 = vld [vmem:[#allocation4 + $0x20] sm:$0xff]  ;;  %v20805_v62 = vld [vmem:[#allocation4 + $0x28] sm:$0xff]  ;;  %v20807_v16 = vld [vmem:[#allocation4 + $0x30] sm:$0xff] }
 0x1d7   : > { %1892 = vst.msk [vmem:[#allocation4 + $0x40] ss:$8 sm:$0xf] %vm20446_vm4, %v1890_v28  ;;  %v2038_v34 = vpack.c.bf16 %v20803_v35, %v2030_v33  ;;  %v2039_v63 = vpack.c.bf16 %v20805_v62, %v2031_v29  ;;  %v2040_v40 = vpack.c.bf16 %v20807_v16, %v2032_v30  ;;  %v20817_v38 = vld [vmem:[#allocation4 + $0x38] sm:$0xff]  ;;  %v13284_v28 = vld [vmem:[%s24418_s2 + $0x5a8] sm:$0xf] }
 0x1d8   : > { %v2041_v0 = vpack.c.bf16 %v20817_v38, %v2033_v17  ;;  %v18462_v33 = vld [vmem:[%s24418_s2 + $0x5b4] sm:$0xf0]  ;;  %v13412_v29 = vld [vmem:[%s24418_s2 + $0x6a8] sm:$0xf]  ;;  %v13157_v17 = vor.u32 %v18430_v59, %v13156_v24 }
 0x1d9   : > { %v2174_v1 = vshll.u32 %v2038_v34, 16  ;;  %v2186_v19 = vshll.u32 %v2039_v63, 16  ;;  %v2198_v55 = vshll.u32 %v2040_v40, 16  ;;  %v2172_v23 = vshrl.u32 %v2038_v34, 16  ;;  %v18494_v34 = vld [vmem:[%s24418_s2 + $0x6b4] sm:$0xf0] }
 0x1da   : > { %v2210_v42 = vshll.u32 %v2041_v0, 16  ;;  %v2184_v14 = vshrl.u32 %v2039_v63, 16  ;;  %v2196_v37 = vshrl.u32 %v2040_v40, 16  ;;  %v2208_v25 = vshrl.u32 %v2041_v0, 16  ;;  %v13524_v63 = vld [vmem:[%s24418_s2 + $0x788] sm:$0xf] }
 0x1db   : > { %v2176_v43 = vrot.slane %v2174_v1, 1  ;;  %v2188_v32 = vrot.slane %v2186_v19, 1  ;;  %v2200_v50 = vrot.slane %v2198_v55, 1  ;;  %v18522_v40 = vld [vmem:[%s24418_s2 + $0x794] sm:$0xf0]  ;;  %v13285_v0 = vor.u32 %v18462_v33, %v13284_v28 }
 0x1dc   : > { %v2212_v53 = vrot.slane %v2210_v42, 1  ;;  %v13140_v1 = vld [vmem:[%s24418_s2 + $0x488] sm:$0xf]  ;;  %v18426_v19 = vld [vmem:[%s24418_s2 + $0x494] sm:$0xf0]  ;;  %v13413_v55 = vor.u32 %v18494_v34, %v13412_v29  ;;  %v13525_v41 = vor.u32 %v18522_v40, %v13524_v63 }
 0x1dd   : > { %v2177_v61 = vor.u32 %v2176_v43, %v2172_v23  ;;  %v2189_v22 = vor.u32 %v2188_v32, %v2184_v14  ;;  %v2201_v36 = vor.u32 %v2200_v50, %v2196_v37  ;;  %v18458_v42 = vld [vmem:[%s24418_s2 + $0x594] sm:$0xf0]  ;;  %v13396_v43 = vld [vmem:[%s24418_s2 + $0x688] sm:$0xf] }
 0x1de   : > { %v2034_v9 = vld [vmem:[#allocation4 + $0x40] sm:$0x1]  ;;  %v2035_v44 = vld [vmem:[#allocation4 + $0x48] sm:$0x1]  ;;  %v2036_v45 = vld [vmem:[#allocation4 + $0x50] sm:$0x1]  ;;  %v2213_v21 = vor.u32 %v2212_v53, %v2208_v25 }
 0x1df   : > { %v2042_v48 = vpack.c.bf16 %v2034_v9, %v2034_v9  ;;  %v2043_v49 = vpack.c.bf16 %v2035_v44, %v2035_v44  ;;  %v2044_v7 = vpack.c.bf16 %v2036_v45, %v2036_v45  ;;  %v2037_v46 = vld [vmem:[#allocation4 + $0x58] sm:$0x1]  ;;  %v13508_v9 = vld [vmem:[%s24418_s2 + $0x768] sm:$0xf]  ;;  %v13141_v45 = vor.u32 %v18426_v19, %v13140_v1 }
 0x1e0   : > { %v2045_v52 = vpack.c.bf16 %v2037_v46, %v2037_v46  ;;  %v18490_v32 = vld [vmem:[%s24418_s2 + $0x694] sm:$0xf0]  ;;  %v13252_v46 = vld [vmem:[%s24418_s2 + $0x568] sm:$0xf] }
 0x1e1   : > { %v2179_v27 = vshll.u32 %v2042_v48, 16  ;;  %v2191_v13 = vshll.u32 %v2043_v49, 16  ;;  %v2203_v56 = vshll.u32 %v2044_v7, 16  ;;  %v18518_v44 = vld [vmem:[%s24418_s2 + $0x774] sm:$0xf0]  ;;  %v13397_v7 = vor.u32 %v18490_v32, %v13396_v43 }
 0x1e2   : > { %v2215_v57 = vshll.u32 %v2045_v52, 16  ;;  %v13124_v48 = vld [vmem:[%s24418_s2 + $0x468] sm:$0xf]  ;;  %v18422_v49 = vld [vmem:[%s24418_s2 + $0x474] sm:$0xf0]  ;;  %v13509_v50 = vor.u32 %v18518_v44, %v13508_v9  ;;  %v13253_v54 = vor.u32 %v18454_v3, %v13252_v46 }
 0x1e3   : > { %v2181_v18 = vrot.slane %v2179_v27, 1  ;;  %v2193_v6 = vrot.slane %v2191_v13, 1  ;;  %v2205_v10 = vrot.slane %v2203_v56, 1  ;;  %v18486_v23 = vld [vmem:[%s24418_s2 + $0x674] sm:$0xf0]  ;;  %v13125_v53 = vor.u32 %v18422_v49, %v13124_v48 }
 0x1e4   : > { %v2217_v11 = vrot.slane %v2215_v57, 1  ;;  %v13492_v14 = vld [vmem:[%s24418_s2 + $0x748] sm:$0xf]  ;;  %v18514_v52 = vld [vmem:[%s24418_s2 + $0x754] sm:$0xf0]  ;;  %v13381_v37 = vor.u32 %v18486_v23, %v13380_v51 }
 0x1e5   : > { %v20851_v39 = vsel %vm911_vm0, %v2177_v61, %v2181_v18  ;;  %v20854_v20 = vsel %vm911_vm0, %v2189_v22, %v2193_v6  ;;  %v20857_v60 = vsel %vm911_vm0, %v2201_v36, %v2205_v10  ;;  %v13108_v27 = vld [vmem:[%s24418_s2 + $0x448] sm:$0xf]  ;;  %v18418_v13 = vld [vmem:[%s24418_s2 + $0x454] sm:$0xf0]  ;;  %v13493_v56 = vor.u32 %v18514_v52, %v13492_v14  ;;  %v18428_v3 = vld [vmem:[%s24418_s2 + $0x4ac] sm:$0xf] }
 0x1e6   : > { %2853 = vmatmul.bf16.vlgmr.msrb.gmra.mxu0 %v20851_v39  ;;  %2867 = vmatmul.bf16.vlgmr.msrb.gmra.mxu1 %v20854_v20  ;;  %v20871_v30 = vsel %vm911_vm0, %v2213_v21, %v2217_v11  ;;  %v18450_v61 = vld [vmem:[%s24418_s2 + $0x554] sm:$0xf0]  ;;  %v13364_v22 = vld [vmem:[%s24418_s2 + $0x648] sm:$0xf]  ;;  %v13109_v5 = vor.u32 %v18418_v13, %v13108_v27  ;;  %v18464_v51 = vld [vmem:[%s24418_s2 + $0x5cc] sm:$0xf] }
 0x1e7   : > { %2881 = vmatmul.bf16.vlgmr.msrb.gmra.mxu2 %v20857_v60  ;;  %13546 = vmatmul.msk.bf16.vlgmr.msrb.gmra.mxu3 %vm1662_vm3, %v20871_v30  ;;  %v18482_v25 = vld [vmem:[%s24418_s2 + $0x654] sm:$0xf0]  ;;  %v13476_v57 = vld [vmem:[%s24418_s2 + $0x728] sm:$0xf]  ;;  %v13237_v18 = vor.u32 %v18450_v61, %v13236_v2  ;;  %v13302_v23 = vld [vmem:[%s24418_s2 + $0x5d8] sm:$0xf0] }
 0x1e8   : > { %2957 = vmatpush.bf16.msrb.mxu3 %v13173_v47  ;;  %2971 = vmatpush.bf16.msrb.mxu0 %v13301_v58  ;;  %v13269_v47 = vor.u32 %v18458_v42, %v13268_v31  ;;  %v13092_v6 = vld [vmem:[%s24418_s2 + $0x428] sm:$0xf]  ;;  %v18414_v36 = vld [vmem:[%s24418_s2 + $0x434] sm:$0xf0]  ;;  %v13365_v10 = vor.u32 %v18482_v25, %v13364_v22  ;;  %v13477_v21 = vor.u32 %v18510_v4, %v13476_v57  ;;  %v18432_v31 = vld [vmem:[%s24418_s2 + $0x4cc] sm:$0xf] }
 0x1e9   : > { %2985 = vmatpush.bf16.msrb.mxu1 %v13429_v12  ;;  %3000 = vmatpush.bf16.msrb.mxu2 %v13541_v26  ;;  %v13220_v11 = vld [vmem:[%s24418_s2 + $0x528] sm:$0xf]  ;;  %v18446_v58 = vld [vmem:[%s24418_s2 + $0x534] sm:$0xf0]  ;;  %v13093_v28 = vor.u32 %v18414_v36, %v13092_v6  ;;  %v13174_v42 = vld [vmem:[%s24418_s2 + $0x4d8] sm:$0xf0]  ;;  %v13305_v2 = vor.u32 %v18464_v51, %v13302_v23 }
 0x1ea   : > { %v13348_v12 = vld [vmem:[%s24418_s2 + $0x628] sm:$0xf]  ;;  %v18478_v24 = vld [vmem:[%s24418_s2 + $0x634] sm:$0xf0]  ;;  %v13221_v33 = vor.u32 %v18446_v58, %v13220_v11  ;;  %v13177_v46 = vor.u32 %v18432_v31, %v13174_v42  ;;  %v13158_v14 = vld [vmem:[%s24418_s2 + $0x4b8] sm:$0xf0] }
 0x1eb   : > { %v13460_v59 = vld [vmem:[%s24418_s2 + $0x708] sm:$0xf]  ;;  %v18506_v26 = vld [vmem:[%s24418_s2 + $0x714] sm:$0xf0]  ;;  %v13349_v63 = vor.u32 %v18478_v24, %v13348_v12  ;;  %v18496_v52 = vld [vmem:[%s24418_s2 + $0x6cc] sm:$0xf]  ;;  %v13161_v61 = vor.u32 %v18428_v3, %v13158_v14 }
 0x1ec   : > { %2958 = vmatpush.bf16.msrb.mxu3 %v13157_v17  ;;  %2972 = vmatpush.bf16.msrb.mxu0 %v13285_v0  ;;  %v13076_v29 = vld [vmem:[%s24418_s2 + $0x408] sm:$0xf]  ;;  %v18410_v34 = vld [vmem:[%s24418_s2 + $0x414] sm:$0xf0]  ;;  %v13461_v40 = vor.u32 %v18506_v26, %v13460_v59  ;;  %v18524_v13 = vld [vmem:[%s24418_s2 + $0x7ac] sm:$0xf] }
 0x1ed   : > { %2986 = vmatpush.bf16.msrb.mxu1 %v13413_v55  ;;  %3001 = vmatpush.bf16.msrb.mxu2 %v13525_v41  ;;  %v13204_v17 = vld [vmem:[%s24418_s2 + $0x508] sm:$0xf]  ;;  %v18442_v0 = vld [vmem:[%s24418_s2 + $0x514] sm:$0xf0]  ;;  %v13077_v43 = vor.u32 %v18410_v34, %v13076_v29  ;;  %v18424_v25 = vld [vmem:[%s24418_s2 + $0x48c] sm:$0xf] }
 0x1ee   : > { %v13332_v1 = vld [vmem:[%s24418_s2 + $0x608] sm:$0xf]  ;;  %v18474_v19 = vld [vmem:[%s24418_s2 + $0x614] sm:$0xf0]  ;;  %v13205_v32 = vor.u32 %v18442_v0, %v13204_v17  ;;  %v18460_v57 = vld [vmem:[%s24418_s2 + $0x5ac] sm:$0xf] }
 0x1ef   : > { %v13444_v55 = vld [vmem:[%s24418_s2 + $0x6e8] sm:$0xf]  ;;  %v18502_v41 = vld [vmem:[%s24418_s2 + $0x6f4] sm:$0xf0]  ;;  %v13286_v4 = vld [vmem:[%s24418_s2 + $0x5b8] sm:$0xf0] }
 0x1f0   : > { %2959 = vmatpush.bf16.msrb.mxu3 %v13141_v45  ;;  %2973 = vmatpush.bf16.msrb.mxu0 %v13269_v47  ;;  %v13060_v9 = vld [vmem:[%s24418_s2 + $0x3e8] sm:$0xf]  ;;  %v18406_v44 = vld [vmem:[%s24418_s2 + $0x3f4] sm:$0xf0]  ;;  %v13333_v47 = vor.u32 %v18474_v19, %v13332_v1  ;;  %v13445_v48 = vor.u32 %v18502_v41, %v13444_v55  ;;  %v18492_v6 = vld [vmem:[%s24418_s2 + $0x6ac] sm:$0xf]  ;;  %v13289_v11 = vor.u32 %v18460_v57, %v13286_v4 }
 0x1f1   : > { %2987 = vmatpush.bf16.msrb.mxu1 %v13397_v7  ;;  %3002 = vmatpush.bf16.msrb.mxu2 %v13509_v50  ;;  %v13188_v45 = vld [vmem:[%s24418_s2 + $0x4e8] sm:$0xf]  ;;  %v18438_v49 = vld [vmem:[%s24418_s2 + $0x4f4] sm:$0xf0]  ;;  %v13414_v36 = vld [vmem:[%s24418_s2 + $0x6b8] sm:$0xf0] }
 0x1f2   : > { %v13316_v7 = vld [vmem:[%s24418_s2 + $0x5e8] sm:$0xf]  ;;  %v18470_v50 = vld [vmem:[%s24418_s2 + $0x5f4] sm:$0xf0]  ;;  %v13189_v27 = vor.u32 %v18438_v49, %v13188_v45  ;;  %v13417_v12 = vor.u32 %v18492_v6, %v13414_v36  ;;  %v18420_v24 = vld [vmem:[%s24418_s2 + $0x46c] sm:$0xf] }
 0x1f3   : > { %v18456_v59 = vld [vmem:[%s24418_s2 + $0x58c] sm:$0xf]  ;;  %v13270_v26 = vld [vmem:[%s24418_s2 + $0x598] sm:$0xf0] }
 0x1f4   : > { %2960 = vmatpush.bf16.msrb.mxu3 %v13125_v53  ;;  %2974 = vmatpush.bf16.msrb.mxu0 %v13253_v54  ;;  %v13430_v53 = vld [vmem:[%s24418_s2 + $0x6d8] sm:$0xf0]  ;;  %v13061_v54 = vor.u32 %v18406_v44, %v13060_v9  ;;  %v18488_v29 = vld [vmem:[%s24418_s2 + $0x68c] sm:$0xf]  ;;  %v13273_v17 = vor.u32 %v18456_v59, %v13270_v26 }
 0x1f5   : > { %2988 = vmatpush.bf16.msrb.mxu1 %v13381_v37  ;;  %3003 = vmatpush.bf16.msrb.mxu2 %v13493_v56  ;;  %v13542_v37 = vld [vmem:[%s24418_s2 + $0x7b8] sm:$0xf0]  ;;  %v13317_v56 = vor.u32 %v18470_v50, %v13316_v7  ;;  %v13433_v22 = vor.u32 %v18496_v52, %v13430_v53  ;;  %v18416_v19 = vld [vmem:[%s24418_s2 + $0x44c] sm:$0xf] }
 0x1f6   : > { %2909 = vmatmul.bf16.vlgmr.msra.gmra.mxu0 %v20851_v39  ;;  %2923 = vmatmul.bf16.vlgmr.msra.gmra.mxu1 %v20854_v20  ;;  %v13398_v34 = vld [vmem:[%s24418_s2 + $0x698] sm:$0xf0]  ;;  %v18452_v55 = vld [vmem:[%s24418_s2 + $0x56c] sm:$0xf] }
 0x1f7   : > { %2937 = vmatmul.bf16.vlgmr.msra.gmra.mxu2 %v20857_v60  ;;  %13547 = vmatmul.msk.bf16.vlgmr.msra.gmra.mxu3 %vm1662_vm3, %v20871_v30  ;;  %v13401_v1 = vor.u32 %v18488_v29, %v13398_v34  ;;  %v13254_v41 = vld [vmem:[%s24418_s2 + $0x578] sm:$0xf0]  ;;  %v18512_v9 = vld [vmem:[%s24418_s2 + $0x74c] sm:$0xf]  ;;  %v13664_v34 = vld [vmem:[%s24418_s2 + $0xe0] sm:$0xf] }
 0x1f8   : > { %2961 = vmatpush.bf16.msrb.mxu3 %v13109_v5  ;;  %2975 = vmatpush.bf16.msrb.mxu0 %v13237_v18  ;;  %v13545_v5 = vor.u32 %v18524_v13, %v13542_v37  ;;  %v13142_v18 = vld [vmem:[%s24418_s2 + $0x498] sm:$0xf0]  ;;  %v13257_v45 = vor.u32 %v18452_v55, %v13254_v41  ;;  %v18412_v49 = vld [vmem:[%s24418_s2 + $0x42c] sm:$0xf] }
 0x1f9   : > { %2989 = vmatpush.bf16.msrb.mxu1 %v13365_v10  ;;  %3004 = vmatpush.bf16.msrb.mxu2 %v13477_v21  ;;  %v18520_v10 = vld [vmem:[%s24418_s2 + $0x78c] sm:$0xf]  ;;  %v13526_v21 = vld [vmem:[%s24418_s2 + $0x798] sm:$0xf0]  ;;  %v13145_v58 = vor.u32 %v18424_v25, %v13142_v18 }
 0x1fa   : > { %v13110_v42 = vld [vmem:[%s24418_s2 + $0x458] sm:$0xf0]  ;;  %v18448_v7 = vld [vmem:[%s24418_s2 + $0x54c] sm:$0xf] }
 0x1fb   : > { %v13494_v44 = vld [vmem:[%s24418_s2 + $0x758] sm:$0xf0]  ;;  %v18480_v51 = vld [vmem:[%s24418_s2 + $0x64c] sm:$0xf] }
 0x1fc   : > { %2962 = vmatpush.bf16.msrb.mxu3 %v13093_v28  ;;  %2976 = vmatpush.bf16.msrb.mxu0 %v13221_v33  ;;  %v13529_v28 = vor.u32 %v18520_v10, %v13526_v21  ;;  %v13126_v33 = vld [vmem:[%s24418_s2 + $0x478] sm:$0xf0]  ;;  %v18508_v14 = vld [vmem:[%s24418_s2 + $0x72c] sm:$0xf] }
 0x1fd   : > { %2990 = vmatpush.bf16.msrb.mxu1 %v13349_v63  ;;  %3005 = vmatpush.bf16.msrb.mxu2 %v13461_v40  ;;  %v18516_v63 = vld [vmem:[%s24418_s2 + $0x76c] sm:$0xf]  ;;  %v13510_v40 = vld [vmem:[%s24418_s2 + $0x778] sm:$0xf0]  ;;  %v13129_v0 = vor.u32 %v18420_v24, %v13126_v33  ;;  %v18341_v33 = vld [vmem:[%s24418_s2 + $0x1ec] sm:$0xf0] }
 0x1fe   : > { %v13513_v31 = vor.u32 %v18516_v63, %v13510_v40  ;;  %v13238_v50 = vld [vmem:[%s24418_s2 + $0x558] sm:$0xf0]  ;;  %v18408_v13 = vld [vmem:[%s24418_s2 + $0x40c] sm:$0xf]  ;;  %v18309_v63 = vld [vmem:[%s24418_s2 + $0xec] sm:$0xf0] }
 0x1ff   : > { %v13094_v3 = vld [vmem:[%s24418_s2 + $0x438] sm:$0xf0]  ;;  %v13241_v53 = vor.u32 %v18448_v7, %v13238_v50  ;;  %v18444_v37 = vld [vmem:[%s24418_s2 + $0x52c] sm:$0xf]  ;;  %v18401_v7 = vld [vmem:[%s24418_s2 + $0x3cc] sm:$0xf0] }
 0x200   : > { %2963 = vmatpush.bf16.msrb.mxu3 %v13077_v43  ;;  %2977 = vmatpush.bf16.msrb.mxu0 %v13205_v32  ;;  %v18484_v43 = vld [vmem:[%s24418_s2 + $0x66c] sm:$0xf]  ;;  %v13382_v32 = vld [vmem:[%s24418_s2 + $0x678] sm:$0xf0] }
 0x201   : > { %2991 = vmatpush.bf16.msrb.mxu1 %v13333_v47  ;;  %3006 = vmatpush.bf16.msrb.mxu2 %v13445_v48  ;;  %v13113_v47 = vor.u32 %v18416_v19, %v13110_v42  ;;  %v13385_v48 = vor.u32 %v18484_v43, %v13382_v32  ;;  %v13366_v23 = vld [vmem:[%s24418_s2 + $0x658] sm:$0xf0]  ;;  %v18504_v57 = vld [vmem:[%s24418_s2 + $0x70c] sm:$0xf]  ;;  %v13648_v42 = vld [vmem:[%s24418_s2 + $0xc0] sm:$0xf]  ;;  %v13665_v32 = vor.u32 %v18309_v63, %v13664_v34 }
 0x202   : > { %v13478_v52 = vld [vmem:[%s24418_s2 + $0x738] sm:$0xf0]  ;;  %v18404_v18 = vld [vmem:[%s24418_s2 + $0x3ec] sm:$0xf]  ;;  %v13776_v43 = vld [vmem:[%s24418_s2 + $0x1c0] sm:$0xf] }
 0x203   : > { %v13350_v25 = vld [vmem:[%s24418_s2 + $0x638] sm:$0xf0]  ;;  %v18440_v21 = vld [vmem:[%s24418_s2 + $0x50c] sm:$0xf]  ;;  %v13584_v63 = vld [vmem:[%s24418_s2 + $0x40] sm:$0xf] }
 0x204   : > { %2964 = vmatpush.bf16.msrb.mxu3 %v13061_v54  ;;  %2978 = vmatpush.bf16.msrb.mxu0 %v13189_v27  ;;  %v13097_v54 = vor.u32 %v18412_v49, %v13094_v3  ;;  %v13369_v27 = vor.u32 %v18480_v51, %v13366_v23  ;;  %v13462_v4 = vld [vmem:[%s24418_s2 + $0x718] sm:$0xf0]  ;;  %v18500_v59 = vld [vmem:[%s24418_s2 + $0x6ec] sm:$0xf]  ;;  %v14032_v49 = vld [vmem:[%s24418_s2 + $0x3c0] sm:$0xf] }
 0x205   : > { %3013 = vmatpush.bf16.msra.mxu2 %v13177_v46  ;;  %2992 = vmatpush.bf16.msrb.mxu1 %v13317_v56  ;;  %v13497_v46 = vor.u32 %v18512_v9, %v13494_v44  ;;  %v13222_v56 = vld [vmem:[%s24418_s2 + $0x538] sm:$0xf0]  ;;  %v18468_v19 = vld [vmem:[%s24418_s2 + $0x5ec] sm:$0xf]  ;;  %v18337_v9 = vld [vmem:[%s24418_s2 + $0x1cc] sm:$0xf0] }
 0x206   : > { %v13062_v10 = vld [vmem:[%s24418_s2 + $0x3f8] sm:$0xf0]  ;;  %v13920_v44 = vld [vmem:[%s24418_s2 + $0x2e0] sm:$0xf] }
 0x207   : > { %2965 = vmatmul.bf16.vlgmr.msrb.gmra.mxu3 %v20851_v39  ;;  %2979 = vmatmul.bf16.vlgmr.msrb.gmra.mxu0 %v20854_v20  ;;  %v13334_v24 = vld [vmem:[%s24418_s2 + $0x618] sm:$0xf0]  ;;  %v13065_v40 = vor.u32 %v18404_v18, %v13062_v10  ;;  %v13632_v51 = vld [vmem:[%s24418_s2 + $0xa0] sm:$0xf]  ;;  %v18297_v18 = vld [vmem:[%s24418_s2 + $0x8c] sm:$0xf0] }
 0x208   : > { %3027 = vmatpush.bf16.msra.mxu3 %v13305_v2  ;;  %3041 = vmatpush.bf16.msra.mxu0 %v13433_v22  ;;  %v13481_v2 = vor.u32 %v18508_v14, %v13478_v52  ;;  %v18476_v22 = vld [vmem:[%s24418_s2 + $0x62c] sm:$0xf]  ;;  %v13446_v26 = vld [vmem:[%s24418_s2 + $0x6f8] sm:$0xf0]  ;;  %v13760_v23 = vld [vmem:[%s24418_s2 + $0x1a0] sm:$0xf]  ;;  %v14033_v52 = vor.u32 %v18401_v7, %v14032_v49 }
 0x209   : > { %3014 = vmatpush.bf16.msra.mxu2 %v13161_v61  ;;  %3056 = vmatpush.bf16.msra.mxu1 %v13545_v5  ;;  %v13078_v61 = vld [vmem:[%s24418_s2 + $0x418] sm:$0xf0]  ;;  %v13225_v5 = vor.u32 %v18444_v37, %v13222_v56  ;;  %v13353_v36 = vor.u32 %v18476_v22, %v13350_v25  ;;  %v13449_v55 = vor.u32 %v18500_v59, %v13446_v26  ;;  %v14016_v37 = vld [vmem:[%s24418_s2 + $0x3a0] sm:$0xf]  ;;  %v18397_v56 = vld [vmem:[%s24418_s2 + $0x3ac] sm:$0xf0] }
 0x20a   : > { %2993 = vmatmul.bf16.vlgmr.msrb.gmra.mxu1 %v20857_v60  ;;  %13548 = vmatmul.msk.bf16.vlgmr.msrb.gmra.mxu2 %vm1662_vm3, %v20871_v30  ;;  %v13081_v6 = vor.u32 %v18408_v13, %v13078_v61  ;;  %v18301_v13 = vld [vmem:[%s24418_s2 + $0xac] sm:$0xf0]  ;;  %v13616_v61 = vld [vmem:[%s24418_s2 + $0x80] sm:$0xf] }
 0x20b   : > { %v13744_v22 = vld [vmem:[%s24418_s2 + $0x180] sm:$0xf]  ;;  %v13633_v25 = vor.u32 %v18301_v13, %v13632_v51  ;;  %v18361_v59 = vld [vmem:[%s24418_s2 + $0x28c] sm:$0xf0] }
 0x20c   : > { %3028 = vmatpush.bf16.msra.mxu3 %v13289_v11  ;;  %3042 = vmatpush.bf16.msra.mxu0 %v13417_v12  ;;  %v13206_v11 = vld [vmem:[%s24418_s2 + $0x518] sm:$0xf0]  ;;  %v18472_v12 = vld [vmem:[%s24418_s2 + $0x60c] sm:$0xf]  ;;  %v18293_v26 = vld [vmem:[%s24418_s2 + $0x6c] sm:$0xf0] }
 0x20d   : > { %3015 = vmatpush.bf16.msra.mxu2 %v13145_v58  ;;  %3057 = vmatpush.bf16.msra.mxu1 %v13529_v28  ;;  %v13465_v58 = vor.u32 %v18504_v57, %v13462_v4  ;;  %v13792_v28 = vld [vmem:[%s24418_s2 + $0x1e0] sm:$0xf]  ;;  %v13209_v29 = vor.u32 %v18440_v21, %v13206_v11  ;;  %v14017_v57 = vor.u32 %v18397_v56, %v14016_v37  ;;  %v18353_v7 = vld [vmem:[%s24418_s2 + $0x24c] sm:$0xf0] }
 0x20e   : > { %v13793_v41 = vor.u32 %v18341_v33, %v13792_v28  ;;  %v13888_v4 = vld [vmem:[%s24418_s2 + $0x2a0] sm:$0xf]  ;;  %v13617_v11 = vor.u32 %v18297_v18, %v13616_v61  ;;  %v18389_v33 = vld [vmem:[%s24418_s2 + $0x36c] sm:$0xf0]  ;;  %v18307_v61 = vld [vmem:[%s24418_s2 + $0xe4] sm:$0xf] }
 0x20f   : > { %v13984_v28 = vld [vmem:[%s24418_s2 + $0x360] sm:$0xf]  ;;  %v18313_v13 = vld [vmem:[%s24418_s2 + $0x10c] sm:$0xf0]  ;;  %v13922_v18 = vld [vmem:[%s24418_s2 + $0x2f0] sm:$0xf0] }
 0x210   : > { %3029 = vmatpush.bf16.msra.mxu3 %v13273_v17  ;;  %3043 = vmatpush.bf16.msra.mxu0 %v13401_v1  ;;  %v13337_v17 = vor.u32 %v18472_v12, %v13334_v24  ;;  %v13190_v1 = vld [vmem:[%s24418_s2 + $0x4f8] sm:$0xf0]  ;;  %v18325_v12 = vld [vmem:[%s24418_s2 + $0x16c] sm:$0xf0]  ;;  %v13872_v24 = vld [vmem:[%s24418_s2 + $0x280] sm:$0xf] }
 0x211   : > { %3016 = vmatpush.bf16.msra.mxu2 %v13129_v0  ;;  %3058 = vmatpush.bf16.msra.mxu1 %v13513_v31  ;;  %v18436_v0 = vld [vmem:[%s24418_s2 + $0x4ec] sm:$0xf]  ;;  %v13318_v31 = vld [vmem:[%s24418_s2 + $0x5f8] sm:$0xf0]  ;;  %v13873_v34 = vor.u32 %v18361_v59, %v13872_v24  ;;  %v13840_v49 = vld [vmem:[%s24418_s2 + $0x240] sm:$0xf] }
 0x212   : > { %v13321_v50 = vor.u32 %v18468_v19, %v13318_v31  ;;  %v13856_v19 = vld [vmem:[%s24418_s2 + $0x260] sm:$0xf]  ;;  %v18349_v56 = vld [vmem:[%s24418_s2 + $0x22c] sm:$0xf0]  ;;  %v18335_v59 = vld [vmem:[%s24418_s2 + $0x1c4] sm:$0xf] }
 0x213   : > { %v13968_v31 = vld [vmem:[%s24418_s2 + $0x340] sm:$0xf] }
 0x214   : > { %3030 = vmatpush.bf16.msra.mxu3 %v13257_v45  ;;  %3044 = vmatpush.bf16.msra.mxu0 %v13385_v48  ;;  %v18373_v45 = vld [vmem:[%s24418_s2 + $0x2ec] sm:$0xf0]  ;;  %v13824_v37 = vld [vmem:[%s24418_s2 + $0x220] sm:$0xf] }
 0x215   : > { %3017 = vmatpush.bf16.msra.mxu2 %v13113_v47  ;;  %3059 = vmatpush.bf16.msra.mxu1 %v13497_v46  ;;  %v13193_v47 = vor.u32 %v18436_v0, %v13190_v1  ;;  %v18305_v48 = vld [vmem:[%s24418_s2 + $0xcc] sm:$0xf0]  ;;  %v13777_v46 = vor.u32 %v18337_v9, %v13776_v43  ;;  %v13921_v3 = vor.u32 %v18373_v45, %v13920_v44  ;;  %v13568_v9 = vld [vmem:[%s24418_s2 + $0x20] sm:$0xf] }
 0x216   : > { %v13649_v14 = vor.u32 %v18305_v48, %v13648_v42  ;;  %v13985_v0 = vor.u32 %v18389_v33, %v13984_v28  ;;  %v18321_v1 = vld [vmem:[%s24418_s2 + $0x14c] sm:$0xf0]  ;;  %v13696_v44 = vld [vmem:[%s24418_s2 + $0x120] sm:$0xf]  ;;  %v18367_v28 = vld [vmem:[%s24418_s2 + $0x2c4] sm:$0xf] }
 0x217   : > { %v18385_v42 = vld [vmem:[%s24418_s2 + $0x34c] sm:$0xf0]  ;;  %v13906_v33 = vld [vmem:[%s24418_s2 + $0x2d0] sm:$0xf0] }
 0x218   : > { %3031 = vmatpush.bf16.msra.mxu3 %v13241_v53  ;;  %3045 = vmatpush.bf16.msra.mxu0 %v13369_v27  ;;  %v18333_v53 = vld [vmem:[%s24418_s2 + $0x1ac] sm:$0xf0] }
 0x219   : > { %3018 = vmatpush.bf16.msra.mxu2 %v13097_v54  ;;  %3060 = vmatpush.bf16.msra.mxu1 %v13481_v2  ;;  %v13904_v54 = vld [vmem:[%s24418_s2 + $0x2c0] sm:$0xf]  ;;  %v18369_v27 = vld [vmem:[%s24418_s2 + $0x2cc] sm:$0xf0] }
 0x21a   : > { %v13905_v2 = vor.u32 %v18369_v27, %v13904_v54  ;;  %v18317_v48 = vld [vmem:[%s24418_s2 + $0x12c] sm:$0xf0] }
 0x21b   : > { %v13697_v51 = vor.u32 %v18317_v48, %v13696_v44  ;;  %v18395_v44 = vld [vmem:[%s24418_s2 + $0x3a4] sm:$0xf] }
 0x21c   : > { %3032 = vmatpush.bf16.msra.mxu3 %v13225_v5  ;;  %3046 = vmatpush.bf16.msra.mxu0 %v13353_v36  ;;  %v18365_v5 = vld [vmem:[%s24418_s2 + $0x2ac] sm:$0xf0] }
 0x21d   : > { %3019 = vmatpush.bf16.msra.mxu2 %v13081_v6  ;;  %3061 = vmatpush.bf16.msra.mxu1 %v13465_v58  ;;  %v14000_v6 = vld [vmem:[%s24418_s2 + $0x380] sm:$0xf]  ;;  %v18393_v36 = vld [vmem:[%s24418_s2 + $0x38c] sm:$0xf0]  ;;  %v13889_v21 = vor.u32 %v18365_v5, %v13888_v4  ;;  %v13825_v4 = vor.u32 %v18349_v56, %v13824_v37  ;;  %v18371_v5 = vld [vmem:[%s24418_s2 + $0x2e4] sm:$0xf] }
 0x21e   : > { %v14001_v58 = vor.u32 %v18393_v36, %v14000_v6  ;;  %v13925_v24 = vor.u32 %v18371_v5, %v13922_v18  ;;  %v18291_v37 = vld [vmem:[%s24418_s2 + $0x64] sm:$0xf]  ;;  %v13602_v56 = vld [vmem:[%s24418_s2 + $0x70] sm:$0xf0] }
 0x21f   : > { %v13605_v5 = vor.u32 %v18291_v37, %v13602_v56 }
 0x220   : > { %3033 = vmatpush.bf16.msra.mxu3 %v13209_v29  ;;  %3047 = vmatpush.bf16.msra.mxu0 %v13337_v17 }
 0x221   : > { %3020 = vmatpush.bf16.msra.mxu2 %v13065_v40  ;;  %3062 = vmatpush.bf16.msra.mxu1 %v13449_v55  ;;  %v13712_v40 = vld [vmem:[%s24418_s2 + $0x140] sm:$0xf]  ;;  %v18357_v55 = vld [vmem:[%s24418_s2 + $0x26c] sm:$0xf0] }
 0x222   : > { %v13713_v43 = vor.u32 %v18321_v1, %v13712_v40  ;;  %v1895_v40 = vld [vmem:[#allocation4 + $0x8] sm:$0xff]  ;;  %v1897_v1 = vld [vmem:[#allocation4 + $0x18] sm:$0xff] }
 0x224   : > { %3021 = vmatmul.bf16.vlgmr.msra.gmra.mxu2 %v20851_v39  ;;  %3034 = vmatpush.bf16.msra.mxu3 %v13193_v47  ;;  %v13761_v39 = vor.u32 %v18333_v53, %v13760_v23  ;;  %v13969_v47 = vor.u32 %v18385_v42, %v13968_v31  ;;  %v13841_v23 = vor.u32 %v18353_v7, %v13840_v49  ;;  %v13680_v53 = vld [vmem:[%s24418_s2 + $0x100] sm:$0xf]  ;;  %v13634_v31 = vld [vmem:[%s24418_s2 + $0xb0] sm:$0xf0] }
 0x225   : > { %3706 = vmatpush.bf16.msrb.mxu2 %v13793_v41  ;;  %3692 = vmatpush.bf16.msrb.mxu1 %v13665_v32  ;;  %v18289_v41 = vld [vmem:[%s24418_s2 + $0x4c] sm:$0xf0]  ;;  %v13857_v32 = vor.u32 %v18357_v55, %v13856_v19  ;;  %v13909_v42 = vor.u32 %v18367_v28, %v13906_v33  ;;  %v18283_v28 = vld [vmem:[%s24418_s2 + $0x24] sm:$0xf]  ;;  %v13570_v33 = vld [vmem:[%s24418_s2 + $0x30] sm:$0xf0] }
 0x226   : > { %13549 = vmatmul.msk.bf16.vlgmr.msra.gmra.mxu1 %vm1662_vm3, %v20871_v30  ;;  %3048 = vmatpush.bf16.msra.mxu0 %v13321_v50  ;;  %v18329_v30 = vld [vmem:[%s24418_s2 + $0x18c] sm:$0xf0]  ;;  %v13585_v45 = vor.u32 %v18289_v41, %v13584_v63  ;;  %v18299_v41 = vld [vmem:[%s24418_s2 + $0xa4] sm:$0xf] }
 0x227   : > { %3035 = vmatmul.bf16.vlgmr.msra.gmra.mxu3 %v20854_v20  ;;  %v13745_v10 = vor.u32 %v18329_v30, %v13744_v22  ;;  %v13600_v20 = vld [vmem:[%s24418_s2 + $0x60] sm:$0xf]  ;;  %v18285_v50 = vld [vmem:[%s24418_s2 + $0x2c] sm:$0xf0]  ;;  %v13666_v22 = vld [vmem:[%s24418_s2 + $0xf0] sm:$0xf0]  ;;  %v13681_v30 = vor.u32 %v18313_v13, %v13680_v53  ;;  %v13637_v49 = vor.u32 %v18299_v41, %v13634_v31 }
 0x228   : > { %3720 = vmatpush.bf16.msrb.mxu3 %v13921_v3  ;;  %v13601_v17 = vor.u32 %v18293_v26, %v13600_v20  ;;  %v18381_v3 = vld [vmem:[%s24418_s2 + $0x32c] sm:$0xf0]  ;;  %v13569_v54 = vor.u32 %v18285_v50, %v13568_v9  ;;  %v13778_v26 = vld [vmem:[%s24418_s2 + $0x1d0] sm:$0xf0]  ;;  %v18363_v9 = vld [vmem:[%s24418_s2 + $0x2a4] sm:$0xf] }
 0x229   : > { %3707 = vmatpush.bf16.msrb.mxu2 %v13777_v46  ;;  %3693 = vmatpush.bf16.msrb.mxu1 %v13649_v14  ;;  %v13952_v46 = vld [vmem:[%s24418_s2 + $0x320] sm:$0xf]  ;;  %v13781_v55 = vor.u32 %v18335_v59, %v13778_v26  ;;  %v18295_v50 = vld [vmem:[%s24418_s2 + $0x84] sm:$0xf]  ;;  %v13954_v41 = vld [vmem:[%s24418_s2 + $0x330] sm:$0xf0] }
 0x22a   : > { %3735 = vmatpush.bf16.msrb.mxu0 %v14033_v52  ;;  %v13552_v14 = vld [vmem:[%s24418_s2] sm:$0xf]  ;;  %v18281_v52 = vld [vmem:[%s24418_s2 + $0xc] sm:$0xf0]  ;;  %v13953_v27 = vor.u32 %v18381_v3, %v13952_v46  ;;  %v13618_v46 = vld [vmem:[%s24418_s2 + $0x90] sm:$0xf0] }
 0x22b   : > { %3049 = vmatmul.bf16.vlgmr.msra.gmra.mxu0 %v20857_v60  ;;  %v13728_v60 = vld [vmem:[%s24418_s2 + $0x160] sm:$0xf]  ;;  %v13553_v6 = vor.u32 %v18281_v52, %v13552_v14  ;;  %v18359_v14 = vld [vmem:[%s24418_s2 + $0x284] sm:$0xf]  ;;  %v13874_v52 = vld [vmem:[%s24418_s2 + $0x290] sm:$0xf0] }
 0x22c   : > { %3721 = vmatpush.bf16.msrb.mxu3 %v13905_v2  ;;  %v13729_v29 = vor.u32 %v18325_v12, %v13728_v60  ;;  %v18377_v2 = vld [vmem:[%s24418_s2 + $0x30c] sm:$0xf0]  ;;  %v1894_v60 = vld [vmem:[#allocation4] sm:$0xff]  ;;  %v13650_v12 = vld [vmem:[%s24418_s2 + $0xd0] sm:$0xf0] }
 0x22d   : > { %3708 = vmatpush.bf16.msrb.mxu2 %v13761_v39  ;;  %3694 = vmatpush.bf16.msrb.mxu1 %v13633_v25  ;;  %v13936_v39 = vld [vmem:[%s24418_s2 + $0x300] sm:$0xf]  ;;  %v18339_v25 = vld [vmem:[%s24418_s2 + $0x1e4] sm:$0xf]  ;;  %v21453_v63 = vpack.c.bf16 %v20803_v35, %v1894_v60  ;;  %v21465_v35 = vpack.c.bf16 %v20817_v38, %v1897_v1  ;;  %v13890_v38 = vld [vmem:[%s24418_s2 + $0x2b0] sm:$0xf0] }
 0x22e   : > { %3736 = vmatpush.bf16.msrb.mxu0 %v14017_v57  ;;  %v13794_v57 = vld [vmem:[%s24418_s2 + $0x1f0] sm:$0xf0]  ;;  %v13937_v36 = vor.u32 %v18377_v2, %v13936_v39  ;;  %v13893_v3 = vor.u32 %v18363_v9, %v13890_v38  ;;  %v18391_v53 = vld [vmem:[%s24418_s2 + $0x384] sm:$0xf]  ;;  %v13877_v39 = vor.u32 %v18359_v14, %v13874_v52  ;;  %v18374_v52 = vld [vmem:[%s24418_s2 + $0x2f4] sm:$0xf0] }
 0x22f   : > { %v13797_v20 = vor.u32 %v18339_v25, %v13794_v57  ;;  %v18355_v25 = vld [vmem:[%s24418_s2 + $0x264] sm:$0xf]  ;;  %v13858_v57 = vld [vmem:[%s24418_s2 + $0x270] sm:$0xf0] }
 0x230   : > { %3722 = vmatpush.bf16.msrb.mxu3 %v13889_v21  ;;  %v13669_v21 = vor.u32 %v18307_v61, %v13666_v22  ;;  %v18323_v61 = vld [vmem:[%s24418_s2 + $0x164] sm:$0xf]  ;;  %v13730_v22 = vld [vmem:[%s24418_s2 + $0x170] sm:$0xf0] }
 0x231   : > { %3709 = vmatpush.bf16.msrb.mxu2 %v13745_v10  ;;  %3695 = vmatpush.bf16.msrb.mxu1 %v13617_v11  ;;  %v13808_v10 = vld [vmem:[%s24418_s2 + $0x200] sm:$0xf]  ;;  %v18345_v11 = vld [vmem:[%s24418_s2 + $0x20c] sm:$0xf0]  ;;  %v13733_v18 = vor.u32 %v18323_v61, %v13730_v22  ;;  %v13714_v60 = vld [vmem:[%s24418_s2 + $0x150] sm:$0xf0] }
 0x232   : > { %3737 = vmatpush.bf16.msrb.mxu0 %v14001_v58  ;;  %v18303_v58 = vld [vmem:[%s24418_s2 + $0xc4] sm:$0xf]  ;;  %v13682_v9 = vld [vmem:[%s24418_s2 + $0x110] sm:$0xf0] }
 0x233   : > { %v13653_v19 = vor.u32 %v18303_v58, %v13650_v12  ;;  %v13842_v58 = vld [vmem:[%s24418_s2 + $0x250] sm:$0xf0]  ;;  %v18383_v12 = vld [vmem:[%s24418_s2 + $0x344] sm:$0xf] }
 0x234   : > { %3723 = vmatpush.bf16.msrb.mxu3 %v13873_v34  ;;  %v14034_v34 = vld [vmem:[%s24418_s2 + $0x3d0] sm:$0xf0]  ;;  %v18347_v1 = vld [vmem:[%s24418_s2 + $0x224] sm:$0xf] }
 0x235   : > { %3710 = vmatpush.bf16.msrb.mxu2 %v13729_v29  ;;  %3696 = vmatpush.bf16.msrb.mxu1 %v13601_v17  ;;  %v18399_v29 = vld [vmem:[%s24418_s2 + $0x3c4] sm:$0xf]  ;;  %v13809_v17 = vor.u32 %v18345_v11, %v13808_v10  ;;  %v13861_v10 = vor.u32 %v18355_v25, %v13858_v57  ;;  %v13784_v25 = vld [vmem:[%s24418_s2 + $0x1c8] sm:$0xf]  ;;  %v18338_v57 = vld [vmem:[%s24418_s2 + $0x1d4] sm:$0xf0] }
 0x236   : > { %3738 = vmatpush.bf16.msrb.mxu0 %v13985_v0  ;;  %v21456_v0 = vpack.c.bf16 %v20805_v62, %v1895_v40  ;;  %v18331_v62 = vld [vmem:[%s24418_s2 + $0x1a4] sm:$0xf] }
 0x237   : > { %v18351_v11 = vld [vmem:[%s24418_s2 + $0x244] sm:$0xf] }
 0x238   : > { %3724 = vmatpush.bf16.msrb.mxu3 %v13857_v32  ;;  %v13762_v32 = vld [vmem:[%s24418_s2 + $0x1b0] sm:$0xf0]  ;;  %v18315_v40 = vld [vmem:[%s24418_s2 + $0x124] sm:$0xf] }
 0x239   : > { %3711 = vmatpush.bf16.msrb.mxu2 %v13713_v43  ;;  %3697 = vmatpush.bf16.msrb.mxu1 %v13585_v45  ;;  %v14037_v43 = vor.u32 %v18399_v29, %v14034_v34  ;;  %v14018_v45 = vld [vmem:[%s24418_s2 + $0x3b0] sm:$0xf0]  ;;  %v13765_v7 = vor.u32 %v18331_v62, %v13762_v32  ;;  %v13845_v29 = vor.u32 %v18351_v11, %v13842_v58  ;;  %v18279_v31 = vld [vmem:[%s24418_s2 + $0x4] sm:$0xf]  ;;  %v13768_v11 = vld [vmem:[%s24418_s2 + $0x1a8] sm:$0xf] }
 0x23a   : > { %3739 = vmatpush.bf16.msrb.mxu0 %v13969_v47  ;;  %v1896_v47 = vld [vmem:[#allocation4 + $0x10] sm:$0xff]  ;;  %v18311_v32 = vld [vmem:[%s24418_s2 + $0x104] sm:$0xf]  ;;  %v18334_v58 = vld [vmem:[%s24418_s2 + $0x1b4] sm:$0xf0] }
 0x23b   : > { %v21490_v48 = vpack.c.bf16 %v20807_v16, %v1896_v47  ;;  %v13746_v16 = vld [vmem:[%s24418_s2 + $0x190] sm:$0xf0]  ;;  %v13685_v14 = vor.u32 %v18311_v32, %v13682_v9 }
 0x23c   : > { %3725 = vmatpush.bf16.msrb.mxu3 %v13841_v23  ;;  %v18327_v23 = vld [vmem:[%s24418_s2 + $0x184] sm:$0xf]  ;;  %v13554_v62 = vld [vmem:[%s24418_s2 + $0x10] sm:$0xf0] }
 0x23d   : > { %3712 = vmatpush.bf16.msrb.mxu2 %v13697_v51  ;;  %3698 = vmatpush.bf16.msrb.mxu1 %v13569_v54  ;;  %v14021_v51 = vor.u32 %v18395_v44, %v14018_v45  ;;  %v14002_v54 = vld [vmem:[%s24418_s2 + $0x390] sm:$0xf0]  ;;  %v13749_v13 = vor.u32 %v18327_v23, %v13746_v16  ;;  %v18343_v45 = vld [vmem:[%s24418_s2 + $0x204] sm:$0xf]  ;;  %v13928_v23 = vld [vmem:[%s24418_s2 + $0x2e8] sm:$0xf]  ;;  %v13557_v16 = vor.u32 %v18279_v31, %v13554_v62 }
 0x23e   : > { %3740 = vmatpush.bf16.msrb.mxu0 %v13953_v27  ;;  %v13621_v27 = vor.u32 %v18295_v50, %v13618_v46  ;;  %v14005_v2 = vor.u32 %v18391_v53, %v14002_v54  ;;  %v13810_v47 = vld [vmem:[%s24418_s2 + $0x210] sm:$0xf0]  ;;  %v13672_v50 = vld [vmem:[%s24418_s2 + $0xe8] sm:$0xf]  ;;  %v18310_v46 = vld [vmem:[%s24418_s2 + $0xf4] sm:$0xf0]  ;;  %v13929_v61 = vor.u32 %v18374_v52, %v13928_v23 }
 0x23f   : > { %v14040_v53 = vld [vmem:[%s24418_s2 + $0x3c8] sm:$0xf]  ;;  %v18402_v54 = vld [vmem:[%s24418_s2 + $0x3d4] sm:$0xf0]  ;;  %v13673_v37 = vor.u32 %v18310_v46, %v13672_v50 }
 0x240   : > { %3726 = vmatpush.bf16.msrb.mxu3 %v13825_v4  ;;  %v13986_v4 = vld [vmem:[%s24418_s2 + $0x370] sm:$0xf0]  ;;  %v14041_v22 = vor.u32 %v18402_v54, %v14040_v53  ;;  %v13992_v31 = vld [vmem:[%s24418_s2 + $0x368] sm:$0xf]  ;;  %v18326_v50 = vld [vmem:[%s24418_s2 + $0x174] sm:$0xf0] }
 0x241   : > { %3713 = vmatpush.bf16.msrb.mxu2 %v13681_v30  ;;  %3699 = vmatpush.bf16.msrb.mxu1 %v13553_v6  ;;  %v18387_v30 = vld [vmem:[%s24418_s2 + $0x364] sm:$0xf]  ;;  %v13864_v46 = vld [vmem:[%s24418_s2 + $0x268] sm:$0xf]  ;;  %v18386_v23 = vld [vmem:[%s24418_s2 + $0x354] sm:$0xf0] }
 0x242   : > { %3741 = vmatpush.bf16.msrb.mxu0 %v13937_v36  ;;  %v18287_v6 = vld [vmem:[%s24418_s2 + $0x44] sm:$0xf]  ;;  %v13586_v36 = vld [vmem:[%s24418_s2 + $0x50] sm:$0xf0]  ;;  %v13592_v52 = vld [vmem:[%s24418_s2 + $0x48] sm:$0xf] }
 0x243   : > { %v13589_v59 = vor.u32 %v18287_v6, %v13586_v36  ;;  %v13785_v36 = vor.u32 %v18338_v57, %v13784_v25  ;;  %v18290_v53 = vld [vmem:[%s24418_s2 + $0x54] sm:$0xf0] }
 0x244   : > { %3700 = vmatmul.bf16.vlgmr.msrb.gmra.mxu1 %v21453_v63  ;;  %3714 = vmatmul.bf16.vlgmr.msrb.gmra.mxu2 %v21456_v0 }
 0x245   : > { %3762 = vmatpush.bf16.msra.mxu1 %v13797_v20  ;;  %3776 = vmatpush.bf16.msra.mxu2 %v13925_v24  ;;  %v18319_v20 = vld [vmem:[%s24418_s2 + $0x144] sm:$0xf]  ;;  %v13970_v24 = vld [vmem:[%s24418_s2 + $0x350] sm:$0xf0] }
 0x246   : > { %3748 = vmatpush.bf16.msra.mxu0 %v13669_v21  ;;  %3727 = vmatpush.bf16.msrb.mxu3 %v13809_v17  ;;  %v13989_v21 = vor.u32 %v18387_v30, %v13986_v4  ;;  %v13717_v26 = vor.u32 %v18319_v20, %v13714_v60  ;;  %v13973_v34 = vor.u32 %v18383_v12, %v13970_v24  ;;  %v13698_v17 = vld [vmem:[%s24418_s2 + $0x130] sm:$0xf0]  ;;  %v13912_v30 = vld [vmem:[%s24418_s2 + $0x2c8] sm:$0xf]  ;;  %v18370_v4 = vld [vmem:[%s24418_s2 + $0x2d4] sm:$0xf0] }
 0x247   : > { %14046 = vmatmul.msk.bf16.vlgmr.msrb.gmra.mxu0 %vm1662_vm3, %v21465_v35  ;;  %v13913_v20 = vor.u32 %v18370_v4, %v13912_v30  ;;  %v13896_v12 = vld [vmem:[%s24418_s2 + $0x2a8] sm:$0xf]  ;;  %v18366_v24 = vld [vmem:[%s24418_s2 + $0x2b4] sm:$0xf0]  ;;  %v13593_v30 = vor.u32 %v18290_v53, %v13592_v52  ;;  %v18300_v53 = vld [vmem:[%s24418_s2 + $0xac] sm:$0xf] }
 0x249   : > { %3763 = vmatpush.bf16.msra.mxu1 %v13781_v55  ;;  %3777 = vmatpush.bf16.msra.mxu2 %v13909_v42  ;;  %v18379_v55 = vld [vmem:[%s24418_s2 + $0x324] sm:$0xf]  ;;  %v13573_v42 = vor.u32 %v18283_v28, %v13570_v33  ;;  %v13769_v33 = vor.u32 %v18334_v58, %v13768_v11  ;;  %v13832_v11 = vld [vmem:[%s24418_s2 + $0x228] sm:$0xf] }
 0x24a   : > { %3749 = vmatpush.bf16.msra.mxu0 %v13653_v19  ;;  %3791 = vmatpush.bf16.msra.mxu3 %v14037_v43  ;;  %v13826_v19 = vld [vmem:[%s24418_s2 + $0x230] sm:$0xf0]  ;;  %v13701_v43 = vor.u32 %v18315_v40, %v13698_v17  ;;  %v13957_v44 = vor.u32 %v18379_v55, %v13954_v41  ;;  %v13897_v40 = vor.u32 %v18366_v24, %v13896_v12  ;;  %v13880_v55 = vld [vmem:[%s24418_s2 + $0x288] sm:$0xf]  ;;  %v18362_v41 = vld [vmem:[%s24418_s2 + $0x294] sm:$0xf0] }
 0x24b   : > { %3728 = vmatmul.bf16.vlgmr.msrb.gmra.mxu3 %v21490_v48  ;;  %v13829_v38 = vor.u32 %v18347_v1, %v13826_v19  ;;  %v13752_v1 = vld [vmem:[%s24418_s2 + $0x188] sm:$0xf]  ;;  %v18330_v19 = vld [vmem:[%s24418_s2 + $0x194] sm:$0xf0] }
 0x24c   : > { %v13753_v62 = vor.u32 %v18330_v19, %v13752_v1  ;;  %v18350_v12 = vld [vmem:[%s24418_s2 + $0x234] sm:$0xf0]  ;;  %v13944_v24 = vld [vmem:[%s24418_s2 + $0x308] sm:$0xf] }
 0x24d   : > { %3764 = vmatpush.bf16.msra.mxu1 %v13765_v7  ;;  %3778 = vmatpush.bf16.msra.mxu2 %v13893_v3  ;;  %v13938_v7 = vld [vmem:[%s24418_s2 + $0x310] sm:$0xf0]  ;;  %v13800_v3 = vld [vmem:[%s24418_s2 + $0x1e8] sm:$0xf] }
 0x24e   : > { %3750 = vmatpush.bf16.msra.mxu0 %v13637_v49  ;;  %3792 = vmatpush.bf16.msra.mxu3 %v14021_v51  ;;  %v18375_v49 = vld [vmem:[%s24418_s2 + $0x304] sm:$0xf]  ;;  %v18342_v51 = vld [vmem:[%s24418_s2 + $0x1f4] sm:$0xf0]  ;;  %v13688_v19 = vld [vmem:[%s24418_s2 + $0x108] sm:$0xf] }
 0x24f   : > { %v13801_v56 = vor.u32 %v18342_v51, %v13800_v3  ;;  %v18358_v3 = vld [vmem:[%s24418_s2 + $0x274] sm:$0xf0]  ;;  %v13976_v51 = vld [vmem:[%s24418_s2 + $0x348] sm:$0xf] }
 0x250   : > { %v13865_v54 = vor.u32 %v18358_v3, %v13864_v46  ;;  %v18400_v46 = vld [vmem:[%s24418_s2 + $0x3cc] sm:$0xf]  ;;  %v14042_v3 = vld [vmem:[%s24418_s2 + $0x3d8] sm:$0xf0] }
 0x251   : > { %3765 = vmatpush.bf16.msra.mxu1 %v13749_v13  ;;  %3779 = vmatpush.bf16.msra.mxu2 %v13877_v39  ;;  %v13941_v13 = vor.u32 %v18375_v49, %v13938_v7  ;;  %v13656_v39 = vld [vmem:[%s24418_s2 + $0xc8] sm:$0xf] }
 0x252   : > { %3751 = vmatpush.bf16.msra.mxu0 %v13621_v27  ;;  %3793 = vmatpush.bf16.msra.mxu3 %v14005_v2  ;;  %v13813_v27 = vor.u32 %v18343_v45, %v13810_v47  ;;  %v18306_v2 = vld [vmem:[%s24418_s2 + $0xd4] sm:$0xf0]  ;;  %v13881_v45 = vor.u32 %v18362_v41, %v13880_v55  ;;  %v13736_v7 = vld [vmem:[%s24418_s2 + $0x168] sm:$0xf] }
 0x253   : > { %v13657_v6 = vor.u32 %v18306_v2, %v13656_v39  ;;  %v18354_v39 = vld [vmem:[%s24418_s2 + $0x254] sm:$0xf0]  ;;  %v13960_v2 = vld [vmem:[%s24418_s2 + $0x328] sm:$0xf] }
 0x254   : > { %v18314_v55 = vld [vmem:[%s24418_s2 + $0x114] sm:$0xf0]  ;;  %v13816_v41 = vld [vmem:[%s24418_s2 + $0x208] sm:$0xf] }
 0x255   : > { %3766 = vmatpush.bf16.msra.mxu1 %v13733_v18  ;;  %3780 = vmatpush.bf16.msra.mxu2 %v13861_v10  ;;  %v18398_v18 = vld [vmem:[%s24418_s2 + $0x3b4] sm:$0xf0]  ;;  %v13640_v10 = vld [vmem:[%s24418_s2 + $0xa8] sm:$0xf] }
 0x256   : > { %3752 = vmatpush.bf16.msra.mxu0 %v13605_v5  ;;  %3794 = vmatpush.bf16.msra.mxu3 %v13989_v21  ;;  %v14024_v5 = vld [vmem:[%s24418_s2 + $0x3a8] sm:$0xf]  ;;  %v18302_v21 = vld [vmem:[%s24418_s2 + $0xb4] sm:$0xf0] }
 0x257   : > { %v14025_v60 = vor.u32 %v18398_v18, %v14024_v5  ;;  %v13641_v28 = vor.u32 %v18302_v21, %v13640_v10 }
 0x259   : > { %3767 = vmatpush.bf16.msra.mxu1 %v13717_v26  ;;  %3781 = vmatpush.bf16.msra.mxu2 %v13845_v29  ;;  %v18394_v26 = vld [vmem:[%s24418_s2 + $0x394] sm:$0xf0]  ;;  %v13624_v29 = vld [vmem:[%s24418_s2 + $0x88] sm:$0xf] }
 0x25a   : > { %3753 = vmatpush.bf16.msra.mxu0 %v13589_v59  ;;  %3795 = vmatpush.bf16.msra.mxu3 %v13973_v34  ;;  %v14008_v59 = vld [vmem:[%s24418_s2 + $0x388] sm:$0xf]  ;;  %v18298_v34 = vld [vmem:[%s24418_s2 + $0x94] sm:$0xf0] }
 0x25b   : > { %v14009_v17 = vor.u32 %v18394_v26, %v14008_v59  ;;  %v18378_v59 = vld [vmem:[%s24418_s2 + $0x314] sm:$0xf0]  ;;  %v18308_v26 = vld [vmem:[%s24418_s2 + $0xec] sm:$0xf] }
 0x25c   : > { %v13945_v1 = vor.u32 %v18378_v59, %v13944_v24  ;;  %v13898_v24 = vld [vmem:[%s24418_s2 + $0x2b8] sm:$0xf0]  ;;  %v18392_v59 = vld [vmem:[%s24418_s2 + $0x38c] sm:$0xf] }
 0x25d   : > { %3768 = vmatpush.bf16.msra.mxu1 %v13701_v43  ;;  %3782 = vmatpush.bf16.msra.mxu2 %v13829_v38  ;;  %v13625_v43 = vor.u32 %v18298_v34, %v13624_v29  ;;  %v13608_v38 = vld [vmem:[%s24418_s2 + $0x68] sm:$0xf] }
 0x25e   : > { %3754 = vmatpush.bf16.msra.mxu0 %v13573_v42  ;;  %3796 = vmatpush.bf16.msra.mxu3 %v13957_v44  ;;  %v18390_v42 = vld [vmem:[%s24418_s2 + $0x374] sm:$0xf0]  ;;  %v13560_v34 = vld [vmem:[%s24418_s2 + $0x8] sm:$0xf] }
 0x25f   : > { %v18294_v44 = vld [vmem:[%s24418_s2 + $0x74] sm:$0xf0]  ;;  %v13993_v47 = vor.u32 %v18390_v42, %v13992_v31 }
 0x260   : > { %v18346_v42 = vld [vmem:[%s24418_s2 + $0x214] sm:$0xf0] }
 0x261   : > { %3769 = vmatpush.bf16.msra.mxu1 %v13685_v14  ;;  %3783 = vmatpush.bf16.msra.mxu2 %v13813_v27  ;;  %v13737_v14 = vor.u32 %v18326_v50, %v13736_v7  ;;  %v13977_v27 = vor.u32 %v18386_v23, %v13976_v51  ;;  %v13930_v50 = vld [vmem:[%s24418_s2 + $0x2f8] sm:$0xf0]  ;;  %v13689_v51 = vor.u32 %v18314_v55, %v13688_v19  ;;  %v18328_v19 = vld [vmem:[%s24418_s2 + $0x18c] sm:$0xf] }
 0x262   : > { %3755 = vmatpush.bf16.msra.mxu0 %v13557_v16  ;;  %3797 = vmatpush.bf16.msra.mxu3 %v13941_v13  ;;  %v13609_v16 = vor.u32 %v18294_v44, %v13608_v38  ;;  %v13720_v13 = vld [vmem:[%s24418_s2 + $0x148] sm:$0xf]  ;;  %v18340_v38 = vld [vmem:[%s24418_s2 + $0x1ec] sm:$0xf]  ;;  %v13802_v44 = vld [vmem:[%s24418_s2 + $0x1f8] sm:$0xf0]  ;;  %v13817_v23 = vor.u32 %v18346_v42, %v13816_v41 }
 0x263   : > { %v2854_v32 = vpop.f32.mrf.mxu0  ;;  %v2868_v9 = vpop.f32.mrf.mxu1  ;;  %v13805_v52 = vor.u32 %v18340_v38, %v13802_v44  ;;  %v13754_v55 = vld [vmem:[%s24418_s2 + $0x198] sm:$0xf0]  ;;  %v18360_v41 = vld [vmem:[%s24418_s2 + $0x28c] sm:$0xf] }
 0x264   : > { %3770 = vmatmul.bf16.vlgmr.msra.gmra.mxu1 %v21456_v0  ;;  %3784 = vmatmul.bf16.vlgmr.msra.gmra.mxu2 %v21490_v48  ;;  %v2869_v49 = vadd.f32 %v2868_v9, %v2854_v32  ;;  %v18388_v42 = vld [vmem:[%s24418_s2 + $0x36c] sm:$0xf]  ;;  %v13757_v44 = vor.u32 %v18328_v19, %v13754_v55  ;;  %v14416_v19 = vld [vmem:[%s24418_s2 + $0x9a0] sm:$0xf]  ;;  %v18589_v55 = vld [vmem:[%s24418_s2 + $0x9ac] sm:$0xf0] }
 0x265   : > { %3832 = vmatpush.bf16.msrb.mxu1 %v13929_v61  ;;  %3847 = vmatpush.bf16.msrb.mxu2 %v14041_v22  ;;  %v18382_v61 = vld [vmem:[%s24418_s2 + $0x334] sm:$0xf0] }
 0x266   : > { %3804 = vmatpush.bf16.msrb.mxu3 %v13673_v37  ;;  %3818 = vmatpush.bf16.msrb.mxu0 %v13801_v56  ;;  %v18322_v37 = vld [vmem:[%s24418_s2 + $0x154] sm:$0xf0]  ;;  %v13848_v56 = vld [vmem:[%s24418_s2 + $0x248] sm:$0xf]  ;;  %v13961_v21 = vor.u32 %v18382_v61, %v13960_v2  ;;  %v13914_v2 = vld [vmem:[%s24418_s2 + $0x2d8] sm:$0xf0] }
 0x267   : > { %3756 = vmatmul.bf16.vlgmr.msra.gmra.mxu0 %v21453_v63  ;;  %14047 = vmatmul.msk.bf16.vlgmr.msra.gmra.mxu3 %vm1662_vm3, %v21465_v35  ;;  %v13721_v4 = vor.u32 %v18322_v37, %v13720_v13  ;;  %v13849_v10 = vor.u32 %v18354_v39, %v13848_v56  ;;  %v14045_v13 = vor.u32 %v18400_v46, %v14042_v3  ;;  %v18336_v37 = vld [vmem:[%s24418_s2 + $0x1cc] sm:$0xf]  ;;  %v13786_v56 = vld [vmem:[%s24418_s2 + $0x1d8] sm:$0xf0] }
 0x268   : > { %v18368_v39 = vld [vmem:[%s24418_s2 + $0x2cc] sm:$0xf] }
 0x269   : > { %3833 = vmatpush.bf16.msrb.mxu1 %v13913_v20  ;;  %3848 = vmatpush.bf16.msrb.mxu2 %v14025_v60  ;;  %v13704_v20 = vld [vmem:[%s24418_s2 + $0x128] sm:$0xf]  ;;  %v18318_v60 = vld [vmem:[%s24418_s2 + $0x134] sm:$0xf0]  ;;  %v18396_v61 = vld [vmem:[%s24418_s2 + $0x3ac] sm:$0xf] }
 0x26a   : > { %3805 = vmatpush.bf16.msrb.mxu3 %v13657_v6  ;;  %3819 = vmatpush.bf16.msrb.mxu0 %v13785_v36  ;;  %v2882_v22 = vpop.f32.mrf.mxu2  ;;  %v2896_v25 = vpop.f32.mrf.mxu3  ;;  %v13576_v6 = vld [vmem:[%s24418_s2 + $0x28] sm:$0xf]  ;;  %v18286_v36 = vld [vmem:[%s24418_s2 + $0x34] sm:$0xf0]  ;;  %v13705_v29 = vor.u32 %v18318_v60, %v13704_v20  ;;  %v18332_v20 = vld [vmem:[%s24418_s2 + $0x1ac] sm:$0xf] }
 0x26b   : > { %v2883_v57 = vadd.f32 %v2882_v22, %v2869_v49  ;;  %v21762_v5 = vpop.f32.mrf.mxu0  ;;  %v21764_v18 = vpop.f32.mrf.mxu1  ;;  %v14026_v22 = vld [vmem:[%s24418_s2 + $0x3b8] sm:$0xf0]  ;;  %v18324_v3 = vld [vmem:[%s24418_s2 + $0x16c] sm:$0xf] }
 0x26c   : > { %v13770_v60 = vld [vmem:[%s24418_s2 + $0x1b8] sm:$0xf0] }
 0x26d   : > { %3834 = vmatpush.bf16.msrb.mxu1 %v13897_v40  ;;  %3849 = vmatpush.bf16.msrb.mxu2 %v14009_v17  ;;  %v21781_v58 = vadd.f32 %v2896_v25, %v2883_v57  ;;  %v18282_v40 = vld [vmem:[%s24418_s2 + $0x14] sm:$0xf0]  ;;  %v13833_v17 = vor.u32 %v18350_v12, %v13832_v11  ;;  %v13789_v57 = vor.u32 %v18336_v37, %v13786_v56  ;;  %v18364_v11 = vld [vmem:[%s24418_s2 + $0x2ac] sm:$0xf]  ;;  %v13578_v37 = vld [vmem:[%s24418_s2 + $0x38] sm:$0xf0] }
 0x26e   : > { %3806 = vmatpush.bf16.msrb.mxu3 %v13641_v28  ;;  %3820 = vmatpush.bf16.msrb.mxu0 %v13769_v33  ;;  %v13674_v28 = vld [vmem:[%s24418_s2 + $0xf8] sm:$0xf0]  ;;  %v13577_v33 = vor.u32 %v18286_v36, %v13576_v6  ;;  %v13917_v6 = vor.u32 %v18368_v39, %v13914_v2  ;;  %v14029_v36 = vor.u32 %v18396_v61, %v14026_v22  ;;  %v18320_v2 = vld [vmem:[%s24418_s2 + $0x14c] sm:$0xf] }
 0x26f   : > { %v13677_v31 = vor.u32 %v18308_v26, %v13674_v28  ;;  %v14010_v26 = vld [vmem:[%s24418_s2 + $0x398] sm:$0xf0]  ;;  %v18352_v22 = vld [vmem:[%s24418_s2 + $0x24c] sm:$0xf] }
 0x270   : > { %v13722_v61 = vld [vmem:[%s24418_s2 + $0x158] sm:$0xf0] }
 0x271   : > { %3835 = vmatpush.bf16.msrb.mxu1 %v13881_v45  ;;  %3850 = vmatpush.bf16.msrb.mxu2 %v13993_v47  ;;  %v18372_v45 = vld [vmem:[%s24418_s2 + $0x2ec] sm:$0xf]  ;;  %v13561_v47 = vor.u32 %v18282_v40, %v13560_v34  ;;  %v13610_v40 = vld [vmem:[%s24418_s2 + $0x78] sm:$0xf0] }
 0x272   : > { %3807 = vmatpush.bf16.msrb.mxu3 %v13625_v43  ;;  %3821 = vmatpush.bf16.msrb.mxu0 %v13753_v62  ;;  %v18304_v43 = vld [vmem:[%s24418_s2 + $0xcc] sm:$0xf]  ;;  %v13658_v62 = vld [vmem:[%s24418_s2 + $0xd8] sm:$0xf0]  ;;  %v21822_v32 = vpop.f32.mrf.mxu2  ;;  %v21824_v9 = vpop.f32.mrf.mxu3 }
 0x273   : > { %v2910_v49 = vpop.f32.mrf.mxu0  ;;  %v2924_v7 = vpop.f32.mrf.mxu1  ;;  %v18292_v34 = vld [vmem:[%s24418_s2 + $0x6c] sm:$0xf] }
 0x274   : > { %v13613_v38 = vor.u32 %v18292_v34, %v13610_v40  ;;  %v13946_v34 = vld [vmem:[%s24418_s2 + $0x318] sm:$0xf0]  ;;  %v14288_v40 = vld [vmem:[%s24418_s2 + $0x8a0] sm:$0xf] }
 0x275   : > { %3836 = vmatpush.bf16.msrb.mxu1 %v13865_v54  ;;  %3851 = vmatpush.bf16.msrb.mxu2 %v13977_v27  ;;  %v13642_v54 = vld [vmem:[%s24418_s2 + $0xb8] sm:$0xf0]  ;;  %v13933_v27 = vor.u32 %v18372_v45, %v13930_v50  ;;  %v18288_v45 = vld [vmem:[%s24418_s2 + $0x4c] sm:$0xf] }
 0x276   : > { %3808 = vmatpush.bf16.msrb.mxu3 %v13609_v16  ;;  %3822 = vmatpush.bf16.msrb.mxu0 %v13737_v14  ;;  %v2925_v16 = vadd.f32 %v2924_v7, %v2910_v49  ;;  %v13661_v14 = vor.u32 %v18304_v43, %v13658_v62  ;;  %v13645_v25 = vor.u32 %v18300_v53, %v13642_v54  ;;  %v13994_v43 = vld [vmem:[%s24418_s2 + $0x378] sm:$0xf0] }
 0x277   : > { %v13997_v50 = vor.u32 %v18388_v42, %v13994_v43  ;;  %v18312_v43 = vld [vmem:[%s24418_s2 + $0x10c] sm:$0xf] }
 0x279   : > { %3837 = vmatpush.bf16.msrb.mxu1 %v13849_v10  ;;  %3852 = vmatpush.bf16.msrb.mxu2 %v13961_v21 }
 0x27a   : > { %3809 = vmatpush.bf16.msrb.mxu3 %v13593_v30  ;;  %3823 = vmatpush.bf16.msrb.mxu0 %v13721_v4  ;;  %v18296_v30 = vld [vmem:[%s24418_s2 + $0x8c] sm:$0xf]  ;;  %v13626_v4 = vld [vmem:[%s24418_s2 + $0x98] sm:$0xf0]  ;;  %v2938_v10 = vpop.f32.mrf.mxu2  ;;  %v2952_v21 = vpop.f32.mrf.mxu3 }
 0x27b   : > { %v2939_v12 = vadd.f32 %v2938_v10, %v2925_v16  ;;  %v21923_v62 = vpop.f32.mrf.mxu0  ;;  %v21931_v49 = vpop.f32.mrf.mxu1  ;;  %v13866_v16 = vld [vmem:[%s24418_s2 + $0x278] sm:$0xf0] }
 0x27c   : > { %v13562_v10 = vld [vmem:[%s24418_s2 + $0x18] sm:$0xf0] }
 0x27d   : > { %3838 = vmatpush.bf16.msrb.mxu1 %v13833_v17  ;;  %3853 = vmatpush.bf16.msrb.mxu2 %v13945_v1  ;;  %v21897_v28 = vadd.f32 %v2952_v21, %v2939_v12  ;;  %v13901_v17 = vor.u32 %v18364_v11, %v13898_v24  ;;  %v14013_v1 = vor.u32 %v18392_v59, %v14010_v26  ;;  %v18316_v21 = vld [vmem:[%s24418_s2 + $0x12c] sm:$0xf]  ;;  %v13706_v24 = vld [vmem:[%s24418_s2 + $0x138] sm:$0xf0] }
 0x27e   : > { %3810 = vmatpush.bf16.msrb.mxu3 %v13577_v33  ;;  %3824 = vmatpush.bf16.msrb.mxu0 %v13705_v29  ;;  %v13629_v33 = vor.u32 %v18296_v30, %v13626_v4  ;;  %v13773_v29 = vor.u32 %v18332_v20, %v13770_v60  ;;  %v13962_v30 = vld [vmem:[%s24418_s2 + $0x338] sm:$0xf0]  ;;  %v18348_v59 = vld [vmem:[%s24418_s2 + $0x22c] sm:$0xf]  ;;  %v13709_v42 = vor.u32 %v18316_v21, %v13706_v24  ;;  %v18581_v21 = vld [vmem:[%s24418_s2 + $0x96c] sm:$0xf0] }
 0x27f   : > { %v13834_v26 = vld [vmem:[%s24418_s2 + $0x238] sm:$0xf0]  ;;  %v14512_v24 = vld [vmem:[%s24418_s2 + $0xa60] sm:$0xf] }
 0x280   : > { %14048 = vmatmul.msk.bf16.vlgmr.msrb.gmra.mxu2 %vm1662_vm3, %v21465_v35 }
 0x281   : > { %3860 = vmatpush.bf16.msra.mxu2 %v13677_v31  ;;  %3839 = vmatpush.bf16.msrb.mxu1 %v13817_v23  ;;  %v13882_v31 = vld [vmem:[%s24418_s2 + $0x298] sm:$0xf0]  ;;  %v18356_v23 = vld [vmem:[%s24418_s2 + $0x26c] sm:$0xf] }
 0x282   : > { %3811 = vmatpush.bf16.msrb.mxu3 %v13561_v47  ;;  %3825 = vmatpush.bf16.msrb.mxu0 %v13689_v51  ;;  %v13594_v47 = vld [vmem:[%s24418_s2 + $0x58] sm:$0xf0]  ;;  %v13885_v7 = vor.u32 %v18360_v41, %v13882_v31  ;;  %v21933_v46 = vpop.f32.mrf.mxu3  ;;  %v21953_v53 = vpop.f32.mrf.mxu2  ;;  %v13869_v56 = vor.u32 %v18356_v23, %v13866_v16  ;;  %v14417_v23 = vor.u32 %v18589_v55, %v14416_v19  ;;  %v14272_v16 = vld [vmem:[%s24418_s2 + $0x880] sm:$0xf] }
 0x283   : > { %v13738_v51 = vld [vmem:[%s24418_s2 + $0x178] sm:$0xf0]  ;;  %v13597_v54 = vor.u32 %v18288_v45, %v13594_v47  ;;  %v14224_v55 = vld [vmem:[%s24418_s2 + $0x820] sm:$0xf] }
 0x284   : > { %3840 = vmatmul.bf16.vlgmr.msrb.gmra.mxu1 %v21490_v48  ;;  %v2980_v20 = vpop.f32.mrf.mxu0  ;;  %v13690_v47 = vld [vmem:[%s24418_s2 + $0x118] sm:$0xf0] }
 0x285   : > { %3861 = vmatpush.bf16.msra.mxu2 %v13661_v14  ;;  %3903 = vmatpush.bf16.msra.mxu1 %v14045_v13  ;;  %v18384_v14 = vld [vmem:[%s24418_s2 + $0x34c] sm:$0xf] }
 0x286   : > { %3874 = vmatpush.bf16.msra.mxu3 %v13805_v52  ;;  %3888 = vmatpush.bf16.msra.mxu0 %v13933_v27  ;;  %v13978_v52 = vld [vmem:[%s24418_s2 + $0x358] sm:$0xf0]  ;;  %v13741_v27 = vor.u32 %v18324_v3, %v13738_v51  ;;  %v18284_v13 = vld [vmem:[%s24418_s2 + $0x2c] sm:$0xf] }
 0x287   : > { %3812 = vmatmul.bf16.vlgmr.msrb.gmra.mxu3 %v21453_v63  ;;  %3826 = vmatmul.bf16.vlgmr.msrb.gmra.mxu0 %v21456_v0  ;;  %v13981_v39 = vor.u32 %v18384_v14, %v13978_v52  ;;  %v13581_v4 = vor.u32 %v18284_v13, %v13578_v37  ;;  %v14544_v14 = vld [vmem:[%s24418_s2 + $0xaa0] sm:$0xf]  ;;  %v18621_v52 = vld [vmem:[%s24418_s2 + $0xaac] sm:$0xf0]  ;;  %v13693_v37 = vor.u32 %v18312_v43, %v13690_v47 }
 0x288   : > { %v18585_v13 = vld [vmem:[%s24418_s2 + $0x98c] sm:$0xf0]  ;;  %v14352_v43 = vld [vmem:[%s24418_s2 + $0x920] sm:$0xf] }
 0x289   : > { %3862 = vmatpush.bf16.msra.mxu2 %v13645_v25  ;;  %3904 = vmatpush.bf16.msra.mxu1 %v14029_v36  ;;  %v13850_v25 = vld [vmem:[%s24418_s2 + $0x258] sm:$0xf0]  ;;  %v18280_v36 = vld [vmem:[%s24418_s2 + $0xc] sm:$0xf] }
 0x28a   : > { %3875 = vmatpush.bf16.msra.mxu3 %v13789_v57  ;;  %3889 = vmatpush.bf16.msra.mxu0 %v13917_v6  ;;  %v18380_v57 = vld [vmem:[%s24418_s2 + $0x32c] sm:$0xf]  ;;  %v13725_v6 = vor.u32 %v18320_v2, %v13722_v61  ;;  %v13853_v60 = vor.u32 %v18352_v22, %v13850_v25  ;;  %v2966_v12 = vpop.f32.mrf.mxu3  ;;  %v13565_v31 = vor.u32 %v18280_v36, %v13562_v10  ;;  %v18549_v36 = vld [vmem:[%s24418_s2 + $0x86c] sm:$0xf0]  ;;  %v14384_v10 = vld [vmem:[%s24418_s2 + $0x960] sm:$0xf] }
 0x28b   : > { %v13965_v11 = vor.u32 %v18380_v57, %v13962_v30  ;;  %v14545_v61 = vor.u32 %v18621_v52, %v14544_v14  ;;  %v14256_v57 = vld [vmem:[%s24418_s2 + $0x860] sm:$0xf] }
 0x28c   : > { %v14528_v30 = vld [vmem:[%s24418_s2 + $0xa80] sm:$0xf] }
 0x28d   : > { %3863 = vmatpush.bf16.msra.mxu2 %v13629_v33  ;;  %3905 = vmatpush.bf16.msra.mxu1 %v14013_v1  ;;  %v2981_v33 = vadd.f32 %v2980_v20, %v2966_v12  ;;  %v18557_v1 = vld [vmem:[%s24418_s2 + $0x8ac] sm:$0xf0]  ;;  %v14385_v12 = vor.u32 %v18581_v21, %v14384_v10  ;;  %v14208_v14 = vld [vmem:[%s24418_s2 + $0x800] sm:$0xf]  ;;  %v3923_v10 = vld [vmem:[#allocation4 + $0x58] sm:$0x3] }
 0x28e   : > { %3876 = vmatpush.bf16.msra.mxu3 %v13773_v29  ;;  %3890 = vmatpush.bf16.msra.mxu0 %v13901_v17  ;;  %v18376_v29 = vld [vmem:[%s24418_s2 + $0x30c] sm:$0xf]  ;;  %v2994_v17 = vpop.f32.mrf.mxu1  ;;  %v14289_v51 = vor.u32 %v18557_v1, %v14288_v40  ;;  %v18645_v20 = vld [vmem:[%s24418_s2 + $0xb6c] sm:$0xf0]  ;;  %v14624_v40 = vld [vmem:[%s24418_s2 + $0xb40] sm:$0xf] }
 0x28f   : > { %v2995_v41 = vadd.f32 %v2994_v17, %v2981_v33  ;;  %v13949_v45 = vor.u32 %v18376_v29, %v13946_v34  ;;  %v18545_v33 = vld [vmem:[%s24418_s2 + $0x84c] sm:$0xf0]  ;;  %v14368_v29 = vld [vmem:[%s24418_s2 + $0x940] sm:$0xf] }
 0x290   : > { %v18577_v34 = vld [vmem:[%s24418_s2 + $0x94c] sm:$0xf0]  ;;  %v14480_v52 = vld [vmem:[%s24418_s2 + $0xa20] sm:$0xf] }
 0x291   : > { %3864 = vmatpush.bf16.msra.mxu2 %v13613_v38  ;;  %3906 = vmatpush.bf16.msra.mxu1 %v13997_v50  ;;  %v3008_v38 = vpop.f32.mrf.mxu2  ;;  %v13818_v50 = vld [vmem:[%s24418_s2 + $0x218] sm:$0xf0]  ;;  %v14369_v19 = vor.u32 %v18577_v34, %v14368_v29  ;;  %v18629_v29 = vld [vmem:[%s24418_s2 + $0xaec] sm:$0xf0] }
 0x292   : > { %3877 = vmatpush.bf16.msra.mxu3 %v13757_v44  ;;  %3891 = vmatpush.bf16.msra.mxu0 %v13885_v7  ;;  %v13837_v44 = vor.u32 %v18348_v59, %v13834_v26  ;;  %v18344_v7 = vld [vmem:[%s24418_s2 + $0x20c] sm:$0xf]  ;;  %v22027_v3 = vadd.f32 %v3008_v38, %v2995_v41  ;;  %v18613_v59 = vld [vmem:[%s24418_s2 + $0xa6c] sm:$0xf0] }
 0x293   : > { %v13821_v2 = vor.u32 %v18344_v7, %v13818_v50  ;;  %v14513_v17 = vor.u32 %v18613_v59, %v14512_v24  ;;  %v18609_v41 = vld [vmem:[%s24418_s2 + $0xa4c] sm:$0xf0]  ;;  %v3916_v7 = vld [vmem:[#allocation4] sm:$0xfc]  ;;  %v3920_v50 = vld [vmem:[#allocation4 + $0x40] sm:$0x3] }
 0x294   : > { %v18573_v38 = vld [vmem:[%s24418_s2 + $0x92c] sm:$0xf0]  ;;  %v14320_v59 = vld [vmem:[%s24418_s2 + $0x8e0] sm:$0xf] }
 0x295   : > { %3865 = vmatpush.bf16.msra.mxu2 %v13597_v54  ;;  %3907 = vmatpush.bf16.msra.mxu1 %v13981_v39  ;;  %v18553_v54 = vld [vmem:[%s24418_s2 + $0x88c] sm:$0xf0] }
 0x296   : > { %3878 = vmatpush.bf16.msra.mxu3 %v13741_v27  ;;  %3892 = vmatpush.bf16.msra.mxu0 %v13869_v56  ;;  %v14400_v27 = vld [vmem:[%s24418_s2 + $0x980] sm:$0xf]  ;;  %v18649_v39 = vld [vmem:[%s24418_s2 + $0xb8c] sm:$0xf0]  ;;  %v14273_v22 = vor.u32 %v18553_v54, %v14272_v16  ;;  %v14353_v16 = vor.u32 %v18573_v38, %v14352_v43  ;;  %v3917_v43 = vld [vmem:[#allocation4 + $0x8] sm:$0xfc]  ;;  %v3931_v38 = vpack.c.bf16 %v3923_v10, %v3923_v10 }
 0x297   : > { %v14656_v56 = vld [vmem:[%s24418_s2 + $0xb80] sm:$0xf]  ;;  %v14401_v25 = vor.u32 %v18585_v13, %v14400_v27  ;;  %v18605_v54 = vld [vmem:[%s24418_s2 + $0xa2c] sm:$0xf0]  ;;  %v22139_v27 = vpop.f32.mrf.mxu3 }
 0x298   : > { %v18533_v24 = vld [vmem:[%s24418_s2 + $0x7ec] sm:$0xf0]  ;;  %v4075_v10 = vrot.slane %v3931_v38, 1 }
 0x299   : > { %3866 = vmatpush.bf16.msra.mxu2 %v13581_v4  ;;  %3908 = vmatpush.bf16.msra.mxu1 %v13965_v11  ;;  %v18617_v4 = vld [vmem:[%s24418_s2 + $0xa8c] sm:$0xf0]  ;;  %v14257_v11 = vor.u32 %v18549_v36, %v14256_v57  ;;  %v22141_v13 = vpop.f32.mrf.mxu2 }
 0x29a   : > { %3879 = vmatpush.bf16.msra.mxu3 %v13725_v6  ;;  %3893 = vmatpush.bf16.msra.mxu0 %v13853_v60  ;;  %v14657_v6 = vor.u32 %v18649_v39, %v14656_v56  ;;  %v14529_v60 = vor.u32 %v18617_v4, %v14528_v30  ;;  %v18537_v56 = vld [vmem:[%s24418_s2 + $0x80c] sm:$0xf0]  ;;  %v14336_v39 = vld [vmem:[%s24418_s2 + $0x900] sm:$0xf]  ;;  %v22158_v30 = vpop.f32.mrf.mxu0  ;;  %v14481_v4 = vor.u32 %v18605_v54, %v14480_v52  ;;  %v18587_v52 = vld [vmem:[%s24418_s2 + $0x9a4] sm:$0xf] }
 0x29b   : > { %v14209_v21 = vor.u32 %v18537_v56, %v14208_v14  ;;  %v18555_v14 = vld [vmem:[%s24418_s2 + $0x8a4] sm:$0xf]  ;;  %v14418_v54 = vld [vmem:[%s24418_s2 + $0x9b0] sm:$0xf0] }
 0x29d   : > { %3867 = vmatpush.bf16.msra.mxu2 %v13565_v31  ;;  %3909 = vmatpush.bf16.msra.mxu1 %v13949_v45  ;;  %v18637_v45 = vld [vmem:[%s24418_s2 + $0xb2c] sm:$0xf0] }
 0x29e   : > { %3880 = vmatpush.bf16.msra.mxu3 %v13709_v42  ;;  %3894 = vmatpush.bf16.msra.mxu0 %v13837_v44  ;;  %v18541_v42 = vld [vmem:[%s24418_s2 + $0x82c] sm:$0xf0]  ;;  %v14608_v44 = vld [vmem:[%s24418_s2 + $0xb20] sm:$0xf] }
 0x2a0   : > { %3868 = vmatmul.bf16.vlgmr.msra.gmra.mxu2 %v21453_v63  ;;  %14049 = vmatmul.msk.bf16.vlgmr.msra.gmra.mxu1 %vm1662_vm3, %v21465_v35  ;;  %v14640_v63 = vld [vmem:[%s24418_s2 + $0xb60] sm:$0xf] }
 0x2a1   : > { %4703 = vmatpush.bf16.msrb.mxu1 %v14289_v51  ;;  %4717 = vmatpush.bf16.msrb.mxu2 %v14417_v23  ;;  %v14240_v35 = vld [vmem:[%s24418_s2 + $0x840] sm:$0xf]  ;;  %v14641_v26 = vor.u32 %v18645_v20, %v14640_v63  ;;  %v3921_v51 = vld [vmem:[#allocation4 + $0x48] sm:$0x3]  ;;  %v14225_v23 = vor.u32 %v18541_v42, %v14224_v55  ;;  %v18597_v42 = vld [vmem:[%s24418_s2 + $0x9ec] sm:$0xf0] }
 0x2a2   : > { %3881 = vmatpush.bf16.msra.mxu3 %v13693_v37  ;;  %3895 = vmatpush.bf16.msra.mxu0 %v13821_v2  ;;  %v14241_v1 = vor.u32 %v18545_v33, %v14240_v35  ;;  %v14609_v37 = vor.u32 %v18637_v45, %v14608_v44  ;;  %v18569_v2 = vld [vmem:[%s24418_s2 + $0x90c] sm:$0xf0]  ;;  %v3929_v36 = vpack.c.bf16 %v3921_v51, %v3921_v51  ;;  %v14192_v20 = vld [vmem:[%s24418_s2 + $0x7e0] sm:$0xf] }
 0x2a3   : > { %v14337_v63 = vor.u32 %v18569_v2, %v14336_v39  ;;  %v14576_v33 = vld [vmem:[%s24418_s2 + $0xae0] sm:$0xf]  ;;  %v14193_v55 = vor.u32 %v18533_v24, %v14192_v20  ;;  %v3922_v44 = vld [vmem:[#allocation4 + $0x50] sm:$0x3]  ;;  %v14290_v39 = vld [vmem:[%s24418_s2 + $0x8b0] sm:$0xf0] }
 0x2a4   : > { %v14560_v51 = vld [vmem:[%s24418_s2 + $0xac0] sm:$0xf]  ;;  %v18619_v2 = vld [vmem:[%s24418_s2 + $0xaa4] sm:$0xf]  ;;  %v18593_v24 = vld [vmem:[%s24418_s2 + $0x9cc] sm:$0xf0] }
 0x2a5   : > { %4704 = vmatpush.bf16.msrb.mxu1 %v14273_v22  ;;  %4718 = vmatpush.bf16.msrb.mxu2 %v14401_v25  ;;  %v18633_v22 = vld [vmem:[%s24418_s2 + $0xb0c] sm:$0xf0]  ;;  %v19585_v25 = vld [vmem:[#allocation4 + $0x20] sm:$0xff] }
 0x2a6   : > { %4731 = vmatpush.bf16.msrb.mxu3 %v14545_v61  ;;  %4746 = vmatpush.bf16.msrb.mxu0 %v14657_v6  ;;  %v14592_v61 = vld [vmem:[%s24418_s2 + $0xb00] sm:$0xf]  ;;  %v3924_v57 = vpack.c.bf16 %v19585_v25, %v3916_v7  ;;  %v3928_v6 = vpack.c.bf16 %v3920_v50, %v3920_v50  ;;  %v18561_v50 = vld [vmem:[%s24418_s2 + $0x8cc] sm:$0xf0] }
 0x2a7   : > { %3882 = vmatmul.bf16.vlgmr.msra.gmra.mxu3 %v21456_v0  ;;  %3896 = vmatmul.bf16.vlgmr.msra.gmra.mxu0 %v21490_v48  ;;  %v18641_v0 = vld [vmem:[%s24418_s2 + $0xb4c] sm:$0xf0]  ;;  %v14496_v48 = vld [vmem:[%s24418_s2 + $0xa40] sm:$0xf]  ;;  %v14593_v35 = vor.u32 %v18633_v22, %v14592_v61  ;;  %v3022_v45 = vpop.f32.mrf.mxu2  ;;  %v14546_v61 = vld [vmem:[%s24418_s2 + $0xab0] sm:$0xf0] }
 0x2a8   : > { %v14625_v31 = vor.u32 %v18641_v0, %v14624_v40  ;;  %v14497_v47 = vor.u32 %v18609_v41, %v14496_v48  ;;  %v22186_v34 = vrot.slane %v3924_v57, 1  ;;  %v14176_v0 = vld [vmem:[%s24418_s2 + $0x7c0] sm:$0xf]  ;;  %v19586_v22 = vld [vmem:[#allocation4 + $0x28] sm:$0xff] }
 0x2a9   : > { %4705 = vmatpush.bf16.msrb.mxu1 %v14257_v11  ;;  %4719 = vmatpush.bf16.msrb.mxu2 %v14385_v12  ;;  %v18601_v11 = vld [vmem:[%s24418_s2 + $0xa0c] sm:$0xf0]  ;;  %v22169_v12 = vpop.f32.mrf.mxu1  ;;  %v14304_v41 = vld [vmem:[%s24418_s2 + $0x8c0] sm:$0xf]  ;;  %v3925_v25 = vpack.c.bf16 %v19586_v22, %v3917_v43 }
 0x2aa   : > { %4732 = vmatpush.bf16.msrb.mxu3 %v14529_v60  ;;  %4747 = vmatpush.bf16.msrb.mxu0 %v14641_v26  ;;  %v14464_v60 = vld [vmem:[%s24418_s2 + $0xa00] sm:$0xf]  ;;  %v18565_v26 = vld [vmem:[%s24418_s2 + $0x8ec] sm:$0xf0]  ;;  %v3036_v7 = vpop.f32.mrf.mxu3 }
 0x2ab   : > { %v14465_v40 = vor.u32 %v18601_v11, %v14464_v60  ;;  %v14321_v48 = vor.u32 %v18565_v26, %v14320_v59  ;;  %v14421_v60 = vor.u32 %v18587_v52, %v14418_v54  ;;  %v19587_v11 = vld [vmem:[#allocation4 + $0x38] sm:$0xff]  ;;  %v18551_v59 = vld [vmem:[%s24418_s2 + $0x884] sm:$0xf]  ;;  %v4068_v38 = vrot.slane %v3925_v25, 1  ;;  %v14386_v54 = vld [vmem:[%s24418_s2 + $0x970] sm:$0xf0] }
 0x2ac   : > { %v18583_v26 = vld [vmem:[%s24418_s2 + $0x984] sm:$0xf] }
 0x2ad   : > { %4706 = vmatpush.bf16.msrb.mxu1 %v14241_v1  ;;  %4720 = vmatpush.bf16.msrb.mxu2 %v14369_v19  ;;  %v4066_v1 = vrot.slane %v3928_v6, 1  ;;  %v22194_v19 = vrot.slane %v3929_v36, 1  ;;  %v14305_v6 = vor.u32 %v18561_v50, %v14304_v41  ;;  %v3919_v36 = vld [vmem:[#allocation4 + $0x18] sm:$0xfc]  ;;  %v14274_v41 = vld [vmem:[%s24418_s2 + $0x890] sm:$0xf0] }
 0x2ae   : > { %4733 = vmatpush.bf16.msrb.mxu3 %v14513_v17  ;;  %4748 = vmatpush.bf16.msrb.mxu0 %v14625_v31  ;;  %v18529_v17 = vld [vmem:[%s24418_s2 + $0x7cc] sm:$0xf0]  ;;  %v14448_v31 = vld [vmem:[%s24418_s2 + $0x9e0] sm:$0xf] }
 0x2af   : > { %v14449_v56 = vor.u32 %v18597_v42, %v14448_v31  ;;  %v18615_v31 = vld [vmem:[%s24418_s2 + $0xa84] sm:$0xf]  ;;  %v14530_v42 = vld [vmem:[%s24418_s2 + $0xa90] sm:$0xf0]  ;;  %v22268_v43 = vsel %vm1363_vm2, %v22186_v34, %v4066_v1  ;;  %v22278_v34 = vsel %vm1363_vm2, %v4068_v38, %v22194_v19  ;;  %v14277_v1 = vor.u32 %v18551_v59, %v14274_v41  ;;  %v22350_v38 = vpop.f32.mrf.mxu2 }
 0x2b0   : > { %v14533_v52 = vor.u32 %v18615_v31, %v14530_v42  ;;  %v14242_v59 = vld [vmem:[%s24418_s2 + $0x850] sm:$0xf0]  ;;  %v18635_v31 = vld [vmem:[%s24418_s2 + $0xb24] sm:$0xf] }
 0x2b1   : > { %4707 = vmatpush.bf16.msrb.mxu1 %v14225_v23  ;;  %4721 = vmatpush.bf16.msrb.mxu2 %v14353_v16  ;;  %v18625_v23 = vld [vmem:[%s24418_s2 + $0xacc] sm:$0xf0]  ;;  %v3037_v16 = vadd.f32 %v3036_v7, %v3022_v45  ;;  %v14354_v41 = vld [vmem:[%s24418_s2 + $0x930] sm:$0xf0] }
 0x2b2   : > { %4734 = vmatpush.bf16.msrb.mxu3 %v14497_v47  ;;  %4749 = vmatpush.bf16.msrb.mxu0 %v14609_v37  ;;  %v14577_v47 = vor.u32 %v18629_v29, %v14576_v33  ;;  %v3050_v37 = vpop.f32.mrf.mxu0  ;;  %v14561_v20 = vor.u32 %v18625_v23, %v14560_v51  ;;  %v3918_v33 = vld [vmem:[#allocation4 + $0x10] sm:$0xfc]  ;;  %v3930_v29 = vpack.c.bf16 %v3922_v44, %v3922_v44 }
 0x2b3   : > { %v22232_v57 = vadd.f32 %v3050_v37, %v3037_v16  ;;  %v19588_v45 = vld [vmem:[#allocation4 + $0x30] sm:$0xff]  ;;  %v18547_v16 = vld [vmem:[%s24418_s2 + $0x864] sm:$0xf] }
 0x2b4   : > { %v4072_v23 = vrot.slane %v3930_v29, 1  ;;  %v18643_v37 = vld [vmem:[%s24418_s2 + $0xb64] sm:$0xf]  ;;  %v14610_v42 = vld [vmem:[%s24418_s2 + $0xb30] sm:$0xf0] }
 0x2b5   : > { %4708 = vmatpush.bf16.msrb.mxu1 %v14209_v21  ;;  %4722 = vmatpush.bf16.msrb.mxu2 %v14337_v63  ;;  %v14432_v21 = vld [vmem:[%s24418_s2 + $0x9c0] sm:$0xf]  ;;  %v22237_v63 = vpop.f32.mrf.mxu1 }
 0x2b6   : > { %4735 = vmatpush.bf16.msrb.mxu3 %v14481_v4  ;;  %4750 = vmatpush.bf16.msrb.mxu0 %v14593_v35  ;;  %v14177_v4 = vor.u32 %v18529_v17, %v14176_v0  ;;  %v3927_v35 = vpack.c.bf16 %v19587_v11, %v3919_v36  ;;  %v14549_v0 = vor.u32 %v18619_v2, %v14546_v61  ;;  %v14402_v17 = vld [vmem:[%s24418_s2 + $0x990] sm:$0xf0]  ;;  %v18611_v2 = vld [vmem:[%s24418_s2 + $0xa64] sm:$0xf] }
 0x2b7   : > { %v14433_v44 = vor.u32 %v18593_v24, %v14432_v21  ;;  %v14405_v50 = vor.u32 %v18583_v26, %v14402_v17  ;;  %v14514_v61 = vld [vmem:[%s24418_s2 + $0xa70] sm:$0xf0]  ;;  %v18575_v36 = vld [vmem:[%s24418_s2 + $0x944] sm:$0xf] }
 0x2b8   : > { %v4074_v7 = vrot.slane %v3927_v35, 1  ;;  %v18639_v11 = vld [vmem:[%s24418_s2 + $0xb44] sm:$0xf]  ;;  %v14626_v35 = vld [vmem:[%s24418_s2 + $0xb50] sm:$0xf0] }
 0x2b9   : > { %4709 = vmatpush.bf16.msrb.mxu1 %v14193_v55  ;;  %4723 = vmatpush.bf16.msrb.mxu2 %v14321_v48  ;;  %v18647_v55 = vld [vmem:[%s24418_s2 + $0xb84] sm:$0xf]  ;;  %v14658_v48 = vld [vmem:[%s24418_s2 + $0xb90] sm:$0xf0] }
 0x2ba   : > { %4736 = vmatpush.bf16.msrb.mxu3 %v14465_v40  ;;  %4751 = vmatpush.bf16.msrb.mxu0 %v14577_v47  ;;  %v14293_v40 = vor.u32 %v18555_v14, %v14290_v39  ;;  %v3926_v47 = vpack.c.bf16 %v19588_v45, %v3918_v33  ;;  %v14661_v51 = vor.u32 %v18647_v55, %v14658_v48  ;;  %v18579_v14 = vld [vmem:[%s24418_s2 + $0x964] sm:$0xf]  ;;  %v14258_v39 = vld [vmem:[%s24418_s2 + $0x870] sm:$0xf0] }
 0x2bb   : > { %v22292_v19 = vsel %vm1363_vm2, %v4074_v7, %v4075_v10  ;;  %v14389_v25 = vor.u32 %v18579_v14, %v14386_v54  ;;  %v14261_v21 = vor.u32 %v18547_v16, %v14258_v39  ;;  %v18607_v26 = vld [vmem:[%s24418_s2 + $0xa44] sm:$0xf]  ;;  %v14498_v33 = vld [vmem:[%s24418_s2 + $0xa50] sm:$0xf0] }
 0x2bc   : > { %v4071_v22 = vrot.slane %v3926_v47, 1  ;;  %v18571_v17 = vld [vmem:[%s24418_s2 + $0x924] sm:$0xf]  ;;  %v14501_v48 = vor.u32 %v18607_v26, %v14498_v33  ;;  %v14482_v47 = vld [vmem:[%s24418_s2 + $0xa30] sm:$0xf0] }
 0x2bd   : > { %4710 = vmatpush.bf16.msrb.mxu1 %v14177_v4  ;;  %4724 = vmatpush.bf16.msrb.mxu2 %v14305_v6  ;;  %v18543_v6 = vld [vmem:[%s24418_s2 + $0x844] sm:$0xf]  ;;  %v22323_v24 = vpop.f32.mrf.mxu1  ;;  %v14357_v7 = vor.u32 %v18571_v17, %v14354_v41  ;;  %v14594_v54 = vld [vmem:[%s24418_s2 + $0xb10] sm:$0xf0] }
 0x2be   : > { %4737 = vmatpush.bf16.msrb.mxu3 %v14449_v56  ;;  %4752 = vmatpush.bf16.msrb.mxu0 %v14561_v20  ;;  %v14642_v56 = vld [vmem:[%s24418_s2 + $0xb70] sm:$0xf0]  ;;  %v22312_v10 = vsel %vm1363_vm2, %v4071_v22, %v4072_v23  ;;  %v14517_v20 = vor.u32 %v18611_v2, %v14514_v61  ;;  %v14245_v55 = vor.u32 %v18543_v6, %v14242_v59  ;;  %v18603_v45 = vld [vmem:[%s24418_s2 + $0xa24] sm:$0xf]  ;;  %v22387_v22 = vpop.f32.mrf.mxu0 }
 0x2bf   : > { %v14645_v4 = vor.u32 %v18643_v37, %v14642_v56  ;;  %v18567_v23 = vld [vmem:[%s24418_s2 + $0x904] sm:$0xf]  ;;  %v14485_v14 = vor.u32 %v18603_v45, %v14482_v47  ;;  %v22376_v37 = vpop.f32.mrf.mxu3  ;;  %v14210_v39 = vld [vmem:[%s24418_s2 + $0x810] sm:$0xf0] }
 0x2c0   : > { %4711 = vmatmul.bf16.vlgmr.msrb.gmra.mxu1 %v22268_v43  ;;  %4725 = vmatmul.bf16.vlgmr.msrb.gmra.mxu2 %v22278_v34  ;;  %v18599_v2 = vld [vmem:[%s24418_s2 + $0xa04] sm:$0xf]  ;;  %v14466_v61 = vld [vmem:[%s24418_s2 + $0xa10] sm:$0xf0] }
 0x2c1   : > { %4773 = vmatpush.bf16.msra.mxu1 %v14421_v60  ;;  %4787 = vmatpush.bf16.msra.mxu2 %v14549_v0  ;;  %v14370_v60 = vld [vmem:[%s24418_s2 + $0x950] sm:$0xf0]  ;;  %v18539_v0 = vld [vmem:[%s24418_s2 + $0x824] sm:$0xf] }
 0x2c2   : > { %4759 = vmatpush.bf16.msra.mxu0 %v14293_v40  ;;  %4738 = vmatpush.bf16.msrb.mxu3 %v14433_v44  ;;  %v14373_v29 = vor.u32 %v18575_v36, %v14370_v60  ;;  %v14629_v40 = vor.u32 %v18639_v11, %v14626_v35  ;;  %v14226_v44 = vld [vmem:[%s24418_s2 + $0x830] sm:$0xf0]  ;;  %v18531_v6 = vld [vmem:[%s24418_s2 + $0x7e4] sm:$0xf]  ;;  %v14469_v60 = vor.u32 %v18599_v2, %v14466_v61  ;;  %v18622_v61 = vld [vmem:[%s24418_s2 + $0xab4] sm:$0xf0] }
 0x2c3   : > { %14670 = vmatmul.msk.bf16.vlgmr.msrb.gmra.mxu0 %vm1662_vm3, %v22292_v19  ;;  %v14229_v16 = vor.u32 %v18539_v0, %v14226_v44  ;;  %v18563_v36 = vld [vmem:[%s24418_s2 + $0x8e4] sm:$0xf]  ;;  %v14322_v11 = vld [vmem:[%s24418_s2 + $0x8f0] sm:$0xf0] }
 0x2c4   : > { %v18627_v35 = vld [vmem:[%s24418_s2 + $0xae4] sm:$0xf]  ;;  %v14578_v59 = vld [vmem:[%s24418_s2 + $0xaf0] sm:$0xf0]  ;;  %v14325_v0 = vor.u32 %v18563_v36, %v14322_v11 }
 0x2c5   : > { %4774 = vmatpush.bf16.msra.mxu1 %v14405_v50  ;;  %4788 = vmatpush.bf16.msra.mxu2 %v14533_v52  ;;  %v14613_v50 = vor.u32 %v18635_v31, %v14610_v42  ;;  %v18631_v52 = vld [vmem:[%s24418_s2 + $0xb04] sm:$0xf]  ;;  %v3701_v56 = vpop.f32.mrf.mxu1  ;;  %v14581_v17 = vor.u32 %v18627_v35, %v14578_v59  ;;  %v14306_v31 = vld [vmem:[%s24418_s2 + $0x8d0] sm:$0xf0]  ;;  %v14280_v35 = vld [vmem:[%s24418_s2 + $0x888] sm:$0xf] }
 0x2c6   : > { %4802 = vmatpush.bf16.msra.mxu3 %v14661_v51  ;;  %4760 = vmatpush.bf16.msra.mxu0 %v14277_v1  ;;  %v18535_v51 = vld [vmem:[%s24418_s2 + $0x804] sm:$0xf]  ;;  %v14338_v1 = vld [vmem:[%s24418_s2 + $0x910] sm:$0xf0]  ;;  %v18554_v59 = vld [vmem:[%s24418_s2 + $0x894] sm:$0xf0] }
 0x2c7   : > { %4739 = vmatmul.bf16.vlgmr.msrb.gmra.mxu3 %v22312_v10  ;;  %v3715_v26 = vpop.f32.mrf.mxu2  ;;  %v18595_v33 = vld [vmem:[%s24418_s2 + $0x9e4] sm:$0xf] }
 0x2c8   : > { %v18559_v41 = vld [vmem:[%s24418_s2 + $0x8c4] sm:$0xf] }
 0x2c9   : > { %4775 = vmatpush.bf16.msra.mxu1 %v14389_v25  ;;  %4789 = vmatpush.bf16.msra.mxu2 %v14517_v20  ;;  %v14341_v25 = vor.u32 %v18567_v23, %v14338_v1  ;;  %v14213_v20 = vor.u32 %v18535_v51, %v14210_v39  ;;  %v18591_v45 = vld [vmem:[%s24418_s2 + $0x9c4] sm:$0xf]  ;;  %v14434_v51 = vld [vmem:[%s24418_s2 + $0x9d0] sm:$0xf0]  ;;  %v14296_v23 = vld [vmem:[%s24418_s2 + $0x8a8] sm:$0xf]  ;;  %v14309_v39 = vor.u32 %v18559_v41, %v14306_v31 }
 0x2ca   : > { %4803 = vmatpush.bf16.msra.mxu3 %v14645_v4  ;;  %4761 = vmatpush.bf16.msra.mxu0 %v14261_v21  ;;  %v14597_v4 = vor.u32 %v18631_v52, %v14594_v54  ;;  %v3702_v21 = vadd.f32 %v3701_v56, %v21781_v58  ;;  %v14194_v58 = vld [vmem:[%s24418_s2 + $0x7f0] sm:$0xf0]  ;;  %v18623_v47 = vld [vmem:[%s24418_s2 + $0xac4] sm:$0xf]  ;;  %v14424_v1 = vld [vmem:[%s24418_s2 + $0x9a8] sm:$0xf]  ;;  %v3743_v56 = vpop.f32.mrf.mxu0 }
 0x2cb   : > { %v14197_v42 = vor.u32 %v18531_v6, %v14194_v58  ;;  %v18590_v52 = vld [vmem:[%s24418_s2 + $0x9b4] sm:$0xf0]  ;;  %v14552_v54 = vld [vmem:[%s24418_s2 + $0xaa8] sm:$0xf]  ;;  %v22464_v6 = vadd.f32 %v22237_v63, %v22232_v57 }
 0x2cc   : > { %v14425_v11 = vor.u32 %v18590_v52, %v14424_v1  ;;  %v14408_v57 = vld [vmem:[%s24418_s2 + $0x988] sm:$0xf]  ;;  %v18586_v63 = vld [vmem:[%s24418_s2 + $0x994] sm:$0xf0] }
 0x2cd   : > { %4776 = vmatpush.bf16.msra.mxu1 %v14373_v29  ;;  %4790 = vmatpush.bf16.msra.mxu2 %v14501_v48  ;;  %v14450_v29 = vld [vmem:[%s24418_s2 + $0x9f0] sm:$0xf0]  ;;  %v18550_v41 = vld [vmem:[%s24418_s2 + $0x874] sm:$0xf0]  ;;  %v14248_v1 = vld [vmem:[%s24418_s2 + $0x848] sm:$0xf] }
 0x2ce   : > { %4804 = vmatpush.bf16.msra.mxu3 %v14629_v40  ;;  %4762 = vmatpush.bf16.msra.mxu0 %v14245_v55  ;;  %v3716_v40 = vadd.f32 %v3715_v26, %v3702_v21  ;;  %v18527_v55 = vld [vmem:[%s24418_s2 + $0x7c4] sm:$0xf]  ;;  %v14178_v48 = vld [vmem:[%s24418_s2 + $0x7d0] sm:$0xf0]  ;;  %v14453_v44 = vor.u32 %v18595_v33, %v14450_v29  ;;  %v14553_v26 = vor.u32 %v18622_v61, %v14552_v54  ;;  %v14536_v33 = vld [vmem:[%s24418_s2 + $0xa88] sm:$0xf] }
 0x2cf   : > { %v14181_v21 = vor.u32 %v18527_v55, %v14178_v48  ;;  %v18618_v29 = vld [vmem:[%s24418_s2 + $0xa94] sm:$0xf0]  ;;  %v14409_v55 = vor.u32 %v18586_v63, %v14408_v57  ;;  %v14264_v48 = vld [vmem:[%s24418_s2 + $0x868] sm:$0xf] }
 0x2d0   : > { %v14537_v31 = vor.u32 %v18618_v29, %v14536_v33  ;;  %v18546_v52 = vld [vmem:[%s24418_s2 + $0x854] sm:$0xf0]  ;;  %v14504_v61 = vld [vmem:[%s24418_s2 + $0xa48] sm:$0xf] }
 0x2d1   : > { %4777 = vmatpush.bf16.msra.mxu1 %v14357_v7  ;;  %4791 = vmatpush.bf16.msra.mxu2 %v14485_v14  ;;  %v14562_v7 = vld [vmem:[%s24418_s2 + $0xad0] sm:$0xf0]  ;;  %v14360_v57 = vld [vmem:[%s24418_s2 + $0x928] sm:$0xf]  ;;  %v18574_v63 = vld [vmem:[%s24418_s2 + $0x934] sm:$0xf0] }
 0x2d2   : > { %4805 = vmatpush.bf16.msra.mxu3 %v14613_v50  ;;  %4763 = vmatpush.bf16.msra.mxu0 %v14229_v16  ;;  %v3729_v50 = vpop.f32.mrf.mxu3  ;;  %v18558_v16 = vld [vmem:[%s24418_s2 + $0x8b4] sm:$0xf0]  ;;  %v14565_v2 = vor.u32 %v18623_v47, %v14562_v7  ;;  %v14520_v47 = vld [vmem:[%s24418_s2 + $0xa68] sm:$0xf] }
 0x2d3   : > { %v3730_v14 = vadd.f32 %v3729_v50, %v3716_v40  ;;  %v14648_v40 = vld [vmem:[%s24418_s2 + $0xb68] sm:$0xf]  ;;  %v18614_v7 = vld [vmem:[%s24418_s2 + $0xa74] sm:$0xf0] }
 0x2d4   : > { %v14632_v50 = vld [vmem:[%s24418_s2 + $0xb48] sm:$0xf]  ;;  %v14521_v54 = vor.u32 %v18614_v7, %v14520_v47  ;;  %v18606_v29 = vld [vmem:[%s24418_s2 + $0xa34] sm:$0xf0] }
 0x2d5   : > { %4778 = vmatpush.bf16.msra.mxu1 %v14341_v25  ;;  %4792 = vmatpush.bf16.msra.mxu2 %v14469_v60  ;;  %v14664_v25 = vld [vmem:[%s24418_s2 + $0xb88] sm:$0xf]  ;;  %v22466_v36 = vadd.f32 %v3743_v56, %v3730_v14  ;;  %v14297_v60 = vor.u32 %v18558_v16, %v14296_v23  ;;  %v22521_v23 = vpop.f32.mrf.mxu0  ;;  %v14265_v16 = vor.u32 %v18550_v41, %v14264_v48 }
 0x2d6   : > { %4806 = vmatpush.bf16.msra.mxu3 %v14597_v4  ;;  %4764 = vmatpush.bf16.msra.mxu0 %v14213_v20  ;;  %v18650_v4 = vld [vmem:[%s24418_s2 + $0xb94] sm:$0xf0]  ;;  %v14437_v20 = vor.u32 %v18591_v45, %v14434_v51  ;;  %v14488_v33 = vld [vmem:[%s24418_s2 + $0xa28] sm:$0xf]  ;;  %v14361_v41 = vor.u32 %v18574_v63, %v14360_v57  ;;  %v18556_v57 = vld [vmem:[%s24418_s2 + $0x8ac] sm:$0xf] }
 0x2d7   : > { %v14665_v58 = vor.u32 %v18650_v4, %v14664_v25  ;;  %v18582_v45 = vld [vmem:[%s24418_s2 + $0x974] sm:$0xf0]  ;;  %v22538_v25 = vpop.f32.mrf.mxu1  ;;  %v14489_v47 = vor.u32 %v18606_v29, %v14488_v33  ;;  %v14298_v63 = vld [vmem:[%s24418_s2 + $0x8b8] sm:$0xf0] }
 0x2d8   : > { %v18642_v51 = vld [vmem:[%s24418_s2 + $0xb54] sm:$0xf0] }
 0x2d9   : > { %4779 = vmatpush.bf16.msra.mxu1 %v14325_v0  ;;  %4793 = vmatpush.bf16.msra.mxu2 %v14453_v44  ;;  %v18646_v0 = vld [vmem:[%s24418_s2 + $0xb74] sm:$0xf0]  ;;  %v14392_v44 = vld [vmem:[%s24418_s2 + $0x968] sm:$0xf]  ;;  %v14633_v56 = vor.u32 %v18642_v51, %v14632_v50 }
 0x2da   : > { %4807 = vmatpush.bf16.msra.mxu3 %v14581_v17  ;;  %4765 = vmatpush.bf16.msra.mxu0 %v14197_v42  ;;  %v14281_v17 = vor.u32 %v18554_v59, %v14280_v35  ;;  %v14649_v42 = vor.u32 %v18646_v0, %v14648_v40  ;;  %v14393_v14 = vor.u32 %v18582_v45, %v14392_v44  ;;  %v18610_v4 = vld [vmem:[%s24418_s2 + $0xa54] sm:$0xf0]  ;;  %v14232_v35 = vld [vmem:[%s24418_s2 + $0x828] sm:$0xf]  ;;  %v22581_v44 = vpop.f32.mrf.mxu3 }
 0x2db   : > { %v18542_v59 = vld [vmem:[%s24418_s2 + $0x834] sm:$0xf0]  ;;  %v14600_v40 = vld [vmem:[%s24418_s2 + $0xb08] sm:$0xf] }
 0x2dc   : > { %v18634_v0 = vld [vmem:[%s24418_s2 + $0xb14] sm:$0xf0]  ;;  %v14233_v48 = vor.u32 %v18542_v59, %v14232_v35  ;;  %v14344_v50 = vld [vmem:[%s24418_s2 + $0x908] sm:$0xf] }
 0x2dd   : > { %4780 = vmatpush.bf16.msra.mxu1 %v14309_v39  ;;  %4794 = vmatpush.bf16.msra.mxu2 %v14437_v20  ;;  %v14376_v39 = vld [vmem:[%s24418_s2 + $0x948] sm:$0xf]  ;;  %v18638_v20 = vld [vmem:[%s24418_s2 + $0xb34] sm:$0xf0]  ;;  %v14601_v7 = vor.u32 %v18634_v0, %v14600_v40 }
 0x2de   : > { %4808 = vmatpush.bf16.msra.mxu3 %v14565_v2  ;;  %4766 = vmatpush.bf16.msra.mxu0 %v14181_v21  ;;  %v18578_v2 = vld [vmem:[%s24418_s2 + $0x954] sm:$0xf0]  ;;  %v14616_v21 = vld [vmem:[%s24418_s2 + $0xb28] sm:$0xf] }
 0x2df   : > { %v18570_v51 = vld [vmem:[%s24418_s2 + $0x914] sm:$0xf0]  ;;  %v14568_v59 = vld [vmem:[%s24418_s2 + $0xac8] sm:$0xf] }
 0x2e0   : > { %4781 = vmatmul.bf16.vlgmr.msra.gmra.mxu1 %v22278_v34  ;;  %4795 = vmatmul.bf16.vlgmr.msra.gmra.mxu2 %v22312_v10  ;;  %v18598_v35 = vld [vmem:[%s24418_s2 + $0x9f4] sm:$0xf0]  ;;  %v14184_v0 = vld [vmem:[%s24418_s2 + $0x7c8] sm:$0xf] }
 0x2e1   : > { %4843 = vmatpush.bf16.msrb.mxu1 %v14553_v26  ;;  %4858 = vmatpush.bf16.msrb.mxu2 %v14665_v58  ;;  %v14505_v26 = vor.u32 %v18610_v4, %v14504_v61  ;;  %v14617_v58 = vor.u32 %v18638_v20, %v14616_v21  ;;  %v18534_v61 = vld [vmem:[%s24418_s2 + $0x7f4] sm:$0xf0]  ;;  %v14328_v20 = vld [vmem:[%s24418_s2 + $0x8e8] sm:$0xf] }
 0x2e2   : > { %4815 = vmatpush.bf16.msrb.mxu3 %v14297_v60  ;;  %4829 = vmatpush.bf16.msrb.mxu0 %v14425_v11  ;;  %v14249_v60 = vor.u32 %v18546_v52, %v14248_v1  ;;  %v14377_v11 = vor.u32 %v18578_v2, %v14376_v39  ;;  %v18602_v1 = vld [vmem:[%s24418_s2 + $0xa14] sm:$0xf0]  ;;  %v14345_v39 = vor.u32 %v18570_v51, %v14344_v50  ;;  %v14200_v2 = vld [vmem:[%s24418_s2 + $0x7e8] sm:$0xf] }
 0x2e3   : > { %4767 = vmatmul.bf16.vlgmr.msra.gmra.mxu0 %v22268_v43  ;;  %14671 = vmatmul.msk.bf16.vlgmr.msra.gmra.mxu3 %vm1662_vm3, %v22292_v19  ;;  %v18630_v52 = vld [vmem:[%s24418_s2 + $0xaf4] sm:$0xf0]  ;;  %v14201_v29 = vor.u32 %v18534_v61, %v14200_v2  ;;  %v14301_v50 = vor.u32 %v18556_v57, %v14298_v63  ;;  %v14666_v2 = vld [vmem:[%s24418_s2 + $0xb98] sm:$0xf0]  ;;  %v18616_v57 = vld [vmem:[%s24418_s2 + $0xa8c] sm:$0xf] }
 0x2e4   : > { %v18594_v51 = vld [vmem:[%s24418_s2 + $0x9d4] sm:$0xf0]  ;;  %v14538_v63 = vld [vmem:[%s24418_s2 + $0xa98] sm:$0xf0] }
 0x2e5   : > { %4844 = vmatpush.bf16.msrb.mxu1 %v14537_v31  ;;  %4859 = vmatpush.bf16.msrb.mxu2 %v14649_v42  ;;  %v14216_v31 = vld [vmem:[%s24418_s2 + $0x808] sm:$0xf]  ;;  %v18538_v42 = vld [vmem:[%s24418_s2 + $0x814] sm:$0xf0] }
 0x2e6   : > { %4816 = vmatpush.bf16.msrb.mxu3 %v14281_v17  ;;  %4830 = vmatpush.bf16.msrb.mxu0 %v14409_v55  ;;  %v22573_v17 = vpop.f32.mrf.mxu2  ;;  %v3757_v55 = vpop.f32.mrf.mxu0 }
 0x2e7   : > { %v3758_v45 = vadd.f32 %v3757_v55, %v21897_v28  ;;  %v14584_v28 = vld [vmem:[%s24418_s2 + $0xae8] sm:$0xf]  ;;  %v18530_v55 = vld [vmem:[%s24418_s2 + $0x7d4] sm:$0xf0] }
 0x2e8   : > { %v14585_v21 = vor.u32 %v18630_v52, %v14584_v28  ;;  %v14426_v28 = vld [vmem:[%s24418_s2 + $0x9b8] sm:$0xf0]  ;;  %v18620_v52 = vld [vmem:[%s24418_s2 + $0xaac] sm:$0xf] }
 0x2e9   : > { %4845 = vmatpush.bf16.msrb.mxu1 %v14521_v54  ;;  %4860 = vmatpush.bf16.msrb.mxu2 %v14633_v56  ;;  %v14217_v56 = vor.u32 %v18538_v42, %v14216_v31  ;;  %v14312_v42 = vld [vmem:[%s24418_s2 + $0x8c8] sm:$0xf] }
 0x2ea   : > { %4817 = vmatpush.bf16.msrb.mxu3 %v14265_v16  ;;  %4831 = vmatpush.bf16.msrb.mxu0 %v14393_v14  ;;  %v14472_v16 = vld [vmem:[%s24418_s2 + $0xa08] sm:$0xf]  ;;  %v3771_v14 = vpop.f32.mrf.mxu1 }
 0x2eb   : > { %v3772_v54 = vadd.f32 %v3771_v14, %v3758_v45  ;;  %v14473_v4 = vor.u32 %v18602_v1, %v14472_v16  ;;  %v18562_v45 = vld [vmem:[%s24418_s2 + $0x8d4] sm:$0xf0]  ;;  %v18552_v16 = vld [vmem:[%s24418_s2 + $0x88c] sm:$0xf]  ;;  %v14282_v14 = vld [vmem:[%s24418_s2 + $0x898] sm:$0xf0] }
 0x2ec   : > { %v18588_v1 = vld [vmem:[%s24418_s2 + $0x9ac] sm:$0xf]  ;;  %v14313_v61 = vor.u32 %v18562_v45, %v14312_v42  ;;  %v14394_v45 = vld [vmem:[%s24418_s2 + $0x978] sm:$0xf0] }
 0x2ed   : > { %4846 = vmatpush.bf16.msrb.mxu1 %v14505_v26  ;;  %4861 = vmatpush.bf16.msrb.mxu2 %v14617_v58  ;;  %v18626_v26 = vld [vmem:[%s24418_s2 + $0xad4] sm:$0xf0]  ;;  %v18580_v42 = vld [vmem:[%s24418_s2 + $0x96c] sm:$0xf] }
 0x2ee   : > { %4818 = vmatpush.bf16.msrb.mxu3 %v14249_v60  ;;  %4832 = vmatpush.bf16.msrb.mxu0 %v14377_v11  ;;  %v18566_v60 = vld [vmem:[%s24418_s2 + $0x8f4] sm:$0xf0]  ;;  %v14456_v11 = vld [vmem:[%s24418_s2 + $0x9e8] sm:$0xf]  ;;  %v3785_v58 = vpop.f32.mrf.mxu2  ;;  %v14569_v31 = vor.u32 %v18626_v26, %v14568_v59  ;;  %v18584_v26 = vld [vmem:[%s24418_s2 + $0x98c] sm:$0xf] }
 0x2ef   : > { %v3786_v33 = vadd.f32 %v3785_v58, %v3772_v54  ;;  %v14329_v40 = vor.u32 %v18566_v60, %v14328_v20  ;;  %v14185_v54 = vor.u32 %v18530_v55, %v14184_v0  ;;  %v14429_v20 = vor.u32 %v18588_v1, %v14426_v28  ;;  %v18548_v60 = vld [vmem:[%s24418_s2 + $0x86c] sm:$0xf]  ;;  %v14410_v58 = vld [vmem:[%s24418_s2 + $0x998] sm:$0xf0] }
 0x2f0   : > { %v14413_v0 = vor.u32 %v18584_v26, %v14410_v58  ;;  %v18544_v55 = vld [vmem:[%s24418_s2 + $0x84c] sm:$0xf]  ;;  %v14397_v1 = vor.u32 %v18580_v42, %v14394_v45  ;;  %v14202_v45 = vld [vmem:[%s24418_s2 + $0x7f8] sm:$0xf0] }
 0x2f1   : > { %4847 = vmatpush.bf16.msrb.mxu1 %v14489_v47  ;;  %4862 = vmatpush.bf16.msrb.mxu2 %v14601_v7  ;;  %v14440_v47 = vld [vmem:[%s24418_s2 + $0x9c8] sm:$0xf]  ;;  %v18540_v28 = vld [vmem:[%s24418_s2 + $0x82c] sm:$0xf] }
 0x2f2   : > { %4819 = vmatpush.bf16.msrb.mxu3 %v14233_v48  ;;  %4833 = vmatpush.bf16.msrb.mxu0 %v14361_v41  ;;  %v3799_v48 = vpop.f32.mrf.mxu3  ;;  %v14457_v41 = vor.u32 %v18598_v35, %v14456_v11  ;;  %v14266_v11 = vld [vmem:[%s24418_s2 + $0x878] sm:$0xf0]  ;;  %v18532_v42 = vld [vmem:[%s24418_s2 + $0x7ec] sm:$0xf] }
 0x2f3   : > { %v22647_v7 = vadd.f32 %v3799_v48, %v3786_v33  ;;  %v18644_v33 = vld [vmem:[%s24418_s2 + $0xb6c] sm:$0xf]  ;;  %v14250_v48 = vld [vmem:[%s24418_s2 + $0x858] sm:$0xf0] }
 0x2f5   : > { %4848 = vmatpush.bf16.msrb.mxu1 %v14473_v4  ;;  %4863 = vmatpush.bf16.msrb.mxu2 %v14585_v21  ;;  %v14441_v4 = vor.u32 %v18594_v51, %v14440_v47  ;;  %v14285_v21 = vor.u32 %v18552_v16, %v14282_v14  ;;  %v18612_v47 = vld [vmem:[%s24418_s2 + $0xa6c] sm:$0xf]  ;;  %v14634_v16 = vld [vmem:[%s24418_s2 + $0xb58] sm:$0xf0]  ;;  %v14253_v14 = vor.u32 %v18544_v55, %v14250_v48  ;;  %v22779_v48 = vpop.f32.mrf.mxu0 }
 0x2f6   : > { %4820 = vmatpush.bf16.msrb.mxu3 %v14217_v56  ;;  %4834 = vmatpush.bf16.msrb.mxu0 %v14345_v39  ;;  %v14554_v56 = vld [vmem:[%s24418_s2 + $0xab8] sm:$0xf0]  ;;  %v18648_v39 = vld [vmem:[%s24418_s2 + $0xb8c] sm:$0xf] }
 0x2f7   : > { %v14557_v35 = vor.u32 %v18620_v52, %v14554_v56  ;;  %v14669_v59 = vor.u32 %v18648_v39, %v14666_v2  ;;  %v18640_v51 = vld [vmem:[%s24418_s2 + $0xb4c] sm:$0xf]  ;;  %v14234_v52 = vld [vmem:[%s24418_s2 + $0x838] sm:$0xf0] }
 0x2f8   : > { %v14637_v56 = vor.u32 %v18640_v51, %v14634_v16  ;;  %v18576_v39 = vld [vmem:[%s24418_s2 + $0x94c] sm:$0xf]  ;;  %v14378_v2 = vld [vmem:[%s24418_s2 + $0x958] sm:$0xf0] }
 0x2f9   : > { %4849 = vmatpush.bf16.msrb.mxu1 %v14457_v41  ;;  %4864 = vmatpush.bf16.msrb.mxu2 %v14569_v31  ;;  %v14541_v41 = vor.u32 %v18616_v57, %v14538_v63  ;;  %v18572_v57 = vld [vmem:[%s24418_s2 + $0x92c] sm:$0xf]  ;;  %v14362_v63 = vld [vmem:[%s24418_s2 + $0x938] sm:$0xf0] }
 0x2fa   : > { %4821 = vmatpush.bf16.msrb.mxu3 %v14201_v29  ;;  %4835 = vmatpush.bf16.msrb.mxu0 %v14329_v40  ;;  %v14650_v29 = vld [vmem:[%s24418_s2 + $0xb78] sm:$0xf0]  ;;  %v14269_v40 = vor.u32 %v18548_v60, %v14266_v11  ;;  %v14237_v60 = vor.u32 %v18540_v28, %v14234_v52  ;;  %v14381_v11 = vor.u32 %v18576_v39, %v14378_v2  ;;  %v18568_v51 = vld [vmem:[%s24418_s2 + $0x90c] sm:$0xf] }
 0x2fb   : > { %v14653_v31 = vor.u32 %v18644_v33, %v14650_v29  ;;  %v18604_v33 = vld [vmem:[%s24418_s2 + $0xa2c] sm:$0xf]  ;;  %v22768_v29 = vpop.f32.mrf.mxu3  ;;  %v14602_v55 = vld [vmem:[%s24418_s2 + $0xb18] sm:$0xf0]  ;;  %v14205_v39 = vor.u32 %v18532_v42, %v14202_v45 }
 0x2fc   : > { %14672 = vmatmul.msk.bf16.vlgmr.msrb.gmra.mxu2 %vm1662_vm3, %v22292_v19  ;;  %v14346_v16 = vld [vmem:[%s24418_s2 + $0x918] sm:$0xf0]  ;;  %v18628_v52 = vld [vmem:[%s24418_s2 + $0xaec] sm:$0xf] }
 0x2fd   : > { %4871 = vmatpush.bf16.msra.mxu2 %v14301_v50  ;;  %4850 = vmatpush.bf16.msrb.mxu1 %v14441_v4  ;;  %v14522_v50 = vld [vmem:[%s24418_s2 + $0xa78] sm:$0xf0]  ;;  %v14349_v2 = vor.u32 %v18568_v51, %v14346_v16  ;;  %v18560_v42 = vld [vmem:[%s24418_s2 + $0x8cc] sm:$0xf] }
 0x2fe   : > { %4822 = vmatpush.bf16.msrb.mxu3 %v14185_v54  ;;  %4836 = vmatpush.bf16.msrb.mxu0 %v14313_v61  ;;  %v14525_v54 = vor.u32 %v18612_v47, %v14522_v50  ;;  %v18608_v61 = vld [vmem:[%s24418_s2 + $0xa4c] sm:$0xf]  ;;  %v14506_v4 = vld [vmem:[%s24418_s2 + $0xa58] sm:$0xf0] }
 0x2ff   : > { %v14509_v26 = vor.u32 %v18608_v61, %v14506_v4  ;;  %v14474_v28 = vld [vmem:[%s24418_s2 + $0xa18] sm:$0xf0]  ;;  %v18528_v61 = vld [vmem:[%s24418_s2 + $0x7cc] sm:$0xf] }
 0x300   : > { %4851 = vmatmul.bf16.vlgmr.msrb.gmra.mxu1 %v22312_v10  ;;  %v14186_v4 = vld [vmem:[%s24418_s2 + $0x7d8] sm:$0xf0] }
 0x301   : > { %4872 = vmatpush.bf16.msra.mxu2 %v14285_v21  ;;  %4914 = vmatpush.bf16.msra.mxu1 %v14669_v59  ;;  %v18636_v21 = vld [vmem:[%s24418_s2 + $0xb2c] sm:$0xf]  ;;  %v14218_v59 = vld [vmem:[%s24418_s2 + $0x818] sm:$0xf0] }
 0x302   : > { %4885 = vmatpush.bf16.msra.mxu3 %v14429_v20  ;;  %4899 = vmatpush.bf16.msra.mxu0 %v14557_v35  ;;  %v14618_v20 = vld [vmem:[%s24418_s2 + $0xb38] sm:$0xf0]  ;;  %v18536_v35 = vld [vmem:[%s24418_s2 + $0x80c] sm:$0xf] }
 0x303   : > { %4823 = vmatmul.bf16.vlgmr.msrb.gmra.mxu3 %v22268_v43  ;;  %4837 = vmatmul.bf16.vlgmr.msrb.gmra.mxu0 %v22278_v34  ;;  %v14621_v58 = vor.u32 %v18636_v21, %v14618_v20  ;;  %v14314_v45 = vld [vmem:[%s24418_s2 + $0x8d8] sm:$0xf0] }
 0x305   : > { %4873 = vmatpush.bf16.msra.mxu2 %v14269_v40  ;;  %4915 = vmatpush.bf16.msra.mxu1 %v14653_v31  ;;  %v14490_v40 = vld [vmem:[%s24418_s2 + $0xa38] sm:$0xf0]  ;;  %v14365_v31 = vor.u32 %v18572_v57, %v14362_v63 }
 0x306   : > { %4886 = vmatpush.bf16.msra.mxu3 %v14413_v0  ;;  %4900 = vmatpush.bf16.msra.mxu0 %v14541_v41  ;;  %v18632_v0 = vld [vmem:[%s24418_s2 + $0xb0c] sm:$0xf]  ;;  %v14221_v41 = vor.u32 %v18536_v35, %v14218_v59  ;;  %v14493_v47 = vor.u32 %v18604_v33, %v14490_v40  ;;  %v14570_v57 = vld [vmem:[%s24418_s2 + $0xad8] sm:$0xf0]  ;;  %v3827_v33 = vpop.f32.mrf.mxu0  ;;  %v14189_v40 = vor.u32 %v18528_v61, %v14186_v4 }
 0x307   : > { %v14605_v50 = vor.u32 %v18632_v0, %v14602_v55  ;;  %v18596_v35 = vld [vmem:[%s24418_s2 + $0x9ec] sm:$0xf] }
 0x309   : > { %4874 = vmatpush.bf16.msra.mxu2 %v14253_v14  ;;  %4916 = vmatpush.bf16.msra.mxu1 %v14637_v56  ;;  %v18600_v14 = vld [vmem:[%s24418_s2 + $0xa0c] sm:$0xf]  ;;  %v22807_v56 = vpop.f32.mrf.mxu2 }
 0x30a   : > { %4887 = vmatpush.bf16.msra.mxu3 %v14397_v1  ;;  %4901 = vmatpush.bf16.msra.mxu0 %v14525_v54  ;;  %v22796_v1 = vpop.f32.mrf.mxu1  ;;  %v14586_v54 = vld [vmem:[%s24418_s2 + $0xaf8] sm:$0xf0]  ;;  %v14477_v21 = vor.u32 %v18600_v14, %v14474_v28  ;;  %v3813_v59 = vpop.f32.mrf.mxu3  ;;  %v14317_v14 = vor.u32 %v18560_v42, %v14314_v45 }
 0x30b   : > { %v14589_v20 = vor.u32 %v18628_v52, %v14586_v54  ;;  %v3814_v63 = vadd.f32 %v3813_v59, %v22027_v3  ;;  %v18592_v3 = vld [vmem:[%s24418_s2 + $0x9cc] sm:$0xf] }
 0x30d   : > { %4875 = vmatpush.bf16.msra.mxu2 %v14237_v60  ;;  %4917 = vmatpush.bf16.msra.mxu1 %v14621_v58  ;;  %v18564_v60 = vld [vmem:[%s24418_s2 + $0x8ec] sm:$0xf]  ;;  %v3828_v55 = vadd.f32 %v3827_v33, %v3814_v63 }
 0x30e   : > { %4888 = vmatpush.bf16.msra.mxu3 %v14381_v11  ;;  %4902 = vmatpush.bf16.msra.mxu0 %v14509_v26  ;;  %v14330_v11 = vld [vmem:[%s24418_s2 + $0x8f8] sm:$0xf0]  ;;  %v18624_v58 = vld [vmem:[%s24418_s2 + $0xacc] sm:$0xf] }
 0x30f   : > { %v14458_v26 = vld [vmem:[%s24418_s2 + $0x9f8] sm:$0xf0]  ;;  %v14333_v0 = vor.u32 %v18564_v60, %v14330_v11 }
 0x311   : > { %4876 = vmatpush.bf16.msra.mxu2 %v14221_v41  ;;  %4918 = vmatpush.bf16.msra.mxu1 %v14605_v50  ;;  %v14461_v41 = vor.u32 %v18596_v35, %v14458_v26  ;;  %v14442_v50 = vld [vmem:[%s24418_s2 + $0x9d8] sm:$0xf0]  ;;  %v3855_v16 = vpop.f32.mrf.mxu2 }
 0x312   : > { %4889 = vmatpush.bf16.msra.mxu3 %v14365_v31  ;;  %4903 = vmatpush.bf16.msra.mxu0 %v14493_v47  ;;  %v14573_v31 = vor.u32 %v18624_v58, %v14570_v57  ;;  %v3841_v47 = vpop.f32.mrf.mxu1  ;;  %v14445_v52 = vor.u32 %v18592_v3, %v14442_v50  ;;  %v2871_v58 = vadd.f32 %v21764_v18, %v21762_v5 }
 0x313   : > { %v3842_v51 = vadd.f32 %v3841_v47, %v3828_v55  ;;  %v22878_v55 = vld [vmem:[%s24421_s1] sm:$0xf]  ;;  %s12611_s1 = sshll.u32 %s24434_s4, 2 }
 0x314   : > { %v2885_v63 = vadd.f32 %v21822_v32, %v2871_v58  ;;  %v4937_v5 = vperm.slane %v22878_v55, 0  ;;  %s847_s6 = scalar_lea.vmem %s24393_s21, %s12611_s1 }
 0x315   : > { %4877 = vmatpush.bf16.msra.mxu2 %v14205_v39  ;;  %4919 = vmatpush.bf16.msra.mxu1 %v14589_v20  ;;  %v22846_v28 = vadd.f32 %v3855_v16, %v3842_v51  ;;  %v22855_v39 = vpop.f32.mrf.mxu3 }
 0x316   : > { %4890 = vmatpush.bf16.msra.mxu3 %v14349_v2  ;;  %4904 = vmatpush.bf16.msra.mxu0 %v14477_v21  ;;  %v22857_v2 = vpop.f32.mrf.mxu0 }
 0x319   : > { %4878 = vmatpush.bf16.msra.mxu2 %v14189_v40  ;;  %4920 = vmatpush.bf16.msra.mxu1 %v14573_v31  ;;  %v22853_v54 = vpop.f32.mrf.mxu2 }
 0x31a   : > { %4891 = vmatpush.bf16.msra.mxu3 %v14333_v0  ;;  %4905 = vmatpush.bf16.msra.mxu0 %v14461_v41  ;;  %v22859_v61 = vpop.f32.mrf.mxu1  ;;  %v2899_v41 = vadd.f32 %v21824_v9, %v2885_v63 }
 0x31c   : > { %4879 = vmatmul.bf16.vlgmr.msra.gmra.mxu2 %v22268_v43  ;;  %14673 = vmatmul.msk.bf16.vlgmr.msra.gmra.mxu1 %vm1662_vm3, %v22292_v19  ;;  %v3704_v42 = vadd.f32 %v22538_v25, %v2899_v41 }
 0x31e   : > { %4892 = vmatpush.bf16.msra.mxu3 %v14317_v14  ;;  %4906 = vmatpush.bf16.msra.mxu0 %v14445_v52  ;;  %v3718_v47 = vadd.f32 %v22573_v17, %v3704_v42 }
 0x320   : > { %v3732_v50 = vadd.f32 %v22581_v44, %v3718_v47 }
 0x321   : > { %4893 = vmatmul.bf16.vlgmr.msra.gmra.mxu3 %v22278_v34  ;;  %4907 = vmatmul.bf16.vlgmr.msra.gmra.mxu0 %v22312_v10 }
 0x322   : > { %v3911_v11 = vpop.f32.mrf.mxu1 }
 0x323   : > { %v3869_v4 = vpop.f32.mrf.mxu2 }
 0x324   : > { %v3870_v43 = vadd.f32 %v3869_v4, %v22464_v6  ;;  %v3897_v19 = vpop.f32.mrf.mxu0 }
 0x32a   : > { %v3883_v21 = vpop.f32.mrf.mxu3  ;;  %v22864_v34 = vpop.f32.mrf.mxu1 }
 0x32b   : > { %v3884_v20 = vadd.f32 %v3883_v21, %v3870_v43  ;;  %v22866_v10 = vpop.f32.mrf.mxu2  ;;  %v3746_v43 = vadd.f32 %v22521_v23, %v3732_v50 }
 0x32c   : > { %v22868_v59 = vpop.f32.mrf.mxu0 }
 0x32d   : > { %v3898_v60 = vadd.f32 %v3897_v19, %v3884_v20 }
 0x32f   : > { %v22862_v35 = vadd.f32 %v3911_v11, %v3898_v60 }
 0x332   : > { %v22870_v26 = vpop.f32.mrf.mxu3 }
 0x33d   : > { %v4712_v57 = vpop.f32.mrf.mxu1 }
 0x340   : > { %v4754_v40 = vpop.f32.mrf.mxu0 }
 0x343   : > { %v4726_v6 = vpop.f32.mrf.mxu2 }
 0x344   : > { %v4727_v33 = vadd.f32 %v4726_v6, %v4712_v57 }
 0x345   : > { %v4714_v3 = vpop.f32.mrf.mxu1 }
 0x348   : > { %v4756_v9 = vpop.f32.mrf.mxu0 }
 0x34a   : > { %v4740_v0 = vpop.f32.mrf.mxu3 }
 0x34b   : > { %v4741_v31 = vadd.f32 %v4740_v0, %v4727_v33  ;;  %v4728_v18 = vpop.f32.mrf.mxu2 }
 0x34c   : > { %v4729_v16 = vadd.f32 %v4728_v18, %v4714_v3 }
 0x34d   : > { %v4755_v45 = vadd.f32 %v4754_v40, %v4741_v31  ;;  %v4938_v40 = vperm.slane %v22878_v55, 1 }
 0x34f   : > { %v4927_v32 = vadd.f32 %v4755_v45, %v22466_v36  ;;  %v2927_v36 = vadd.f32 %v21931_v49, %v21923_v62 }
 0x351   : > { %v4945_v51 = vadd.f32 %v4937_v5, %v4927_v32  ;;  %v2941_v44 = vadd.f32 %v21953_v53, %v2927_v36 }
 0x352   : > { %v4742_v14 = vpop.f32.mrf.mxu3 }
 0x353   : > { %v4953_v52 = vmax.f32 %v4945_v51, 0.0  ;;  %v4743_v4 = vadd.f32 %v4742_v14, %v4729_v16  ;;  %v2955_v11 = vadd.f32 %v21933_v46, %v2941_v44 }
 0x355   : > { %4961 = vst [vmem:[#allocation3] sm:$0xff] %v4953_v52  ;;  %v4757_v25 = vadd.f32 %v4756_v9, %v4743_v4  ;;  %v3760_v23 = vadd.f32 %v22779_v48, %v2955_v11 }
 0x357   : > { %v4931_v21 = vadd.f32 %v4757_v25, %v3746_v43  ;;  %v3774_v31 = vadd.f32 %v22796_v1, %v3760_v23  ;;  %v2983_v1 = vadd.f32 %v22158_v30, %v22139_v27 }
 0x359   : > { %v4949_v20 = vadd.f32 %v4937_v5, %v4931_v21  ;;  %v3788_v49 = vadd.f32 %v22807_v56, %v3774_v31  ;;  %v4939_v21 = vperm.slane %v22878_v55, 2 }
 0x35b   : > { %v4957_v19 = vmax.f32 %v4949_v20, 0.0  ;;  %v3802_v48 = vadd.f32 %v22768_v29, %v3788_v49  ;;  %v4940_v49 = vperm.slane %v22878_v55, 3 }
 0x35d   : > { %4965 = vst [vmem:[#allocation3 + $0x20] sm:$0xff] %v4957_v19  ;;  %v4782_v60 = vpop.f32.mrf.mxu1 }
 0x360   : > { %v4768_v17 = vpop.f32.mrf.mxu0 }
 0x361   : > { %v4783_v58 = vadd.f32 %v4782_v60, %v4768_v17 }
 0x363   : > { %v4796_v57 = vpop.f32.mrf.mxu2 }
 0x364   : > { %v4797_v63 = vadd.f32 %v4796_v57, %v4783_v58 }
 0x365   : > { %v4784_v41 = vpop.f32.mrf.mxu1 }
 0x366   : > { %v4810_v6 = vpop.f32.mrf.mxu3 }
 0x367   : > { %v4811_v33 = vadd.f32 %v4810_v6, %v4797_v63 }
 0x368   : > { %v4770_v0 = vpop.f32.mrf.mxu0 }
 0x369   : > { %v4928_v62 = vadd.f32 %v4811_v33, %v22647_v7  ;;  %v4785_v42 = vadd.f32 %v4784_v41, %v4770_v0  ;;  %v2997_v7 = vadd.f32 %v22169_v12, %v2983_v1 }
 0x36b   : > { %v4946_v53 = vadd.f32 %v4938_v40, %v4928_v62  ;;  %v4798_v46 = vpop.f32.mrf.mxu2  ;;  %v3011_v51 = vadd.f32 %v22141_v13, %v2997_v7 }
 0x36c   : > { %v4799_v5 = vadd.f32 %v4798_v46, %v4785_v42 }
 0x36d   : > { %v4954_v45 = vmax.f32 %v4946_v53, 0.0  ;;  %v3816_v52 = vadd.f32 %v22855_v39, %v3011_v51 }
 0x36e   : > { %v4812_v18 = vpop.f32.mrf.mxu3 }
 0x36f   : > { %4962 = vst [vmem:[#allocation3 + $0x8] sm:$0xff] %v4954_v45  ;;  %v4813_v47 = vadd.f32 %v4812_v18, %v4799_v5  ;;  %v3830_v43 = vadd.f32 %v22857_v2, %v3816_v52 }
 0x371   : > { %v4932_v32 = vadd.f32 %v4813_v47, %v3802_v48  ;;  %v3844_v12 = vadd.f32 %v22859_v61, %v3830_v43 }
 0x373   : > { %v4950_v3 = vadd.f32 %v4938_v40, %v4932_v32  ;;  %v3858_v44 = vadd.f32 %v22853_v54, %v3844_v12 }
 0x375   : > { %v4958_v50 = vmax.f32 %v4950_v3, 0.0 }
 0x377   : > { %4966 = vst [vmem:[#allocation3 + $0x28] sm:$0xff] %v4958_v50 }
 0x37d   : > { %v4852_v16 = vpop.f32.mrf.mxu1 }
 0x37f   : > { %v4866_v29 = vpop.f32.mrf.mxu2 }
 0x380   : > { %v4838_v56 = vpop.f32.mrf.mxu0 }
 0x385   : > { %v4854_v36 = vpop.f32.mrf.mxu1 }
 0x386   : > { %v4824_v14 = vpop.f32.mrf.mxu3 }
 0x387   : > { %v4839_v4 = vadd.f32 %v4838_v56, %v4824_v14  ;;  %v4868_v39 = vpop.f32.mrf.mxu2 }
 0x388   : > { %v4840_v27 = vpop.f32.mrf.mxu0 }
 0x389   : > { %v4853_v9 = vadd.f32 %v4852_v16, %v4839_v4 }
 0x38b   : > { %v4867_v25 = vadd.f32 %v4866_v29, %v4853_v9 }
 0x38d   : > { %v4929_v20 = vadd.f32 %v4867_v25, %v22846_v28  ;;  %v3039_v28 = vadd.f32 %v22376_v37, %v22350_v38 }
 0x38e   : > { %v4826_v30 = vpop.f32.mrf.mxu3 }
 0x38f   : > { %v4947_v19 = vadd.f32 %v4939_v21, %v4929_v20  ;;  %v4841_v13 = vadd.f32 %v4840_v27, %v4826_v30  ;;  %v3053_v6 = vadd.f32 %v22387_v22, %v3039_v28  ;;  %v18684_v28 = vld [vmem:[%s24425_s22 + $0x108] sm:$0xff] }
 0x391   : > { %v4955_v17 = vmax.f32 %v4947_v19, 0.0  ;;  %v4855_v60 = vadd.f32 %v4854_v36, %v4841_v13  ;;  %v3067_v33 = vadd.f32 %v22323_v24, %v3053_v6  ;;  %v18688_v13 = vld [vmem:[%s24424_s3 + $0x128] sm:$0xff]  ;;  %v18687_v36 = vld [vmem:[%s24425_s22 + $0x120] sm:$0xff]  ;;  %v18694_v6 = vld [vmem:[%s24425_s22 + $0x158] sm:$0xff]  ;;  %s18206_s3 = sshll.u32 %s24434_s4, 5 }
 0x392   : > { %5450 = vmatpush.bf16.msrb.mxu1 %v18688_v13  ;;  %s24359_s5 = scalar_lea.vmem %s24431_s23, %s18206_s3 }
 0x393   : > { %4963 = vst [vmem:[#allocation3 + $0x10] sm:$0xff] %v4955_v17  ;;  %v4869_v11 = vadd.f32 %v4868_v39, %v4855_v60  ;;  %v3872_v54 = vadd.f32 %v22866_v10, %v3067_v33  ;;  %v18696_v17 = vld [vmem:[%s24425_s22 + $0x168] sm:$0xff]  ;;  %v18710_v39 = vld [vmem:[%s24425_s22 + $0x1d8] sm:$0xff]  ;;  %v18693_v33 = vld [vmem:[%s24425_s22 + $0x150] sm:$0xff] }
 0x394   : > { %v18704_v60 = vld [vmem:[%s24425_s22 + $0x1a8] sm:$0xff]  ;;  %5463 = vmatpush.bf16.msrb.mxu2 %v18696_v17  ;;  %5491 = vmatpush.bf16.msrb.mxu0 %v18710_v39  ;;  %v18678_v17 = vld [vmem:[%s24425_s22 + $0xd8] sm:$0xff] }
 0x395   : > { %v4933_v2 = vadd.f32 %v4869_v11, %v3858_v44  ;;  %v3886_v31 = vadd.f32 %v22870_v26, %v3872_v54  ;;  %v18686_v44 = vld [vmem:[%s24425_s22 + $0x118] sm:$0xff]  ;;  %5476 = vmatpush.bf16.msrb.mxu3 %v18704_v60  ;;  %v18685_v11 = vld [vmem:[%s24425_s22 + $0x110] sm:$0xff]  ;;  %v18707_v54 = vld [vmem:[%s24425_s22 + $0x1c0] sm:$0xff] }
 0x396   : > { %5451 = vmatpush.bf16.msrb.mxu1 %v18687_v36  ;;  %v18662_v36 = vld [vmem:[%s24425_s22 + $0x58] sm:$0xff] }
 0x397   : > { %v4951_v58 = vadd.f32 %v4939_v21, %v4933_v2  ;;  %v3900_v22 = vadd.f32 %v22868_v59, %v3886_v31  ;;  %v18695_v2 = vld [vmem:[%s24425_s22 + $0x160] sm:$0xff]  ;;  %v18682_v31 = vld [vmem:[%s24425_s22 + $0xf8] sm:$0xff] }
 0x398   : > { %5464 = vmatpush.bf16.msrb.mxu2 %v18695_v2  ;;  %v18671_v2 = vld [vmem:[%s24425_s22 + $0xa0] sm:$0xff] }
 0x399   : > { %v4959_v57 = vmax.f32 %v4951_v58, 0.0  ;;  %v4922_v0 = vpop.f32.mrf.mxu1  ;;  %v18703_v58 = vld [vmem:[%s24425_s22 + $0x1a0] sm:$0xff] }
 0x39a   : > { %5452 = vmatpush.bf16.msrb.mxu1 %v18686_v44  ;;  %5477 = vmatpush.bf16.msrb.mxu3 %v18703_v58  ;;  %v18653_v58 = vld [vmem:[%s24425_s22 + $0x10] sm:$0xff] }
 0x39b   : > { %4967 = vst [vmem:[#allocation3 + $0x30] sm:$0xff] %v4959_v57  ;;  %v18709_v57 = vld [vmem:[%s24425_s22 + $0x1d0] sm:$0xff] }
 0x39c   : > { %5492 = vmatpush.bf16.msrb.mxu0 %v18709_v57  ;;  %5465 = vmatpush.bf16.msrb.mxu2 %v18694_v6  ;;  %v18661_v57 = vld [vmem:[%s24425_s22 + $0x50] sm:$0xff] }
 0x39e   : > { %v4908_v23 = vpop.f32.mrf.mxu0  ;;  %5453 = vmatpush.bf16.msrb.mxu1 %v18685_v11 }
 0x39f   : > { %v4880_v61 = vpop.f32.mrf.mxu2 }
 0x3a0   : > { %5466 = vmatpush.bf16.msrb.mxu2 %v18693_v33  ;;  %v18652_v33 = vld [vmem:[%s24425_s22 + $0x8] sm:$0xff] }
 0x3a1   : > { %v4924_v26 = vpop.f32.mrf.mxu1 }
 0x3a2   : > { %5454 = vmatpush.bf16.msrb.mxu1 %v18684_v28  ;;  %v18677_v28 = vld [vmem:[%s24425_s22 + $0xd0] sm:$0xff] }
 0x3a4   : > { %v4894_v63 = vpop.f32.mrf.mxu3 }
 0x3a5   : > { %v4895_v40 = vadd.f32 %v4894_v63, %v4880_v61  ;;  %v18702_v61 = vld [vmem:[%s24425_s22 + $0x198] sm:$0xff]  ;;  %v18683_v63 = vld [vmem:[%s24425_s22 + $0x100] sm:$0xff] }
 0x3a6   : > { %v4910_v45 = vpop.f32.mrf.mxu0  ;;  %5478 = vmatpush.bf16.msrb.mxu3 %v18702_v61  ;;  %5455 = vmatpush.bf16.msrb.mxu1 %v18683_v63 }
 0x3a7   : > { %v4909_v41 = vadd.f32 %v4908_v23, %v4895_v40  ;;  %v4882_v38 = vpop.f32.mrf.mxu2  ;;  %v18708_v23 = vld [vmem:[%s24425_s22 + $0x1c8] sm:$0xff]  ;;  %v18701_v40 = vld [vmem:[%s24425_s22 + $0x190] sm:$0xff] }
 0x3a8   : > { %5493 = vmatpush.bf16.msrb.mxu0 %v18708_v23  ;;  %v18670_v23 = vld [vmem:[%s24425_s22 + $0x98] sm:$0xff] }
 0x3a9   : > { %v4923_v62 = vadd.f32 %v4922_v0, %v4909_v41 }
 0x3aa   : > { %5479 = vmatpush.bf16.msrb.mxu3 %v18701_v40  ;;  %5456 = vmatpush.bf16.msrb.mxu1 %v18682_v31  ;;  %v18676_v40 = vld [vmem:[%s24425_s22 + $0xc8] sm:$0xff] }
 0x3ab   : > { %v4930_v53 = vadd.f32 %v4923_v62, %v22862_v35  ;;  %v3914_v35 = vadd.f32 %v22864_v34, %v3900_v22  ;;  %v18692_v62 = vld [vmem:[%s24425_s22 + $0x148] sm:$0xff]  ;;  %v18681_v22 = vld [vmem:[%s24425_s22 + $0xf0] sm:$0xff] }
 0x3ac   : > { %v4896_v37 = vpop.f32.mrf.mxu3  ;;  %5494 = vmatpush.bf16.msrb.mxu0 %v18707_v54  ;;  %5467 = vmatpush.bf16.msrb.mxu2 %v18692_v62  ;;  %v18669_v62 = vld [vmem:[%s24425_s22 + $0x90] sm:$0xff] }
 0x3ad   : > { %v4948_v42 = vadd.f32 %v4940_v49, %v4930_v53  ;;  %v4897_v46 = vadd.f32 %v4896_v37, %v4882_v38  ;;  %v18706_v53 = vld [vmem:[%s24425_s22 + $0x1b8] sm:$0xff] }
 0x3ae   : > { %5457 = vmatpush.bf16.msrb.mxu1 %v18681_v22  ;;  %v18668_v22 = vld [vmem:[%s24425_s22 + $0x88] sm:$0xff] }
 0x3af   : > { %v4956_v10 = vmax.f32 %v4948_v42, 0.0  ;;  %v4911_v5 = vadd.f32 %v4910_v45, %v4897_v46  ;;  %v18691_v42 = vld [vmem:[%s24425_s22 + $0x140] sm:$0xff] }
 0x3b0   : > { %5495 = vmatpush.bf16.msrb.mxu0 %v18706_v53  ;;  %v18699_v46 = vld [vmem:[%s24425_s22 + $0x180] sm:$0xff]  ;;  %5468 = vmatpush.bf16.msrb.mxu2 %v18691_v42 }
 0x3b1   : > { %4964 = vst [vmem:[#allocation3 + $0x18] sm:$0xff] %v4956_v10  ;;  %v4925_v59 = vadd.f32 %v4924_v26, %v4911_v5  ;;  %v18705_v10 = vld [vmem:[%s24425_s22 + $0x1b0] sm:$0xff]  ;;  %v18658_v5 = vld [vmem:[%s24425_s22 + $0x38] sm:$0xff]  ;;  %v18659_v53 = vld [vmem:[%s24425_s22 + $0x40] sm:$0xff] }
 0x3b2   : > { %v18666_v26 = vld [vmem:[%s24425_s22 + $0x78] sm:$0xff] }
 0x3b3   : > { %v4934_v55 = vadd.f32 %v4925_v59, %v3914_v35  ;;  %v18690_v59 = vld [vmem:[%s24425_s22 + $0x138] sm:$0xff]  ;;  %5698 = vmatpush.bf16.msra.mxu1 %v18666_v26 }
 0x3b4   : > { %5496 = vmatpush.bf16.msrb.mxu0 %v18705_v10  ;;  %5469 = vmatpush.bf16.msrb.mxu2 %v18690_v59 }
 0x3b5   : > { %v4952_v18 = vadd.f32 %v4940_v49, %v4934_v55  ;;  %v18700_v49 = vld [vmem:[%s24425_s22 + $0x188] sm:$0xff]  ;;  %v18698_v55 = vld [vmem:[%s24425_s22 + $0x178] sm:$0xff] }
 0x3b6   : > { %5480 = vmatpush.bf16.msrb.mxu3 %v18700_v49  ;;  %v18651_v49 = vld [vmem:[%s24425_s22] sm:$0xff] }
 0x3b7   : > { %v4960_v48 = vmax.f32 %v4952_v18, 0.0 }
 0x3b8   : > { %v5006_v47 = vld [vmem:[#allocation3 + $0x4] ss:$8 sm:$0xf]  ;;  %v5008_v32 = vld [vmem:[#allocation3 + $0x5] ss:$8 sm:$0xf]  ;;  %5685 = vmatpush.bf16.msra.mxu0 %v18658_v5 }
 0x3b9   : > { %4968 = vst [vmem:[#allocation3 + $0x38] sm:$0xff] %v4960_v48  ;;  %v22928_v3 = vmax.f32 %v5006_v47, %v5008_v32  ;;  %v4991_v50 = vld [vmem:[#allocation3 + $0x2] ss:$8 sm:$0xf] }
 0x3ba   : > { %v4993_v1 = vld [vmem:[#allocation3 + $0x3] ss:$8 sm:$0xf]  ;;  %v4976_v7 = vld [vmem:[#allocation3] ss:$8 sm:$0xf]  ;;  %5481 = vmatpush.bf16.msrb.mxu3 %v18699_v46 }
 0x3bb   : > { %5011 = vrot.lane.b32.xlu0 %v22928_v3, %s19939_s13  ;;  %v22931_v56 = vmax.f32 %v4991_v50, %v4993_v1  ;;  %v4978_v15 = vld [vmem:[#allocation3 + $0x1] ss:$8 sm:$0xf]  ;;  %v5021_v51 = vld [vmem:[#allocation3 + $0x6] ss:$8 sm:$0xf] }
 0x3bc   : > { %v22933_v34 = vmax.f32 %v4976_v7, %v4978_v15  ;;  %v5023_v16 = vld [vmem:[#allocation3 + $0x7] ss:$8 sm:$0xf] }
 0x3bd   : > { %4996 = vrot.lane.b32.xlu2 %v22931_v56, %s19939_s13  ;;  %v22942_v25 = vmax.f32 %v5021_v51, %v5023_v16  ;;  %v18657_v48 = vld [vmem:[%s24425_s22 + $0x30] sm:$0xff]  ;;  %v18656_v7 = vld [vmem:[%s24425_s22 + $0x28] sm:$0xff]  ;;  %v18674_v51 = vld [vmem:[%s24425_s22 + $0xb8] sm:$0xff] }
 0x3be   : > { %4981 = vrot.lane.b32.xlu1 %v22933_v34, %s19939_s13  ;;  %v18665_v47 = vld [vmem:[%s24425_s22 + $0x70] sm:$0xff]  ;;  %5482 = vmatpush.bf16.msrb.mxu3 %v18698_v55  ;;  %v18664_v15 = vld [vmem:[%s24425_s22 + $0x68] sm:$0xff] }
 0x3bf   : > { %5686 = vmatpush.bf16.msra.mxu0 %v18657_v48  ;;  %5699 = vmatpush.bf16.msra.mxu1 %v18665_v47  ;;  %v18689_v50 = vld [vmem:[%s24425_s22 + $0x130] sm:$0xff]  ;;  %v18680_v16 = vld [vmem:[%s24425_s22 + $0xe8] sm:$0xff] }
 0x3c0   : > { %v5051_v14 = vld [vmem:[#allocation3 + $0x22] ss:$8 sm:$0xf]  ;;  %v5053_v52 = vld [vmem:[#allocation3 + $0x23] ss:$8 sm:$0xf]  ;;  %5470 = vmatpush.bf16.msrb.mxu2 %v18689_v50 }
 0x3c1   : > { %v22937_v4 = vmax.f32 %v5051_v14, %v5053_v52  ;;  %v5036_v29 = vld [vmem:[#allocation3 + $0x20] ss:$8 sm:$0xf]  ;;  %v5038_v9 = vld [vmem:[#allocation3 + $0x21] ss:$8 sm:$0xf] }
 0x3c2   : > { %v22939_v43 = vmax.f32 %v5036_v29, %v5038_v9  ;;  %v5081_v21 = vld [vmem:[#allocation3 + $0x26] ss:$8 sm:$0xf]  ;;  %v5083_v20 = vld [vmem:[#allocation3 + $0x27] ss:$8 sm:$0xf] }
 0x3c3   : > { %5056 = vrot.lane.b32.xlu0 %v22937_v4, %s19939_s13  ;;  %v5066_v27 = vld [vmem:[#allocation3 + $0x24] ss:$8 sm:$0xf]  ;;  %v5068_v30 = vld [vmem:[#allocation3 + $0x25] ss:$8 sm:$0xf]  ;;  %v22946_v12 = vmax.f32 %v5081_v21, %v5083_v20  ;;  %5687 = vmatpush.bf16.msra.mxu0 %v18656_v7 }
 0x3c4   : > { %v22948_v19 = vmax.f32 %v5066_v27, %v5068_v30  ;;  %v18697_v1 = vld [vmem:[%s24425_s22 + $0x170] sm:$0xff]  ;;  %5711 = vmatpush.bf16.msra.mxu2 %v18674_v51  ;;  %5700 = vmatpush.bf16.msra.mxu1 %v18664_v15  ;;  %v18655_v9 = vld [vmem:[%s24425_s22 + $0x20] sm:$0xff]  ;;  %v18672_v30 = vld [vmem:[%s24425_s22 + $0xa8] sm:$0xff] }
 0x3c5   : > { %5041 = vrot.lane.b32.xlu2 %v22939_v43, %s19939_s13  ;;  %5483 = vmatpush.bf16.msrb.mxu3 %v18697_v1  ;;  %v18673_v52 = vld [vmem:[%s24425_s22 + $0xb0] sm:$0xff]  ;;  %v18679_v20 = vld [vmem:[%s24425_s22 + $0xe0] sm:$0xff] }
 0x3c6   : > { %5026 = vrot.lane.b32.xlu1 %v22942_v25, %s19939_s13 }
 0x3c7   : > { %5688 = vmatpush.bf16.msra.mxu0 %v18655_v9 }
 0x3c8   : > { %5712 = vmatpush.bf16.msra.mxu2 %v18673_v52 }
 0x3c9   : > { %5726 = vmatpush.bf16.msra.mxu3 %v18680_v16 }
 0x3cc   : > { %5713 = vmatpush.bf16.msra.mxu2 %v18672_v30  ;;  %v18718_v30 = vld [vmem:[%s24425_s22 + $0x218] sm:$0xff] }
 0x3cd   : > { %5086 = vrot.lane.b32.xlu2 %v22946_v12, %s19939_s13  ;;  %5727 = vmatpush.bf16.msra.mxu3 %v18679_v20 }
 0x3ce   : > { %5071 = vrot.lane.b32.xlu1 %v22948_v19, %s19939_s13 }
 0x3d0   : > { %5714 = vmatpush.bf16.msra.mxu2 %v18671_v2  ;;  %v18739_v2 = vld [vmem:[%s24425_s22 + $0x2c0] sm:$0xff] }
 0x3d1   : > { %5728 = vmatpush.bf16.msra.mxu3 %v18678_v17  ;;  %v18734_v17 = vld [vmem:[%s24425_s22 + $0x298] sm:$0xff] }
 0x3d4   : > { %5715 = vmatpush.bf16.msra.mxu2 %v18670_v23  ;;  %v18731_v23 = vld [vmem:[%s24425_s22 + $0x280] sm:$0xff] }
 0x3d5   : > { %5729 = vmatpush.bf16.msra.mxu3 %v18677_v28  ;;  %v18738_v28 = vld [vmem:[%s24425_s22 + $0x2b8] sm:$0xff] }
 0x3d8   : > { %5716 = vmatpush.bf16.msra.mxu2 %v18669_v62  ;;  %v18722_v62 = vld [vmem:[%s24425_s22 + $0x238] sm:$0xff] }
 0x3d9   : > { %5730 = vmatpush.bf16.msra.mxu3 %v18676_v40 }
 0x3dc   : > { %5717 = vmatpush.bf16.msra.mxu2 %v18668_v22  ;;  %v18721_v22 = vld [vmem:[%s24425_s22 + $0x230] sm:$0xff] }
 0x417   : > { %v4997_v0 = vpop.permute.xlu2 %4996 }
 0x418   : > { %v4998_v41 = vrot.slane %v4997_v0, 1 }
 0x41a   : > { %v4999_v38 = vsel %vm1052_vm1, %v4997_v0, %v4998_v41 }
 0x41b   : > { %v5001_v37 = vmax.f32 %v22931_v56, %v4999_v38 }
 0x41d   : > { %5003 = vst.msk [vmem:[#allocation5 + $0x2] ss:$8 sm:$0xf] %vm22917_vm5, %v5001_v37 }
 0x41f   : > { %v5042_v45 = vpop.permute.xlu2 %5041 }
 0x420   : > { %v5043_v35 = vrot.slane %v5042_v45, 1 }
 0x422   : > { %v5044_v18 = vsel %vm1052_vm1, %v5042_v45, %v5043_v35  ;;  %v18667_v45 = vld [vmem:[%s24425_s22 + $0x80] sm:$0xff] }
 0x423   : > { %v5046_v32 = vmax.f32 %v22939_v43, %v5044_v18  ;;  %v18663_v43 = vld [vmem:[%s24425_s22 + $0x60] sm:$0xff]  ;;  %5718 = vmatpush.bf16.msra.mxu2 %v18667_v45  ;;  %v18712_v45 = vld [vmem:[%s24425_s22 + $0x1e8] sm:$0xff] }
 0x424   : > { %5701 = vmatpush.bf16.msra.mxu1 %v18663_v43 }
 0x425   : > { %5048 = vst.msk [vmem:[#allocation5 + $0x5] ss:$8 sm:$0xf] %vm22917_vm5, %v5046_v32 }
 0x427   : > { %v5087_v56 = vpop.permute.xlu2 %5086 }
 0x428   : > { %v5088_v14 = vrot.slane %v5087_v56, 1  ;;  %5702 = vmatpush.bf16.msra.mxu1 %v18662_v36 }
 0x42a   : > { %v5089_v29 = vsel %vm1052_vm1, %v5087_v56, %v5088_v14 }
 0x42b   : > { %v5091_v21 = vmax.f32 %v22946_v12, %v5089_v29  ;;  %v18654_v12 = vld [vmem:[%s24425_s22 + $0x18] sm:$0xff] }
 0x42c   : > { %5689 = vmatpush.bf16.msra.mxu0 %v18654_v12  ;;  %5703 = vmatpush.bf16.msra.mxu1 %v18661_v57  ;;  %v18724_v57 = vld [vmem:[%s24425_s22 + $0x248] sm:$0xff] }
 0x42d   : > { %5093 = vst.msk [vmem:[#allocation5 + $0x20] ss:$8 sm:$0xf] %vm22917_vm5, %v5091_v21  ;;  %v5012_v27 = vpop.permute.xlu0 %5011 }
 0x42e   : > { %v5013_v13 = vrot.slane %v5012_v27, 1 }
 0x430   : > { %v5014_v60 = vsel %vm1052_vm1, %v5012_v27, %v5013_v13  ;;  %v4982_v39 = vpop.permute.xlu1 %4981  ;;  %5690 = vmatpush.bf16.msra.mxu0 %v18653_v58  ;;  %v18726_v13 = vld [vmem:[%s24425_s22 + $0x258] sm:$0xff]  ;;  %v18716_v58 = vld [vmem:[%s24425_s22 + $0x208] sm:$0xff] }
 0x431   : > { %v5016_v44 = vmax.f32 %v22928_v3, %v5014_v60  ;;  %v4983_v11 = vrot.slane %v4982_v39, 1  ;;  %v18740_v60 = vld [vmem:[%s24425_s22 + $0x2c8] sm:$0xff] }
 0x433   : > { %5018 = vst.msk [vmem:[#allocation5 + $0x3] ss:$8 sm:$0xf] %vm22917_vm5, %v5016_v44  ;;  %v4984_v3 = vsel %vm1052_vm1, %v4982_v39, %v4983_v11  ;;  %v18717_v39 = vld [vmem:[%s24425_s22 + $0x210] sm:$0xff] }
 0x434   : > { %v4986_v6 = vmax.f32 %v22933_v34, %v4984_v3  ;;  %v18660_v34 = vld [vmem:[%s24425_s22 + $0x48] sm:$0xff]  ;;  %5691 = vmatpush.bf16.msra.mxu0 %v18652_v33  ;;  %v5167_v5 = vld [vmem:[#allocation5 + $0x20] sm:$0x1]  ;;  %v5169_v35 = vld [vmem:[#allocation5 + $0x30] sm:$0x1] }
 0x435   : > { %v5057_v61 = vpop.permute.xlu0 %5056  ;;  %5704 = vmatpush.bf16.msra.mxu1 %v18660_v34  ;;  %v5168_v26 = vld [vmem:[#allocation5 + $0x28] sm:$0x1]  ;;  %v5170_v1 = vld [vmem:[#allocation5 + $0x38] sm:$0x1]  ;;  %v18725_v44 = vld [vmem:[%s24425_s22 + $0x250] sm:$0xff] }
 0x436   : > { %4988 = vst.msk [vmem:[#allocation5 + $0x1] ss:$8 sm:$0xf] %vm22917_vm5, %v4986_v6  ;;  %v5058_v63 = vrot.slane %v5057_v61, 1  ;;  %v18733_v11 = vld [vmem:[%s24425_s22 + $0x290] sm:$0xff]  ;;  %v18732_v3 = vld [vmem:[%s24425_s22 + $0x288] sm:$0xff] }
 0x437   : > { %v18715_v6 = vld [vmem:[%s24425_s22 + $0x200] sm:$0xff]  ;;  %v18737_v34 = vld [vmem:[%s24425_s22 + $0x2b0] sm:$0xff] }
 0x438   : > { %v5027_v0 = vpop.permute.xlu1 %5026  ;;  %v5059_v54 = vsel %vm1052_vm1, %v5057_v61, %v5058_v63  ;;  %5692 = vmatpush.bf16.msra.mxu0 %v18651_v49  ;;  %v18723_v61 = vld [vmem:[%s24425_s22 + $0x240] sm:$0xff] }
 0x439   : > { %v5028_v41 = vrot.slane %v5027_v0, 1  ;;  %v5061_v31 = vmax.f32 %v22937_v4, %v5059_v54  ;;  %v18675_v4 = vld [vmem:[%s24425_s22 + $0xc0] sm:$0xff]  ;;  %5705 = vmatpush.bf16.msra.mxu1 %v18659_v53 }
 0x43a   : > { %5731 = vmatpush.bf16.msra.mxu3 %v18675_v4  ;;  %v18736_v4 = vld [vmem:[%s24425_s22 + $0x2a8] sm:$0xff] }
 0x43b   : > { %v5029_v38 = vsel %vm1052_vm1, %v5027_v0, %v5028_v41  ;;  %5063 = vst.msk [vmem:[#allocation5 + $0x6] ss:$8 sm:$0xf] %vm22917_vm5, %v5061_v31  ;;  %v18714_v31 = vld [vmem:[%s24425_s22 + $0x1f8] sm:$0xff] }
 0x43c   : > { %v5031_v37 = vmax.f32 %v22942_v25, %v5029_v38  ;;  %v18730_v38 = vld [vmem:[%s24425_s22 + $0x278] sm:$0xff] }
 0x43e   : > { %5033 = vst.msk [vmem:[#allocation5 + $0x4] ss:$8 sm:$0xf] %vm22917_vm5, %v5031_v37  ;;  %v18713_v37 = vld [vmem:[%s24425_s22 + $0x1f0] sm:$0xff] }
 0x440   : > { %v5072_v42 = vpop.permute.xlu1 %5071 }
 0x441   : > { %v5073_v46 = vrot.slane %v5072_v42, 1 }
 0x443   : > { %v5074_v25 = vsel %vm1052_vm1, %v5072_v42, %v5073_v46  ;;  %v18729_v42 = vld [vmem:[%s24425_s22 + $0x270] sm:$0xff]  ;;  %v18735_v46 = vld [vmem:[%s24425_s22 + $0x2a0] sm:$0xff] }
 0x444   : > { %v5076_v10 = vmax.f32 %v22948_v19, %v5074_v25  ;;  %v18720_v25 = vld [vmem:[%s24425_s22 + $0x228] sm:$0xff] }
 0x446   : > { %5078 = vst.msk [vmem:[#allocation5 + $0x7] ss:$8 sm:$0xf] %vm22917_vm5, %v5076_v10  ;;  %v18728_v10 = vld [vmem:[%s24425_s22 + $0x268] sm:$0xff] }
 0x44d   : > { %v5163_v59 = vld [vmem:[#allocation5] sm:$0xfe]  ;;  %v5164_v55 = vld [vmem:[#allocation5 + $0x8] sm:$0xfe]  ;;  %v5165_v18 = vld [vmem:[#allocation5 + $0x10] sm:$0xfe] }
 0x44e   : > { %v5171_v48 = vpack.c.bf16 %v5167_v5, %v5163_v59  ;;  %v5172_v47 = vpack.c.bf16 %v5168_v26, %v5164_v55  ;;  %v5173_v32 = vpack.c.bf16 %v5169_v35, %v5165_v18  ;;  %v5166_v50 = vld [vmem:[#allocation5 + $0x18] sm:$0xfe]  ;;  %v5096_v63 = vld [vmem:[#allocation5 + $0x8] sm:$0xff]  ;;  %v5097_v33 = vld [vmem:[#allocation5 + $0x10] sm:$0xff] }
 0x44f   : > { %v5174_v7 = vpack.c.bf16 %v5170_v1, %v5166_v50  ;;  %v5095_v40 = vld [vmem:[#allocation5] sm:$0xff]  ;;  %v5098_v0 = vld [vmem:[#allocation5 + $0x18] sm:$0xff]  ;;  %v5100_v54 = vpack.c.bf16 %v5096_v63, %v5096_v63  ;;  %v5101_v41 = vpack.c.bf16 %v5097_v33, %v5097_v33  ;;  %v5738_v35 = vld [vmem:[#allocation5 + $0x8] sm:$0xfc] }
 0x450   : > { %v5239_v56 = vshll.u32 %v5171_v48, 16  ;;  %v5246_v15 = vshll.u32 %v5172_v47, 16  ;;  %v5253_v51 = vshll.u32 %v5173_v32, 16  ;;  %v5237_v16 = vshrl.u32 %v5171_v48, 16  ;;  %v5740_v5 = vld [vmem:[#allocation5 + $0x18] sm:$0xfc] }
 0x451   : > { %v5260_v19 = vshll.u32 %v5174_v7, 16  ;;  %v5244_v24 = vshrl.u32 %v5172_v47, 16  ;;  %v5251_v29 = vshrl.u32 %v5173_v32, 16  ;;  %v5258_v43 = vshrl.u32 %v5174_v7, 16  ;;  %v5737_v26 = vld [vmem:[#allocation5] sm:$0xfc] }
 0x452   : > { %v5241_v14 = vrot.slane %v5239_v56, 1  ;;  %v5248_v52 = vrot.slane %v5246_v15, 1  ;;  %v5255_v9 = vrot.slane %v5253_v51, 1  ;;  %v5099_v49 = vpack.c.bf16 %v5095_v40, %v5095_v40  ;;  %v5741_v59 = vld [vmem:[#allocation5 + $0x20] sm:$0x3] }
 0x453   : > { %v5262_v21 = vrot.slane %v5260_v19, 1  ;;  %v5102_v53 = vpack.c.bf16 %v5098_v0, %v5098_v0  ;;  %v5739_v55 = vld [vmem:[#allocation5 + $0x10] sm:$0xfc]  ;;  %v5744_v18 = vld [vmem:[#allocation5 + $0x38] sm:$0x3]  ;;  %v18711_v48 = vld [vmem:[%s24425_s22 + $0x1e0] sm:$0xff]  ;;  %v5745_v7 = vpack.c.bf16 %v5741_v59, %v5737_v26 }
 0x454   : > { %v5242_v20 = vor.u32 %v5241_v14, %v5237_v16  ;;  %v5249_v27 = vor.u32 %v5248_v52, %v5244_v24  ;;  %v5256_v12 = vor.u32 %v5255_v9, %v5251_v29  ;;  %v18719_v47 = vld [vmem:[%s24425_s22 + $0x220] sm:$0xff]  ;;  %v5742_v32 = vld [vmem:[#allocation5 + $0x28] sm:$0x3]  ;;  %v5748_v50 = vpack.c.bf16 %v5744_v18, %v5740_v5  ;;  %v5743_v15 = vld [vmem:[#allocation5 + $0x30] sm:$0x3] }
 0x455   : > { %v5263_v36 = vor.u32 %v5262_v21, %v5258_v43  ;;  %v18727_v1 = vld [vmem:[%s24425_s22 + $0x260] sm:$0xff]  ;;  %v5746_v56 = vpack.c.bf16 %v5742_v32, %v5738_v35  ;;  %v5747_v51 = vpack.c.bf16 %v5743_v15, %v5739_v55  ;;  %v5814_v16 = vrot.slane %v5745_v7, 1  ;;  %v18754_v63 = vld [vmem:[%s24379_s7 + $0x6c] sm:$0xf]  ;;  %v15185_v33 = vld [vmem:[%s24379_s7 + $0x78] sm:$0xf0] }
 0x456   : > { %5458 = vmatmul.bf16.vlgmr.msrb.gmra.mxu1 %v5242_v20  ;;  %5471 = vmatmul.bf16.vlgmr.msrb.gmra.mxu2 %v5249_v27  ;;  %v5817_v19 = vrot.slane %v5748_v50, 1  ;;  %v15188_v40 = vor.u32 %v18754_v63, %v15185_v33  ;;  %v18751_v0 = vld [vmem:[%s24379_s7 + $0x4c] sm:$0xf0]  ;;  %v15213_v5 = vld [vmem:[%s24379_s7 + $0x30] sm:$0xf0] }
 0x457   : > { %5484 = vmatmul.bf16.vlgmr.msrb.gmra.mxu3 %v5256_v12  ;;  %14854 = vmatmul.msk.bf16.vlgmr.msrb.gmra.mxu0 %vm1052_vm1, %v5263_v36  ;;  %v5815_v14 = vrot.slane %v5746_v56, 1  ;;  %v5816_v24 = vrot.slane %v5747_v51, 1  ;;  %v15219_v55 = vld [vmem:[%s24379_s7 + $0x28] sm:$0xf]  ;;  %v18748_v18 = vld [vmem:[%s24379_s7 + $0x34] sm:$0xf0] }
 0x458   : > { %6004 = vmatpush.bf16.msrb.mxu3 %v18718_v30  ;;  %6017 = vmatpush.bf16.msrb.mxu0 %v18726_v13  ;;  %v15220_v32 = vor.u32 %v18748_v18, %v15219_v55  ;;  %v15221_v50 = vld [vmem:[%s24379_s7 + $0x38] sm:$0xf0]  ;;  %v18743_v7 = vld [vmem:[%s24379_s7 + $0xc] sm:$0xf0] }
 0x459   : > { %6030 = vmatpush.bf16.msrb.mxu1 %v18734_v17  ;;  %6045 = vmatpush.bf16.msrb.mxu2 %v18740_v60 }
 0x45c   : > { %6005 = vmatpush.bf16.msrb.mxu3 %v18717_v39  ;;  %6018 = vmatpush.bf16.msrb.mxu0 %v18725_v44  ;;  %v15175_v44 = vld [vmem:[%s24379_s7 + $0x60] sm:$0xf] }
 0x45d   : > { %6031 = vmatpush.bf16.msrb.mxu1 %v18733_v11  ;;  %6046 = vmatpush.bf16.msrb.mxu2 %v18739_v2  ;;  %v18755_v11 = vld [vmem:[%s24379_s7 + $0x6c] sm:$0xf0]  ;;  %v18753_v2 = vld [vmem:[%s24379_s7 + $0x64] sm:$0xf] }
 0x460   : > { %6006 = vmatpush.bf16.msrb.mxu3 %v18716_v58  ;;  %6019 = vmatpush.bf16.msrb.mxu0 %v18724_v57  ;;  %v15176_v57 = vor.u32 %v18755_v11, %v15175_v44 }
 0x461   : > { %6032 = vmatpush.bf16.msrb.mxu1 %v18732_v3  ;;  %6047 = vmatpush.bf16.msrb.mxu2 %v18738_v28  ;;  %v15177_v3 = vld [vmem:[%s24379_s7 + $0x70] sm:$0xf0]  ;;  %v15183_v28 = vld [vmem:[%s24379_s7 + $0x68] sm:$0xf] }
 0x464   : > { %6007 = vmatpush.bf16.msrb.mxu3 %v18715_v6  ;;  %6020 = vmatpush.bf16.msrb.mxu0 %v18723_v61  ;;  %v18756_v6 = vld [vmem:[%s24379_s7 + $0x74] sm:$0xf0]  ;;  %v15180_v61 = vor.u32 %v18753_v2, %v15177_v3 }
 0x465   : > { %6033 = vmatpush.bf16.msrb.mxu1 %v18731_v23  ;;  %6048 = vmatpush.bf16.msrb.mxu2 %v18737_v34  ;;  %v15184_v23 = vor.u32 %v18756_v6, %v15183_v28  ;;  %v15159_v34 = vld [vmem:[%s24379_s7 + $0x40] sm:$0xf] }
 0x466   : > { %5706 = vmatmul.bf16.vlgmr.msra.gmra.mxu1 %v5100_v54  ;;  %5719 = vmatmul.bf16.vlgmr.msra.gmra.mxu2 %v5101_v41  ;;  %v18749_v54 = vld [vmem:[%s24379_s7 + $0x44] sm:$0xf]  ;;  %v15161_v41 = vld [vmem:[%s24379_s7 + $0x50] sm:$0xf0]  ;;  %v19564_v28 = vld [vmem:[%s24426_s30] ss:$0 sm:$0xff] }
 0x467   : > { %5693 = vmatmul.bf16.vlgmr.msra.gmra.mxu0 %v5099_v49  ;;  %14975 = vmatmul.msk.bf16.vlgmr.msra.gmra.mxu3 %vm1052_vm1, %v5102_v53  ;;  %v15164_v49 = vor.u32 %v18749_v54, %v15161_v41  ;;  %v15167_v53 = vld [vmem:[%s24379_s7 + $0x48] sm:$0xf] }
 0x468   : > { %6008 = vmatpush.bf16.msrb.mxu3 %v18714_v31  ;;  %6021 = vmatpush.bf16.msrb.mxu0 %v18722_v62  ;;  %v15160_v62 = vor.u32 %v18751_v0, %v15159_v34  ;;  %v15247_v34 = vld [vmem:[%s24379_s7 + $0xa0] sm:$0xf]  ;;  %v15249_v0 = vld [vmem:[%s24379_s7 + $0xb0] sm:$0xf0]  ;;  %v15255_v54 = vld [vmem:[%s24379_s7 + $0xa8] sm:$0xf] }
 0x469   : > { %6034 = vmatpush.bf16.msrb.mxu1 %v18730_v38  ;;  %6049 = vmatpush.bf16.msrb.mxu2 %v18736_v4  ;;  %v18752_v38 = vld [vmem:[%s24379_s7 + $0x54] sm:$0xf0]  ;;  %v18750_v4 = vld [vmem:[%s24379_s7 + $0x4c] sm:$0xf] }
 0x46c   : > { %6009 = vmatpush.bf16.msrb.mxu3 %v18713_v37  ;;  %6022 = vmatpush.bf16.msrb.mxu0 %v18721_v22  ;;  %v15168_v37 = vor.u32 %v18752_v38, %v15167_v53  ;;  %v15169_v22 = vld [vmem:[%s24379_s7 + $0x58] sm:$0xf0] }
 0x46d   : > { %6035 = vmatpush.bf16.msrb.mxu1 %v18729_v42  ;;  %6050 = vmatpush.bf16.msrb.mxu2 %v18735_v46  ;;  %v15211_v42 = vld [vmem:[%s24379_s7 + $0x20] sm:$0xf] }
 0x470   : > { %6010 = vmatpush.bf16.msrb.mxu3 %v18712_v45  ;;  %6023 = vmatpush.bf16.msrb.mxu0 %v18720_v25  ;;  %v15172_v45 = vor.u32 %v18750_v4, %v15169_v22  ;;  %v18747_v25 = vld [vmem:[%s24379_s7 + $0x2c] sm:$0xf0] }
 0x471   : > { %6036 = vmatpush.bf16.msrb.mxu1 %v18728_v10  ;;  %6136 = vmatpush.bf16.msra.mxu2 %v15176_v57  ;;  %v18745_v10 = vld [vmem:[%s24379_s7 + $0x24] sm:$0xf]  ;;  %v15212_v35 = vor.u32 %v18747_v25, %v15211_v42  ;;  %v18759_v22 = vld [vmem:[%s24379_s7 + $0x8c] sm:$0xf0]  ;;  %v15233_v25 = vld [vmem:[%s24379_s7 + $0x90] sm:$0xf0] }
 0x472   : > { %v15216_v59 = vor.u32 %v18745_v10, %v15213_v5  ;;  %v15239_v10 = vld [vmem:[%s24379_s7 + $0x88] sm:$0xf]  ;;  %v18760_v5 = vld [vmem:[%s24379_s7 + $0x94] sm:$0xf0] }
 0x473   : > { %v15240_v18 = vor.u32 %v18760_v5, %v15239_v10  ;;  %v15363_v10 = vld [vmem:[%s24379_s7 + $0x168] sm:$0xf]  ;;  %v18788_v5 = vld [vmem:[%s24379_s7 + $0x174] sm:$0xf0] }
 0x474   : > { %6011 = vmatpush.bf16.msrb.mxu3 %v18711_v48  ;;  %6024 = vmatpush.bf16.msrb.mxu0 %v18719_v47  ;;  %v18746_v48 = vld [vmem:[%s24379_s7 + $0x2c] sm:$0xf] }
 0x475   : > { %6037 = vmatpush.bf16.msrb.mxu1 %v18727_v1  ;;  %6137 = vmatpush.bf16.msra.mxu2 %v15160_v62  ;;  %v15195_v1 = vld [vmem:[%s24379_s7] sm:$0xf]  ;;  %v15224_v15 = vor.u32 %v18746_v48, %v15221_v50  ;;  %v18762_v62 = vld [vmem:[%s24379_s7 + $0xac] sm:$0xf]  ;;  %v18769_v50 = vld [vmem:[%s24379_s7 + $0xe4] sm:$0xf] }
 0x476   : > { %15156 = vmatmul.msk.bf16.vlgmr.msrb.gmra.mxu2 %vm1052_vm1, %v5817_v19  ;;  %v15196_v51 = vor.u32 %v18743_v7, %v15195_v1  ;;  %v18741_v19 = vld [vmem:[%s24379_s7 + $0x4] sm:$0xf]  ;;  %v15285_v1 = vld [vmem:[%s24379_s7 + $0xf0] sm:$0xf0]  ;;  %v15291_v7 = vld [vmem:[%s24379_s7 + $0xe8] sm:$0xf] }
 0x477   : > { %6012 = vmatmul.bf16.vlgmr.msrb.gmra.mxu3 %v5814_v16  ;;  %6025 = vmatmul.bf16.vlgmr.msrb.gmra.mxu0 %v5815_v14  ;;  %v15197_v16 = vld [vmem:[%s24379_s7 + $0x10] sm:$0xf0]  ;;  %v15203_v14 = vld [vmem:[%s24379_s7 + $0x8] sm:$0xf] }
 0x478   : > { %6038 = vmatmul.bf16.vlgmr.msrb.gmra.mxu1 %v5816_v24  ;;  %6149 = vmatpush.bf16.msra.mxu3 %v15180_v61 }
 0x479   : > { %6162 = vmatpush.bf16.msra.mxu0 %v15184_v23  ;;  %6175 = vmatpush.bf16.msra.mxu1 %v15188_v40  ;;  %v18761_v40 = vld [vmem:[%s24379_s7 + $0xa4] sm:$0xf] }
 0x47a   : > { %6231 = vmatpush.bf16.msrb.mxu2 %v15212_v35  ;;  %v15252_v4 = vor.u32 %v18761_v40, %v15249_v0  ;;  %v15241_v35 = vld [vmem:[%s24379_s7 + $0x98] sm:$0xf0]  ;;  %v18773_v40 = vld [vmem:[%s24379_s7 + $0x104] sm:$0xf]  ;;  %v15305_v0 = vld [vmem:[%s24379_s7 + $0x110] sm:$0xf0] }
 0x47c   : > { %6150 = vmatpush.bf16.msra.mxu3 %v15164_v49  ;;  %v15257_v49 = vld [vmem:[%s24379_s7 + $0xb8] sm:$0xf0] }
 0x47d   : > { %6163 = vmatpush.bf16.msra.mxu0 %v15168_v37  ;;  %6176 = vmatpush.bf16.msra.mxu1 %v15172_v45  ;;  %v15231_v37 = vld [vmem:[%s24379_s7 + $0x80] sm:$0xf]  ;;  %v18757_v45 = vld [vmem:[%s24379_s7 + $0x84] sm:$0xf] }
 0x47e   : > { %6232 = vmatpush.bf16.msrb.mxu2 %v15196_v51  ;;  %v15236_v55 = vor.u32 %v18757_v45, %v15233_v25  ;;  %v15293_v51 = vld [vmem:[%s24379_s7 + $0xf8] sm:$0xf0]  ;;  %v18785_v45 = vld [vmem:[%s24379_s7 + $0x164] sm:$0xf]  ;;  %v15357_v25 = vld [vmem:[%s24379_s7 + $0x170] sm:$0xf0] }
 0x480   : > { %6244 = vmatpush.bf16.msrb.mxu3 %v15216_v59  ;;  %v15232_v59 = vor.u32 %v18759_v22, %v15231_v37 }
 0x481   : > { %6257 = vmatpush.bf16.msrb.mxu0 %v15220_v32  ;;  %6270 = vmatpush.bf16.msrb.mxu1 %v15224_v15  ;;  %v18771_v32 = vld [vmem:[%s24379_s7 + $0xec] sm:$0xf0]  ;;  %v18770_v15 = vld [vmem:[%s24379_s7 + $0xec] sm:$0xf] }
 0x4d3   : > { %v5459_v52 = vpop.f32.mrf.mxu1 }
 0x4d4   : > { %v5498_v29 = vpop.f32.mrf.mxu0 }
 0x4d9   : > { %v5472_v9 = vpop.f32.mrf.mxu2 }
 0x4da   : > { %v5485_v43 = vpop.f32.mrf.mxu3  ;;  %v5473_v60 = vadd.f32 %v5472_v9, %v5459_v52  ;;  %v18744_v9 = vld [vmem:[%s24379_s7 + $0x14] sm:$0xf0] }
 0x4db   : > { %v5461_v21 = vpop.f32.mrf.mxu1 }
 0x4dc   : > { %v5500_v20 = vpop.f32.mrf.mxu0  ;;  %v5486_v31 = vadd.f32 %v5485_v43, %v5473_v60  ;;  %v18742_v43 = vld [vmem:[%s24379_s7 + $0xc] sm:$0xf]  ;;  %v15205_v21 = vld [vmem:[%s24379_s7 + $0x18] sm:$0xf0] }
 0x4dd   : > { %v15204_v20 = vor.u32 %v18744_v9, %v15203_v14  ;;  %v15267_v14 = vld [vmem:[%s24379_s7 + $0xc0] sm:$0xf]  ;;  %v18765_v9 = vld [vmem:[%s24379_s7 + $0xc4] sm:$0xf] }
 0x4de   : > { %v5499_v47 = vadd.f32 %v5498_v29, %v5486_v31  ;;  %v15200_v29 = vor.u32 %v18741_v19, %v15197_v16  ;;  %v18764_v31 = vld [vmem:[%s24379_s7 + $0xb4] sm:$0xf0]  ;;  %v15288_v16 = vor.u32 %v18769_v50, %v15285_v1  ;;  %v18781_v1 = vld [vmem:[%s24379_s7 + $0x144] sm:$0xf] }
 0x4df   : > { %6258 = vmatpush.bf16.msrb.mxu0 %v15204_v20  ;;  %v15256_v42 = vor.u32 %v18764_v31, %v15255_v54  ;;  %v18768_v20 = vld [vmem:[%s24379_s7 + $0xd4] sm:$0xf0]  ;;  %v15311_v54 = vld [vmem:[%s24379_s7 + $0x108] sm:$0xf] }
 0x4e0   : > { %6245 = vmatpush.bf16.msrb.mxu3 %v15200_v29  ;;  %v15296_v29 = vor.u32 %v18770_v15, %v15293_v51  ;;  %v18776_v31 = vld [vmem:[%s24379_s7 + $0x114] sm:$0xf0]  ;;  %v18782_v51 = vld [vmem:[%s24379_s7 + $0x14c] sm:$0xf] }
 0x4e1   : > { %v5474_v27 = vpop.f32.mrf.mxu2  ;;  %v15312_v37 = vor.u32 %v18776_v31, %v15311_v54  ;;  %v18784_v15 = vld [vmem:[%s24379_s7 + $0x154] sm:$0xf0]  ;;  %v15429_v54 = vld [vmem:[%s24379_s7 + $0x1f0] sm:$0xf0]  ;;  %v15435_v31 = vld [vmem:[%s24379_s7 + $0x1e8] sm:$0xf] }
 0x4e2   : > { %v5487_v30 = vpop.f32.mrf.mxu3  ;;  %v15208_v27 = vor.u32 %v18742_v43, %v15205_v21  ;;  %v15269_v43 = vld [vmem:[%s24379_s7 + $0xd0] sm:$0xf0]  ;;  %v15275_v21 = vld [vmem:[%s24379_s7 + $0xc8] sm:$0xf] }
 0x4e3   : > { %v23257_v13 = vpop.f32.mrf.mxu1 }
 0x4e4   : > { %v5694_v12 = vpop.f32.mrf.mxu0  ;;  %6271 = vmatpush.bf16.msrb.mxu1 %v15208_v27  ;;  %v18766_v27 = vld [vmem:[%s24379_s7 + $0xcc] sm:$0xf] }
 0x4e5   : > { %v5695_v24 = vadd.f32 %v5694_v12, %v5499_v47  ;;  %v15283_v47 = vld [vmem:[%s24379_s7 + $0xe0] sm:$0xf] }
 0x4e6   : > { %v15284_v19 = vor.u32 %v18771_v32, %v15283_v47  ;;  %v18783_v47 = vld [vmem:[%s24379_s7 + $0x14c] sm:$0xf0]  ;;  %v15364_v32 = vor.u32 %v18788_v5, %v15363_v10  ;;  %v18797_v10 = vld [vmem:[%s24379_s7 + $0x1c4] sm:$0xf]  ;;  %v15413_v5 = vld [vmem:[%s24379_s7 + $0x1d0] sm:$0xf0] }
 0x4e7   : > { %v5708_v30 = vadd.f32 %v23257_v13, %v5695_v24  ;;  %v18767_v24 = vld [vmem:[%s24379_s7 + $0xcc] sm:$0xf0] }
 0x4e9   : > { %v23259_v36 = vpop.f32.mrf.mxu2 }
 0x4ea   : > { %v23261_v17 = vpop.f32.mrf.mxu3 }
 0x4eb   : > { %v5709_v39 = vpop.f32.mrf.mxu1 }
 0x4ec   : > { %v5696_v58 = vpop.f32.mrf.mxu0  ;;  %v5721_v39 = vadd.f32 %v23259_v36, %v5708_v30  ;;  %v15277_v30 = vld [vmem:[%s24379_s7 + $0xd8] sm:$0xf0] }
 0x4ee   : > { %v5734_v57 = vadd.f32 %v23261_v17, %v5721_v39  ;;  %v18763_v17 = vld [vmem:[%s24379_s7 + $0xac] sm:$0xf0]  ;;  %v15276_v39 = vor.u32 %v18768_v20, %v15275_v21  ;;  %v15393_v21 = vld [vmem:[%s24379_s7 + $0x1b0] sm:$0xf0]  ;;  %v15399_v20 = vld [vmem:[%s24379_s7 + $0x1a8] sm:$0xf] }
 0x4ef   : > { %v15248_v38 = vor.u32 %v18763_v17, %v15247_v34 }
 0x4f1   : > { %v5722_v46 = vpop.f32.mrf.mxu2 }
 0x4f2   : > { %v5735_v26 = vpop.f32.mrf.mxu3  ;;  %v15260_v46 = vor.u32 %v18762_v62, %v15257_v49  ;;  %v18774_v62 = vld [vmem:[%s24379_s7 + $0x10c] sm:$0xf]  ;;  %v15313_v49 = vld [vmem:[%s24379_s7 + $0x118] sm:$0xf0] }
 0x4f3   : > { %v18758_v26 = vld [vmem:[%s24379_s7 + $0x8c] sm:$0xf]  ;;  %v15316_v22 = vor.u32 %v18774_v62, %v15313_v49  ;;  %v18804_v62 = vld [vmem:[%s24379_s7 + $0x1f4] sm:$0xf0] }
 0x4f4   : > { %v6026_v56 = vpop.f32.mrf.mxu0  ;;  %v15244_v48 = vor.u32 %v18758_v26, %v15241_v35  ;;  %v18786_v26 = vld [vmem:[%s24379_s7 + $0x16c] sm:$0xf]  ;;  %v15365_v35 = vld [vmem:[%s24379_s7 + $0x178] sm:$0xf0] }
 0x4f5   : > { %v6039_v52 = vpop.f32.mrf.mxu1  ;;  %v15368_v50 = vor.u32 %v18786_v26, %v15365_v35  ;;  %v18802_v49 = vld [vmem:[%s24379_s7 + $0x1ec] sm:$0xf]  ;;  %v15419_v26 = vld [vmem:[%s24379_s7 + $0x1c8] sm:$0xf]  ;;  %v18800_v35 = vld [vmem:[%s24379_s7 + $0x1d4] sm:$0xf0] }
 0x4f9   : > { %v6052_v12 = vpop.f32.mrf.mxu2 }
 0x4fa   : > { %v6013_v60 = vpop.f32.mrf.mxu3 }
 0x4fb   : > { %v6027_v44 = vadd.f32 %v6026_v56, %v6013_v60  ;;  %v18772_v56 = vld [vmem:[%s24379_s7 + $0xf4] sm:$0xf0]  ;;  %v15272_v60 = vor.u32 %v18765_v9, %v15269_v43  ;;  %v18795_v9 = vld [vmem:[%s24379_s7 + $0x1ac] sm:$0xf0]  ;;  %v18793_v43 = vld [vmem:[%s24379_s7 + $0x1a4] sm:$0xf] }
 0x4fc   : > { %v6028_v11 = vpop.f32.mrf.mxu0 }
 0x4fd   : > { %v6040_v2 = vadd.f32 %v6039_v52, %v6027_v44  ;;  %v6041_v58 = vpop.f32.mrf.mxu1  ;;  %v15292_v52 = vor.u32 %v18772_v56, %v15291_v7  ;;  %v15280_v44 = vor.u32 %v18766_v27, %v15277_v30  ;;  %v15319_v11 = vld [vmem:[%s24379_s7 + $0x120] sm:$0xf]  ;;  %v15341_v7 = vld [vmem:[%s24379_s7 + $0x150] sm:$0xf0]  ;;  %v15347_v56 = vld [vmem:[%s24379_s7 + $0x148] sm:$0xf] }
 0x4fe   : > { %v18777_v58 = vld [vmem:[%s24379_s7 + $0x124] sm:$0xf]  ;;  %v18796_v27 = vld [vmem:[%s24379_s7 + $0x1b4] sm:$0xf0]  ;;  %v18794_v30 = vld [vmem:[%s24379_s7 + $0x1ac] sm:$0xf] }
 0x4ff   : > { %v6053_v3 = vadd.f32 %v6052_v12, %v6040_v2  ;;  %v15268_v12 = vor.u32 %v18767_v24, %v15267_v14  ;;  %v18779_v2 = vld [vmem:[%s24379_s7 + $0x12c] sm:$0xf0]  ;;  %v15344_v14 = vor.u32 %v18781_v1, %v15341_v7  ;;  %v15348_v24 = vor.u32 %v18784_v15, %v15347_v56 }
 0x501   : > { %v6056_v6 = vadd.f32 %v6053_v3, %v5734_v57  ;;  %v6054_v13 = vpop.f32.mrf.mxu2  ;;  %v15321_v57 = vld [vmem:[%s24379_s7 + $0x130] sm:$0xf0]  ;;  %v15327_v3 = vld [vmem:[%s24379_s7 + $0x128] sm:$0xf] }
 0x502   : > { %v6015_v61 = vpop.f32.mrf.mxu3  ;;  %v15329_v13 = vld [vmem:[%s24379_s7 + $0x138] sm:$0xf0] }
 0x503   : > { %v6061_v23 = vadd.f32 %v19564_v28, %v6056_v6  ;;  %v18780_v28 = vld [vmem:[%s24379_s7 + $0x134] sm:$0xf0]  ;;  %v18778_v6 = vld [vmem:[%s24379_s7 + $0x12c] sm:$0xf] }
 0x504   : > { %v15328_v34 = vor.u32 %v18780_v28, %v15327_v3  ;;  %v15332_v17 = vor.u32 %v18778_v6, %v15329_v13  ;;  %v18789_v3 = vld [vmem:[%s24379_s7 + $0x184] sm:$0xf]  ;;  %v15377_v28 = vld [vmem:[%s24379_s7 + $0x190] sm:$0xf0]  ;;  %v15383_v6 = vld [vmem:[%s24379_s7 + $0x188] sm:$0xf] }
 0x505   : > { %v6062_v63 = vmax.f32 %v6061_v23, 0.0  ;;  %v15320_v23 = vor.u32 %v18779_v2, %v15319_v11  ;;  %v15375_v11 = vld [vmem:[%s24379_s7 + $0x180] sm:$0xf]  ;;  %v18791_v2 = vld [vmem:[%s24379_s7 + $0x18c] sm:$0xf0] }
 0x506   : > { %v18792_v13 = vld [vmem:[%s24379_s7 + $0x194] sm:$0xf0] }
 0x507   : > { %v23365_v33 = vpack.c.bf16 %v6062_v63, %v6062_v63  ;;  %v15324_v63 = vor.u32 %v18777_v58, %v15321_v57  ;;  %v15400_v58 = vor.u32 %v18796_v27, %v15399_v20 }
 0x509   : > { %v6081_v36 = vunpack.c.l.b16 %v23365_v33 }
 0x50b   : > { %v23383_v41 = vpack.c.b16 %v6081_v36, %v6081_v36  ;;  %v18775_v36 = vld [vmem:[%s24379_s7 + $0x10c] sm:$0xf0] }
 0x50d   : > { %v23395_v53 = vshrl.u32 %v23383_v41, 16  ;;  %v6285_v61 = vrot.slane %v23383_v41, 1 }
 0x50f   : > { %15189 = vmatmul.msk.bf16.vlgmr.msra.gmra.mxu2 %vm6126_vm6, %v23395_v53  ;;  %15190 = vmatmul.msk.bf16.vlgmr.msra.gmra.mxu3 %vm6126_vm6, %v23395_v53  ;;  %v6825_v1 = vrot.slane %v23395_v53, 3 }
 0x510   : > { %15191 = vmatmul.msk.bf16.vlgmr.msra.gmra.mxu0 %vm6126_vm6, %v23395_v53  ;;  %15192 = vmatmul.msk.bf16.vlgmr.msra.gmra.mxu1 %vm6126_vm6, %v23395_v53 }
 0x511   : > { %6335 = vmatpush.bf16.msra.mxu2 %v15248_v38  ;;  %6348 = vmatpush.bf16.msra.mxu3 %v15252_v4  ;;  %v15308_v4 = vor.u32 %v18773_v40, %v15305_v0  ;;  %v18803_v40 = vld [vmem:[%s24379_s7 + $0x1ec] sm:$0xf0]  ;;  %v18801_v0 = vld [vmem:[%s24379_s7 + $0x1e4] sm:$0xf] }
 0x512   : > { %6361 = vmatpush.bf16.msra.mxu0 %v15256_v42  ;;  %6374 = vmatpush.bf16.msra.mxu1 %v15260_v46  ;;  %v15355_v42 = vld [vmem:[%s24379_s7 + $0x160] sm:$0xf]  ;;  %v18787_v46 = vld [vmem:[%s24379_s7 + $0x16c] sm:$0xf0] }
 0x515   : > { %6336 = vmatpush.bf16.msra.mxu2 %v15232_v59  ;;  %6349 = vmatpush.bf16.msra.mxu3 %v15236_v55  ;;  %v6393_v59 = vrot.slane %v23395_v53, 1  ;;  %v15356_v55 = vor.u32 %v18787_v46, %v15355_v42  ;;  %v15411_v42 = vld [vmem:[%s24379_s7 + $0x1c0] sm:$0xf]  ;;  %v18799_v46 = vld [vmem:[%s24379_s7 + $0x1cc] sm:$0xf0] }
 0x516   : > { %6362 = vmatpush.bf16.msra.mxu0 %v15240_v18  ;;  %6375 = vmatpush.bf16.msra.mxu1 %v15244_v48  ;;  %v15360_v18 = vor.u32 %v18785_v45, %v15357_v25  ;;  %v15339_v48 = vld [vmem:[%s24379_s7 + $0x140] sm:$0xf]  ;;  %v15436_v45 = vor.u32 %v18804_v62, %v15435_v31  ;;  %v15623_v31 = vld [vmem:[#allocation9 + $0x160] sm:$0xf]  ;;  %v18850_v62 = vld [vmem:[#allocation9 + $0x164] sm:$0xf0] }
 0x51f   : > { %15225 = vmatmul.msk.bf16.vlgmr.msrb.gmra.mxu2 %vm6126_vm6, %v23365_v33  ;;  %15226 = vmatmul.msk.bf16.vlgmr.msrb.gmra.mxu3 %vm6126_vm6, %v23365_v33 }
 0x520   : > { %15227 = vmatmul.msk.bf16.vlgmr.msrb.gmra.mxu0 %vm6126_vm6, %v23365_v33  ;;  %15228 = vmatmul.msk.bf16.vlgmr.msrb.gmra.mxu1 %vm6126_vm6, %v23365_v33  ;;  %v15303_v33 = vld [vmem:[%s24379_s7 + $0x100] sm:$0xf] }
 0x521   : > { %6443 = vmatpush.bf16.msrb.mxu2 %v15284_v19  ;;  %6456 = vmatpush.bf16.msrb.mxu3 %v15288_v16  ;;  %v15304_v38 = vor.u32 %v18775_v36, %v15303_v33  ;;  %v15349_v19 = vld [vmem:[%s24379_s7 + $0x158] sm:$0xf0]  ;;  %v15340_v16 = vor.u32 %v18783_v47, %v15339_v48  ;;  %v15380_v33 = vor.u32 %v18789_v3, %v15377_v28 }
 0x522   : > { %6469 = vmatpush.bf16.msrb.mxu0 %v15292_v52  ;;  %6482 = vmatpush.bf16.msrb.mxu1 %v15296_v29  ;;  %v15352_v52 = vor.u32 %v18782_v51, %v15349_v19  ;;  %v15391_v29 = vld [vmem:[%s24379_s7 + $0x1a0] sm:$0xf]  ;;  %v15384_v36 = vor.u32 %v18792_v13, %v15383_v6  ;;  %v15416_v48 = vor.u32 %v18797_v10, %v15413_v5 }
 0x523   : > { %v15420_v47 = vor.u32 %v18800_v35, %v15419_v26  ;;  %v15615_v10 = vld [vmem:[#allocation9 + $0x150] sm:$0xf]  ;;  %v18848_v26 = vld [vmem:[#allocation9 + $0x154] sm:$0xf0] }
 0x524   : > { %v15679_v35 = vld [vmem:[#allocation9 + $0x1d0] sm:$0xf] }
 0x525   : > { %6444 = vmatpush.bf16.msrb.mxu2 %v15268_v12  ;;  %6457 = vmatpush.bf16.msrb.mxu3 %v15272_v60  ;;  %v15401_v12 = vld [vmem:[%s24379_s7 + $0x1b8] sm:$0xf0]  ;;  %v6501_v60 = vrot.slane %v23383_v41, 2 }
 0x526   : > { %6470 = vmatpush.bf16.msrb.mxu0 %v15276_v39  ;;  %6483 = vmatpush.bf16.msrb.mxu1 %v15280_v44  ;;  %v15392_v39 = vor.u32 %v18795_v9, %v15391_v29  ;;  %v15396_v44 = vor.u32 %v18793_v43, %v15393_v21  ;;  %v15404_v57 = vor.u32 %v18794_v30, %v15401_v12 }
 0x52f   : > { %15261 = vmatmul.msk.bf16.vlgmr.msra.gmra.mxu2 %vm6126_vm6, %v6285_v61  ;;  %15262 = vmatmul.msk.bf16.vlgmr.msra.gmra.mxu3 %vm6126_vm6, %v6285_v61 }
 0x530   : > { %15263 = vmatmul.msk.bf16.vlgmr.msra.gmra.mxu0 %vm6126_vm6, %v6285_v61  ;;  %15264 = vmatmul.msk.bf16.vlgmr.msra.gmra.mxu1 %vm6126_vm6, %v6285_v61  ;;  %v18790_v61 = vld [vmem:[%s24379_s7 + $0x18c] sm:$0xf] }
 0x531   : > { %6551 = vmatpush.bf16.msra.mxu2 %v15320_v23  ;;  %6564 = vmatpush.bf16.msra.mxu3 %v15324_v63  ;;  %v15385_v23 = vld [vmem:[%s24379_s7 + $0x198] sm:$0xf0]  ;;  %v15376_v63 = vor.u32 %v18791_v2, %v15375_v11 }
 0x532   : > { %6577 = vmatpush.bf16.msra.mxu0 %v15328_v34  ;;  %6590 = vmatpush.bf16.msra.mxu1 %v15332_v17  ;;  %v15388_v34 = vor.u32 %v18790_v61, %v15385_v23  ;;  %v15427_v17 = vld [vmem:[%s24379_s7 + $0x1e0] sm:$0xf]  ;;  %v18852_v23 = vld [vmem:[#allocation9 + $0x174] sm:$0xf0] }
 0x533   : > { %v15631_v61 = vld [vmem:[#allocation9 + $0x170] sm:$0xf] }
 0x535   : > { %6552 = vmatpush.bf16.msra.mxu2 %v15304_v38  ;;  %6565 = vmatpush.bf16.msra.mxu3 %v15308_v4  ;;  %v15437_v38 = vld [vmem:[%s24379_s7 + $0x1f8] sm:$0xf0]  ;;  %v6609_v4 = vrot.slane %v23395_v53, 2 }
 0x536   : > { %6578 = vmatpush.bf16.msra.mxu0 %v15312_v37  ;;  %6591 = vmatpush.bf16.msra.mxu1 %v15316_v22  ;;  %v15428_v37 = vor.u32 %v18803_v40, %v15427_v17  ;;  %v15432_v22 = vor.u32 %v18801_v0, %v15429_v54  ;;  %v15440_v25 = vor.u32 %v18802_v49, %v15437_v38  ;;  %v15687_v49 = vld [vmem:[#allocation9 + $0x1e0] sm:$0xf] }
 0x537   : > { %v15624_v38 = vor.u32 %v18850_v62, %v15623_v31  ;;  %v18842_v31 = vld [vmem:[#allocation9 + $0x124] sm:$0xf0]  ;;  %v15655_v62 = vld [vmem:[#allocation9 + $0x1a0] sm:$0xf] }
 0x53f   : > { %15297 = vmatmul.msk.bf16.vlgmr.msrb.gmra.mxu2 %vm6126_vm6, %v6393_v59  ;;  %15298 = vmatmul.msk.bf16.vlgmr.msrb.gmra.mxu3 %vm6126_vm6, %v6393_v59 }
 0x540   : > { %15299 = vmatmul.msk.bf16.vlgmr.msrb.gmra.mxu0 %vm6126_vm6, %v6393_v59  ;;  %15300 = vmatmul.msk.bf16.vlgmr.msrb.gmra.mxu1 %vm6126_vm6, %v6393_v59  ;;  %v18798_v59 = vld [vmem:[%s24379_s7 + $0x1cc] sm:$0xf] }
 0x541   : > { %6659 = vmatpush.bf16.msrb.mxu2 %v15356_v55  ;;  %6672 = vmatpush.bf16.msrb.mxu3 %v15360_v18  ;;  %v15421_v55 = vld [vmem:[%s24379_s7 + $0x1d8] sm:$0xf0]  ;;  %v15412_v18 = vor.u32 %v18799_v46, %v15411_v42 }
 0x542   : > { %6685 = vmatpush.bf16.msrb.mxu0 %v15364_v32  ;;  %6698 = vmatpush.bf16.msrb.mxu1 %v15368_v50  ;;  %v15424_v32 = vor.u32 %v18798_v59, %v15421_v55  ;;  %v6717_v50 = vrot.slane %v23383_v41, 3  ;;  %v18864_v59 = vld [vmem:[#allocation9 + $0x1d4] sm:$0xf0] }
 0x545   : > { %6660 = vmatpush.bf16.msrb.mxu2 %v15340_v16  ;;  %6673 = vmatpush.bf16.msrb.mxu3 %v15344_v14 }
 0x546   : > { %6686 = vmatpush.bf16.msrb.mxu0 %v15348_v24  ;;  %6699 = vmatpush.bf16.msrb.mxu1 %v15352_v52 }
 0x54f   : > { %15333 = vmatmul.msk.bf16.vlgmr.msra.gmra.mxu2 %vm6126_vm6, %v6501_v60  ;;  %15334 = vmatmul.msk.bf16.vlgmr.msra.gmra.mxu3 %vm6126_vm6, %v6501_v60 }
 0x550   : > { %15335 = vmatmul.msk.bf16.vlgmr.msra.gmra.mxu0 %vm6126_vm6, %v6501_v60  ;;  %15336 = vmatmul.msk.bf16.vlgmr.msra.gmra.mxu1 %vm6126_vm6, %v6501_v60 }
 0x551   : > { %6767 = vmatpush.bf16.msra.mxu2 %v15392_v39  ;;  %6780 = vmatpush.bf16.msra.mxu3 %v15396_v44 }
 0x552   : > { %6793 = vmatpush.bf16.msra.mxu0 %v15400_v58  ;;  %6806 = vmatpush.bf16.msra.mxu1 %v15404_v57 }
 0x555   : > { %6768 = vmatpush.bf16.msra.mxu2 %v15376_v63  ;;  %6781 = vmatpush.bf16.msra.mxu3 %v15380_v33  ;;  %v15695_v63 = vld [vmem:[#allocation9 + $0x1f0] sm:$0xf]  ;;  %v15632_v33 = vor.u32 %v18852_v23, %v15631_v61  ;;  %v18814_v61 = vld [vmem:[#allocation9 + $0x44] sm:$0xf0]  ;;  %v15543_v23 = vld [vmem:[#allocation9 + $0xc0] sm:$0xf] }
 0x556   : > { %6794 = vmatpush.bf16.msra.mxu0 %v15384_v36  ;;  %6807 = vmatpush.bf16.msra.mxu1 %v15388_v34  ;;  %v18868_v36 = vld [vmem:[#allocation9 + $0x1f4] sm:$0xf0] }
 0x557   : > { %v15696_v34 = vor.u32 %v18868_v36, %v15695_v63 }
 0x55f   : > { %15369 = vmatmul.msk.bf16.vlgmr.msrb.gmra.mxu2 %vm6126_vm6, %v6609_v4  ;;  %15370 = vmatmul.msk.bf16.vlgmr.msrb.gmra.mxu3 %vm6126_vm6, %v6609_v4 }
 0x560   : > { %15371 = vmatmul.msk.bf16.vlgmr.msrb.gmra.mxu0 %vm6126_vm6, %v6609_v4  ;;  %15372 = vmatmul.msk.bf16.vlgmr.msrb.gmra.mxu1 %vm6126_vm6, %v6609_v4  ;;  %v18866_v4 = vld [vmem:[#allocation9 + $0x1e4] sm:$0xf0] }
 0x561   : > { %6875 = vmatpush.bf16.msrb.mxu2 %v15428_v37  ;;  %6888 = vmatpush.bf16.msrb.mxu3 %v15432_v22  ;;  %v15503_v37 = vld [vmem:[#allocation9 + $0x70] sm:$0xf]  ;;  %v18820_v22 = vld [vmem:[#allocation9 + $0x74] sm:$0xf0]  ;;  %v15688_v42 = vor.u32 %v18866_v4, %v15687_v49 }
 0x562   : > { %6901 = vmatpush.bf16.msrb.mxu0 %v15436_v45  ;;  %6914 = vmatpush.bf16.msrb.mxu1 %v15440_v25  ;;  %v15504_v46 = vor.u32 %v18820_v22, %v15503_v37  ;;  %v15567_v45 = vld [vmem:[#allocation9 + $0xf0] sm:$0xf]  ;;  %v18836_v25 = vld [vmem:[#allocation9 + $0xf4] sm:$0xf0] }
 0x563   : > { %v15568_v5 = vor.u32 %v18836_v25, %v15567_v45  ;;  %v15471_v4 = vld [vmem:[#allocation9 + $0x30] sm:$0xf]  ;;  %v18812_v37 = vld [vmem:[#allocation9 + $0x34] sm:$0xf0] }
 0x564   : > { %v18828_v45 = vld [vmem:[#allocation9 + $0xb4] sm:$0xf0]  ;;  %v15583_v25 = vld [vmem:[#allocation9 + $0x110] sm:$0xf] }
 0x565   : > { %6876 = vmatpush.bf16.msrb.mxu2 %v15412_v18  ;;  %6889 = vmatpush.bf16.msrb.mxu3 %v15416_v48  ;;  %v15616_v48 = vor.u32 %v18848_v26, %v15615_v10  ;;  %v15647_v26 = vld [vmem:[#allocation9 + $0x190] sm:$0xf] }
 0x566   : > { %6902 = vmatpush.bf16.msrb.mxu0 %v15420_v47  ;;  %6915 = vmatpush.bf16.msrb.mxu1 %v15424_v32  ;;  %v15680_v47 = vor.u32 %v18864_v59, %v15679_v35  ;;  %v15495_v32 = vld [vmem:[#allocation9 + $0x60] sm:$0xf]  ;;  %v18856_v35 = vld [vmem:[#allocation9 + $0x194] sm:$0xf0] }
 0x56f   : > { %15405 = vmatmul.msk.bf16.vlgmr.msra.gmra.mxu2 %vm6126_vm6, %v6717_v50  ;;  %15406 = vmatmul.msk.bf16.vlgmr.msra.gmra.mxu3 %vm6126_vm6, %v6717_v50 }
 0x570   : > { %15407 = vmatmul.msk.bf16.vlgmr.msra.gmra.mxu0 %vm6126_vm6, %v6717_v50  ;;  %15408 = vmatmul.msk.bf16.vlgmr.msra.gmra.mxu1 %vm6126_vm6, %v6717_v50  ;;  %v18818_v50 = vld [vmem:[#allocation9 + $0x64] sm:$0xf0] }
 0x571   : > { %7363 = vmatpush.bf16.msra.mxu0 %v15632_v33  ;;  %7376 = vmatpush.bf16.msra.mxu1 %v15696_v34  ;;  %v18830_v33 = vld [vmem:[#allocation9 + $0xc4] sm:$0xf0] }
 0x572   : > { %7337 = vmatpush.bf16.msra.mxu2 %v15504_v46  ;;  %7350 = vmatpush.bf16.msra.mxu3 %v15568_v5  ;;  %v15544_v36 = vor.u32 %v18830_v33, %v15543_v23  ;;  %v15535_v46 = vld [vmem:[#allocation9 + $0xb0] sm:$0xf]  ;;  %v18840_v5 = vld [vmem:[#allocation9 + $0x114] sm:$0xf0]  ;;  %v15625_v23 = vld [vmem:[#allocation9 + $0x168] sm:$0xf0] }
 0x573   : > { %v15536_v10 = vor.u32 %v18828_v45, %v15535_v46 }
 0x575   : > { %7364 = vmatpush.bf16.msra.mxu0 %v15624_v38  ;;  %7377 = vmatpush.bf16.msra.mxu1 %v15688_v42  ;;  %v18858_v38 = vld [vmem:[#allocation9 + $0x1a4] sm:$0xf0]  ;;  %v15472_v42 = vor.u32 %v18812_v37, %v15471_v4 }
 0x576   : > { %v15656_v22 = vor.u32 %v18858_v38, %v15655_v62  ;;  %v15511_v38 = vld [vmem:[#allocation9 + $0x80] sm:$0xf]  ;;  %v18822_v4 = vld [vmem:[#allocation9 + $0x84] sm:$0xf0] }
 0x579   : > { %7365 = vmatpush.bf16.msra.mxu0 %v15616_v48  ;;  %7378 = vmatpush.bf16.msra.mxu1 %v15680_v47  ;;  %v15584_v47 = vor.u32 %v18840_v5, %v15583_v25  ;;  %v18819_v25 = vld [vmem:[#allocation9 + $0x74] sm:$0xf] }
 0x57f   : > { %15441 = vmatmul.msk.bf16.vlgmr.msrb.gmra.mxu2 %vm6126_vm6, %v6825_v1  ;;  %15442 = vmatmul.msk.bf16.vlgmr.msrb.gmra.mxu3 %vm6126_vm6, %v6825_v1 }
 0x580   : > { %15443 = vmatmul.msk.bf16.vlgmr.msrb.gmra.mxu0 %vm6126_vm6, %v6825_v1  ;;  %15444 = vmatmul.msk.bf16.vlgmr.msrb.gmra.mxu1 %vm6126_vm6, %v6825_v1  ;;  %v15559_v1 = vld [vmem:[#allocation9 + $0xe0] sm:$0xf] }
 0x58d   : > { %v6165_v7 = vpop.f32.mrf.mxu0  ;;  %v6178_v41 = vpop.f32.mrf.mxu1 }
 0x592   : > { %v6139_v56 = vpop.f32.mrf.mxu2  ;;  %v6152_v15 = vpop.f32.mrf.mxu3 }
 0x595   : > { %v6167_v51 = vpop.f32.mrf.mxu0  ;;  %v6180_v19 = vpop.f32.mrf.mxu1 }
 0x596   : > { %v15607_v19 = vld [vmem:[#allocation9 + $0x140] sm:$0xf] }
 0x59a   : > { %v6141_v16 = vpop.f32.mrf.mxu2  ;;  %v6154_v14 = vpop.f32.mrf.mxu3 }
 0x59b   : > { %v18846_v16 = vld [vmem:[#allocation9 + $0x144] sm:$0xf0]  ;;  %v15671_v14 = vld [vmem:[#allocation9 + $0x1c0] sm:$0xf] }
 0x59d   : > { %v6260_v24 = vpop.f32.mrf.mxu0  ;;  %v6273_v52 = vpop.f32.mrf.mxu1 }
 0x59e   : > { %v6261_v29 = vadd.f32 %v6260_v24, %v6165_v7  ;;  %v6274_v53 = vadd.f32 %v6273_v52, %v6178_v41  ;;  %v15496_v7 = vor.u32 %v18818_v50, %v15495_v32  ;;  %v18834_v41 = vld [vmem:[#allocation9 + $0xe4] sm:$0xf0]  ;;  %v15608_v24 = vor.u32 %v18846_v16, %v15607_v19  ;;  %v15463_v50 = vld [vmem:[#allocation9 + $0x20] sm:$0xf] }
 0x59f   : > { %v15560_v51 = vor.u32 %v18834_v41, %v15559_v1  ;;  %v18862_v52 = vld [vmem:[#allocation9 + $0x1c4] sm:$0xf0]  ;;  %v15648_v32 = vor.u32 %v18856_v35, %v15647_v26  ;;  %v15575_v16 = vld [vmem:[#allocation9 + $0x100] sm:$0xf] }
 0x5a0   : > { %7338 = vmatpush.bf16.msra.mxu2 %v15496_v7  ;;  %7366 = vmatpush.bf16.msra.mxu0 %v15608_v24  ;;  %v18810_v1 = vld [vmem:[#allocation9 + $0x24] sm:$0xf0]  ;;  %v15527_v7 = vld [vmem:[#allocation9 + $0xa0] sm:$0xf] }
 0x5a1   : > { %7351 = vmatpush.bf16.msra.mxu3 %v15560_v51  ;;  %v15464_v41 = vor.u32 %v18810_v1, %v15463_v50  ;;  %v15639_v24 = vld [vmem:[#allocation9 + $0x180] sm:$0xf]  ;;  %v18847_v50 = vld [vmem:[#allocation9 + $0x154] sm:$0xf] }
 0x5a2   : > { %v6234_v9 = vpop.f32.mrf.mxu2  ;;  %v6247_v43 = vpop.f32.mrf.mxu3 }
 0x5a3   : > { %v6235_v21 = vadd.f32 %v6234_v9, %v6139_v56  ;;  %v6248_v20 = vadd.f32 %v6247_v43, %v6152_v15  ;;  %v15672_v9 = vor.u32 %v18862_v52, %v15671_v14  ;;  %v18838_v14 = vld [vmem:[#allocation9 + $0x104] sm:$0xf0] }
 0x5a4   : > { %v15576_v52 = vor.u32 %v18838_v14, %v15575_v16  ;;  %v15497_v16 = vld [vmem:[#allocation9 + $0x68] sm:$0xf0]  ;;  %v18833_v14 = vld [vmem:[#allocation9 + $0xe4] sm:$0xf] }
 0x5a5   : > { %v6262_v27 = vpop.f32.mrf.mxu0  ;;  %v6275_v30 = vpop.f32.mrf.mxu1  ;;  %7379 = vmatpush.bf16.msra.mxu1 %v15672_v9  ;;  %v15633_v9 = vld [vmem:[#allocation9 + $0x178] sm:$0xf0] }
 0x5a6   : > { %v15599_v27 = vld [vmem:[#allocation9 + $0x130] sm:$0xf] }
 0x5aa   : > { %v6236_v12 = vpop.f32.mrf.mxu2  ;;  %v6249_v60 = vpop.f32.mrf.mxu3 }
 0x5ab   : > { %v18844_v12 = vld [vmem:[#allocation9 + $0x134] sm:$0xf0]  ;;  %v15663_v60 = vld [vmem:[#allocation9 + $0x1b0] sm:$0xf] }
 0x5ad   : > { %v6364_v39 = vpop.f32.mrf.mxu0  ;;  %v6377_v44 = vpop.f32.mrf.mxu1 }
 0x5ae   : > { %v23707_v11 = vadd.f32 %v6364_v39, %v6261_v29  ;;  %v23709_v2 = vadd.f32 %v6377_v44, %v6274_v53  ;;  %v15487_v29 = vld [vmem:[#allocation9 + $0x50] sm:$0xf]  ;;  %v18816_v53 = vld [vmem:[#allocation9 + $0x54] sm:$0xf0]  ;;  %v15600_v44 = vor.u32 %v18844_v12, %v15599_v27  ;;  %v15697_v27 = vld [vmem:[#allocation9 + $0x1f8] sm:$0xf0] }
 0x5af   : > { %v15488_v43 = vor.u32 %v18816_v53, %v15487_v29  ;;  %v18860_v39 = vld [vmem:[#allocation9 + $0x1b4] sm:$0xf0]  ;;  %v18854_v29 = vld [vmem:[#allocation9 + $0x184] sm:$0xf0]  ;;  %v18851_v53 = vld [vmem:[#allocation9 + $0x174] sm:$0xf] }
 0x5b0   : > { %7367 = vmatpush.bf16.msra.mxu0 %v15600_v44  ;;  %v18824_v44 = vld [vmem:[#allocation9 + $0x94] sm:$0xf0] }
 0x5b1   : > { %7339 = vmatpush.bf16.msra.mxu2 %v15488_v43  ;;  %v15640_v43 = vor.u32 %v18854_v29, %v15639_v24 }
 0x5b2   : > { %v6338_v58 = vpop.f32.mrf.mxu2  ;;  %v6351_v57 = vpop.f32.mrf.mxu3 }
 0x5b3   : > { %v23711_v3 = vadd.f32 %v6338_v58, %v6235_v21  ;;  %v23713_v28 = vadd.f32 %v6351_v57, %v6248_v20  ;;  %v15551_v21 = vld [vmem:[#allocation9 + $0xd0] sm:$0xf]  ;;  %v18832_v20 = vld [vmem:[#allocation9 + $0xd4] sm:$0xf0] }
 0x5b4   : > { %v15552_v30 = vor.u32 %v18832_v20, %v15551_v21  ;;  %v15636_v21 = vor.u32 %v18851_v53, %v15633_v9  ;;  %v18867_v20 = vld [vmem:[#allocation9 + $0x1f4] sm:$0xf]  ;;  %v18845_v53 = vld [vmem:[#allocation9 + $0x144] sm:$0xf]  ;;  %v15609_v9 = vld [vmem:[#allocation9 + $0x148] sm:$0xf0] }
 0x5b5   : > { %v6366_v6 = vpop.f32.mrf.mxu0  ;;  %v6379_v13 = vpop.f32.mrf.mxu1  ;;  %v15700_v12 = vor.u32 %v18867_v20, %v15697_v27  ;;  %v15612_v20 = vor.u32 %v18845_v53, %v15609_v9  ;;  %v18861_v27 = vld [vmem:[#allocation9 + $0x1c4] sm:$0xf]  ;;  %v15465_v53 = vld [vmem:[#allocation9 + $0x28] sm:$0xf0] }
 0x5b6   : > { %v15664_v6 = vor.u32 %v18860_v39, %v15663_v60  ;;  %v15479_v13 = vld [vmem:[#allocation9 + $0x40] sm:$0xf]  ;;  %7352 = vmatpush.bf16.msra.mxu3 %v15552_v30  ;;  %v15455_v30 = vld [vmem:[#allocation9 + $0x10] sm:$0xf]  ;;  %v18808_v60 = vld [vmem:[#allocation9 + $0x14] sm:$0xf0] }
 0x5b7   : > { %v15480_v63 = vor.u32 %v18814_v61, %v15479_v13  ;;  %v15519_v39 = vld [vmem:[#allocation9 + $0x90] sm:$0xf]  ;;  %v18849_v61 = vld [vmem:[#allocation9 + $0x164] sm:$0xf] }
 0x5b8   : > { %7380 = vmatpush.bf16.msra.mxu1 %v15664_v6  ;;  %v15628_v33 = vor.u32 %v18849_v61, %v15625_v23  ;;  %v15601_v61 = vld [vmem:[#allocation9 + $0x138] sm:$0xf0]  ;;  %v18859_v23 = vld [vmem:[#allocation9 + $0x1b4] sm:$0xf] }
 0x5b9   : > { %7340 = vmatpush.bf16.msra.mxu2 %v15480_v63  ;;  %v18865_v63 = vld [vmem:[#allocation9 + $0x1e4] sm:$0xf] }
 0x5ba   : > { %v6340_v17 = vpop.f32.mrf.mxu2  ;;  %v6353_v40 = vpop.f32.mrf.mxu3  ;;  %7353 = vmatpush.bf16.msra.mxu3 %v15544_v36  ;;  %v15689_v36 = vld [vmem:[#allocation9 + $0x1e8] sm:$0xf0] }
 0x5bb   : > { %v15591_v40 = vld [vmem:[#allocation9 + $0x120] sm:$0xf]  ;;  %v15692_v62 = vor.u32 %v18865_v63, %v15689_v36 }
 0x5bc   : > { %v15592_v49 = vor.u32 %v18842_v31, %v15591_v40  ;;  %7381 = vmatpush.bf16.msra.mxu1 %v15656_v22  ;;  %v15447_v40 = vld [vmem:[#allocation9] sm:$0xf]  ;;  %v18806_v31 = vld [vmem:[#allocation9 + $0x4] sm:$0xf0] }
 0x5bd   : > { %v23715_v0 = vpop.f32.mrf.mxu0  ;;  %v23717_v54 = vpop.f32.mrf.mxu1  ;;  %7341 = vmatpush.bf16.msra.mxu2 %v15472_v42  ;;  %v15512_v42 = vor.u32 %v18822_v4, %v15511_v38  ;;  %v18829_v38 = vld [vmem:[#allocation9 + $0xc4] sm:$0xf]  ;;  %v15545_v4 = vld [vmem:[#allocation9 + $0xc8] sm:$0xf0] }
 0x5be   : > { %7368 = vmatpush.bf16.msra.mxu0 %v15592_v49  ;;  %7354 = vmatpush.bf16.msra.mxu3 %v15536_v10  ;;  %v15448_v49 = vor.u32 %v18806_v31, %v15447_v40  ;;  %v15505_v10 = vld [vmem:[#allocation9 + $0x78] sm:$0xf0]  ;;  %v18813_v31 = vld [vmem:[#allocation9 + $0x44] sm:$0xf] }
 0x5bf   : > { %v15508_v35 = vor.u32 %v18819_v25, %v15505_v10  ;;  %v15665_v40 = vld [vmem:[#allocation9 + $0x1b8] sm:$0xf0]  ;;  %v15593_v10 = vld [vmem:[#allocation9 + $0x128] sm:$0xf0] }
 0x5c0   : > { %7382 = vmatpush.bf16.msra.mxu1 %v15648_v32  ;;  %v15569_v32 = vld [vmem:[#allocation9 + $0xf8] sm:$0xf0] }
 0x5c1   : > { %7342 = vmatpush.bf16.msra.mxu2 %v15464_v41  ;;  %v18863_v41 = vld [vmem:[#allocation9 + $0x1d4] sm:$0xf] }
 0x5c2   : > { %v23719_v55 = vpop.f32.mrf.mxu2  ;;  %v23721_v18 = vpop.f32.mrf.mxu3  ;;  %7369 = vmatpush.bf16.msra.mxu0 %v15584_v47  ;;  %v18835_v47 = vld [vmem:[#allocation9 + $0xf4] sm:$0xf] }
 0x5c3   : > { %v15572_v1 = vor.u32 %v18835_v47, %v15569_v32  ;;  %v18811_v47 = vld [vmem:[#allocation9 + $0x34] sm:$0xf]  ;;  %v15473_v32 = vld [vmem:[#allocation9 + $0x38] sm:$0xf0] }
 0x5c4   : > { %7383 = vmatpush.bf16.msra.mxu1 %v15640_v43 }
 0x5c5   : > { %v6474_v56 = vpop.f32.mrf.mxu0  ;;  %v6487_v15 = vpop.f32.mrf.mxu1 }
 0x5c6   : > { %v18826_v56 = vld [vmem:[#allocation9 + $0xa4] sm:$0xf0]  ;;  %7370 = vmatpush.bf16.msra.mxu0 %v15576_v52  ;;  %v15561_v52 = vld [vmem:[#allocation9 + $0xe8] sm:$0xf0] }
 0x5c7   : > { %v15528_v19 = vor.u32 %v18826_v56, %v15527_v7  ;;  %v15617_v7 = vld [vmem:[#allocation9 + $0x158] sm:$0xf0]  ;;  %v15564_v29 = vor.u32 %v18833_v14, %v15561_v52 }
 0x5c8   : > { %7428 = vmatpush.bf16.msrb.mxu1 %v15700_v12  ;;  %v15681_v56 = vld [vmem:[#allocation9 + $0x1d8] sm:$0xf0]  ;;  %v18815_v12 = vld [vmem:[#allocation9 + $0x54] sm:$0xf] }
 0x5c9   : > { %7355 = vmatpush.bf16.msra.mxu3 %v15528_v19  ;;  %v18817_v19 = vld [vmem:[#allocation9 + $0x64] sm:$0xf]  ;;  %v15649_v14 = vld [vmem:[#allocation9 + $0x198] sm:$0xf0] }
 0x5ca   : > { %v6448_v58 = vpop.f32.mrf.mxu2  ;;  %v6461_v57 = vpop.f32.mrf.mxu3  ;;  %7415 = vmatpush.bf16.msrb.mxu0 %v15636_v21  ;;  %v15500_v24 = vor.u32 %v18817_v19, %v15497_v16  ;;  %v15585_v19 = vld [vmem:[#allocation9 + $0x118] sm:$0xf0]  ;;  %v18855_v16 = vld [vmem:[#allocation9 + $0x194] sm:$0xf] }
 0x5cb   : > { %v15456_v58 = vor.u32 %v18808_v60, %v15455_v30  ;;  %v15520_v57 = vor.u32 %v18824_v44, %v15519_v39  ;;  %v15673_v30 = vld [vmem:[#allocation9 + $0x1c8] sm:$0xf0]  ;;  %v15489_v39 = vld [vmem:[#allocation9 + $0x58] sm:$0xf0]  ;;  %v18831_v44 = vld [vmem:[#allocation9 + $0xd4] sm:$0xf] }
 0x5cc   : > { %7429 = vmatpush.bf16.msrb.mxu1 %v15692_v62  ;;  %v15676_v60 = vor.u32 %v18861_v27, %v15673_v30  ;;  %v15481_v62 = vld [vmem:[#allocation9 + $0x48] sm:$0xf0]  ;;  %v18825_v27 = vld [vmem:[#allocation9 + $0xa4] sm:$0xf] }
 0x5cd   : > { %v23723_v34 = vpop.f32.mrf.mxu0  ;;  %v23725_v17 = vpop.f32.mrf.mxu1  ;;  %7343 = vmatpush.bf16.msra.mxu2 %v15456_v58  ;;  %7356 = vmatpush.bf16.msra.mxu3 %v15520_v57  ;;  %v15553_v58 = vld [vmem:[#allocation9 + $0xd8] sm:$0xf0]  ;;  %v15492_v57 = vor.u32 %v18815_v12, %v15489_v39  ;;  %v15484_v25 = vor.u32 %v18813_v31, %v15481_v62  ;;  %v15529_v30 = vld [vmem:[#allocation9 + $0xa8] sm:$0xf0]  ;;  %v18837_v12 = vld [vmem:[#allocation9 + $0x104] sm:$0xf]  ;;  %v6492_v39 = vadd.f32 %v23717_v54, %v23709_v2 }
 0x5ce   : > { %7416 = vmatpush.bf16.msrb.mxu0 %v15628_v33  ;;  %v15521_v31 = vld [vmem:[#allocation9 + $0x98] sm:$0xf0] }
 0x5d1   : > { %7344 = vmatpush.bf16.msra.mxu2 %v15448_v49  ;;  %7357 = vmatpush.bf16.msra.mxu3 %v15512_v42  ;;  %v15668_v49 = vor.u32 %v18859_v23, %v15665_v40  ;;  %v18841_v42 = vld [vmem:[#allocation9 + $0x124] sm:$0xf]  ;;  %v23756_v23 = vld [vmem:[%s24380_s8] sm:$0xf]  ;;  %v18823_v40 = vld [vmem:[#allocation9 + $0x94] sm:$0xf] }
 0x5d2   : > { %v23727_v59 = vpop.f32.mrf.mxu2  ;;  %v23729_v48 = vpop.f32.mrf.mxu3 }
 0x5d5   : > { %v6582_v15 = vpop.f32.mrf.mxu0  ;;  %v6595_v51 = vpop.f32.mrf.mxu1  ;;  %7389 = vmatpush.bf16.msrb.mxu2 %v15508_v35  ;;  %7402 = vmatpush.bf16.msrb.mxu3 %v15572_v1  ;;  %v15548_v35 = vor.u32 %v18829_v38, %v15545_v4  ;;  %v6489_v38 = vadd.f32 %v23719_v55, %v23711_v3  ;;  %v6490_v4 = vadd.f32 %v23721_v18, %v23713_v28  ;;  %v18821_v18 = vld [vmem:[#allocation9 + $0x84] sm:$0xf] }
 0x5d6   : > { %v15620_v15 = vor.u32 %v18847_v50, %v15617_v7  ;;  %v15684_v51 = vor.u32 %v18863_v41, %v15681_v56  ;;  %v15596_v50 = vor.u32 %v18841_v42, %v15593_v10  ;;  %v18827_v7 = vld [vmem:[#allocation9 + $0xb4] sm:$0xf]  ;;  %v15537_v41 = vld [vmem:[#allocation9 + $0xb8] sm:$0xf0]  ;;  %v6929_v42 = vperm.slane %v23756_v23, 2 }
 0x5d7   : > { %v18839_v56 = vld [vmem:[#allocation9 + $0x114] sm:$0xf]  ;;  %v15540_v52 = vor.u32 %v18827_v7, %v15537_v41  ;;  %v6598_v3 = vadd.f32 %v23729_v48, %v6490_v4 }
 0x5d8   : > { %7417 = vmatpush.bf16.msrb.mxu0 %v15620_v15  ;;  %7430 = vmatpush.bf16.msrb.mxu1 %v15684_v51  ;;  %v15817_v48 = vld [vmem:[#allocation11 + $0xf0] sm:$0xf0] }
 0x5d9   : > { %7390 = vmatpush.bf16.msrb.mxu2 %v15500_v24  ;;  %7403 = vmatpush.bf16.msrb.mxu3 %v15564_v29  ;;  %v15476_v24 = vor.u32 %v18811_v47, %v15473_v32  ;;  %v18809_v29 = vld [vmem:[#allocation9 + $0x24] sm:$0xf]  ;;  %v6597_v47 = vadd.f32 %v23727_v59, %v6489_v38  ;;  %v15513_v32 = vld [vmem:[#allocation9 + $0x88] sm:$0xf0] }
 0x5da   : > { %v6556_v6 = vpop.f32.mrf.mxu2  ;;  %v6569_v13 = vpop.f32.mrf.mxu3  ;;  %v15516_v59 = vor.u32 %v18821_v18, %v15513_v32 }
 0x5db   : > { %v15556_v6 = vor.u32 %v18831_v44, %v15553_v58  ;;  %v18843_v13 = vld [vmem:[#allocation9 + $0x134] sm:$0xf]  ;;  %v15577_v44 = vld [vmem:[#allocation9 + $0x108] sm:$0xf0]  ;;  %v18853_v58 = vld [vmem:[#allocation9 + $0x184] sm:$0xf] }
 0x5dc   : > { %7418 = vmatpush.bf16.msrb.mxu0 %v15612_v20  ;;  %7431 = vmatpush.bf16.msrb.mxu1 %v15676_v60  ;;  %v15604_v36 = vor.u32 %v18843_v13, %v15601_v61  ;;  %v15652_v20 = vor.u32 %v18855_v16, %v15649_v14  ;;  %v6491_v60 = vadd.f32 %v23715_v0, %v23707_v11  ;;  %v18807_v11 = vld [vmem:[#allocation9 + $0x14] sm:$0xf]  ;;  %v15457_v0 = vld [vmem:[#allocation9 + $0x18] sm:$0xf0] }
 0x5dd   : > { %v23731_v37 = vpop.f32.mrf.mxu0  ;;  %v23733_v22 = vpop.f32.mrf.mxu1  ;;  %7391 = vmatpush.bf16.msrb.mxu2 %v15492_v57  ;;  %7404 = vmatpush.bf16.msrb.mxu3 %v15556_v6  ;;  %v15641_v57 = vld [vmem:[#allocation9 + $0x188] sm:$0xf0]  ;;  %v15468_v6 = vor.u32 %v18809_v29, %v15465_v53  ;;  %v6600_v61 = vadd.f32 %v23725_v17, %v6492_v39  ;;  %v15580_v2 = vor.u32 %v18837_v12, %v15577_v44 }
 0x5de   : > { %v6599_v13 = vadd.f32 %v23723_v34, %v6491_v60  ;;  %v15644_v54 = vor.u32 %v18853_v58, %v15641_v57  ;;  %v18899_v57 = vld [vmem:[#allocation11 + $0xec] sm:$0xf0] }
 0x5df   : > { %v6708_v34 = vadd.f32 %v23733_v22, %v6600_v61  ;;  %v15524_v22 = vor.u32 %v18823_v40, %v15521_v31  ;;  %v15943_v61 = vld [vmem:[#allocation11 + $0x1e0] sm:$0xf] }
 0x5e0   : > { %7419 = vmatpush.bf16.msrb.mxu0 %v15604_v36  ;;  %7432 = vmatpush.bf16.msrb.mxu1 %v15668_v49  ;;  %v15532_v36 = vor.u32 %v18825_v27, %v15529_v30  ;;  %v6707_v62 = vadd.f32 %v23731_v37, %v6599_v13  ;;  %v6930_v37 = vperm.slane %v23756_v23, 3  ;;  %v15945_v27 = vld [vmem:[#allocation11 + $0x1f0] sm:$0xf0] }
 0x5e1   : > { %7392 = vmatpush.bf16.msrb.mxu2 %v15484_v25  ;;  %7405 = vmatpush.bf16.msrb.mxu3 %v15548_v35  ;;  %v15460_v25 = vor.u32 %v18807_v11, %v15457_v0  ;;  %v15449_v35 = vld [vmem:[#allocation9 + $0x8] sm:$0xf0]  ;;  %v15801_v13 = vld [vmem:[#allocation11 + $0xd0] sm:$0xf0] }
 0x5e2   : > { %v23735_v46 = vpop.f32.mrf.mxu2  ;;  %v23737_v45 = vpop.f32.mrf.mxu3 }
 0x5e4   : > { %7420 = vmatpush.bf16.msrb.mxu0 %v15596_v50 }
 0x5e5   : > { %v6690_v5 = vpop.f32.mrf.mxu0  ;;  %v6703_v26 = vpop.f32.mrf.mxu1  ;;  %7393 = vmatpush.bf16.msrb.mxu2 %v15476_v24  ;;  %7406 = vmatpush.bf16.msrb.mxu3 %v15540_v52  ;;  %v6927_v24 = vperm.slane %v23756_v23, 0  ;;  %v6928_v52 = vperm.slane %v23756_v23, 1  ;;  %v18931_v23 = vld [vmem:[#allocation11 + $0x1ec] sm:$0xf0] }
 0x5e6   : > { %v18857_v5 = vld [vmem:[#allocation9 + $0x1a4] sm:$0xf]  ;;  %v15657_v26 = vld [vmem:[#allocation9 + $0x1a8] sm:$0xf0] }
 0x5e7   : > { %v15660_v1 = vor.u32 %v18857_v5, %v15657_v26  ;;  %v18805_v26 = vld [vmem:[#allocation9 + $0x4] sm:$0xf] }
 0x5e8   : > { %v15452_v7 = vor.u32 %v18805_v26, %v15449_v35  ;;  %v15767_v35 = vld [vmem:[#allocation11 + $0x80] sm:$0xf] }
 0x5e9   : > { %7433 = vmatpush.bf16.msrb.mxu1 %v15660_v1  ;;  %7394 = vmatpush.bf16.msrb.mxu2 %v15468_v6  ;;  %v6706_v1 = vadd.f32 %v23737_v45, %v6598_v3  ;;  %v18893_v6 = vld [vmem:[#allocation11 + $0xc4] sm:$0xf]  ;;  %v18887_v3 = vld [vmem:[#allocation11 + $0x8c] sm:$0xf0] }
 0x5ea   : > { %v6664_v43 = vpop.f32.mrf.mxu2  ;;  %v6677_v21 = vpop.f32.mrf.mxu3  ;;  %7407 = vmatpush.bf16.msrb.mxu3 %v15532_v36  ;;  %v15768_v18 = vor.u32 %v18887_v3, %v15767_v35  ;;  %v15863_v35 = vld [vmem:[#allocation11 + $0x140] sm:$0xf]  ;;  %v18911_v3 = vld [vmem:[#allocation11 + $0x14c] sm:$0xf0] }
 0x5eb   : > { %v15588_v21 = vor.u32 %v18839_v56, %v15585_v19  ;;  %v18897_v19 = vld [vmem:[#allocation11 + $0xe4] sm:$0xf] }
 0x5ed   : > { %v23739_v63 = vpop.f32.mrf.mxu0  ;;  %v23741_v33 = vpop.f32.mrf.mxu1  ;;  %7421 = vmatpush.bf16.msrb.mxu0 %v15588_v21  ;;  %7434 = vmatpush.bf16.msrb.mxu1 %v15652_v20  ;;  %v15820_v20 = vor.u32 %v18897_v19, %v15817_v48  ;;  %v18877_v19 = vld [vmem:[#allocation11 + $0x44] sm:$0xf]  ;;  %v15737_v48 = vld [vmem:[#allocation11 + $0x50] sm:$0xf0] }
 0x5ee   : > { %v6815_v10 = vadd.f32 %v23739_v63, %v6707_v62  ;;  %v6816_v5 = vadd.f32 %v23741_v33, %v6708_v34  ;;  %v6705_v33 = vadd.f32 %v23735_v46, %v6597_v47  ;;  %7395 = vmatpush.bf16.msrb.mxu2 %v15460_v25  ;;  %7408 = vmatpush.bf16.msrb.mxu3 %v15524_v22  ;;  %v18895_v62 = vld [vmem:[#allocation11 + $0xcc] sm:$0xf0]  ;;  %v18889_v34 = vld [vmem:[#allocation11 + $0xa4] sm:$0xf]  ;;  %v15783_v25 = vld [vmem:[#allocation11 + $0xa0] sm:$0xf] }
 0x5ef   : > { %v15769_v22 = vld [vmem:[#allocation11 + $0x90] sm:$0xf0] }
 0x5f1   : > { %7422 = vmatpush.bf16.msrb.mxu0 %v15580_v2  ;;  %7435 = vmatpush.bf16.msrb.mxu1 %v15644_v54  ;;  %v15799_v2 = vld [vmem:[#allocation11 + $0xc0] sm:$0xf]  ;;  %v15804_v54 = vor.u32 %v18893_v6, %v15801_v13  ;;  %v18869_v6 = vld [vmem:[#allocation11 + $0x4] sm:$0xf]  ;;  %v15705_v13 = vld [vmem:[#allocation11 + $0x10] sm:$0xf0] }
 0x5f2   : > { %v23743_v15 = vpop.f32.mrf.mxu2  ;;  %v23745_v51 = vpop.f32.mrf.mxu3  ;;  %7396 = vmatpush.bf16.msrb.mxu2 %v15452_v7  ;;  %7409 = vmatpush.bf16.msrb.mxu3 %v15516_v59  ;;  %v18879_v7 = vld [vmem:[#allocation11 + $0x4c] sm:$0xf0] }
 0x5f3   : > { %v6813_v16 = vadd.f32 %v23743_v15, %v6705_v33  ;;  %v6814_v14 = vadd.f32 %v23745_v51, %v6706_v1  ;;  %v15815_v15 = vld [vmem:[#allocation11 + $0xe0] sm:$0xf]  ;;  %v18927_v59 = vld [vmem:[#allocation11 + $0x1cc] sm:$0xf0] }
 0x5f4   : > { %v15816_v0 = vor.u32 %v18899_v57, %v15815_v15  ;;  %v15735_v1 = vld [vmem:[#allocation11 + $0x40] sm:$0xf]  ;;  %v15913_v15 = vld [vmem:[#allocation11 + $0x1b0] sm:$0xf0]  ;;  %v18919_v57 = vld [vmem:[#allocation11 + $0x18c] sm:$0xf0] }
 0x5f5   : > { %v6798_v9 = vpop.f32.mrf.mxu0  ;;  %v6811_v43 = vpop.f32.mrf.mxu1 }
 0x5f6   : > { %v18929_v9 = vld [vmem:[#allocation11 + $0x1e4] sm:$0xf] }
 0x5f7   : > { %v15948_v60 = vor.u32 %v18929_v9, %v15945_v27  ;;  %v18923_v9 = vld [vmem:[#allocation11 + $0x1ac] sm:$0xf0]  ;;  %v15721_v27 = vld [vmem:[#allocation11 + $0x30] sm:$0xf0] }
 0x5fa   : > { %v6772_v17 = vpop.f32.mrf.mxu2  ;;  %v6785_v49 = vpop.f32.mrf.mxu3 }
 0x5fb   : > { %v15785_v17 = vld [vmem:[#allocation11 + $0xb0] sm:$0xf0]  ;;  %v15944_v49 = vor.u32 %v18931_v23, %v15943_v61  ;;  %v15708_v23 = vor.u32 %v18869_v6, %v15705_v13  ;;  %v15953_v6 = vld [vmem:[#allocation11 + $0x1f8] sm:$0xf0]  ;;  %v23783_v13 = vld [vmem:[%s24382_s10] sm:$0x3] }
 0x5fd   : > { %v6904_v55 = vpop.f32.mrf.mxu0  ;;  %v6917_v28 = vpop.f32.mrf.mxu1 }
 0x5fe   : > { %v6923_v50 = vadd.f32 %v6904_v55, %v6815_v10  ;;  %v6924_v63 = vadd.f32 %v6917_v28, %v6816_v5  ;;  %v15788_v10 = vor.u32 %v18889_v34, %v15785_v17  ;;  %v18891_v5 = vld [vmem:[#allocation11 + $0xac] sm:$0xf0]  ;;  %v18881_v55 = vld [vmem:[#allocation11 + $0x64] sm:$0xf]  ;;  %v15753_v28 = vld [vmem:[#allocation11 + $0x70] sm:$0xf0] }
 0x5ff   : > { %v15784_v26 = vor.u32 %v18891_v5, %v15783_v25  ;;  %v15756_v32 = vor.u32 %v18881_v55, %v15753_v28  ;;  %v15879_v17 = vld [vmem:[#allocation11 + $0x160] sm:$0xf]  ;;  %v15807_v25 = vld [vmem:[#allocation11 + $0xc8] sm:$0xf]  ;;  %v18909_v55 = vld [vmem:[#allocation11 + $0x144] sm:$0xf] }
 0x600   : > { %v6937_v41 = vadd.f32 %v6929_v42, %v6923_v50  ;;  %v6938_v56 = vadd.f32 %v6930_v37, %v6924_v63  ;;  %v15800_v42 = vor.u32 %v18895_v62, %v15799_v2  ;;  %v18885_v37 = vld [vmem:[#allocation11 + $0x84] sm:$0xf]  ;;  %v15751_v50 = vld [vmem:[#allocation11 + $0x60] sm:$0xf]  ;;  %v18883_v63 = vld [vmem:[#allocation11 + $0x6c] sm:$0xf0] }
 0x601   : > { %v15772_v47 = vor.u32 %v18885_v37, %v15769_v22  ;;  %v15752_v33 = vor.u32 %v18883_v63, %v15751_v50  ;;  %v18894_v22 = vld [vmem:[#allocation11 + $0xcc] sm:$0xf]  ;;  %v15865_v28 = vld [vmem:[#allocation11 + $0x150] sm:$0xf0]  ;;  %v15791_v50 = vld [vmem:[#allocation11 + $0xa8] sm:$0xf] }
 0x602   : > { %v6941_v29 = vmax.f32 %v6937_v41, 0.0  ;;  %v6942_v46 = vmax.f32 %v6938_v56, 0.0  ;;  %v6878_v53 = vpop.f32.mrf.mxu2  ;;  %v6891_v45 = vpop.f32.mrf.mxu3  ;;  %v15927_v41 = vld [vmem:[#allocation11 + $0x1c0] sm:$0xf]  ;;  %v15736_v56 = vor.u32 %v18879_v7, %v15735_v1  ;;  %v18892_v63 = vld [vmem:[#allocation11 + $0xb4] sm:$0xf0] }
 0x603   : > { %v6921_v43 = vadd.f32 %v6878_v53, %v6813_v16  ;;  %v6922_v21 = vadd.f32 %v6891_v45, %v6814_v14  ;;  %v15928_v16 = vor.u32 %v18927_v59, %v15927_v41  ;;  %v15740_v14 = vor.u32 %v18877_v19, %v15737_v48  ;;  %v18875_v53 = vld [vmem:[#allocation11 + $0x2c] sm:$0xf0]  ;;  %v15911_v45 = vld [vmem:[#allocation11 + $0x1a0] sm:$0xf]  ;;  %v15793_v7 = vld [vmem:[#allocation11 + $0xb8] sm:$0xf0] }
 0x604   : > { %v6945_v30 = vpack.c.bf16 %v6941_v29, %v6941_v29  ;;  %v6946_v12 = vpack.c.bf16 %v6942_v46, %v6942_v46  ;;  %v15719_v29 = vld [vmem:[#allocation11 + $0x20] sm:$0xf]  ;;  %v15792_v1 = vor.u32 %v18892_v63, %v15791_v50  ;;  %v18905_v19 = vld [vmem:[#allocation11 + $0x124] sm:$0xf]  ;;  %v15849_v48 = vld [vmem:[#allocation11 + $0x130] sm:$0xf0] }
 0x605   : > { %v6935_v51 = vadd.f32 %v6927_v24, %v6921_v43  ;;  %v6936_v39 = vadd.f32 %v6928_v52, %v6922_v21  ;;  %v6906_v44 = vpop.f32.mrf.mxu0  ;;  %v6919_v58 = vpop.f32.mrf.mxu1  ;;  %v18925_v24 = vld [vmem:[#allocation11 + $0x1c4] sm:$0xf]  ;;  %v15929_v52 = vld [vmem:[#allocation11 + $0x1d0] sm:$0xf0]  ;;  %v15720_v43 = vor.u32 %v18875_v53, %v15719_v29  ;;  %v15912_v21 = vor.u32 %v18923_v9, %v15911_v45  ;;  %v15847_v41 = vld [vmem:[#allocation11 + $0x120] sm:$0xf] }
 0x606   : > { %7371 = vmatmul.bf16.vlgmr.msra.gmra.mxu0 %v6945_v30  ;;  %7384 = vmatmul.bf16.vlgmr.msra.gmra.mxu1 %v6946_v12  ;;  %v15932_v46 = vor.u32 %v18925_v24, %v15929_v52  ;;  %v15895_v44 = vld [vmem:[#allocation11 + $0x180] sm:$0xf]  ;;  %v18888_v24 = vld [vmem:[#allocation11 + $0x94] sm:$0xf0]  ;;  %v18886_v52 = vld [vmem:[#allocation11 + $0x8c] sm:$0xf] }
 0x607   : > { %v6939_v36 = vmax.f32 %v6935_v51, 0.0  ;;  %v6940_v11 = vmax.f32 %v6936_v39, 0.0  ;;  %7865 = vmatpush.bf16.msra.mxu0 %v15820_v20  ;;  %7878 = vmatpush.bf16.msra.mxu1 %v15948_v60  ;;  %v18873_v20 = vld [vmem:[#allocation11 + $0x24] sm:$0xf]  ;;  %v15703_v51 = vld [vmem:[#allocation11] sm:$0xf]  ;;  %v15896_v61 = vor.u32 %v18919_v57, %v15895_v44 }
 0x608   : > { %v18871_v39 = vld [vmem:[#allocation11 + $0xc] sm:$0xf0]  ;;  %v15777_v29 = vld [vmem:[#allocation11 + $0x98] sm:$0xf0]  ;;  %v15831_v45 = vld [vmem:[#allocation11 + $0x100] sm:$0xf] }
 0x609   : > { %v6943_v40 = vpack.c.bf16 %v6939_v36, %v6939_v36  ;;  %v6944_v31 = vpack.c.bf16 %v6940_v11, %v6940_v11  ;;  %v15704_v58 = vor.u32 %v18871_v39, %v15703_v51  ;;  %v18917_v36 = vld [vmem:[#allocation11 + $0x184] sm:$0xf]  ;;  %v15897_v11 = vld [vmem:[#allocation11 + $0x190] sm:$0xf0]  ;;  %v18903_v9 = vld [vmem:[#allocation11 + $0x10c] sm:$0xf0] }
 0x60a   : > { %v6880_v38 = vpop.f32.mrf.mxu2  ;;  %v6893_v4 = vpop.f32.mrf.mxu3  ;;  %v15900_v2 = vor.u32 %v18917_v36, %v15897_v11  ;;  %v18932_v51 = vld [vmem:[#allocation11 + $0x1f4] sm:$0xf0]  ;;  %v18882_v39 = vld [vmem:[#allocation11 + $0x6c] sm:$0xf]  ;;  %v15832_v44 = vor.u32 %v18903_v9, %v15831_v45 }
 0x60b   : > { %7345 = vmatmul.bf16.vlgmr.msra.gmra.mxu2 %v6943_v40  ;;  %7358 = vmatmul.bf16.vlgmr.msra.gmra.mxu3 %v6944_v31  ;;  %v18913_v38 = vld [vmem:[#allocation11 + $0x164] sm:$0xf]  ;;  %v18930_v57 = vld [vmem:[#allocation11 + $0x1ec] sm:$0xf] }
 0x60c   : > { %7839 = vmatpush.bf16.msra.mxu2 %v15816_v0  ;;  %7866 = vmatpush.bf16.msra.mxu0 %v15804_v54  ;;  %v15823_v0 = vld [vmem:[#allocation11 + $0xe8] sm:$0xf]  ;;  %v18900_v54 = vld [vmem:[#allocation11 + $0xf4] sm:$0xf0] }
 0x60d   : > { %7852 = vmatpush.bf16.msra.mxu3 %v15944_v49  ;;  %7879 = vmatpush.bf16.msra.mxu1 %v15932_v46  ;;  %v15824_v62 = vor.u32 %v18900_v54, %v15823_v0  ;;  %v18915_v49 = vld [vmem:[#allocation11 + $0x16c] sm:$0xf0]  ;;  %v15852_v46 = vor.u32 %v18905_v19, %v15849_v48  ;;  %v15956_v0 = vor.u32 %v18930_v57, %v15953_v6  ;;  %v15743_v54 = vld [vmem:[#allocation11 + $0x48] sm:$0xf]  ;;  %v18920_v48 = vld [vmem:[#allocation11 + $0x194] sm:$0xf0] }
 0x60e   : > { %v15880_v4 = vor.u32 %v18915_v49, %v15879_v17  ;;  %v18878_v17 = vld [vmem:[#allocation11 + $0x4c] sm:$0xf]  ;;  %v15745_v49 = vld [vmem:[#allocation11 + $0x58] sm:$0xf0]  ;;  %v15903_v19 = vld [vmem:[#allocation11 + $0x188] sm:$0xf] }
 0x610   : > { %7840 = vmatpush.bf16.msra.mxu2 %v15800_v42  ;;  %7867 = vmatpush.bf16.msra.mxu0 %v15788_v10  ;;  %v15881_v42 = vld [vmem:[#allocation11 + $0x170] sm:$0xf0]  ;;  %v18896_v10 = vld [vmem:[#allocation11 + $0xd4] sm:$0xf0] }
 0x611   : > { %7853 = vmatpush.bf16.msra.mxu3 %v15928_v16  ;;  %v15884_v5 = vor.u32 %v18913_v38, %v15881_v42  ;;  %v15808_v37 = vor.u32 %v18896_v10, %v15807_v25  ;;  %v15775_v16 = vld [vmem:[#allocation11 + $0x88] sm:$0xf]  ;;  %v15748_v25 = vor.u32 %v18878_v17, %v15745_v49  ;;  %v18926_v10 = vld [vmem:[#allocation11 + $0x1cc] sm:$0xf]  ;;  %v16015_v17 = vld [vmem:[#allocation12 + $0x70] sm:$0xf] }
 0x612   : > { %v15776_v53 = vor.u32 %v18888_v24, %v15775_v16  ;;  %v18870_v16 = vld [vmem:[#allocation11 + $0xc] sm:$0xf]  ;;  %v18948_v49 = vld [vmem:[#allocation12 + $0x74] sm:$0xf0] }
 0x613   : > { %v18918_v24 = vld [vmem:[#allocation11 + $0x18c] sm:$0xf] }
 0x614   : > { %7841 = vmatpush.bf16.msra.mxu2 %v15784_v26  ;;  %7868 = vmatpush.bf16.msra.mxu0 %v15772_v47  ;;  %v15809_v26 = vld [vmem:[#allocation11 + $0xd8] sm:$0xf0] }
 0x615   : > { %7854 = vmatpush.bf16.msra.mxu3 %v15912_v21  ;;  %v15812_v47 = vor.u32 %v18894_v22, %v15809_v26  ;;  %v15780_v21 = vor.u32 %v18886_v52, %v15777_v29  ;;  %v18876_v26 = vld [vmem:[#allocation11 + $0x34] sm:$0xf0]  ;;  %v15905_v52 = vld [vmem:[#allocation11 + $0x198] sm:$0xf0] }
 0x616   : > { %7423 = vmatmul.bf16.vlgmr.msrb.gmra.mxu0 %v6945_v30  ;;  %7436 = vmatmul.bf16.vlgmr.msrb.gmra.mxu1 %v6946_v12  ;;  %v18921_v30 = vld [vmem:[#allocation11 + $0x1a4] sm:$0xf]  ;;  %v15724_v12 = vor.u32 %v18873_v20, %v15721_v27  ;;  %v15833_v20 = vld [vmem:[#allocation11 + $0x110] sm:$0xf0]  ;;  %v15759_v27 = vld [vmem:[#allocation11 + $0x68] sm:$0xf] }
 0x617   : > { %v15916_v60 = vor.u32 %v18921_v30, %v15913_v15  ;;  %v18884_v30 = vld [vmem:[#allocation11 + $0x74] sm:$0xf0] }
 0x618   : > { %7842 = vmatpush.bf16.msra.mxu2 %v15768_v18  ;;  %7869 = vmatpush.bf16.msra.mxu0 %v15756_v32  ;;  %v15864_v18 = vor.u32 %v18911_v3, %v15863_v35  ;;  %v15868_v32 = vor.u32 %v18909_v55, %v15865_v28  ;;  %v15919_v35 = vld [vmem:[#allocation11 + $0x1a8] sm:$0xf]  ;;  %v18874_v55 = vld [vmem:[#allocation11 + $0x2c] sm:$0xf]  ;;  %v15729_v28 = vld [vmem:[#allocation11 + $0x38] sm:$0xf0] }
 0x619   : > { %7880 = vmatpush.bf16.msra.mxu1 %v15916_v60  ;;  %7855 = vmatpush.bf16.msra.mxu3 %v15896_v61  ;;  %v15951_v60 = vld [vmem:[#allocation11 + $0x1e8] sm:$0xf] }
 0x61a   : > { %v15952_v36 = vor.u32 %v18932_v51, %v15951_v60  ;;  %v18914_v51 = vld [vmem:[#allocation11 + $0x16c] sm:$0xf] }
 0x61b   : > { %7397 = vmatmul.bf16.vlgmr.msrb.gmra.mxu2 %v6943_v40  ;;  %7410 = vmatmul.bf16.vlgmr.msrb.gmra.mxu3 %v6944_v31  ;;  %v18898_v40 = vld [vmem:[#allocation11 + $0xec] sm:$0xf]  ;;  %v15825_v31 = vld [vmem:[#allocation11 + $0xf8] sm:$0xf0] }
 0x61c   : > { %7843 = vmatpush.bf16.msra.mxu2 %v15752_v33  ;;  %7870 = vmatpush.bf16.msra.mxu0 %v15740_v14  ;;  %v15828_v34 = vor.u32 %v18898_v40, %v15825_v31  ;;  %v18890_v33 = vld [vmem:[#allocation11 + $0xac] sm:$0xf]  ;;  %v18880_v40 = vld [vmem:[#allocation11 + $0x54] sm:$0xf0]  ;;  %v15935_v31 = vld [vmem:[#allocation11 + $0x1c8] sm:$0xf] }
 0x61d   : > { %7881 = vmatpush.bf16.msra.mxu1 %v15900_v2  ;;  %7856 = vmatpush.bf16.msra.mxu3 %v15880_v4  ;;  %v15796_v59 = vor.u32 %v18890_v33, %v15793_v7  ;;  %v7333_v2 = vperm.slane %v23783_v13, 0  ;;  %v15732_v33 = vor.u32 %v18874_v55, %v15729_v28  ;;  %v15711_v7 = vld [vmem:[#allocation11 + $0x8] sm:$0xf]  ;;  %v15999_v55 = vld [vmem:[#allocation12 + $0x50] sm:$0xf] }
 0x61e   : > { %v18944_v28 = vld [vmem:[#allocation12 + $0x54] sm:$0xf0] }
 0x620   : > { %7844 = vmatpush.bf16.msra.mxu2 %v15736_v56  ;;  %7871 = vmatpush.bf16.msra.mxu0 %v15724_v12  ;;  %v18907_v56 = vld [vmem:[#allocation11 + $0x12c] sm:$0xf0] }
 0x621   : > { %7882 = vmatpush.bf16.msra.mxu1 %v15884_v5  ;;  %7857 = vmatpush.bf16.msra.mxu3 %v15864_v18  ;;  %v15848_v14 = vor.u32 %v18907_v56, %v15847_v41  ;;  %v15937_v5 = vld [vmem:[#allocation11 + $0x1d8] sm:$0xf0]  ;;  %v18922_v18 = vld [vmem:[#allocation11 + $0x1ac] sm:$0xf]  ;;  %v18872_v41 = vld [vmem:[#allocation11 + $0x14] sm:$0xf0] }
 0x622   : > { %v15940_v22 = vor.u32 %v18926_v10, %v15937_v5 }
 0x624   : > { %7845 = vmatpush.bf16.msra.mxu2 %v15720_v43  ;;  %7872 = vmatpush.bf16.msra.mxu0 %v15708_v23  ;;  %v18901_v43 = vld [vmem:[#allocation11 + $0x104] sm:$0xf]  ;;  %v15760_v23 = vor.u32 %v18884_v30, %v15759_v27  ;;  %v15887_v27 = vld [vmem:[#allocation11 + $0x168] sm:$0xf]  ;;  %v18916_v30 = vld [vmem:[#allocation11 + $0x174] sm:$0xf0] }
 0x625   : > { %7883 = vmatpush.bf16.msra.mxu1 %v15868_v32  ;;  %7858 = vmatpush.bf16.msra.mxu3 %v15848_v14  ;;  %v15836_v61 = vor.u32 %v18901_v43, %v15833_v20  ;;  %v15713_v14 = vld [vmem:[#allocation11 + $0x18] sm:$0xf0]  ;;  %v15908_v20 = vor.u32 %v18918_v24, %v15905_v52  ;;  %v15888_v57 = vor.u32 %v18916_v30, %v15887_v27  ;;  %v18964_v24 = vld [vmem:[#allocation12 + $0xf4] sm:$0xf0]  ;;  %v16207_v52 = vld [vmem:[#allocation12 + $0x1f0] sm:$0xf] }
 0x626   : > { %v15716_v45 = vor.u32 %v18870_v16, %v15713_v14  ;;  %v18962_v30 = vld [vmem:[#allocation12 + $0xe4] sm:$0xf0] }
 0x628   : > { %7846 = vmatpush.bf16.msra.mxu2 %v15704_v58  ;;  %7917 = vmatpush.bf16.msrb.mxu0 %v15828_v34  ;;  %v15761_v58 = vld [vmem:[#allocation11 + $0x78] sm:$0xf0]  ;;  %v18928_v34 = vld [vmem:[#allocation11 + $0x1d4] sm:$0xf0] }
 0x629   : > { %7884 = vmatpush.bf16.msra.mxu1 %v15852_v46  ;;  %v15764_v11 = vor.u32 %v18882_v39, %v15761_v58  ;;  %7859 = vmatpush.bf16.msra.mxu3 %v15832_v44  ;;  %v15936_v42 = vor.u32 %v18928_v34, %v15935_v31  ;;  %v15712_v46 = vor.u32 %v18872_v41, %v15711_v7  ;;  %v15889_v39 = vld [vmem:[#allocation11 + $0x178] sm:$0xf0]  ;;  %v15855_v31 = vld [vmem:[#allocation11 + $0x128] sm:$0xf]  ;;  %v16143_v7 = vld [vmem:[#allocation12 + $0x170] sm:$0xf] }
 0x62c   : > { %7891 = vmatpush.bf16.msrb.mxu2 %v15824_v62  ;;  %7918 = vmatpush.bf16.msrb.mxu0 %v15812_v47  ;;  %v15744_v62 = vor.u32 %v18880_v40, %v15743_v54  ;;  %v18924_v47 = vld [vmem:[#allocation11 + $0x1b4] sm:$0xf0]  ;;  %v7334_v40 = vperm.slane %v23783_v13, 1 }
 0x62d   : > { %7885 = vmatpush.bf16.msra.mxu1 %v15836_v61  ;;  %7904 = vmatpush.bf16.msrb.mxu3 %v15952_v36  ;;  %v15920_v63 = vor.u32 %v18924_v47, %v15919_v35  ;;  %v18912_v61 = vld [vmem:[#allocation11 + $0x154] sm:$0xf0]  ;;  %v15839_v35 = vld [vmem:[#allocation11 + $0x108] sm:$0xf] }
 0x62e   : > { %v18904_v47 = vld [vmem:[#allocation11 + $0x114] sm:$0xf0] }
 0x630   : > { %7892 = vmatpush.bf16.msrb.mxu2 %v15808_v37  ;;  %7919 = vmatpush.bf16.msrb.mxu0 %v15796_v59  ;;  %v15727_v37 = vld [vmem:[#allocation11 + $0x28] sm:$0xf] }
 0x631   : > { %7930 = vmatpush.bf16.msrb.mxu1 %v15956_v0  ;;  %v15728_v3 = vor.u32 %v18876_v26, %v15727_v37  ;;  %7905 = vmatpush.bf16.msrb.mxu3 %v15936_v42  ;;  %v15873_v0 = vld [vmem:[#allocation11 + $0x158] sm:$0xf0]  ;;  %v16016_v42 = vor.u32 %v18948_v49, %v16015_v17  ;;  %v18952_v17 = vld [vmem:[#allocation12 + $0x94] sm:$0xf0]  ;;  %v16191_v49 = vld [vmem:[#allocation12 + $0x1d0] sm:$0xf] }
 0x634   : > { %7893 = vmatpush.bf16.msrb.mxu2 %v15792_v1  ;;  %7920 = vmatpush.bf16.msrb.mxu0 %v15780_v21  ;;  %v15921_v1 = vld [vmem:[#allocation11 + $0x1b8] sm:$0xf0] }
 0x635   : > { %7931 = vmatpush.bf16.msrb.mxu1 %v15940_v22  ;;  %v15924_v59 = vor.u32 %v18922_v18, %v15921_v1  ;;  %7906 = vmatpush.bf16.msrb.mxu3 %v15920_v63  ;;  %v18946_v22 = vld [vmem:[#allocation12 + $0x64] sm:$0xf0]  ;;  %v15840_v63 = vor.u32 %v18904_v47, %v15839_v35  ;;  %v16000_v1 = vor.u32 %v18944_v28, %v15999_v55 }
 0x636   : > { %v18950_v47 = vld [vmem:[#allocation12 + $0x84] sm:$0xf0] }
 0x638   : > { %7894 = vmatpush.bf16.msrb.mxu2 %v15776_v53  ;;  %7921 = vmatpush.bf16.msrb.mxu0 %v15764_v11  ;;  %v15904_v53 = vor.u32 %v18920_v48, %v15903_v19  ;;  %v18910_v11 = vld [vmem:[#allocation11 + $0x14c] sm:$0xf]  ;;  %v16079_v19 = vld [vmem:[#allocation12 + $0xf0] sm:$0xf] }
 0x639   : > { %7932 = vmatpush.bf16.msrb.mxu1 %v15924_v59  ;;  %v15876_v34 = vor.u32 %v18910_v11, %v15873_v0  ;;  %v16055_v11 = vld [vmem:[#allocation12 + $0xc0] sm:$0xf]  ;;  %v18958_v0 = vld [vmem:[#allocation12 + $0xc4] sm:$0xf0] }
 0x63a   : > { %7907 = vmatpush.bf16.msrb.mxu3 %v15904_v53  ;;  %v15991_v53 = vld [vmem:[#allocation12 + $0x40] sm:$0xf] }
 0x63c   : > { %7895 = vmatpush.bf16.msrb.mxu2 %v15760_v23  ;;  %7922 = vmatpush.bf16.msrb.mxu0 %v15748_v25  ;;  %v15892_v23 = vor.u32 %v18914_v51, %v15889_v39  ;;  %v16007_v25 = vld [vmem:[#allocation12 + $0x60] sm:$0xf]  ;;  %v18994_v51 = vld [vmem:[#allocation12 + $0x1e4] sm:$0xf0]  ;;  %v15983_v39 = vld [vmem:[#allocation12 + $0x30] sm:$0xf] }
 0x63d   : > { %7933 = vmatpush.bf16.msrb.mxu1 %v15908_v20  ;;  %v16008_v13 = vor.u32 %v18946_v22, %v16007_v25  ;;  %v16071_v20 = vld [vmem:[#allocation12 + $0xe0] sm:$0xf]  ;;  %v18938_v25 = vld [vmem:[#allocation12 + $0x24] sm:$0xf0] }
 0x63e   : > { %7908 = vmatpush.bf16.msrb.mxu3 %v15888_v57  ;;  %v18978_v22 = vld [vmem:[#allocation12 + $0x164] sm:$0xf0] }
 0x640   : > { %7896 = vmatpush.bf16.msrb.mxu2 %v15744_v62  ;;  %7923 = vmatpush.bf16.msrb.mxu0 %v15732_v33  ;;  %v18908_v62 = vld [vmem:[#allocation11 + $0x134] sm:$0xf0] }
 0x641   : > { %7934 = vmatpush.bf16.msrb.mxu1 %v15892_v23  ;;  %v15856_v37 = vor.u32 %v18908_v62, %v15855_v31  ;;  %v18954_v31 = vld [vmem:[#allocation12 + $0xa4] sm:$0xf0] }
 0x644   : > { %7897 = vmatpush.bf16.msrb.mxu2 %v15728_v3  ;;  %7924 = vmatpush.bf16.msrb.mxu0 %v15716_v45  ;;  %v18942_v45 = vld [vmem:[#allocation12 + $0x44] sm:$0xf0] }
 0x645   : > { %7935 = vmatpush.bf16.msrb.mxu1 %v15876_v34  ;;  %v16031_v34 = vld [vmem:[#allocation12 + $0x90] sm:$0xf] }
 0x648   : > { %7898 = vmatpush.bf16.msrb.mxu2 %v15712_v46 }
 0x683   : > { %v23776_v12 = vpop.f32.mrf.mxu0  ;;  %v23778_v15 = vpop.f32.mrf.mxu1 }
 0x68b   : > { %v7374_v38 = vpop.f32.mrf.mxu0  ;;  %v7387_v4 = vpop.f32.mrf.mxu1 }
 0x68c   : > { %v18906_v38 = vld [vmem:[#allocation11 + $0x12c] sm:$0xf]  ;;  %v15857_v4 = vld [vmem:[#allocation11 + $0x138] sm:$0xf0] }
 0x68d   : > { %v15860_v3 = vor.u32 %v18906_v38, %v15857_v4  ;;  %v16032_v38 = vor.u32 %v18952_v17, %v16031_v34  ;;  %v18992_v4 = vld [vmem:[#allocation12 + $0x1d4] sm:$0xf0]  ;;  %v18943_v34 = vld [vmem:[#allocation12 + $0x54] sm:$0xf]  ;;  %v16001_v17 = vld [vmem:[#allocation12 + $0x58] sm:$0xf0] }
 0x68e   : > { %v7346_v32 = vpop.f32.mrf.mxu2  ;;  %v7359_v50 = vpop.f32.mrf.mxu3 }
 0x68f   : > { %v7347_v56 = vadd.f32 %v7346_v32, %v7333_v2  ;;  %v18902_v32 = vld [vmem:[#allocation11 + $0x10c] sm:$0xf]  ;;  %7936 = vmatpush.bf16.msrb.mxu1 %v15860_v3  ;;  %v18990_v3 = vld [vmem:[#allocation12 + $0x1c4] sm:$0xf0] }
 0x691   : > { %v7360_v29 = vadd.f32 %v7359_v50, %v7347_v56  ;;  %v15841_v50 = vld [vmem:[#allocation11 + $0x118] sm:$0xf0]  ;;  %v18980_v56 = vld [vmem:[#allocation12 + $0x174] sm:$0xf0] }
 0x692   : > { %v15844_v41 = vor.u32 %v18902_v32, %v15841_v50  ;;  %v16144_v48 = vor.u32 %v18980_v56, %v16143_v7  ;;  %v16081_v32 = vld [vmem:[#allocation12 + $0xf8] sm:$0xf0]  ;;  %v15967_v50 = vld [vmem:[#allocation12 + $0x10] sm:$0xf]  ;;  %v18976_v7 = vld [vmem:[#allocation12 + $0x154] sm:$0xf0] }
 0x693   : > { %v7373_v9 = vadd.f32 %v23776_v12, %v7360_v29  ;;  %v7424_v43 = vpop.f32.mrf.mxu0  ;;  %v23787_v21 = vpop.f32.mrf.mxu1  ;;  %v15871_v12 = vld [vmem:[#allocation11 + $0x148] sm:$0xf]  ;;  %v18996_v29 = vld [vmem:[#allocation12 + $0x1f4] sm:$0xf0] }
 0x694   : > { %v15872_v2 = vor.u32 %v18912_v61, %v15871_v12  ;;  %7937 = vmatpush.bf16.msrb.mxu1 %v15844_v41  ;;  %v16208_v27 = vor.u32 %v18996_v29, %v16207_v52  ;;  %v18960_v12 = vld [vmem:[#allocation12 + $0xd4] sm:$0xf0]  ;;  %v18934_v52 = vld [vmem:[#allocation12 + $0x4] sm:$0xf0] }
 0x695   : > { %v7386_v60 = vadd.f32 %v23778_v15, %v7373_v9 }
 0x696   : > { %v7348_v44 = vpop.f32.mrf.mxu2  ;;  %v7361_v58 = vpop.f32.mrf.mxu3  ;;  %7909 = vmatpush.bf16.msrb.mxu3 %v15872_v2  ;;  %v16056_v2 = vor.u32 %v18958_v0, %v16055_v11  ;;  %v16159_v11 = vld [vmem:[#allocation12 + $0x190] sm:$0xf]  ;;  %v18984_v0 = vld [vmem:[#allocation12 + $0x194] sm:$0xf0] }
 0x697   : > { %v7441_v6 = vmax.f32 %v7386_v60, 0.0  ;;  %v16199_v60 = vld [vmem:[#allocation12 + $0x1e0] sm:$0xf]  ;;  %v18940_v44 = vld [vmem:[#allocation12 + $0x34] sm:$0xf0]  ;;  %v16072_v58 = vor.u32 %v18962_v30, %v16071_v20 }
 0x698   : > { %v16200_v57 = vor.u32 %v18994_v51, %v16199_v60  ;;  %v15984_v61 = vor.u32 %v18940_v44, %v15983_v39  ;;  %v16017_v20 = vld [vmem:[#allocation12 + $0x78] sm:$0xf0]  ;;  %v18986_v30 = vld [vmem:[#allocation12 + $0x1a4] sm:$0xf0]  ;;  %v18959_v51 = vld [vmem:[#allocation12 + $0xd4] sm:$0xf] }
 0x699   : > { %v23790_v36 = vpack.c.bf16 %v7441_v6, %v7441_v6  ;;  %v16063_v6 = vld [vmem:[#allocation12 + $0xd0] sm:$0xf]  ;;  %v16065_v39 = vld [vmem:[#allocation12 + $0xd8] sm:$0xf0] }
 0x69a   : > { %7910 = vmatpush.bf16.msrb.mxu3 %v15856_v37  ;;  %v16064_v23 = vor.u32 %v18960_v12, %v16063_v6  ;;  %v16135_v37 = vld [vmem:[#allocation12 + $0x160] sm:$0xf]  ;;  %v16111_v44 = vld [vmem:[#allocation12 + $0x130] sm:$0xf]  ;;  %v18945_v12 = vld [vmem:[#allocation12 + $0x64] sm:$0xf] }
 0x69b   : > { %v7426_v15 = vpop.f32.mrf.mxu0  ;;  %v7439_v54 = vpop.f32.mrf.mxu1  ;;  %7847 = vmatmul.bf16.vlgmr.msra.gmra.mxu2 %v23790_v36  ;;  %7873 = vmatmul.bf16.vlgmr.msra.gmra.mxu0 %v23790_v36  ;;  %v16136_v35 = vor.u32 %v18978_v22, %v16135_v37  ;;  %v18995_v37 = vld [vmem:[#allocation12 + $0x1f4] sm:$0xf]  ;;  %v16209_v22 = vld [vmem:[#allocation12 + $0x1f8] sm:$0xf0] }
 0x69c   : > { %8354 = vmatpush.bf16.msra.mxu2 %v16016_v42  ;;  %8380 = vmatpush.bf16.msra.mxu0 %v16144_v48  ;;  %v16047_v15 = vld [vmem:[#allocation12 + $0xb0] sm:$0xf]  ;;  %v18956_v54 = vld [vmem:[#allocation12 + $0xb4] sm:$0xf0]  ;;  %v15975_v42 = vld [vmem:[#allocation12 + $0x20] sm:$0xf] }
 0x69d   : > { %v18961_v48 = vld [vmem:[#allocation12 + $0xe4] sm:$0xf] }
 0x69e   : > { %v7398_v10 = vpop.f32.mrf.mxu2  ;;  %v7411_v5 = vpop.f32.mrf.mxu3  ;;  %7911 = vmatpush.bf16.msrb.mxu3 %v15840_v63 }
 0x69f   : > { %v7399_v26 = vadd.f32 %v7398_v10, %v7334_v40  ;;  %v16039_v40 = vld [vmem:[#allocation12 + $0xa0] sm:$0xf]  ;;  %v16192_v10 = vor.u32 %v18992_v4, %v16191_v49  ;;  %v18982_v4 = vld [vmem:[#allocation12 + $0x184] sm:$0xf0] }
 0x6a0   : > { %8355 = vmatpush.bf16.msra.mxu2 %v16008_v13  ;;  %v16040_v62 = vor.u32 %v18954_v31, %v16039_v40  ;;  %v16183_v13 = vld [vmem:[#allocation12 + $0x1c0] sm:$0xf]  ;;  %8381 = vmatpush.bf16.msra.mxu0 %v16136_v35  ;;  %v18970_v40 = vld [vmem:[#allocation12 + $0x124] sm:$0xf0]  ;;  %v16212_v35 = vor.u32 %v18995_v37, %v16209_v22  ;;  %v18985_v22 = vld [vmem:[#allocation12 + $0x1a4] sm:$0xf] }
 0x6a1   : > { %v7412_v18 = vadd.f32 %v7411_v5, %v7399_v26  ;;  %v15976_v5 = vor.u32 %v18938_v25, %v15975_v42  ;;  %v16023_v26 = vld [vmem:[#allocation12 + $0x80] sm:$0xf]  ;;  %v16184_v28 = vor.u32 %v18990_v3, %v16183_v13  ;;  %v18955_v25 = vld [vmem:[#allocation12 + $0xb4] sm:$0xf]  ;;  %v18941_v13 = vld [vmem:[#allocation12 + $0x44] sm:$0xf] }
 0x6a2   : > { %v16024_v55 = vor.u32 %v18950_v47, %v16023_v26  ;;  %v16151_v49 = vld [vmem:[#allocation12 + $0x180] sm:$0xf]  ;;  %v16095_v26 = vld [vmem:[#allocation12 + $0x110] sm:$0xf]  ;;  %v18968_v47 = vld [vmem:[#allocation12 + $0x114] sm:$0xf0] }
 0x6a3   : > { %v7425_v33 = vadd.f32 %v7424_v43, %v7412_v18  ;;  %v16080_v43 = vor.u32 %v18964_v24, %v16079_v19  ;;  %v18963_v18 = vld [vmem:[#allocation12 + $0xf4] sm:$0xf]  ;;  %v18988_v19 = vld [vmem:[#allocation12 + $0x1b4] sm:$0xf0]  ;;  %v15959_v24 = vld [vmem:[#allocation12] sm:$0xf]  ;;  %v16152_v42 = vor.u32 %v18982_v4, %v16151_v49 }
 0x6a4   : > { %8356 = vmatpush.bf16.msra.mxu2 %v16000_v1  ;;  %v16084_v63 = vor.u32 %v18963_v18, %v16081_v32  ;;  %v16127_v1 = vld [vmem:[#allocation12 + $0x150] sm:$0xf]  ;;  %v15993_v3 = vld [vmem:[#allocation12 + $0x48] sm:$0xf0]  ;;  %v18953_v18 = vld [vmem:[#allocation12 + $0xa4] sm:$0xf] }
 0x6a5   : > { %v7438_v59 = vadd.f32 %v23787_v21, %v7425_v33  ;;  %v15992_v21 = vor.u32 %v18942_v45, %v15991_v53  ;;  %v18936_v33 = vld [vmem:[#allocation12 + $0x14] sm:$0xf0]  ;;  %v16128_v56 = vor.u32 %v18976_v7, %v16127_v1  ;;  %v16119_v53 = vld [vmem:[#allocation12 + $0x140] sm:$0xf]  ;;  %v18974_v45 = vld [vmem:[#allocation12 + $0x144] sm:$0xf0] }
 0x6a6   : > { %v7400_v16 = vpop.f32.mrf.mxu2  ;;  %v7413_v14 = vpop.f32.mrf.mxu3  ;;  %v15968_v41 = vor.u32 %v18936_v33, %v15967_v50  ;;  %v16041_v32 = vld [vmem:[#allocation12 + $0xa8] sm:$0xf0]  ;;  %v18993_v50 = vld [vmem:[#allocation12 + $0x1e4] sm:$0xf]  ;;  %v16087_v1 = vld [vmem:[#allocation12 + $0x100] sm:$0xf] }
 0x6a7   : > { %v7442_v46 = vmax.f32 %v7438_v59, 0.0  ;;  %v16175_v59 = vld [vmem:[#allocation12 + $0x1b0] sm:$0xf]  ;;  %v16073_v14 = vld [vmem:[#allocation12 + $0xe8] sm:$0xf0]  ;;  %8382 = vmatpush.bf16.msra.mxu0 %v16128_v56 }
 0x6a8   : > { %8357 = vmatpush.bf16.msra.mxu2 %v15992_v21  ;;  %v16176_v16 = vor.u32 %v18988_v19, %v16175_v59  ;;  %v16076_v29 = vor.u32 %v18961_v48, %v16073_v14  ;;  %v16201_v33 = vld [vmem:[#allocation12 + $0x1e8] sm:$0xf0]  ;;  %v18966_v7 = vld [vmem:[#allocation12 + $0x104] sm:$0xf0]  ;;  %v18939_v59 = vld [vmem:[#allocation12 + $0x34] sm:$0xf] }
 0x6a9   : > { %v7444_v9 = vpack.c.bf16 %v7442_v46, %v7442_v46  ;;  %v15960_v46 = vor.u32 %v18934_v52, %v15959_v24  ;;  %v16088_v56 = vor.u32 %v18966_v7, %v16087_v1  ;;  %v15985_v19 = vld [vmem:[#allocation12 + $0x38] sm:$0xf0]  ;;  %v18979_v48 = vld [vmem:[#allocation12 + $0x174] sm:$0xf]  ;;  %v15961_v4 = vld [vmem:[#allocation12 + $0x8] sm:$0xf0] }
 0x6aa   : > { %v16145_v14 = vld [vmem:[#allocation12 + $0x178] sm:$0xf0]  ;;  %v18951_v24 = vld [vmem:[#allocation12 + $0x94] sm:$0xf]  ;;  %v16105_v1 = vld [vmem:[#allocation12 + $0x128] sm:$0xf0] }
 0x6ab   : > { %7860 = vmatmul.bf16.vlgmr.msra.gmra.mxu3 %v7444_v9  ;;  %7886 = vmatmul.bf16.vlgmr.msra.gmra.mxu1 %v7444_v9  ;;  %v16033_v52 = vld [vmem:[#allocation12 + $0x98] sm:$0xf0] }
 0x6ac   : > { %7899 = vmatmul.bf16.vlgmr.msrb.gmra.mxu2 %v23790_v36  ;;  %7925 = vmatmul.bf16.vlgmr.msrb.gmra.mxu0 %v23790_v36  ;;  %v16048_v36 = vor.u32 %v18956_v54, %v16047_v15  ;;  %v16160_v15 = vor.u32 %v18984_v0, %v16159_v11  ;;  %v16057_v54 = vld [vmem:[#allocation12 + $0xc8] sm:$0xf0]  ;;  %v15969_v11 = vld [vmem:[#allocation12 + $0x18] sm:$0xf0]  ;;  %v18975_v0 = vld [vmem:[#allocation12 + $0x154] sm:$0xf] }
 0x6ad   : > { %8367 = vmatpush.bf16.msra.mxu3 %v16080_v43  ;;  %8393 = vmatpush.bf16.msra.mxu1 %v16208_v27  ;;  %v16120_v43 = vor.u32 %v18974_v45, %v16119_v53  ;;  %v16167_v27 = vld [vmem:[#allocation12 + $0x1a0] sm:$0xf]  ;;  %v16036_v53 = vor.u32 %v18951_v24, %v16033_v52  ;;  %v18991_v45 = vld [vmem:[#allocation12 + $0x1d4] sm:$0xf]  ;;  %v16097_v24 = vld [vmem:[#allocation12 + $0x118] sm:$0xf0] }
 0x6ae   : > { %8358 = vmatpush.bf16.msra.mxu2 %v15984_v61  ;;  %v16168_v60 = vor.u32 %v18986_v30, %v16167_v27  ;;  %v16009_v61 = vld [vmem:[#allocation12 + $0x68] sm:$0xf0]  ;;  %v18977_v30 = vld [vmem:[#allocation12 + $0x164] sm:$0xf] }
 0x6af   : > { %8383 = vmatpush.bf16.msra.mxu0 %v16120_v43  ;;  %v15977_v27 = vld [vmem:[#allocation12 + $0x28] sm:$0xf0] }
 0x6b1   : > { %8368 = vmatpush.bf16.msra.mxu3 %v16072_v58  ;;  %8394 = vmatpush.bf16.msra.mxu1 %v16200_v57  ;;  %v16068_v58 = vor.u32 %v18959_v51, %v16065_v39  ;;  %v18972_v57 = vld [vmem:[#allocation12 + $0x134] sm:$0xf0]  ;;  %v18949_v51 = vld [vmem:[#allocation12 + $0x84] sm:$0xf]  ;;  %v16025_v39 = vld [vmem:[#allocation12 + $0x88] sm:$0xf0] }
 0x6b2   : > { %8359 = vmatpush.bf16.msra.mxu2 %v15976_v5  ;;  %v16112_v6 = vor.u32 %v18972_v57, %v16111_v44  ;;  %v18989_v57 = vld [vmem:[#allocation12 + $0x1c4] sm:$0xf] }
 0x6b4   : > { %8384 = vmatpush.bf16.msra.mxu0 %v16112_v6  ;;  %v16185_v6 = vld [vmem:[#allocation12 + $0x1c8] sm:$0xf0] }
 0x6b5   : > { %8369 = vmatpush.bf16.msra.mxu3 %v16064_v23  ;;  %8395 = vmatpush.bf16.msra.mxu1 %v16192_v10  ;;  %v16012_v23 = vor.u32 %v18945_v12, %v16009_v61  ;;  %v16049_v10 = vld [vmem:[#allocation12 + $0xb8] sm:$0xf0]  ;;  %v18935_v12 = vld [vmem:[#allocation12 + $0x14] sm:$0xf] }
 0x6b6   : > { %8360 = vmatpush.bf16.msra.mxu2 %v15968_v41  ;;  %v16052_v5 = vor.u32 %v18955_v25, %v16049_v10  ;;  %v16204_v41 = vor.u32 %v18993_v50, %v16201_v33  ;;  %v16121_v25 = vld [vmem:[#allocation12 + $0x148] sm:$0xf0]  ;;  %v18983_v50 = vld [vmem:[#allocation12 + $0x194] sm:$0xf]  ;;  %v18969_v33 = vld [vmem:[#allocation12 + $0x124] sm:$0xf] }
 0x6b9   : > { %8370 = vmatpush.bf16.msra.mxu3 %v16056_v2  ;;  %8396 = vmatpush.bf16.msra.mxu1 %v16184_v28  ;;  %v18957_v2 = vld [vmem:[#allocation12 + $0xc4] sm:$0xf]  ;;  %v15996_v28 = vor.u32 %v18941_v13, %v15993_v3  ;;  %v16113_v3 = vld [vmem:[#allocation12 + $0x138] sm:$0xf0] }
 0x6ba   : > { %8361 = vmatpush.bf16.msra.mxu2 %v15960_v46  ;;  %v16060_v31 = vor.u32 %v18957_v2, %v16057_v54  ;;  %v16148_v46 = vor.u32 %v18979_v48, %v16145_v14  ;;  %v16129_v2 = vld [vmem:[#allocation12 + $0x158] sm:$0xf0]  ;;  %v16153_v48 = vld [vmem:[#allocation12 + $0x188] sm:$0xf0]  ;;  %v18967_v14 = vld [vmem:[#allocation12 + $0x114] sm:$0xf] }
 0x6bb   : > { %7912 = vmatmul.bf16.vlgmr.msrb.gmra.mxu3 %v7444_v9  ;;  %7938 = vmatmul.bf16.vlgmr.msrb.gmra.mxu1 %v7444_v9  ;;  %v18947_v9 = vld [vmem:[#allocation12 + $0x74] sm:$0xf]  ;;  %v16132_v54 = vor.u32 %v18975_v0, %v16129_v2 }
 0x6bc   : > { %v16020_v21 = vor.u32 %v18947_v9, %v16017_v20  ;;  %v16193_v9 = vld [vmem:[#allocation12 + $0x1d8] sm:$0xf0]  ;;  %v18937_v20 = vld [vmem:[#allocation12 + $0x24] sm:$0xf] }
 0x6bd   : > { %8371 = vmatpush.bf16.msra.mxu3 %v16048_v36  ;;  %8397 = vmatpush.bf16.msra.mxu1 %v16176_v16  ;;  %v16103_v36 = vld [vmem:[#allocation12 + $0x120] sm:$0xf]  ;;  %v15988_v16 = vor.u32 %v18939_v59, %v15985_v19  ;;  %v16196_v43 = vor.u32 %v18991_v45, %v16193_v9  ;;  %v16108_v59 = vor.u32 %v18969_v33, %v16105_v1  ;;  %v18981_v19 = vld [vmem:[#allocation12 + $0x184] sm:$0xf] }
 0x6be   : > { %8406 = vmatpush.bf16.msrb.mxu2 %v16020_v21  ;;  %v15980_v21 = vor.u32 %v18937_v20, %v15977_v27  ;;  %v18965_v20 = vld [vmem:[#allocation12 + $0x104] sm:$0xf]  ;;  %v16089_v27 = vld [vmem:[#allocation12 + $0x108] sm:$0xf0] }
 0x6bf   : > { %v19213_v33 = vld [vmem:[#allocation15 + $0x6bc] sm:$0xf0] }
 0x6c1   : > { %8372 = vmatpush.bf16.msra.mxu3 %v16040_v62  ;;  %8398 = vmatpush.bf16.msra.mxu1 %v16168_v60  ;;  %v16104_v62 = vor.u32 %v18970_v40, %v16103_v36  ;;  %v16137_v60 = vld [vmem:[#allocation12 + $0x168] sm:$0xf0]  ;;  %v23801_v36 = vld [vmem:[%s24384_s12] sm:$0xf] }
 0x6c2   : > { %8407 = vmatpush.bf16.msrb.mxu2 %v16012_v23  ;;  %v16140_v44 = vor.u32 %v18977_v30, %v16137_v60  ;;  %v16188_v23 = vor.u32 %v18989_v57, %v16185_v6  ;;  %v7834_v30 = vperm.slane %v23801_v36, 3  ;;  %v19117_v60 = vld [vmem:[#allocation15 + $0x3bc] sm:$0xf0]  ;;  %v7833_v2 = vperm.slane %v23801_v36, 2 }
 0x6c3   : > { %8385 = vmatpush.bf16.msra.mxu0 %v16104_v62  ;;  %v18987_v62 = vld [vmem:[#allocation12 + $0x1b4] sm:$0xf] }
 0x6c5   : > { %8373 = vmatpush.bf16.msra.mxu3 %v16032_v38  ;;  %8399 = vmatpush.bf16.msra.mxu1 %v16160_v15  ;;  %v16004_v38 = vor.u32 %v18943_v34, %v16001_v17  ;;  %v15972_v15 = vor.u32 %v18935_v12, %v15969_v11  ;;  %v16177_v34 = vld [vmem:[#allocation12 + $0x1b8] sm:$0xf0]  ;;  %v18933_v17 = vld [vmem:[#allocation12 + $0x4] sm:$0xf] }
 0x6c6   : > { %v19085_v11 = vld [vmem:[#allocation15 + $0x2bc] sm:$0xf0] }
 0x6c7   : > { %8408 = vmatpush.bf16.msrb.mxu2 %v16004_v38  ;;  %v16180_v38 = vor.u32 %v18987_v62, %v16177_v34  ;;  %v19237_v34 = vld [vmem:[#allocation15 + $0x784] sm:$0xf] }
 0x6c9   : > { %8374 = vmatpush.bf16.msra.mxu3 %v16024_v55  ;;  %8400 = vmatpush.bf16.msra.mxu1 %v16152_v42  ;;  %v16096_v55 = vor.u32 %v18968_v47, %v16095_v26  ;;  %v18973_v42 = vld [vmem:[#allocation12 + $0x144] sm:$0xf]  ;;  %v16169_v26 = vld [vmem:[#allocation12 + $0x1a8] sm:$0xf0] }
 0x6ca   : > { %v16124_v37 = vor.u32 %v18973_v42, %v16121_v25  ;;  %v16172_v13 = vor.u32 %v18985_v22, %v16169_v26  ;;  %v19109_v25 = vld [vmem:[#allocation15 + $0x384] sm:$0xf] }
 0x6cb   : > { %8386 = vmatpush.bf16.msra.mxu0 %v16096_v55  ;;  %8409 = vmatpush.bf16.msrb.mxu2 %v15996_v28  ;;  %v7831_v55 = vperm.slane %v23801_v36, 0  ;;  %v19221_v26 = vld [vmem:[#allocation15 + $0x704] sm:$0xf] }
 0x6cd   : > { %8419 = vmatpush.bf16.msrb.mxu3 %v16084_v63  ;;  %8445 = vmatpush.bf16.msrb.mxu1 %v16212_v35  ;;  %v16044_v63 = vor.u32 %v18953_v18, %v16041_v32  ;;  %v18971_v35 = vld [vmem:[#allocation12 + $0x134] sm:$0xf] }
 0x6ce   : > { %v16116_v32 = vor.u32 %v18971_v35, %v16113_v3  ;;  %v17113_v35 = vld [vmem:[#allocation15 + $0x740] sm:$0xf0] }
 0x6cf   : > { %8387 = vmatpush.bf16.msra.mxu0 %v16088_v56  ;;  %8410 = vmatpush.bf16.msrb.mxu2 %v15988_v16 }
 0x6d1   : > { %8420 = vmatpush.bf16.msrb.mxu3 %v16076_v29  ;;  %8446 = vmatpush.bf16.msrb.mxu1 %v16204_v41 }
 0x6d3   : > { %8432 = vmatpush.bf16.msrb.mxu0 %v16148_v46  ;;  %8411 = vmatpush.bf16.msrb.mxu2 %v15980_v21  ;;  %v16663_v21 = vld [vmem:[#allocation15 + $0x380] sm:$0xf] }
 0x6d5   : > { %8421 = vmatpush.bf16.msrb.mxu3 %v16068_v58  ;;  %8447 = vmatpush.bf16.msrb.mxu1 %v16196_v43  ;;  %v16028_v58 = vor.u32 %v18949_v51, %v16025_v39  ;;  %v16100_v43 = vor.u32 %v18967_v14, %v16097_v24  ;;  %v16664_v51 = vor.u32 %v19117_v60, %v16663_v21  ;;  %v16599_v39 = vld [vmem:[#allocation15 + $0x300] sm:$0xf]  ;;  %v16601_v14 = vld [vmem:[#allocation15 + $0x340] sm:$0xf0] }
 0x6d6   : > { %v16983_v24 = vld [vmem:[#allocation15 + $0x600] sm:$0xf]  ;;  %v19189_v21 = vld [vmem:[#allocation15 + $0x604] sm:$0xf] }
 0x6d7   : > { %8433 = vmatpush.bf16.msrb.mxu0 %v16140_v44  ;;  %8412 = vmatpush.bf16.msrb.mxu2 %v15972_v15  ;;  %v19101_v44 = vld [vmem:[#allocation15 + $0x33c] sm:$0xf0]  ;;  %v16985_v60 = vld [vmem:[#allocation15 + $0x640] sm:$0xf0] }
 0x6d8   : > { %v16600_v6 = vor.u32 %v19101_v44, %v16599_v39  ;;  %v19077_v44 = vld [vmem:[#allocation15 + $0x284] sm:$0xf] }
 0x6d9   : > { %8422 = vmatpush.bf16.msrb.mxu3 %v16060_v31  ;;  %8448 = vmatpush.bf16.msrb.mxu1 %v16188_v23  ;;  %v7832_v31 = vperm.slane %v23801_v36, 1  ;;  %v16535_v23 = vld [vmem:[#allocation15 + $0x280] sm:$0xf] }
 0x6da   : > { %v17111_v36 = vld [vmem:[#allocation15 + $0x700] sm:$0xf] }
 0x6db   : > { %8434 = vmatpush.bf16.msrb.mxu0 %v16132_v54  ;;  %v17175_v54 = vld [vmem:[#allocation15 + $0x780] sm:$0xf] }
 0x6dd   : > { %8423 = vmatpush.bf16.msrb.mxu3 %v16052_v5  ;;  %v15964_v5 = vor.u32 %v18933_v17, %v15961_v4  ;;  %8449 = vmatpush.bf16.msrb.mxu1 %v16180_v38  ;;  %v17177_v17 = vld [vmem:[#allocation15 + $0x7c0] sm:$0xf0]  ;;  %v16471_v38 = vld [vmem:[#allocation15 + $0x200] sm:$0xf] }
 0x6de   : > { %v19069_v4 = vld [vmem:[#allocation15 + $0x23c] sm:$0xf0]  ;;  %v17180_v42 = vor.u32 %v19237_v34, %v17177_v17 }
 0x6df   : > { %8413 = vmatpush.bf16.msrb.mxu2 %v15964_v5  ;;  %8435 = vmatpush.bf16.msrb.mxu0 %v16124_v37  ;;  %v16665_v37 = vld [vmem:[#allocation15 + $0x3c0] sm:$0xf0]  ;;  %v16472_v3 = vor.u32 %v19069_v4, %v16471_v38  ;;  %v16215_v17 = vld [vmem:[#allocation15] sm:$0xf] }
 0x6e0   : > { %v19005_v38 = vld [vmem:[#allocation15 + $0x3c] sm:$0xf0] }
 0x6e1   : > { %8424 = vmatpush.bf16.msrb.mxu3 %v16044_v63  ;;  %v16161_v63 = vld [vmem:[#allocation12 + $0x198] sm:$0xf0]  ;;  %8450 = vmatpush.bf16.msrb.mxu1 %v16172_v13 }
 0x6e2   : > { %v16164_v41 = vor.u32 %v18983_v50, %v16161_v63  ;;  %v16407_v50 = vld [vmem:[#allocation15 + $0x180] sm:$0xf] }
 0x6e3   : > { %8436 = vmatpush.bf16.msrb.mxu0 %v16116_v32  ;;  %v19053_v63 = vld [vmem:[#allocation15 + $0x1bc] sm:$0xf0] }
 0x6e5   : > { %8425 = vmatpush.bf16.msrb.mxu3 %v16036_v53  ;;  %8451 = vmatpush.bf16.msrb.mxu1 %v16164_v41  ;;  %v16156_v53 = vor.u32 %v18981_v19, %v16153_v48  ;;  %v19093_v41 = vld [vmem:[#allocation15 + $0x304] sm:$0xf] }
 0x6e6   : > { %v17049_v19 = vld [vmem:[#allocation15 + $0x6c0] sm:$0xf0]  ;;  %v16604_v39 = vor.u32 %v19093_v41, %v16601_v14 }
 0x6e7   : > { %8437 = vmatpush.bf16.msrb.mxu0 %v16108_v59  ;;  %v19205_v59 = vld [vmem:[#allocation15 + $0x684] sm:$0xf] }
 0x6e9   : > { %8426 = vmatpush.bf16.msrb.mxu3 %v16028_v58  ;;  %8452 = vmatpush.bf16.msrb.mxu1 %v16156_v53  ;;  %v16092_v58 = vor.u32 %v18965_v20, %v16089_v27  ;;  %v16343_v53 = vld [vmem:[#allocation15 + $0x100] sm:$0xf] }
 0x6eb   : > { %8438 = vmatpush.bf16.msrb.mxu0 %v16100_v43  ;;  %v19197_v43 = vld [vmem:[#allocation15 + $0x63c] sm:$0xf0] }
 0x6ef   : > { %8439 = vmatpush.bf16.msrb.mxu0 %v16092_v58  ;;  %v16537_v58 = vld [vmem:[#allocation15 + $0x2c0] sm:$0xf0] }
 0x718   : > { %v7874_v29 = vpop.f32.mrf.mxu0 }
 0x719   : > { %v7875_v10 = vadd.f32 %v7874_v29, %v7832_v31  ;;  %v16536_v31 = vor.u32 %v19085_v11, %v16535_v23  ;;  %v16988_v23 = vor.u32 %v19189_v21, %v16985_v60  ;;  %v19021_v11 = vld [vmem:[#allocation15 + $0xbc] sm:$0xf0]  ;;  %v19141_v60 = vld [vmem:[#allocation15 + $0x484] sm:$0xf] }
 0x71a   : > { %v19149_v21 = vld [vmem:[#allocation15 + $0x4bc] sm:$0xf0] }
 0x71e   : > { %v7848_v61 = vpop.f32.mrf.mxu2 }
 0x71f   : > { %v7849_v56 = vadd.f32 %v7848_v61, %v7831_v55  ;;  %v17116_v55 = vor.u32 %v19221_v26, %v17113_v35  ;;  %v16607_v26 = vld [vmem:[#allocation15 + $0x308] sm:$0xf] }
 0x720   : > { %v7876_v40 = vpop.f32.mrf.mxu0  ;;  %v19102_v35 = vld [vmem:[#allocation15 + $0x344] sm:$0xf0] }
 0x721   : > { %v19245_v40 = vld [vmem:[#allocation15 + $0x7bc] sm:$0xf0] }
 0x722   : > { %v17176_v62 = vor.u32 %v19245_v40, %v17175_v54  ;;  %v19061_v40 = vld [vmem:[#allocation15 + $0x204] sm:$0xf] }
 0x726   : > { %v7850_v49 = vpop.f32.mrf.mxu2 }
 0x728   : > { %v7887_v47 = vpop.f32.mrf.mxu1 }
 0x729   : > { %v23805_v28 = vadd.f32 %v7887_v47, %v7875_v10  ;;  %v7926_v18 = vpop.f32.mrf.mxu0  ;;  %v19229_v10 = vld [vmem:[#allocation15 + $0x73c] sm:$0xf0] }
 0x72a   : > { %v7927_v12 = vadd.f32 %v7926_v18, %v7834_v30  ;;  %v17112_v22 = vor.u32 %v19229_v10, %v17111_v36  ;;  %v17047_v18 = vld [vmem:[#allocation15 + $0x680] sm:$0xf]  ;;  %v19045_v36 = vld [vmem:[#allocation15 + $0x184] sm:$0xf] }
 0x72b   : > { %v7961_v7 = vpack.c.bf16 %v23805_v28, %v23805_v28  ;;  %v7947_v47 = vrot.slane %v23805_v28, 7  ;;  %v19037_v30 = vld [vmem:[#allocation15 + $0x13c] sm:$0xf0]  ;;  %v16409_v10 = vld [vmem:[#allocation15 + $0x1c0] sm:$0xf0] }
 0x72d   : > { %8375 = vmatmul.bf16.vlgmr.msra.gmra.mxu3 %v7961_v7 }
 0x72e   : > { %v7861_v16 = vpop.f32.mrf.mxu3  ;;  %10009 = vmatpush.bf16.msra.mxu3 %v17176_v62 }
 0x72f   : > { %v23809_v52 = vadd.f32 %v7861_v16, %v7849_v56  ;;  %v7900_v29 = vpop.f32.mrf.mxu2  ;;  %v17048_v56 = vor.u32 %v19213_v33, %v17047_v18  ;;  %v16281_v18 = vld [vmem:[#allocation15 + $0xc0] sm:$0xf0]  ;;  %v19110_v33 = vld [vmem:[#allocation15 + $0x38c] sm:$0xf] }
 0x730   : > { %v7889_v46 = vpop.f32.mrf.mxu1  ;;  %v7901_v5 = vadd.f32 %v7900_v29, %v7833_v2  ;;  %v16921_v2 = vld [vmem:[#allocation15 + $0x5c0] sm:$0xf0]  ;;  %v16543_v29 = vld [vmem:[#allocation15 + $0x288] sm:$0xf] }
 0x731   : > { %v23813_v45 = vpack.c.bf16 %v23809_v52, %v23809_v52  ;;  %v7928_v9 = vpop.f32.mrf.mxu0  ;;  %v16408_v46 = vor.u32 %v19053_v63, %v16407_v50  ;;  %v7951_v20 = vsel %vm7950_vm7, %v23809_v52, %v7947_v47  ;;  %v16919_v52 = vld [vmem:[#allocation15 + $0x580] sm:$0xf]  ;;  %v19029_v47 = vld [vmem:[#allocation15 + $0x104] sm:$0xf] }
 0x732   : > { %10010 = vmatpush.bf16.msra.mxu3 %v17112_v22  ;;  %v17052_v9 = vor.u32 %v19205_v59, %v17049_v19  ;;  %v16412_v22 = vor.u32 %v19045_v36, %v16409_v10  ;;  %v18997_v50 = vld [vmem:[#allocation15 + $0x4] sm:$0xf]  ;;  %v16609_v59 = vld [vmem:[#allocation15 + $0x348] sm:$0xf0] }
 0x733   : > { %8362 = vmatmul.bf16.vlgmr.msra.gmra.mxu2 %v23813_v45  ;;  %v16217_v63 = vld [vmem:[#allocation15 + $0x40] sm:$0xf0]  ;;  %v17185_v36 = vld [vmem:[#allocation15 + $0x7c8] sm:$0xf0] }
 0x734   : > { %9996 = vmatpush.bf16.msra.mxu2 %v16664_v51 }
 0x736   : > { %v7863_v57 = vpop.f32.mrf.mxu3  ;;  %10011 = vmatpush.bf16.msra.mxu3 %v17048_v56  ;;  %v19094_v56 = vld [vmem:[#allocation15 + $0x30c] sm:$0xf] }
 0x737   : > { %v7902_v61 = vpop.f32.mrf.mxu2  ;;  %v16984_v57 = vor.u32 %v19197_v43, %v16983_v24  ;;  %v16612_v19 = vor.u32 %v19094_v56, %v16609_v59  ;;  %v16857_v24 = vld [vmem:[#allocation15 + $0x540] sm:$0xf0]  ;;  %v19078_v43 = vld [vmem:[#allocation15 + $0x28c] sm:$0xf] }
 0x738   : > { %v7939_v0 = vpop.f32.mrf.mxu1  ;;  %9997 = vmatpush.bf16.msra.mxu2 %v16600_v6  ;;  %v19181_v6 = vld [vmem:[#allocation15 + $0x5bc] sm:$0xf0]  ;;  %v16344_v61 = vor.u32 %v19037_v30, %v16343_v53  ;;  %v16289_v56 = vld [vmem:[#allocation15 + $0xc8] sm:$0xf0] }
 0x739   : > { %v7940_v15 = vadd.f32 %v7939_v0, %v7927_v12  ;;  %v19173_v0 = vld [vmem:[#allocation15 + $0x584] sm:$0xf]  ;;  %v16920_v54 = vor.u32 %v19181_v6, %v16919_v52  ;;  %v19062_v52 = vld [vmem:[#allocation15 + $0x20c] sm:$0xf] }
 0x73a   : > { %10012 = vmatpush.bf16.msra.mxu3 %v16984_v57  ;;  %v16924_v34 = vor.u32 %v19173_v0, %v16921_v2  ;;  %v19070_v57 = vld [vmem:[#allocation15 + $0x244] sm:$0xf0]  ;;  %v19125_v0 = vld [vmem:[#allocation15 + $0x404] sm:$0xf] }
 0x73b   : > { %v23818_v49 = vpack.c.bf16 %v7940_v15, %v7940_v15  ;;  %v7949_v28 = vrot.slane %v7940_v15, 5  ;;  %v16540_v15 = vor.u32 %v19077_v44, %v16537_v58  ;;  %v16479_v58 = vld [vmem:[#allocation15 + $0x208] sm:$0xf]  ;;  %v16729_v2 = vld [vmem:[#allocation15 + $0x440] sm:$0xf0] }
 0x73c   : > { %9998 = vmatpush.bf16.msra.mxu2 %v16536_v31  ;;  %v16473_v31 = vld [vmem:[#allocation15 + $0x240] sm:$0xf0]  ;;  %v16480_v6 = vor.u32 %v19070_v57, %v16479_v58  ;;  %v16929_v57 = vld [vmem:[#allocation15 + $0x5c8] sm:$0xf0] }
 0x73d   : > { %8401 = vmatmul.bf16.vlgmr.msra.gmra.mxu1 %v23818_v49  ;;  %8427 = vmatmul.bf16.vlgmr.msrb.gmra.mxu3 %v7961_v7  ;;  %v16668_v7 = vor.u32 %v19109_v25, %v16665_v37  ;;  %v16476_v4 = vor.u32 %v19061_v40, %v16473_v31  ;;  %v19118_v25 = vld [vmem:[#allocation15 + $0x3c4] sm:$0xf0] }
 0x73e   : > { %v7913_v13 = vpop.f32.mrf.mxu3  ;;  %10035 = vmatpush.bf16.msra.mxu1 %v17180_v42  ;;  %v16671_v42 = vld [vmem:[#allocation15 + $0x388] sm:$0xf]  ;;  %10013 = vmatpush.bf16.msra.mxu3 %v16920_v54 }
 0x73f   : > { %v7914_v32 = vadd.f32 %v7913_v13, %v7901_v5  ;;  %v16216_v5 = vor.u32 %v19005_v38, %v16215_v17  ;;  %v16672_v37 = vor.u32 %v19118_v25, %v16671_v42  ;;  %v16345_v13 = vld [vmem:[#allocation15 + $0x140] sm:$0xf0]  ;;  %v16415_v54 = vld [vmem:[#allocation15 + $0x188] sm:$0xf]  ;;  %v19046_v17 = vld [vmem:[#allocation15 + $0x18c] sm:$0xf] }
 0x740   : > { %v7941_v1 = vpop.f32.mrf.mxu1  ;;  %9999 = vmatpush.bf16.msra.mxu2 %v16472_v3  ;;  %v16608_v3 = vor.u32 %v19102_v35, %v16607_v26  ;;  %v19054_v40 = vld [vmem:[#allocation15 + $0x1c4] sm:$0xf0]  ;;  %v16417_v38 = vld [vmem:[#allocation15 + $0x1c8] sm:$0xf0] }
 0x741   : > { %v7948_v48 = vrot.slane %v7914_v32, 6  ;;  %v23823_v16 = vpack.c.bf16 %v7914_v32, %v7914_v32  ;;  %v16673_v1 = vld [vmem:[#allocation15 + $0x3c8] sm:$0xf0]  ;;  %v17183_v31 = vld [vmem:[#allocation15 + $0x788] sm:$0xf]  ;;  %v16420_v42 = vor.u32 %v19046_v17, %v16417_v38 }
 0x742   : > { %10036 = vmatpush.bf16.msra.mxu1 %v17116_v55  ;;  %v16348_v55 = vor.u32 %v19029_v47, %v16345_v13  ;;  %v16676_v41 = vor.u32 %v19110_v33, %v16673_v1  ;;  %v19238_v25 = vld [vmem:[#allocation15 + $0x78c] sm:$0xf]  ;;  %v19230_v35 = vld [vmem:[#allocation15 + $0x744] sm:$0xf0] }
 0x743   : > { %v7953_v27 = vsel %vm7952_vm8, %v7948_v48, %v7949_v28  ;;  %8388 = vmatmul.bf16.vlgmr.msra.gmra.mxu0 %v23823_v16  ;;  %8414 = vmatmul.bf16.vlgmr.msrb.gmra.mxu2 %v23813_v45  ;;  %v16279_v45 = vld [vmem:[#allocation15 + $0x80] sm:$0xf]  ;;  %v17188_v10 = vor.u32 %v19238_v25, %v17185_v36  ;;  %v19030_v47 = vld [vmem:[#allocation15 + $0x10c] sm:$0xf]  ;;  %v17055_v33 = vld [vmem:[#allocation15 + $0x688] sm:$0xf] }
 0x744   : > { %v7955_v51 = vsel %vm7954_vm9, %v7951_v20, %v7953_v27  ;;  %10022 = vmatpush.bf16.msra.mxu0 %v16668_v7  ;;  %10000 = vmatpush.bf16.msra.mxu2 %v16408_v46  ;;  %v16280_v62 = vor.u32 %v19021_v11, %v16279_v45  ;;  %v16220_v7 = vor.u32 %v18997_v50, %v16217_v63  ;;  %v16855_v28 = vld [vmem:[#allocation15 + $0x500] sm:$0xf]  ;;  %v19086_v46 = vld [vmem:[#allocation15 + $0x2c4] sm:$0xf0]  ;;  %v16545_v20 = vld [vmem:[#allocation15 + $0x2c8] sm:$0xf0] }
 0x745   : > { %7959 = vst.msk [vmem:[%s847_s6] sm:$0xf] %vm23829_vm10, %v7955_v51  ;;  %v19165_v48 = vld [vmem:[#allocation15 + $0x53c] sm:$0xf0]  ;;  %v16548_v30 = vor.u32 %v19078_v43, %v16545_v20  ;;  %v16793_v51 = vld [vmem:[#allocation15 + $0x4c0] sm:$0xf0] }
 0x746   : > { %v7915_v12 = vpop.f32.mrf.mxu3  ;;  %10037 = vmatpush.bf16.msra.mxu1 %v17052_v9  ;;  %v16856_v14 = vor.u32 %v19165_v48, %v16855_v28  ;;  %v16544_v9 = vor.u32 %v19086_v46, %v16543_v29  ;;  %v16791_v27 = vld [vmem:[#allocation15 + $0x480] sm:$0xf]  ;;  %v16796_v44 = vor.u32 %v19141_v60, %v16793_v51  ;;  %v16353_v13 = vld [vmem:[#allocation15 + $0x148] sm:$0xf0]  ;;  %v16287_v50 = vld [vmem:[#allocation15 + $0x88] sm:$0xf] }
 0x747   : > { %v16481_v12 = vld [vmem:[#allocation15 + $0x248] sm:$0xf0]  ;;  %v19133_v45 = vld [vmem:[#allocation15 + $0x43c] sm:$0xf0]  ;;  %v19022_v63 = vld [vmem:[#allocation15 + $0xc4] sm:$0xf0] }
 0x748   : > { %10023 = vmatpush.bf16.msra.mxu0 %v16604_v39  ;;  %10001 = vmatpush.bf16.msra.mxu2 %v16344_v61  ;;  %v16792_v39 = vor.u32 %v19149_v21, %v16791_v27  ;;  %v16727_v61 = vld [vmem:[#allocation15 + $0x400] sm:$0xf]  ;;  %v16288_v1 = vor.u32 %v19022_v63, %v16287_v50  ;;  %v19206_v28 = vld [vmem:[#allocation15 + $0x68c] sm:$0xf]  ;;  %v16991_v29 = vld [vmem:[#allocation15 + $0x608] sm:$0xf] }
 0x749   : > { %10014 = vmatpush.bf16.msra.mxu3 %v16856_v14  ;;  %v16728_v11 = vor.u32 %v19133_v45, %v16727_v61  ;;  %v17057_v48 = vld [vmem:[#allocation15 + $0x6c8] sm:$0xf0]  ;;  %v16223_v14 = vld [vmem:[#allocation15 + $0x8] sm:$0xf]  ;;  %v16681_v50 = vld [vmem:[#allocation15 + $0x3d0] sm:$0xf0] }
 0x74a   : > { %10038 = vmatpush.bf16.msra.mxu1 %v16988_v23  ;;  %v16484_v23 = vor.u32 %v19062_v52, %v16481_v12  ;;  %v16225_v43 = vld [vmem:[#allocation15 + $0x48] sm:$0xf0]  ;;  %v16927_v51 = vld [vmem:[#allocation15 + $0x588] sm:$0xf] }
 0x74b   : > { %v16993_v21 = vld [vmem:[#allocation15 + $0x648] sm:$0xf0]  ;;  %v19166_v12 = vld [vmem:[#allocation15 + $0x544] sm:$0xf0] }
 0x74c   : > { %10024 = vmatpush.bf16.msra.mxu0 %v16540_v15  ;;  %10002 = vmatpush.bf16.msra.mxu2 %v16280_v62  ;;  %v16732_v15 = vor.u32 %v19125_v0, %v16729_v2  ;;  %v16416_v62 = vor.u32 %v19054_v40, %v16415_v54  ;;  %v19158_v61 = vld [vmem:[#allocation15 + $0x50c] sm:$0xf]  ;;  %v8028_v2 = vld [vmem:[#allocation14] sm:$0x3]  ;;  %v19150_v54 = vld [vmem:[#allocation15 + $0x4c4] sm:$0xf0] }
 0x74d   : > { %8453 = vmatmul.bf16.vlgmr.msrb.gmra.mxu1 %v23818_v49  ;;  %v19013_v49 = vld [vmem:[#allocation15 + $0x84] sm:$0xf]  ;;  %10015 = vmatpush.bf16.msra.mxu3 %v16792_v39  ;;  %v19182_v39 = vld [vmem:[#allocation15 + $0x5c4] sm:$0xf0]  ;;  %v16865_v45 = vld [vmem:[#allocation15 + $0x548] sm:$0xf0] }
 0x74e   : > { %10039 = vmatpush.bf16.msra.mxu1 %v16924_v34  ;;  %v16284_v32 = vor.u32 %v19013_v49, %v16281_v18  ;;  %v19246_v34 = vld [vmem:[#allocation15 + $0x7c4] sm:$0xf0]  ;;  %v19222_v49 = vld [vmem:[#allocation15 + $0x70c] sm:$0xf]  ;;  %v16928_v58 = vor.u32 %v19182_v39, %v16927_v51  ;;  %v16868_v0 = vor.u32 %v19158_v61, %v16865_v45  ;;  %v8350_v17 = vperm.slane %v8028_v2, 0 }
 0x74f   : > { %v17121_v18 = vld [vmem:[#allocation15 + $0x748] sm:$0xf0]  ;;  %v19134_v25 = vld [vmem:[#allocation15 + $0x444] sm:$0xf0]  ;;  %v16487_v51 = vld [vmem:[#allocation15 + $0x210] sm:$0xf] }
 0x750   : > { %10025 = vmatpush.bf16.msra.mxu0 %v16476_v4  ;;  %10003 = vmatpush.bf16.msra.mxu2 %v16216_v5  ;;  %v17184_v4 = vor.u32 %v19246_v34, %v17183_v31  ;;  %v16351_v5 = vld [vmem:[#allocation15 + $0x108] sm:$0xf]  ;;  %v19142_v40 = vld [vmem:[#allocation15 + $0x48c] sm:$0xf]  ;;  %v19071_v39 = vld [vmem:[#allocation15 + $0x24c] sm:$0xf0] }
 0x751   : > { %10016 = vmatpush.bf16.msra.mxu3 %v16728_v11  ;;  %v16801_v34 = vld [vmem:[#allocation15 + $0x4c8] sm:$0xf0] }
 0x752   : > { %v16804_v38 = vor.u32 %v19142_v40, %v16801_v34  ;;  %v19126_v36 = vld [vmem:[#allocation15 + $0x40c] sm:$0xf]  ;;  %v17193_v34 = vld [vmem:[#allocation15 + $0x7d0] sm:$0xf0] }
 0x753   : > { %8440 = vmatmul.bf16.vlgmr.msrb.gmra.mxu0 %v23823_v16  ;;  %v19157_v16 = vld [vmem:[#allocation15 + $0x504] sm:$0xf] }
 0x754   : > { %10048 = vmatpush.bf16.msrb.mxu2 %v16672_v37  ;;  %10026 = vmatpush.bf16.msra.mxu0 %v16412_v22  ;;  %v16860_v53 = vor.u32 %v19157_v16, %v16857_v24  ;;  %v19038_v37 = vld [vmem:[#allocation15 + $0x144] sm:$0xf0]  ;;  %v17060_v16 = vor.u32 %v19206_v28, %v17057_v48  ;;  %v16617_v28 = vld [vmem:[#allocation15 + $0x350] sm:$0xf0] }
 0x755   : > { %10061 = vmatpush.bf16.msrb.mxu3 %v17184_v4  ;;  %v17119_v22 = vld [vmem:[#allocation15 + $0x708] sm:$0xf]  ;;  %v16352_v26 = vor.u32 %v19038_v37, %v16351_v5 }
 0x756   : > { %10040 = vmatpush.bf16.msra.mxu1 %v16860_v53  ;;  %v19006_v24 = vld [vmem:[#allocation15 + $0x44] sm:$0xf0] }
 0x757   : > { %v16224_v46 = vor.u32 %v19006_v24, %v16223_v14  ;;  %v19198_v53 = vld [vmem:[#allocation15 + $0x644] sm:$0xf0] }
 0x758   : > { %10049 = vmatpush.bf16.msrb.mxu2 %v16608_v3  ;;  %10027 = vmatpush.bf16.msra.mxu0 %v16348_v55  ;;  %v17120_v3 = vor.u32 %v19230_v35, %v17119_v22  ;;  %v16356_v55 = vor.u32 %v19030_v47, %v16353_v13  ;;  %v16992_v20 = vor.u32 %v19198_v53, %v16991_v29  ;;  %v16735_v4 = vld [vmem:[#allocation15 + $0x408] sm:$0xf]  ;;  %v16551_v53 = vld [vmem:[#allocation15 + $0x290] sm:$0xf] }
 0x759   : > { %v16736_v5 = vor.u32 %v19134_v25, %v16735_v4  ;;  %v19039_v25 = vld [vmem:[#allocation15 + $0x14c] sm:$0xf0] }
 0x75a   : > { %10041 = vmatpush.bf16.msra.mxu1 %v16796_v44  ;;  %10062 = vmatpush.bf16.msrb.mxu3 %v17120_v3  ;;  %v19174_v44 = vld [vmem:[#allocation15 + $0x58c] sm:$0xf] }
 0x75b   : > { %v16932_v52 = vor.u32 %v19174_v44, %v16929_v57  ;;  %v19063_v44 = vld [vmem:[#allocation15 + $0x214] sm:$0xf] }
 0x75c   : > { %10028 = vmatpush.bf16.msra.mxu0 %v16284_v32  ;;  %10050 = vmatpush.bf16.msrb.mxu2 %v16544_v9  ;;  %v17124_v32 = vor.u32 %v19222_v49, %v17121_v18  ;;  %v18998_v9 = vld [vmem:[#allocation15 + $0xc] sm:$0xf]  ;;  %v19119_v18 = vld [vmem:[#allocation15 + $0x3cc] sm:$0xf0] }
 0x75d   : > { %v16228_v27 = vor.u32 %v18998_v9, %v16225_v43  ;;  %v19087_v9 = vld [vmem:[#allocation15 + $0x2cc] sm:$0xf0]  ;;  %v19079_v43 = vld [vmem:[#allocation15 + $0x294] sm:$0xf] }
 0x75e   : > { %10042 = vmatpush.bf16.msra.mxu1 %v16732_v15  ;;  %v16799_v15 = vld [vmem:[#allocation15 + $0x488] sm:$0xf] }
 0x760   : > { %10029 = vmatpush.bf16.msra.mxu0 %v16220_v7  ;;  %10051 = vmatpush.bf16.msrb.mxu2 %v16480_v6  ;;  %v19214_v7 = vld [vmem:[#allocation15 + $0x6c4] sm:$0xf0] }
 0x761   : > { %v17056_v59 = vor.u32 %v19214_v7, %v17055_v33  ;;  %v16863_v6 = vld [vmem:[#allocation15 + $0x508] sm:$0xf] }
 0x762   : > { %10087 = vmatpush.bf16.msrb.mxu1 %v17188_v10  ;;  %v16864_v11 = vor.u32 %v19166_v12, %v16863_v6  ;;  %v16737_v10 = vld [vmem:[#allocation15 + $0x448] sm:$0xf0]  ;;  %v16488_v12 = vor.u32 %v19071_v39, %v16487_v51 }
 0x763   : > { %10063 = vmatpush.bf16.msrb.mxu3 %v17056_v59  ;;  %v16740_v22 = vor.u32 %v19126_v36, %v16737_v10  ;;  %v19103_v59 = vld [vmem:[#allocation15 + $0x34c] sm:$0xf0] }
 0x764   : > { %10074 = vmatpush.bf16.msrb.mxu0 %v16676_v41  ;;  %10052 = vmatpush.bf16.msrb.mxu2 %v16416_v62  ;;  %v19014_v41 = vld [vmem:[#allocation15 + $0x8c] sm:$0xf]  ;;  %v16800_v62 = vor.u32 %v19150_v54, %v16799_v15  ;;  %v19247_v15 = vld [vmem:[#allocation15 + $0x7cc] sm:$0xf0]  ;;  %v19047_v54 = vld [vmem:[#allocation15 + $0x194] sm:$0xf] }
 0x766   : > { %10088 = vmatpush.bf16.msrb.mxu1 %v17124_v32  ;;  %v19111_v32 = vld [vmem:[#allocation15 + $0x394] sm:$0xf] }
 0x767   : > { %10064 = vmatpush.bf16.msrb.mxu3 %v16992_v20  ;;  %v16684_v7 = vor.u32 %v19111_v32, %v16681_v50  ;;  %v16553_v20 = vld [vmem:[#allocation15 + $0x2d0] sm:$0xf0] }
 0x768   : > { %10075 = vmatpush.bf16.msrb.mxu0 %v16612_v19  ;;  %10053 = vmatpush.bf16.msrb.mxu2 %v16352_v26  ;;  %v16292_v19 = vor.u32 %v19014_v41, %v16289_v56  ;;  %v16615_v41 = vld [vmem:[#allocation15 + $0x310] sm:$0xf] }
 0x769   : > { %v16616_v29 = vor.u32 %v19103_v59, %v16615_v41  ;;  %v19207_v41 = vld [vmem:[#allocation15 + $0x694] sm:$0xf] }
 0x76a   : > { %10089 = vmatpush.bf16.msrb.mxu1 %v17060_v16  ;;  %v8351_v16 = vperm.slane %v8028_v2, 1  ;;  %v17191_v2 = vld [vmem:[#allocation15 + $0x790] sm:$0xf]  ;;  %v17065_v59 = vld [vmem:[#allocation15 + $0x6d0] sm:$0xf0] }
 0x76b   : > { %10065 = vmatpush.bf16.msrb.mxu3 %v16928_v58  ;;  %v16489_v58 = vld [vmem:[#allocation15 + $0x250] sm:$0xf0]  ;;  %v17192_v4 = vor.u32 %v19247_v15, %v17191_v2  ;;  %v16625_v2 = vld [vmem:[#allocation15 + $0x358] sm:$0xf0] }
 0x76c   : > { %10076 = vmatpush.bf16.msrb.mxu0 %v16548_v30  ;;  %10054 = vmatpush.bf16.msrb.mxu2 %v16288_v1  ;;  %v19190_v30 = vld [vmem:[#allocation15 + $0x60c] sm:$0xf]  ;;  %v16492_v61 = vor.u32 %v19063_v44, %v16489_v58 }
 0x76d   : > { %v16996_v60 = vor.u32 %v19190_v30, %v16993_v21  ;;  %v16552_v21 = vor.u32 %v19087_v9, %v16551_v53  ;;  %v18999_v53 = vld [vmem:[#allocation15 + $0x14] sm:$0xf] }
 0x76e   : > { %v16233_v9 = vld [vmem:[#allocation15 + $0x50] sm:$0xf0] }
 0x76f   : > { %10090 = vmatpush.bf16.msrb.mxu1 %v16996_v60  ;;  %10066 = vmatpush.bf16.msrb.mxu3 %v16864_v11  ;;  %v16556_v60 = vor.u32 %v19079_v43, %v16553_v20  ;;  %v19055_v11 = vld [vmem:[#allocation15 + $0x1cc] sm:$0xf0]  ;;  %v19191_v43 = vld [vmem:[#allocation15 + $0x614] sm:$0xf]  ;;  %v16236_v44 = vor.u32 %v18999_v53, %v16233_v9  ;;  %v19240_v53 = vld [vmem:[#allocation15 + $0x79c] sm:$0xf] }
 0x770   : > { %10077 = vmatpush.bf16.msrb.mxu0 %v16484_v23  ;;  %10055 = vmatpush.bf16.msrb.mxu2 %v16224_v46  ;;  %v17001_v20 = vld [vmem:[#allocation15 + $0x650] sm:$0xf0]  ;;  %v17201_v9 = vld [vmem:[#allocation15 + $0x7d8] sm:$0xf0] }
 0x771   : > { %v17004_v58 = vor.u32 %v19191_v43, %v17001_v20 }
 0x773   : > { %10091 = vmatpush.bf16.msrb.mxu1 %v16932_v52  ;;  %10067 = vmatpush.bf16.msrb.mxu3 %v16800_v62  ;;  %v19239_v62 = vld [vmem:[#allocation15 + $0x794] sm:$0xf] }
 0x774   : > { %10078 = vmatpush.bf16.msrb.mxu0 %v16420_v42  ;;  %v17196_v10 = vor.u32 %v19239_v62, %v17193_v34 }
 0x777   : > { %10092 = vmatpush.bf16.msrb.mxu1 %v16868_v0  ;;  %10068 = vmatpush.bf16.msrb.mxu3 %v16736_v5  ;;  %v17127_v5 = vld [vmem:[#allocation15 + $0x710] sm:$0xf] }
 0x778   : > { %10079 = vmatpush.bf16.msrb.mxu0 %v16356_v55  ;;  %v16679_v55 = vld [vmem:[#allocation15 + $0x390] sm:$0xf] }
 0x779   : > { %v16680_v1 = vor.u32 %v19119_v18, %v16679_v55  ;;  %v19023_v18 = vld [vmem:[#allocation15 + $0xcc] sm:$0xf0] }
 0x77b   : > { %10093 = vmatpush.bf16.msrb.mxu1 %v16804_v38 }
 0x77c   : > { %10080 = vmatpush.bf16.msrb.mxu0 %v16292_v19  ;;  %v19095_v19 = vld [vmem:[#allocation15 + $0x314] sm:$0xf] }
 0x77d   : > { %v16620_v46 = vor.u32 %v19095_v19, %v16617_v28 }
 0x77f   : > { %10094 = vmatpush.bf16.msrb.mxu1 %v16740_v22  ;;  %v19031_v22 = vld [vmem:[#allocation15 + $0x114] sm:$0xf] }
 0x780   : > { %10081 = vmatpush.bf16.msrb.mxu0 %v16228_v27 }
 0x7b0   : > { %v8376_v23 = vpop.f32.mrf.mxu3 }
 0x7b6   : > { %v8363_v31 = vpop.f32.mrf.mxu2 }
 0x7b7   : > { %v8364_v26 = vadd.f32 %v8363_v31, %v8350_v17  ;;  %v16425_v31 = vld [vmem:[#allocation15 + $0x1d0] sm:$0xf0] }
 0x7b8   : > { %v8378_v42 = vpop.f32.mrf.mxu3  ;;  %v16428_v36 = vor.u32 %v19047_v54, %v16425_v31  ;;  %v19167_v31 = vld [vmem:[#allocation15 + $0x54c] sm:$0xf0] }
 0x7b9   : > { %v8377_v47 = vadd.f32 %v8376_v23, %v8364_v26  ;;  %v16423_v23 = vld [vmem:[#allocation15 + $0x190] sm:$0xf]  ;;  %v16361_v26 = vld [vmem:[#allocation15 + $0x150] sm:$0xf0] }
 0x7ba   : > { %v8402_v37 = vpop.f32.mrf.mxu1  ;;  %v16424_v38 = vor.u32 %v19055_v11, %v16423_v23  ;;  %v16359_v42 = vld [vmem:[#allocation15 + $0x110] sm:$0xf]  ;;  %v16364_v32 = vor.u32 %v19031_v22, %v16361_v26  ;;  %v16623_v23 = vld [vmem:[#allocation15 + $0x318] sm:$0xf] }
 0x7bb   : > { %v19104_v11 = vld [vmem:[#allocation15 + $0x354] sm:$0xf0]  ;;  %v16807_v22 = vld [vmem:[#allocation15 + $0x490] sm:$0xf] }
 0x7bc   : > { %v16624_v62 = vor.u32 %v19104_v11, %v16623_v23  ;;  %v19151_v26 = vld [vmem:[#allocation15 + $0x4cc] sm:$0xf0]  ;;  %v16303_v23 = vld [vmem:[#allocation15 + $0x98] sm:$0xf] }
 0x7bd   : > { %v17071_v11 = vld [vmem:[#allocation15 + $0x698] sm:$0xf] }
 0x7be   : > { %v8365_v35 = vpop.f32.mrf.mxu2 }
 0x7bf   : > { %v19223_v35 = vld [vmem:[#allocation15 + $0x714] sm:$0xf] }
 0x7c0   : > { %v8389_v13 = vpop.f32.mrf.mxu0  ;;  %v8428_v3 = vpop.f32.mrf.mxu3 }
 0x7c1   : > { %v8390_v49 = vadd.f32 %v8389_v13, %v8377_v47  ;;  %v17129_v47 = vld [vmem:[#allocation15 + $0x750] sm:$0xf0] }
 0x7c2   : > { %v8404_v63 = vpop.f32.mrf.mxu1  ;;  %v17132_v50 = vor.u32 %v19223_v35, %v17129_v47 }
 0x7c3   : > { %v8403_v33 = vadd.f32 %v8402_v37, %v8390_v49  ;;  %v19231_v37 = vld [vmem:[#allocation15 + $0x74c] sm:$0xf0] }
 0x7c4   : > { %v17128_v55 = vor.u32 %v19231_v37, %v17127_v5  ;;  %v16295_v49 = vld [vmem:[#allocation15 + $0x90] sm:$0xf] }
 0x7c5   : > { %v23843_v56 = vpack.c.bf16 %v8403_v33, %v8403_v33  ;;  %v17063_v63 = vld [vmem:[#allocation15 + $0x690] sm:$0xf]  ;;  %v16296_v19 = vor.u32 %v19023_v18, %v16295_v49  ;;  %v19072_v49 = vld [vmem:[#allocation15 + $0x254] sm:$0xf0]  ;;  %v19064_v18 = vld [vmem:[#allocation15 + $0x21c] sm:$0xf] }
 0x7c6   : > { %v8415_v48 = vpop.f32.mrf.mxu2  ;;  %v19215_v33 = vld [vmem:[#allocation15 + $0x6cc] sm:$0xf0] }
 0x7c7   : > { %10004 = vmatmul.bf16.vlgmr.msra.gmra.mxu2 %v23843_v56  ;;  %10030 = vmatmul.bf16.vlgmr.msra.gmra.mxu0 %v23843_v56  ;;  %v8416_v30 = vadd.f32 %v8415_v48, %v8351_v16  ;;  %v17064_v28 = vor.u32 %v19215_v33, %v17063_v63  ;;  %v16231_v48 = vld [vmem:[#allocation15 + $0x10] sm:$0xf] }
 0x7c8   : > { %10100 = vmatpush.bf16.msra.mxu2 %v16680_v1  ;;  %10126 = vmatpush.bf16.msra.mxu0 %v16684_v7  ;;  %v8391_v14 = vpop.f32.mrf.mxu0  ;;  %v8430_v24 = vpop.f32.mrf.mxu3  ;;  %v19015_v1 = vld [vmem:[#allocation15 + $0x94] sm:$0xf]  ;;  %v19007_v16 = vld [vmem:[#allocation15 + $0x4c] sm:$0xf0] }
 0x7c9   : > { %v8429_v52 = vadd.f32 %v8428_v3, %v8416_v30  ;;  %v16360_v3 = vor.u32 %v19039_v25, %v16359_v42  ;;  %v16297_v7 = vld [vmem:[#allocation15 + $0xd0] sm:$0xf0]  ;;  %v16999_v14 = vld [vmem:[#allocation15 + $0x610] sm:$0xf]  ;;  %v19120_v30 = vld [vmem:[#allocation15 + $0x3d4] sm:$0xf0]  ;;  %v16232_v51 = vor.u32 %v19007_v16, %v16231_v48 }
 0x7ca   : > { %v8454_v27 = vpop.f32.mrf.mxu1  ;;  %v16300_v24 = vor.u32 %v19015_v1, %v16297_v7  ;;  %v16559_v42 = vld [vmem:[#allocation15 + $0x298] sm:$0xf]  ;;  %v16743_v63 = vld [vmem:[#allocation15 + $0x410] sm:$0xf]  ;;  %v19127_v7 = vld [vmem:[#allocation15 + $0x414] sm:$0xf] }
 0x7cb   : > { %v19088_v25 = vld [vmem:[#allocation15 + $0x2d4] sm:$0xf0]  ;;  %v19135_v1 = vld [vmem:[#allocation15 + $0x44c] sm:$0xf0] }
 0x7cc   : > { %10101 = vmatpush.bf16.msra.mxu2 %v16616_v29  ;;  %10127 = vmatpush.bf16.msra.mxu0 %v16620_v46  ;;  %v17068_v29 = vor.u32 %v19207_v41, %v17065_v59  ;;  %v19199_v46 = vld [vmem:[#allocation15 + $0x64c] sm:$0xf0]  ;;  %v16560_v35 = vor.u32 %v19088_v25, %v16559_v42  ;;  %v16745_v41 = vld [vmem:[#allocation15 + $0x450] sm:$0xf0]  ;;  %v17199_v48 = vld [vmem:[#allocation15 + $0x798] sm:$0xf] }
 0x7cd   : > { %v17000_v39 = vor.u32 %v19199_v46, %v16999_v14  ;;  %v19248_v16 = vld [vmem:[#allocation15 + $0x7d4] sm:$0xf0]  ;;  %v16744_v46 = vor.u32 %v19135_v1, %v16743_v63  ;;  %v16748_v43 = vor.u32 %v19127_v7, %v16745_v41  ;;  %v19176_v7 = vld [vmem:[#allocation15 + $0x59c] sm:$0xf] }
 0x7ce   : > { %v8417_v57 = vpop.f32.mrf.mxu2  ;;  %v19056_v14 = vld [vmem:[#allocation15 + $0x1d4] sm:$0xf0]  ;;  %v17200_v20 = vor.u32 %v19248_v16, %v17199_v48  ;;  %v19097_v48 = vld [vmem:[#allocation15 + $0x324] sm:$0xf] }
 0x7cf   : > { %v16935_v57 = vld [vmem:[#allocation15 + $0x590] sm:$0xf]  ;;  %v19008_v25 = vld [vmem:[#allocation15 + $0x54] sm:$0xf0]  ;;  %v16633_v16 = vld [vmem:[#allocation15 + $0x360] sm:$0xf0] }
 0x7d0   : > { %10102 = vmatpush.bf16.msra.mxu2 %v16552_v21  ;;  %10128 = vmatpush.bf16.msra.mxu0 %v16556_v60  ;;  %v8441_v6 = vpop.f32.mrf.mxu0  ;;  %v19112_v21 = vld [vmem:[#allocation15 + $0x39c] sm:$0xf]  ;;  %v19184_v1 = vld [vmem:[#allocation15 + $0x5d4] sm:$0xf0] }
 0x7d1   : > { %v8442_v45 = vadd.f32 %v8441_v6, %v8429_v52  ;;  %v16689_v60 = vld [vmem:[#allocation15 + $0x3d8] sm:$0xf0]  ;;  %v19183_v52 = vld [vmem:[#allocation15 + $0x5cc] sm:$0xf0] }
 0x7d2   : > { %v8456_v0 = vpop.f32.mrf.mxu1  ;;  %v16936_v15 = vor.u32 %v19183_v52, %v16935_v57  ;;  %v16369_v57 = vld [vmem:[#allocation15 + $0x158] sm:$0xf0] }
 0x7d3   : > { %v8455_v40 = vadd.f32 %v8454_v27, %v8442_v45  ;;  %v16687_v27 = vld [vmem:[#allocation15 + $0x398] sm:$0xf]  ;;  %v16937_v45 = vld [vmem:[#allocation15 + $0x5d0] sm:$0xf0]  ;;  %v19096_v0 = vld [vmem:[#allocation15 + $0x31c] sm:$0xf] }
 0x7d4   : > { %10103 = vmatpush.bf16.msra.mxu2 %v16488_v12  ;;  %10129 = vmatpush.bf16.msra.mxu0 %v16492_v61  ;;  %v16688_v6 = vor.u32 %v19120_v30, %v16687_v27  ;;  %v16692_v12 = vor.u32 %v19112_v21, %v16689_v60  ;;  %v19175_v61 = vld [vmem:[#allocation15 + $0x594] sm:$0xf]  ;;  %v16628_v34 = vor.u32 %v19096_v0, %v16625_v2  ;;  %v16367_v21 = vld [vmem:[#allocation15 + $0x118] sm:$0xf]  ;;  %v19224_v52 = vld [vmem:[#allocation15 + $0x71c] sm:$0xf] }
 0x7d5   : > { %v23847_v17 = vpack.c.bf16 %v8455_v40, %v8455_v40  ;;  %v16940_v54 = vor.u32 %v19175_v61, %v16937_v45  ;;  %v16871_v40 = vld [vmem:[#allocation15 + $0x510] sm:$0xf]  ;;  %v17135_v60 = vld [vmem:[#allocation15 + $0x718] sm:$0xf] }
 0x7d6   : > { %v16872_v5 = vor.u32 %v19167_v31, %v16871_v40  ;;  %v19216_v0 = vld [vmem:[#allocation15 + $0x6d4] sm:$0xf0]  ;;  %v16305_v40 = vld [vmem:[#allocation15 + $0xd8] sm:$0xf0] }
 0x7d7   : > { %10017 = vmatmul.bf16.vlgmr.msra.gmra.mxu3 %v23847_v17  ;;  %10043 = vmatmul.bf16.vlgmr.msra.gmra.mxu1 %v23847_v17  ;;  %v19208_v31 = vld [vmem:[#allocation15 + $0x69c] sm:$0xf] }
 0x7d8   : > { %10056 = vmatmul.bf16.vlgmr.msrb.gmra.mxu2 %v23843_v56  ;;  %10082 = vmatmul.bf16.vlgmr.msrb.gmra.mxu0 %v23843_v56  ;;  %v8443_v13 = vpop.f32.mrf.mxu0 }
 0x7d9   : > { %10104 = vmatpush.bf16.msra.mxu2 %v16424_v38  ;;  %10113 = vmatpush.bf16.msra.mxu3 %v17192_v4  ;;  %v19159_v38 = vld [vmem:[#allocation15 + $0x514] sm:$0xf] }
 0x7da   : > { %10130 = vmatpush.bf16.msra.mxu0 %v16428_v36  ;;  %10139 = vmatpush.bf16.msra.mxu1 %v17196_v10  ;;  %v16873_v4 = vld [vmem:[#allocation15 + $0x550] sm:$0xf0]  ;;  %v19080_v36 = vld [vmem:[#allocation15 + $0x29c] sm:$0xf] }
 0x7db   : > { %v16561_v10 = vld [vmem:[#allocation15 + $0x2d8] sm:$0xf0]  ;;  %v16876_v37 = vor.u32 %v19159_v38, %v16873_v4  ;;  %v19143_v13 = vld [vmem:[#allocation15 + $0x494] sm:$0xf]  ;;  %v16239_v38 = vld [vmem:[#allocation15 + $0x18] sm:$0xf] }
 0x7dc   : > { %v16564_v47 = vor.u32 %v19080_v36, %v16561_v10  ;;  %v17007_v36 = vld [vmem:[#allocation15 + $0x618] sm:$0xf] }
 0x7dd   : > { %10105 = vmatpush.bf16.msra.mxu2 %v16360_v3  ;;  %10114 = vmatpush.bf16.msra.mxu3 %v17128_v55  ;;  %v16809_v3 = vld [vmem:[#allocation15 + $0x4d0] sm:$0xf0]  ;;  %v16495_v55 = vld [vmem:[#allocation15 + $0x218] sm:$0xf] }
 0x7de   : > { %10131 = vmatpush.bf16.msra.mxu0 %v16364_v32  ;;  %10140 = vmatpush.bf16.msra.mxu1 %v17132_v50  ;;  %v16497_v32 = vld [vmem:[#allocation15 + $0x258] sm:$0xf0]  ;;  %v16808_v50 = vor.u32 %v19151_v26, %v16807_v22  ;;  %v16812_v33 = vor.u32 %v19143_v13, %v16809_v3  ;;  %v16496_v59 = vor.u32 %v19072_v49, %v16495_v55  ;;  %v19200_v10 = vld [vmem:[#allocation15 + $0x654] sm:$0xf0]  ;;  %v19121_v13 = vld [vmem:[#allocation15 + $0x3dc] sm:$0xf0] }
 0x7df   : > { %v16241_v22 = vld [vmem:[#allocation15 + $0x58] sm:$0xf0]  ;;  %v17008_v3 = vor.u32 %v19200_v10, %v17007_v36  ;;  %v19113_v55 = vld [vmem:[#allocation15 + $0x3a4] sm:$0xf] }
 0x7e0   : > { %v19192_v26 = vld [vmem:[#allocation15 + $0x61c] sm:$0xf]  ;;  %v16697_v49 = vld [vmem:[#allocation15 + $0x3e0] sm:$0xf0] }
 0x7e1   : > { %10106 = vmatpush.bf16.msra.mxu2 %v16296_v19  ;;  %10115 = vmatpush.bf16.msra.mxu3 %v17064_v28  ;;  %v16500_v19 = vor.u32 %v19064_v18, %v16497_v32  ;;  %v16431_v28 = vld [vmem:[#allocation15 + $0x198] sm:$0xf]  ;;  %v16240_v18 = vor.u32 %v19008_v25, %v16239_v38  ;;  %v16700_v41 = vor.u32 %v19113_v55, %v16697_v49  ;;  %v16439_v38 = vld [vmem:[#allocation15 + $0x1a0] sm:$0xf]  ;;  %v19049_v36 = vld [vmem:[#allocation15 + $0x1a4] sm:$0xf] }
 0x7e2   : > { %10132 = vmatpush.bf16.msra.mxu0 %v16300_v24  ;;  %10141 = vmatpush.bf16.msra.mxu1 %v17068_v29  ;;  %v19048_v24 = vld [vmem:[#allocation15 + $0x19c] sm:$0xf]  ;;  %v16432_v27 = vor.u32 %v19056_v14, %v16431_v28  ;;  %v19105_v28 = vld [vmem:[#allocation15 + $0x35c] sm:$0xf0]  ;;  %v16441_v10 = vld [vmem:[#allocation15 + $0x1e0] sm:$0xf0] }
 0x7e3   : > { %v16433_v29 = vld [vmem:[#allocation15 + $0x1d8] sm:$0xf0]  ;;  %v19249_v25 = vld [vmem:[#allocation15 + $0x7dc] sm:$0xf0] }
 0x7e4   : > { %v16436_v30 = vor.u32 %v19048_v24, %v16433_v29  ;;  %v19041_v55 = vld [vmem:[#allocation15 + $0x15c] sm:$0xf0] }
 0x7e5   : > { %10107 = vmatpush.bf16.msra.mxu2 %v16232_v51  ;;  %10116 = vmatpush.bf16.msra.mxu3 %v17000_v39  ;;  %v19232_v51 = vld [vmem:[#allocation15 + $0x754] sm:$0xf0]  ;;  %v17204_v39 = vor.u32 %v19240_v53, %v17201_v9  ;;  %v19160_v9 = vld [vmem:[#allocation15 + $0x51c] sm:$0xf]  ;;  %v17143_v49 = vld [vmem:[#allocation15 + $0x720] sm:$0xf] }
 0x7e6   : > { %10133 = vmatpush.bf16.msra.mxu0 %v16236_v44  ;;  %10142 = vmatpush.bf16.msra.mxu1 %v17004_v58  ;;  %v19040_v44 = vld [vmem:[#allocation15 + $0x154] sm:$0xf0]  ;;  %v19032_v58 = vld [vmem:[#allocation15 + $0x11c] sm:$0xf] }
 0x7e7   : > { %10069 = vmatmul.bf16.vlgmr.msrb.gmra.mxu3 %v23847_v17  ;;  %10095 = vmatmul.bf16.vlgmr.msrb.gmra.mxu1 %v23847_v17  ;;  %v16368_v61 = vor.u32 %v19040_v44, %v16367_v21  ;;  %v16372_v45 = vor.u32 %v19032_v58, %v16369_v57  ;;  %v19168_v53 = vld [vmem:[#allocation15 + $0x554] sm:$0xf0]  ;;  %v19081_v21 = vld [vmem:[#allocation15 + $0x2a4] sm:$0xf] }
 0x7e8   : > { %10108 = vmatmul.bf16.vlgmr.msra.gmra.mxu2 %v23843_v56  ;;  %v16815_v58 = vld [vmem:[#allocation15 + $0x498] sm:$0xf] }
 0x7e9   : > { %10152 = vmatpush.bf16.msrb.mxu2 %v16688_v6  ;;  %10117 = vmatpush.bf16.msra.mxu3 %v16936_v15  ;;  %v17137_v6 = vld [vmem:[#allocation15 + $0x758] sm:$0xf0]  ;;  %v19024_v15 = vld [vmem:[#allocation15 + $0xd4] sm:$0xf0] }
 0x7ea   : > { %10178 = vmatpush.bf16.msrb.mxu0 %v16692_v12  ;;  %10143 = vmatpush.bf16.msra.mxu1 %v16940_v54  ;;  %v17136_v12 = vor.u32 %v19232_v51, %v17135_v60  ;;  %v17140_v2 = vor.u32 %v19224_v52, %v17137_v6  ;;  %v19016_v54 = vld [vmem:[#allocation15 + $0x9c] sm:$0xf]  ;;  %v16304_v4 = vor.u32 %v19024_v15, %v16303_v23  ;;  %v16569_v60 = vld [vmem:[#allocation15 + $0x2e0] sm:$0xf0]  ;;  %v19152_v57 = vld [vmem:[#allocation15 + $0x4d4] sm:$0xf0] }
 0x7eb   : > { %10134 = vmatmul.bf16.vlgmr.msra.gmra.mxu0 %v23843_v56  ;;  %v16308_v42 = vor.u32 %v19016_v54, %v16305_v40  ;;  %v19144_v52 = vld [vmem:[#allocation15 + $0x49c] sm:$0xf]  ;;  %v16572_v6 = vor.u32 %v19081_v21, %v16569_v60  ;;  %v19065_v23 = vld [vmem:[#allocation15 + $0x224] sm:$0xf]  ;;  %v19136_v40 = vld [vmem:[#allocation15 + $0x454] sm:$0xf0] }
 0x7ec   : > { %v17015_v21 = vld [vmem:[#allocation15 + $0x620] sm:$0xf] }
 0x7ed   : > { %10153 = vmatpush.bf16.msrb.mxu2 %v16624_v62  ;;  %10118 = vmatpush.bf16.msra.mxu3 %v16872_v5  ;;  %v17073_v62 = vld [vmem:[#allocation15 + $0x6d8] sm:$0xf0]  ;;  %v19201_v60 = vld [vmem:[#allocation15 + $0x65c] sm:$0xf0] }
 0x7ee   : > { %10179 = vmatpush.bf16.msrb.mxu0 %v16628_v34  ;;  %10144 = vmatpush.bf16.msra.mxu1 %v16876_v37  ;;  %v17072_v34 = vor.u32 %v19216_v0, %v17071_v11  ;;  %v17076_v5 = vor.u32 %v19208_v31, %v17073_v62  ;;  %v19000_v37 = vld [vmem:[#allocation15 + $0x1c] sm:$0xf]  ;;  %v16505_v11 = vld [vmem:[#allocation15 + $0x260] sm:$0xf0]  ;;  %v16816_v0 = vor.u32 %v19152_v57, %v16815_v58 }
 0x7ef   : > { %v16244_v32 = vor.u32 %v19000_v37, %v16241_v22  ;;  %v19128_v31 = vld [vmem:[#allocation15 + $0x41c] sm:$0xf]  ;;  %v19241_v37 = vld [vmem:[#allocation15 + $0x7a4] sm:$0xf] }
 0x7f0   : > { %v16753_v62 = vld [vmem:[#allocation15 + $0x458] sm:$0xf0]  ;;  %v17209_v22 = vld [vmem:[#allocation15 + $0x7e0] sm:$0xf0] }
 0x7f1   : > { %10154 = vmatpush.bf16.msrb.mxu2 %v16560_v35  ;;  %10119 = vmatpush.bf16.msra.mxu3 %v16808_v50  ;;  %v17009_v35 = vld [vmem:[#allocation15 + $0x658] sm:$0xf0]  ;;  %v19193_v58 = vld [vmem:[#allocation15 + $0x624] sm:$0xf] }
 0x7f2   : > { %10180 = vmatpush.bf16.msrb.mxu0 %v16564_v47  ;;  %10145 = vmatpush.bf16.msra.mxu1 %v16812_v33  ;;  %v16695_v47 = vld [vmem:[#allocation15 + $0x3a0] sm:$0xf]  ;;  %v17012_v50 = vor.u32 %v19192_v26, %v17009_v35  ;;  %v16943_v33 = vld [vmem:[#allocation15 + $0x598] sm:$0xf]  ;;  %v16756_v26 = vor.u32 %v19128_v31, %v16753_v62  ;;  %v17017_v57 = vld [vmem:[#allocation15 + $0x660] sm:$0xf0] }
 0x7f3   : > { %v16696_v63 = vor.u32 %v19121_v13, %v16695_v47  ;;  %v16944_v14 = vor.u32 %v19184_v1, %v16943_v33  ;;  %v16444_v13 = vor.u32 %v19049_v36, %v16441_v10  ;;  %v19225_v33 = vld [vmem:[#allocation15 + $0x724] sm:$0xf] }
 0x7f4   : > { %v17145_v1 = vld [vmem:[#allocation15 + $0x760] sm:$0xf0] }
 0x7f5   : > { %10155 = vmatpush.bf16.msrb.mxu2 %v16496_v59  ;;  %10120 = vmatpush.bf16.msra.mxu3 %v16744_v46  ;;  %v16945_v59 = vld [vmem:[#allocation15 + $0x5d8] sm:$0xf0]  ;;  %v16879_v46 = vld [vmem:[#allocation15 + $0x518] sm:$0xf]  ;;  %v16953_v62 = vld [vmem:[#allocation15 + $0x5e0] sm:$0xf0] }
 0x7f6   : > { %10181 = vmatpush.bf16.msrb.mxu0 %v16500_v19  ;;  %10146 = vmatpush.bf16.msra.mxu1 %v16748_v43  ;;  %v16631_v19 = vld [vmem:[#allocation15 + $0x320] sm:$0xf]  ;;  %v16948_v24 = vor.u32 %v19176_v7, %v16945_v59  ;;  %v16636_v43 = vor.u32 %v19097_v48, %v16633_v16  ;;  %v16880_v51 = vor.u32 %v19168_v53, %v16879_v46  ;;  %v19209_v46 = vld [vmem:[#allocation15 + $0x6a4] sm:$0xf] }
 0x7f7   : > { %v16632_v29 = vor.u32 %v19105_v28, %v16631_v19  ;;  %v16311_v19 = vld [vmem:[#allocation15 + $0xa0] sm:$0xf]  ;;  %v17148_v16 = vor.u32 %v19225_v33, %v17145_v1  ;;  %v17081_v53 = vld [vmem:[#allocation15 + $0x6e0] sm:$0xf0] }
 0x7f8   : > { %10121 = vmatmul.bf16.vlgmr.msra.gmra.mxu3 %v23847_v17  ;;  %v19025_v28 = vld [vmem:[#allocation15 + $0xdc] sm:$0xf0]  ;;  %v19145_v33 = vld [vmem:[#allocation15 + $0x4a4] sm:$0xf] }
 0x7f9   : > { %10165 = vmatpush.bf16.msrb.mxu3 %v17200_v20  ;;  %10156 = vmatpush.bf16.msrb.mxu2 %v16432_v27  ;;  %v16881_v20 = vld [vmem:[#allocation15 + $0x558] sm:$0xf0]  ;;  %v16567_v27 = vld [vmem:[#allocation15 + $0x2a0] sm:$0xf] }
 0x7fa   : > { %10182 = vmatpush.bf16.msrb.mxu0 %v16436_v30  ;;  %10191 = vmatpush.bf16.msrb.mxu1 %v17204_v39  ;;  %v19089_v30 = vld [vmem:[#allocation15 + $0x2dc] sm:$0xf0]  ;;  %v16884_v39 = vor.u32 %v19160_v9, %v16881_v20  ;;  %v16312_v9 = vor.u32 %v19025_v28, %v16311_v19  ;;  %v19066_v19 = vld [vmem:[#allocation15 + $0x22c] sm:$0xf] }
 0x7fb   : > { %10147 = vmatmul.bf16.vlgmr.msra.gmra.mxu1 %v23847_v17  ;;  %v16568_v44 = vor.u32 %v19089_v30, %v16567_v27  ;;  %v17079_v48 = vld [vmem:[#allocation15 + $0x6a0] sm:$0xf]  ;;  %v16513_v28 = vld [vmem:[#allocation15 + $0x268] sm:$0xf0] }
 0x7fc   : > { %v19009_v30 = vld [vmem:[#allocation15 + $0x5c] sm:$0xf0] }
 0x7fd   : > { %10166 = vmatpush.bf16.msrb.mxu3 %v17136_v12  ;;  %10157 = vmatpush.bf16.msrb.mxu2 %v16368_v61  ;;  %v16817_v12 = vld [vmem:[#allocation15 + $0x4d8] sm:$0xf0]  ;;  %v16503_v61 = vld [vmem:[#allocation15 + $0x220] sm:$0xf] }
 0x7fe   : > { %10183 = vmatpush.bf16.msrb.mxu0 %v16372_v45  ;;  %10192 = vmatpush.bf16.msrb.mxu1 %v17140_v2  ;;  %v19073_v45 = vld [vmem:[#allocation15 + $0x25c] sm:$0xf0]  ;;  %v16751_v2 = vld [vmem:[#allocation15 + $0x418] sm:$0xf]  ;;  %v16820_v15 = vor.u32 %v19144_v52, %v16817_v12  ;;  %v16703_v52 = vld [vmem:[#allocation15 + $0x3a8] sm:$0xf] }
 0x7ff   : > { %v16504_v54 = vor.u32 %v19073_v45, %v16503_v61  ;;  %v19114_v61 = vld [vmem:[#allocation15 + $0x3ac] sm:$0xf] }
 0x800   : > { %v16705_v45 = vld [vmem:[#allocation15 + $0x3e8] sm:$0xf0] }
 0x801   : > { %10167 = vmatpush.bf16.msrb.mxu3 %v17072_v34  ;;  %10158 = vmatpush.bf16.msrb.mxu2 %v16304_v4  ;;  %v16508_v34 = vor.u32 %v19065_v23, %v16505_v11  ;;  %v19057_v4 = vld [vmem:[#allocation15 + $0x1dc] sm:$0xf0]  ;;  %v17016_v23 = vor.u32 %v19201_v60, %v17015_v21  ;;  %v16708_v31 = vor.u32 %v19114_v61, %v16705_v45  ;;  %v19050_v21 = vld [vmem:[#allocation15 + $0x1ac] sm:$0xf]  ;;  %v19042_v61 = vld [vmem:[#allocation15 + $0x164] sm:$0xf0] }
 0x802   : > { %10184 = vmatpush.bf16.msrb.mxu0 %v16308_v42  ;;  %10193 = vmatpush.bf16.msrb.mxu1 %v17076_v5  ;;  %v17207_v42 = vld [vmem:[#allocation15 + $0x7a0] sm:$0xf]  ;;  %v16752_v5 = vor.u32 %v19136_v40, %v16751_v2  ;;  %v16440_v35 = vor.u32 %v19057_v4, %v16439_v38  ;;  %v19177_v40 = vld [vmem:[#allocation15 + $0x5a4] sm:$0xf]  ;;  %v19106_v38 = vld [vmem:[#allocation15 + $0x364] sm:$0xf0] }
 0x803   : > { %v17208_v47 = vor.u32 %v19249_v25, %v17207_v42  ;;  %v19098_v4 = vld [vmem:[#allocation15 + $0x32c] sm:$0xf]  ;;  %v16956_v36 = vor.u32 %v19177_v40, %v16953_v62  ;;  %v17151_v45 = vld [vmem:[#allocation15 + $0x728] sm:$0xf] }
 0x804   : > { %v16641_v42 = vld [vmem:[#allocation15 + $0x368] sm:$0xf0] }
 0x805   : > { %10168 = vmatpush.bf16.msrb.mxu3 %v17008_v3  ;;  %10159 = vmatpush.bf16.msrb.mxu2 %v16240_v18  ;;  %v16375_v3 = vld [vmem:[#allocation15 + $0x120] sm:$0xf]  ;;  %v17212_v18 = vor.u32 %v19241_v37, %v17209_v22  ;;  %v19161_v22 = vld [vmem:[#allocation15 + $0x524] sm:$0xf]  ;;  %v16449_v60 = vld [vmem:[#allocation15 + $0x1e8] sm:$0xf0] }
 0x806   : > { %10185 = vmatpush.bf16.msrb.mxu0 %v16244_v32  ;;  %10194 = vmatpush.bf16.msrb.mxu1 %v17012_v50  ;;  %v19233_v32 = vld [vmem:[#allocation15 + $0x75c] sm:$0xf0]  ;;  %v19033_v50 = vld [vmem:[#allocation15 + $0x124] sm:$0xf]  ;;  %v16376_v7 = vor.u32 %v19041_v55, %v16375_v3  ;;  %v19082_v3 = vld [vmem:[#allocation15 + $0x2ac] sm:$0xf] }
 0x807   : > { %v19169_v37 = vld [vmem:[#allocation15 + $0x55c] sm:$0xf0]  ;;  %v16577_v55 = vld [vmem:[#allocation15 + $0x2e8] sm:$0xf0] }
 0x808   : > { %10160 = vmatmul.bf16.vlgmr.msrb.gmra.mxu2 %v23843_v56  ;;  %v16580_v1 = vor.u32 %v19082_v3, %v16577_v55  ;;  %v17023_v3 = vld [vmem:[#allocation15 + $0x628] sm:$0xf] }
 0x809   : > { %10204 = vmatpush.bf16.msra.mxu2 %v16696_v63  ;;  %10186 = vmatmul.bf16.vlgmr.msrb.gmra.mxu0 %v23843_v56  ;;  %v16377_v63 = vld [vmem:[#allocation15 + $0x160] sm:$0xf0]  ;;  %v19202_v55 = vld [vmem:[#allocation15 + $0x664] sm:$0xf0] }
 0x80a   : > { %10230 = vmatpush.bf16.msra.mxu0 %v16700_v41  ;;  %10169 = vmatpush.bf16.msrb.mxu3 %v16944_v14  ;;  %v17144_v41 = vor.u32 %v19233_v32, %v17143_v49  ;;  %v16380_v59 = vor.u32 %v19033_v50, %v16377_v63  ;;  %v19217_v14 = vld [vmem:[#allocation15 + $0x6dc] sm:$0xf0] }
 0x80b   : > { %10195 = vmatpush.bf16.msrb.mxu1 %v16948_v24  ;;  %v19017_v24 = vld [vmem:[#allocation15 + $0xa4] sm:$0xf]  ;;  %v17080_v20 = vor.u32 %v19217_v14, %v17079_v48  ;;  %v16823_v50 = vld [vmem:[#allocation15 + $0x4a0] sm:$0xf] }
 0x80c   : > { %v19153_v63 = vld [vmem:[#allocation15 + $0x4dc] sm:$0xf0] }
 0x80d   : > { %10205 = vmatpush.bf16.msra.mxu2 %v16632_v29  ;;  %v16313_v29 = vld [vmem:[#allocation15 + $0xe0] sm:$0xf0]  ;;  %v16824_v48 = vor.u32 %v19153_v63, %v16823_v50  ;;  %v19194_v50 = vld [vmem:[#allocation15 + $0x62c] sm:$0xf] }
 0x80e   : > { %10231 = vmatpush.bf16.msra.mxu0 %v16636_v43  ;;  %10170 = vmatpush.bf16.msrb.mxu3 %v16880_v51  ;;  %v16247_v43 = vld [vmem:[#allocation15 + $0x20] sm:$0xf]  ;;  %v16316_v27 = vor.u32 %v19017_v24, %v16313_v29  ;;  %v17084_v51 = vor.u32 %v19209_v46, %v17081_v53  ;;  %v19129_v46 = vld [vmem:[#allocation15 + $0x424] sm:$0xf]  ;;  %v17025_v63 = vld [vmem:[#allocation15 + $0x668] sm:$0xf0] }
 0x80f   : > { %10196 = vmatpush.bf16.msrb.mxu1 %v16884_v39  ;;  %v19001_v39 = vld [vmem:[#allocation15 + $0x24] sm:$0xf]  ;;  %v16248_v12 = vor.u32 %v19009_v30, %v16247_v43  ;;  %v19137_v29 = vld [vmem:[#allocation15 + $0x45c] sm:$0xf0]  ;;  %v16447_v43 = vld [vmem:[#allocation15 + $0x1a8] sm:$0xf] }
 0x810   : > { %v16761_v53 = vld [vmem:[#allocation15 + $0x460] sm:$0xf0]  ;;  %v19250_v30 = vld [vmem:[#allocation15 + $0x7e4] sm:$0xf0] }
 0x811   : > { %10206 = vmatpush.bf16.msra.mxu2 %v16568_v44  ;;  %v16249_v44 = vld [vmem:[#allocation15 + $0x60] sm:$0xf0] }
 0x812   : > { %10232 = vmatpush.bf16.msra.mxu0 %v16572_v6  ;;  %10171 = vmatpush.bf16.msrb.mxu3 %v16816_v0  ;;  %v19122_v6 = vld [vmem:[#allocation15 + $0x3e4] sm:$0xf0]  ;;  %v16252_v11 = vor.u32 %v19001_v39, %v16249_v44  ;;  %v17020_v0 = vor.u32 %v19193_v58, %v17017_v57  ;;  %v19242_v39 = vld [vmem:[#allocation15 + $0x7ac] sm:$0xf]  ;;  %v16764_v58 = vor.u32 %v19129_v46, %v16761_v53 }
 0x813   : > { %10197 = vmatpush.bf16.msrb.mxu1 %v16820_v15  ;;  %v16704_v2 = vor.u32 %v19122_v6, %v16703_v52  ;;  %v16951_v15 = vld [vmem:[#allocation15 + $0x5a0] sm:$0xf]  ;;  %v17217_v44 = vld [vmem:[#allocation15 + $0x7e8] sm:$0xf0]  ;;  %v16452_v6 = vor.u32 %v19050_v21, %v16449_v60 }
 0x814   : > { %v16961_v53 = vld [vmem:[#allocation15 + $0x5e8] sm:$0xf0] }
 0x815   : > { %10207 = vmatpush.bf16.msra.mxu2 %v16504_v54  ;;  %v19185_v54 = vld [vmem:[#allocation15 + $0x5dc] sm:$0xf0] }
 0x816   : > { %10233 = vmatpush.bf16.msra.mxu0 %v16508_v34  ;;  %10172 = vmatpush.bf16.msrb.mxu3 %v16752_v5  ;;  %v16639_v34 = vld [vmem:[#allocation15 + $0x328] sm:$0xf]  ;;  %v16952_v25 = vor.u32 %v19185_v54, %v16951_v15  ;;  %v16887_v5 = vld [vmem:[#allocation15 + $0x520] sm:$0xf]  ;;  %v19226_v15 = vld [vmem:[#allocation15 + $0x72c] sm:$0xf] }
 0x817   : > { %10198 = vmatpush.bf16.msrb.mxu1 %v16756_v26  ;;  %v16640_v10 = vor.u32 %v19106_v38, %v16639_v34  ;;  %v16644_v26 = vor.u32 %v19098_v4, %v16641_v42  ;;  %v16888_v49 = vor.u32 %v19169_v37, %v16887_v5  ;;  %v17153_v54 = vld [vmem:[#allocation15 + $0x768] sm:$0xf0]  ;;  %v16319_v34 = vld [vmem:[#allocation15 + $0xa8] sm:$0xf] }
 0x818   : > { %v19026_v38 = vld [vmem:[#allocation15 + $0xe4] sm:$0xf0]  ;;  %v17156_v42 = vor.u32 %v19226_v15, %v17153_v54  ;;  %v19210_v5 = vld [vmem:[#allocation15 + $0x6ac] sm:$0xf] }
 0x819   : > { %10208 = vmatpush.bf16.msra.mxu2 %v16440_v35  ;;  %10173 = vmatmul.bf16.vlgmr.msrb.gmra.mxu3 %v23847_v17  ;;  %v16889_v35 = vld [vmem:[#allocation15 + $0x560] sm:$0xf0]  ;;  %v17087_v4 = vld [vmem:[#allocation15 + $0x6a8] sm:$0xf]  ;;  %v17089_v37 = vld [vmem:[#allocation15 + $0x6e8] sm:$0xf0] }
 0x81a   : > { %10217 = vmatpush.bf16.msra.mxu3 %v17208_v47  ;;  %10234 = vmatpush.bf16.msra.mxu0 %v16444_v13  ;;  %v16575_v47 = vld [vmem:[#allocation15 + $0x2a8] sm:$0xf]  ;;  %v19146_v54 = vld [vmem:[#allocation15 + $0x4ac] sm:$0xf] }
 0x81b   : > { %10243 = vmatpush.bf16.msra.mxu1 %v17212_v18  ;;  %v19090_v13 = vld [vmem:[#allocation15 + $0x2e4] sm:$0xf0]  ;;  %v16892_v18 = vor.u32 %v19161_v22, %v16889_v35  ;;  %v16320_v22 = vor.u32 %v19026_v38, %v16319_v34  ;;  %v19075_v34 = vld [vmem:[#allocation15 + $0x26c] sm:$0xf0]  ;;  %v19067_v38 = vld [vmem:[#allocation15 + $0x234] sm:$0xf] }
 0x81c   : > { %10199 = vmatmul.bf16.vlgmr.msrb.gmra.mxu1 %v23847_v17  ;;  %v16576_v32 = vor.u32 %v19090_v13, %v16575_v47  ;;  %v19010_v13 = vld [vmem:[#allocation15 + $0x64] sm:$0xf0] }
 0x81d   : > { %10209 = vmatpush.bf16.msra.mxu2 %v16376_v7  ;;  %v16825_v7 = vld [vmem:[#allocation15 + $0x4e0] sm:$0xf0]  ;;  %v19154_v15 = vld [vmem:[#allocation15 + $0x4e4] sm:$0xf0] }
 0x81e   : > { %10218 = vmatpush.bf16.msra.mxu3 %v17144_v41  ;;  %10235 = vmatpush.bf16.msra.mxu0 %v16380_v59  ;;  %v16511_v41 = vld [vmem:[#allocation15 + $0x228] sm:$0xf]  ;;  %v16828_v14 = vor.u32 %v19145_v33, %v16825_v7  ;;  %v16711_v33 = vld [vmem:[#allocation15 + $0x3b0] sm:$0xf] }
 0x81f   : > { %10244 = vmatpush.bf16.msra.mxu1 %v17148_v16  ;;  %v19074_v59 = vld [vmem:[#allocation15 + $0x264] sm:$0xf0]  ;;  %v16759_v16 = vld [vmem:[#allocation15 + $0x420] sm:$0xf] }
 0x820   : > { %v16512_v24 = vor.u32 %v19074_v59, %v16511_v41  ;;  %v19115_v41 = vld [vmem:[#allocation15 + $0x3b4] sm:$0xf] }
 0x821   : > { %10210 = vmatpush.bf16.msra.mxu2 %v16312_v9  ;;  %v16516_v9 = vor.u32 %v19066_v19, %v16513_v28  ;;  %v16713_v59 = vld [vmem:[#allocation15 + $0x3f0] sm:$0xf0]  ;;  %v17024_v19 = vor.u32 %v19202_v55, %v17023_v3  ;;  %v19251_v55 = vld [vmem:[#allocation15 + $0x7ec] sm:$0xf0] }
 0x822   : > { %10219 = vmatpush.bf16.msra.mxu3 %v17080_v20  ;;  %10236 = vmatpush.bf16.msra.mxu0 %v16316_v27  ;;  %v19058_v20 = vld [vmem:[#allocation15 + $0x1e4] sm:$0xf0]  ;;  %v16716_v46 = vor.u32 %v19115_v41, %v16713_v59 }
 0x823   : > { %10245 = vmatpush.bf16.msra.mxu1 %v17084_v51  ;;  %v17215_v27 = vld [vmem:[#allocation15 + $0x7a8] sm:$0xf]  ;;  %v16760_v51 = vor.u32 %v19137_v29, %v16759_v16  ;;  %v16448_v57 = vor.u32 %v19058_v20, %v16447_v43  ;;  %v19178_v29 = vld [vmem:[#allocation15 + $0x5ac] sm:$0xf]  ;;  %v19107_v43 = vld [vmem:[#allocation15 + $0x36c] sm:$0xf0] }
 0x824   : > { %v17216_v52 = vor.u32 %v19250_v30, %v17215_v27  ;;  %v19099_v20 = vld [vmem:[#allocation15 + $0x334] sm:$0xf]  ;;  %v16964_v21 = vor.u32 %v19178_v29, %v16961_v53 }
 0x825   : > { %10211 = vmatpush.bf16.msra.mxu2 %v16248_v12  ;;  %v16383_v12 = vld [vmem:[#allocation15 + $0x128] sm:$0xf]  ;;  %v16649_v27 = vld [vmem:[#allocation15 + $0x370] sm:$0xf0] }
 0x826   : > { %10220 = vmatpush.bf16.msra.mxu3 %v17016_v23  ;;  %10237 = vmatpush.bf16.msra.mxu0 %v16252_v11  ;;  %v17220_v23 = vor.u32 %v19242_v39, %v17217_v44  ;;  %v19234_v11 = vld [vmem:[#allocation15 + $0x764] sm:$0xf0]  ;;  %v16384_v40 = vor.u32 %v19042_v61, %v16383_v12  ;;  %v19162_v44 = vld [vmem:[#allocation15 + $0x52c] sm:$0xf]  ;;  %v19083_v12 = vld [vmem:[#allocation15 + $0x2b4] sm:$0xf] }
 0x827   : > { %10246 = vmatpush.bf16.msra.mxu1 %v17020_v0  ;;  %v19034_v0 = vld [vmem:[#allocation15 + $0x12c] sm:$0xf]  ;;  %v19170_v39 = vld [vmem:[#allocation15 + $0x564] sm:$0xf0]  ;;  %v16585_v61 = vld [vmem:[#allocation15 + $0x2f0] sm:$0xf0] }
 0x828   : > { %10212 = vmatmul.bf16.vlgmr.msra.gmra.mxu2 %v23843_v56  ;;  %v16393_v29 = vld [vmem:[#allocation15 + $0x170] sm:$0xf0] }
 0x829   : > { %10256 = vmatpush.bf16.msrb.mxu2 %v16704_v2  ;;  %10238 = vmatmul.bf16.vlgmr.msra.gmra.mxu0 %v23843_v56  ;;  %v16385_v2 = vld [vmem:[#allocation15 + $0x168] sm:$0xf0]  ;;  %v17161_v53 = vld [vmem:[#allocation15 + $0x770] sm:$0xf0] }
 0x82a   : > { %10282 = vmatpush.bf16.msrb.mxu0 %v16708_v31  ;;  %10221 = vmatpush.bf16.msra.mxu3 %v16952_v25  ;;  %v17152_v31 = vor.u32 %v19234_v11, %v17151_v45  ;;  %v16388_v62 = vor.u32 %v19034_v0, %v16385_v2  ;;  %v19218_v25 = vld [vmem:[#allocation15 + $0x6e4] sm:$0xf0] }
 0x82b   : > { %10247 = vmatpush.bf16.msra.mxu1 %v16956_v36  ;;  %v19018_v36 = vld [vmem:[#allocation15 + $0xac] sm:$0xf]  ;;  %v17088_v35 = vor.u32 %v19218_v25, %v17087_v4  ;;  %v16831_v2 = vld [vmem:[#allocation15 + $0x4a8] sm:$0xf]  ;;  %v16521_v4 = vld [vmem:[#allocation15 + $0x270] sm:$0xf0] }
 0x82c   : > { %v16767_v25 = vld [vmem:[#allocation15 + $0x428] sm:$0xf] }
 0x82d   : > { %10257 = vmatpush.bf16.msrb.mxu2 %v16640_v10  ;;  %v16321_v10 = vld [vmem:[#allocation15 + $0xe8] sm:$0xf0] }
 0x82e   : > { %10283 = vmatpush.bf16.msrb.mxu0 %v16644_v26  ;;  %10222 = vmatpush.bf16.msra.mxu3 %v16888_v49  ;;  %v16255_v26 = vld [vmem:[#allocation15 + $0x28] sm:$0xf]  ;;  %v16324_v47 = vor.u32 %v19018_v36, %v16321_v10  ;;  %v17092_v49 = vor.u32 %v19210_v5, %v17089_v37  ;;  %v19130_v37 = vld [vmem:[#allocation15 + $0x42c] sm:$0xf] }
 0x82f   : > { %10248 = vmatpush.bf16.msra.mxu1 %v16892_v18  ;;  %v19002_v18 = vld [vmem:[#allocation15 + $0x2c] sm:$0xf]  ;;  %v16256_v7 = vor.u32 %v19010_v13, %v16255_v26  ;;  %v19138_v5 = vld [vmem:[#allocation15 + $0x464] sm:$0xf0]  ;;  %v16524_v26 = vor.u32 %v19067_v38, %v16521_v4  ;;  %v17223_v13 = vld [vmem:[#allocation15 + $0x7b0] sm:$0xf] }
 0x830   : > { %v17224_v41 = vor.u32 %v19251_v55, %v17223_v13  ;;  %v19003_v38 = vld [vmem:[#allocation15 + $0x34] sm:$0xf]  ;;  %v16967_v13 = vld [vmem:[#allocation15 + $0x5b0] sm:$0xf] }
 0x831   : > { %10258 = vmatpush.bf16.msrb.mxu2 %v16576_v32  ;;  %v16257_v32 = vld [vmem:[#allocation15 + $0x68] sm:$0xf0]  ;;  %v16265_v4 = vld [vmem:[#allocation15 + $0x70] sm:$0xf0] }
 0x832   : > { %10284 = vmatpush.bf16.msrb.mxu0 %v16580_v1  ;;  %10223 = vmatpush.bf16.msra.mxu3 %v16824_v48  ;;  %v19123_v1 = vld [vmem:[#allocation15 + $0x3ec] sm:$0xf0]  ;;  %v16260_v28 = vor.u32 %v19002_v18, %v16257_v32  ;;  %v17028_v48 = vor.u32 %v19194_v50, %v17025_v63  ;;  %v16457_v18 = vld [vmem:[#allocation15 + $0x1f0] sm:$0xf0]  ;;  %v16768_v32 = vor.u32 %v19138_v5, %v16767_v25  ;;  %v19124_v5 = vld [vmem:[#allocation15 + $0x3f4] sm:$0xf0] }
 0x833   : > { %10249 = vmatpush.bf16.msra.mxu1 %v16828_v14  ;;  %v16712_v16 = vor.u32 %v19123_v1, %v16711_v33  ;;  %v16959_v14 = vld [vmem:[#allocation15 + $0x5a8] sm:$0xf]  ;;  %v19243_v50 = vld [vmem:[#allocation15 + $0x7b4] sm:$0xf] }
 0x834   : > { %v17225_v63 = vld [vmem:[#allocation15 + $0x7f0] sm:$0xf0] }
 0x835   : > { %10259 = vmatpush.bf16.msrb.mxu2 %v16512_v24  ;;  %v19186_v24 = vld [vmem:[#allocation15 + $0x5e4] sm:$0xf0] }
 0x836   : > { %10285 = vmatpush.bf16.msrb.mxu0 %v16516_v9  ;;  %10224 = vmatpush.bf16.msra.mxu3 %v16760_v51  ;;  %v16647_v9 = vld [vmem:[#allocation15 + $0x330] sm:$0xf]  ;;  %v16960_v30 = vor.u32 %v19186_v24, %v16959_v14  ;;  %v16895_v51 = vld [vmem:[#allocation15 + $0x528] sm:$0xf]  ;;  %v19035_v24 = vld [vmem:[#allocation15 + $0x134] sm:$0xf] }
 0x837   : > { %10250 = vmatpush.bf16.msra.mxu1 %v16764_v58  ;;  %v16648_v60 = vor.u32 %v19107_v43, %v16647_v9  ;;  %v16652_v58 = vor.u32 %v19099_v20, %v16649_v27  ;;  %v16896_v45 = vor.u32 %v19170_v39, %v16895_v51  ;;  %v19235_v14 = vld [vmem:[#allocation15 + $0x76c] sm:$0xf0]  ;;  %v23873_v43 = vld [vmem:[#allocation17] sm:$0x3]  ;;  %v16396_v27 = vor.u32 %v19035_v24, %v16393_v29  ;;  %v19332_v24 = vld [vmem:[%s24391_s19 + $0x78] sm:$0xff] }
 0x839   : > { %10260 = vmatpush.bf16.msrb.mxu2 %v16448_v57  ;;  %10225 = vmatmul.bf16.vlgmr.msra.gmra.mxu3 %v23847_v17  ;;  %v16897_v57 = vld [vmem:[#allocation15 + $0x568] sm:$0xf0] }
 0x83a   : > { %10269 = vmatpush.bf16.msrb.mxu3 %v17216_v52  ;;  %10286 = vmatpush.bf16.msrb.mxu0 %v16452_v6  ;;  %v16583_v52 = vld [vmem:[#allocation15 + $0x2b0] sm:$0xf] }
 0x83b   : > { %10295 = vmatpush.bf16.msrb.mxu1 %v17220_v23  ;;  %v19091_v6 = vld [vmem:[#allocation15 + $0x2ec] sm:$0xf0]  ;;  %v16900_v23 = vor.u32 %v19162_v44, %v16897_v57  ;;  %v16329_v57 = vld [vmem:[#allocation15 + $0xf0] sm:$0xf0] }
 0x83c   : > { %10251 = vmatmul.bf16.vlgmr.msra.gmra.mxu1 %v23847_v17  ;;  %v16584_v11 = vor.u32 %v19091_v6, %v16583_v52  ;;  %v19219_v44 = vld [vmem:[#allocation15 + $0x6ec] sm:$0xf0]  ;;  %v19211_v52 = vld [vmem:[#allocation15 + $0x6b4] sm:$0xf] }
 0x83d   : > { %10261 = vmatpush.bf16.msrb.mxu2 %v16384_v40  ;;  %v16588_v40 = vor.u32 %v19083_v12, %v16585_v61  ;;  %v17097_v6 = vld [vmem:[#allocation15 + $0x6f0] sm:$0xf0]  ;;  %v10415_v12 = vperm.slane %v23873_v43, 1 }
 0x83e   : > { %10270 = vmatpush.bf16.msrb.mxu3 %v17152_v31  ;;  %10287 = vmatpush.bf16.msrb.mxu0 %v16388_v62  ;;  %v16833_v31 = vld [vmem:[#allocation15 + $0x4e8] sm:$0xf0]  ;;  %v16519_v62 = vld [vmem:[#allocation15 + $0x230] sm:$0xf] }
 0x83f   : > { %10296 = vmatpush.bf16.msrb.mxu1 %v17156_v42  ;;  %v16832_v42 = vor.u32 %v19154_v15, %v16831_v2  ;;  %v16836_v36 = vor.u32 %v19146_v54, %v16833_v31  ;;  %v16520_v10 = vor.u32 %v19075_v34, %v16519_v62  ;;  %v17031_v31 = vld [vmem:[#allocation15 + $0x630] sm:$0xf]  ;;  %v17100_v34 = vor.u32 %v19211_v52, %v17097_v6 }
 0x840   : > { %v19203_v62 = vld [vmem:[#allocation15 + $0x66c] sm:$0xf0] }
 0x841   : > { %10262 = vmatpush.bf16.msrb.mxu2 %v16320_v22  ;;  %v16769_v22 = vld [vmem:[#allocation15 + $0x468] sm:$0xf0]  ;;  %v16839_v52 = vld [vmem:[#allocation15 + $0x4b0] sm:$0xf] }
 0x842   : > { %10271 = vmatpush.bf16.msrb.mxu3 %v17088_v35  ;;  %10288 = vmatpush.bf16.msrb.mxu0 %v16324_v47  ;;  %v16455_v35 = vld [vmem:[#allocation15 + $0x1b0] sm:$0xf]  ;;  %v16772_v33 = vor.u32 %v19130_v37, %v16769_v22  ;;  %v19116_v22 = vld [vmem:[#allocation15 + $0x3bc] sm:$0xf] }
 0x843   : > { %10297 = vmatpush.bf16.msrb.mxu1 %v17092_v49  ;;  %v19059_v47 = vld [vmem:[#allocation15 + $0x1ec] sm:$0xf0]  ;;  %v19051_v49 = vld [vmem:[#allocation15 + $0x1b4] sm:$0xf] }
 0x844   : > { %v23869_v0 = vpop.f32.mrf.mxu0  ;;  %v16456_v1 = vor.u32 %v19059_v47, %v16455_v35  ;;  %v16460_v59 = vor.u32 %v19051_v49, %v16457_v18  ;;  %v16268_v35 = vor.u32 %v19003_v38, %v16265_v4  ;;  %v10414_v47 = vperm.slane %v23873_v43, 0  ;;  %v19171_v43 = vld [vmem:[#allocation15 + $0x56c] sm:$0xf0]  ;;  %v19068_v38 = vld [vmem:[#allocation15 + $0x23c] sm:$0xf] }
 0x845   : > { %10263 = vmatpush.bf16.msrb.mxu2 %v16256_v7  ;;  %v19155_v6 = vld [vmem:[#allocation15 + $0x4ec] sm:$0xf0]  ;;  %v16529_v4 = vld [vmem:[#allocation15 + $0x278] sm:$0xf0] }
 0x846   : > { %10272 = vmatpush.bf16.msrb.mxu3 %v17024_v19  ;;  %10289 = vmatpush.bf16.msrb.mxu0 %v16260_v28  ;;  %v16391_v19 = vld [vmem:[#allocation15 + $0x130] sm:$0xf] }
 0x847   : > { %10298 = vmatpush.bf16.msrb.mxu1 %v17028_v48  ;;  %v19043_v28 = vld [vmem:[#allocation15 + $0x16c] sm:$0xf0] }
 0x848   : > { %10264 = vmatmul.bf16.vlgmr.msrb.gmra.mxu2 %v23843_v56  ;;  %v17159_v48 = vld [vmem:[#allocation15 + $0x730] sm:$0xf]  ;;  %v16392_v9 = vor.u32 %v19043_v28, %v16391_v19  ;;  %v19108_v19 = vld [vmem:[#allocation15 + $0x374] sm:$0xf0] }
 0x849   : > { %10308 = vmatpush.bf16.msra.mxu2 %v16712_v16  ;;  %10290 = vmatmul.bf16.vlgmr.msrb.gmra.mxu0 %v23843_v56  ;;  %v17228_v16 = vor.u32 %v19243_v50, %v17225_v63  ;;  %v17160_v20 = vor.u32 %v19235_v14, %v17159_v48  ;;  %v19179_v50 = vld [vmem:[#allocation15 + $0x5b4] sm:$0xf]  ;;  %v19100_v48 = vld [vmem:[#allocation15 + $0x33c] sm:$0xf] }
 0x84a   : > { %10334 = vmatpush.bf16.msra.mxu0 %v16716_v46  ;;  %10273 = vmatpush.bf16.msrb.mxu3 %v16960_v30  ;;  %v23871_v3 = vpop.f32.mrf.mxu2  ;;  %v19227_v46 = vld [vmem:[#allocation15 + $0x734] sm:$0xf]  ;;  %v16327_v30 = vld [vmem:[#allocation15 + $0xb0] sm:$0xf] }
 0x84b   : > { %10299 = vmatpush.bf16.msrb.mxu1 %v16964_v21  ;;  %v19027_v21 = vld [vmem:[#allocation15 + $0xec] sm:$0xf0]  ;;  %v17164_v51 = vor.u32 %v19227_v46, %v17161_v53  ;;  %v16969_v63 = vld [vmem:[#allocation15 + $0x5f0] sm:$0xf0] }
 0x84c   : > { %v10033_v7 = vpop.f32.mrf.mxu0  ;;  %v16328_v61 = vor.u32 %v19027_v21, %v16327_v30  ;;  %v16903_v53 = vld [vmem:[#allocation15 + $0x530] sm:$0xf] }
 0x84d   : > { %10309 = vmatpush.bf16.msra.mxu2 %v16648_v60  ;;  %v17095_v60 = vld [vmem:[#allocation15 + $0x6b0] sm:$0xf] }
 0x84e   : > { %10335 = vmatpush.bf16.msra.mxu0 %v16652_v58  ;;  %10274 = vmatpush.bf16.msrb.mxu3 %v16896_v45  ;;  %v19019_v58 = vld [vmem:[#allocation15 + $0xb4] sm:$0xf] }
 0x84f   : > { %10300 = vmatpush.bf16.msrb.mxu1 %v16900_v23  ;;  %v16263_v23 = vld [vmem:[#allocation15 + $0x30] sm:$0xf]  ;;  %v16332_v2 = vor.u32 %v19019_v58, %v16329_v57  ;;  %v16904_v57 = vor.u32 %v19171_v43, %v16903_v53  ;;  %v19236_v53 = vld [vmem:[#allocation15 + $0x774] sm:$0xf0] }
 0x851   : > { %10310 = vmatpush.bf16.msra.mxu2 %v16584_v11  ;;  %v17096_v11 = vor.u32 %v19219_v44, %v17095_v60  ;;  %v16593_v44 = vld [vmem:[#allocation15 + $0x2f8] sm:$0xf0] }
 0x852   : > { %10336 = vmatpush.bf16.msra.mxu0 %v16588_v40  ;;  %10275 = vmatpush.bf16.msrb.mxu3 %v16832_v42  ;;  %v10007_v39 = vpop.f32.mrf.mxu2  ;;  %v19011_v40 = vld [vmem:[#allocation15 + $0x6c] sm:$0xf0]  ;;  %v19195_v42 = vld [vmem:[#allocation15 + $0x634] sm:$0xf] }
 0x853   : > { %10301 = vmatpush.bf16.msrb.mxu1 %v16836_v36  ;;  %v17033_v36 = vld [vmem:[#allocation15 + $0x670] sm:$0xf0]  ;;  %v16264_v37 = vor.u32 %v19011_v40, %v16263_v23  ;;  %v19084_v39 = vld [vmem:[#allocation15 + $0x2bc] sm:$0xf] }
 0x854   : > { %v10044_v45 = vpop.f32.mrf.mxu1  ;;  %v17036_v55 = vor.u32 %v19195_v42, %v17033_v36  ;;  %v16841_v40 = vld [vmem:[#allocation15 + $0x4f0] sm:$0xf0]  ;;  %v16840_v42 = vor.u32 %v19155_v6, %v16839_v52  ;;  %v16775_v36 = vld [vmem:[#allocation15 + $0x430] sm:$0xf]  ;;  %v19028_v6 = vld [vmem:[#allocation15 + $0xf4] sm:$0xf0] }
 0x855   : > { %10311 = vmatpush.bf16.msra.mxu2 %v16520_v10  ;;  %v10045_v15 = vadd.f32 %v10044_v45, %v23869_v0  ;;  %v23879_v54 = vpop.f32.mrf.mxu0  ;;  %v16719_v10 = vld [vmem:[#allocation15 + $0x3b8] sm:$0xf]  ;;  %v17032_v0 = vor.u32 %v19203_v62, %v17031_v31 }
 0x856   : > { %10337 = vmatpush.bf16.msra.mxu0 %v16524_v26  ;;  %10276 = vmatpush.bf16.msrb.mxu3 %v16768_v32  ;;  %v16721_v26 = vld [vmem:[#allocation15 + $0x3f8] sm:$0xf0]  ;;  %v16720_v49 = vor.u32 %v19124_v5, %v16719_v10  ;;  %v19187_v32 = vld [vmem:[#allocation15 + $0x5ec] sm:$0xf0]  ;;  %v16527_v31 = vld [vmem:[#allocation15 + $0x238] sm:$0xf] }
 0x857   : > { %10302 = vmatpush.bf16.msrb.mxu1 %v16772_v33  ;;  %v10419_v25 = vadd.f32 %v10415_v12, %v10045_v15  ;;  %v16968_v29 = vor.u32 %v19187_v32, %v16967_v13  ;;  %v23893_v12 = vld [vmem:[#allocation17] sm:$0x3]  ;;  %v19076_v62 = vld [vmem:[#allocation15 + $0x274] sm:$0xf0] }
 0x858   : > { %v16463_v13 = vld [vmem:[#allocation15 + $0x1b8] sm:$0xf] }
 0x859   : > { %10312 = vmatpush.bf16.msra.mxu2 %v16456_v1  ;;  %10277 = vmatmul.bf16.vlgmr.msrb.gmra.mxu3 %v23847_v17  ;;  %v10421_v33 = vmax.f32 %v10419_v25, 0.0  ;;  %v16724_v1 = vor.u32 %v19116_v22, %v16721_v26  ;;  %v19139_v22 = vld [vmem:[#allocation15 + $0x46c] sm:$0xf0]  ;;  %v19131_v26 = vld [vmem:[#allocation15 + $0x434] sm:$0xf] }
 0x85a   : > { %10321 = vmatpush.bf16.msra.mxu3 %v17224_v41  ;;  %10338 = vmatpush.bf16.msra.mxu0 %v16460_v59  ;;  %v10018_v18 = vpop.f32.mrf.mxu3  ;;  %v16655_v59 = vld [vmem:[#allocation15 + $0x338] sm:$0xf] }
 0x85b   : > { %10347 = vmatpush.bf16.msra.mxu1 %v17228_v16  ;;  %v10019_v7 = vadd.f32 %v10018_v18, %v23871_v3  ;;  %v23883_v41 = vpop.f32.mrf.mxu2  ;;  %v16657_v16 = vld [vmem:[#allocation15 + $0x378] sm:$0xf0]  ;;  %v16972_v3 = vor.u32 %v19179_v50, %v16969_v63  ;;  %v10424_v30 = vrot.slane %v10421_v33, 7  ;;  %v19252_v32 = vld [vmem:[#allocation15 + $0x7f4] sm:$0xf0]  ;;  %v16776_v33 = vor.u32 %v19139_v22, %v16775_v36 }
 0x85c   : > { %10303 = vmatmul.bf16.vlgmr.msrb.gmra.mxu1 %v23847_v17  ;;  %v10046_v28 = vpop.f32.mrf.mxu1  ;;  %v16660_v60 = vor.u32 %v19100_v48, %v16657_v16  ;;  %v19052_v50 = vld [vmem:[#allocation15 + $0x1bc] sm:$0xf]  ;;  %v19204_v22 = vld [vmem:[#allocation15 + $0x674] sm:$0xf0] }
 0x85d   : > { %10313 = vmatpush.bf16.msra.mxu2 %v16392_v9  ;;  %v10418_v14 = vadd.f32 %v10414_v47, %v10019_v7  ;;  %v10085_v46 = vpop.f32.mrf.mxu0  ;;  %v16656_v9 = vor.u32 %v19108_v19, %v16655_v59  ;;  %v16532_v47 = vor.u32 %v19068_v38, %v16529_v4  ;;  %v16465_v63 = vld [vmem:[#allocation15 + $0x1f8] sm:$0xf0]  ;;  %v10433_v19 = vperm.slane %v23893_v12, 0  ;;  %v16399_v28 = vld [vmem:[#allocation15 + $0x138] sm:$0xf] }
 0x85e   : > { %10322 = vmatpush.bf16.msra.mxu3 %v17160_v20  ;;  %10339 = vmatpush.bf16.msra.mxu0 %v16396_v27  ;;  %v19163_v20 = vld [vmem:[#allocation15 + $0x534] sm:$0xf]  ;;  %v17233_v7 = vld [vmem:[#allocation15 + $0x7f8] sm:$0xf0]  ;;  %v16468_v16 = vor.u32 %v19052_v50, %v16465_v63  ;;  %v17167_v46 = vld [vmem:[#allocation15 + $0x738] sm:$0xf] }
 0x85f   : > { %10348 = vmatpush.bf16.msra.mxu1 %v17164_v51  ;;  %v16905_v27 = vld [vmem:[#allocation15 + $0x570] sm:$0xf0]  ;;  %v10420_v21 = vmax.f32 %v10418_v14, 0.0  ;;  %v19092_v51 = vld [vmem:[#allocation15 + $0x2f4] sm:$0xf0] }
 0x860   : > { %v16592_v45 = vor.u32 %v19092_v51, %v16591_v8  ;;  %v17169_v8 = vld [vmem:[#allocation15 + $0x778] sm:$0xf0]  ;;  %v16271_v38 = vld [vmem:[#allocation15 + $0x38] sm:$0xf] }
 0x861   : > { %10314 = vmatpush.bf16.msra.mxu2 %v16328_v61  ;;  %v10425_v58 = vsel %vm7950_vm7, %v10420_v21, %v10424_v30  ;;  %v16908_v61 = vor.u32 %v19163_v20, %v16905_v27  ;;  %v19036_v27 = vld [vmem:[#allocation15 + $0x13c] sm:$0xf]  ;;  %v19012_v4 = vld [vmem:[#allocation15 + $0x74] sm:$0xf0] }
 0x862   : > { %10323 = vmatpush.bf16.msra.mxu3 %v17096_v11  ;;  %10340 = vmatpush.bf16.msra.mxu0 %v16332_v2  ;;  %10429 = vst.msk [vmem:[#allocation6] ss:$8 sm:$0x3] %vm23886_vm11, %v10425_v58  ;;  %v10020_v23 = vpop.f32.mrf.mxu3  ;;  %v19147_v11 = vld [vmem:[#allocation15 + $0x4b4] sm:$0xf]  ;;  %v16596_v2 = vor.u32 %v19084_v39, %v16593_v44 }
 0x863   : > { %10349 = vmatpush.bf16.msra.mxu1 %v17100_v34  ;;  %v10059_v15 = vpop.f32.mrf.mxu2  ;;  %v10434_v34 = vperm.slane %v23893_v12, 1  ;;  %v16844_v10 = vor.u32 %v19147_v11, %v16841_v40  ;;  %v16401_v30 = vld [vmem:[#allocation15 + $0x178] sm:$0xf0]  ;;  %v16335_v44 = vld [vmem:[#allocation15 + $0xb8] sm:$0xf] }
 0x864   : > { %v10096_v25 = vpop.f32.mrf.mxu1  ;;  %v16404_v52 = vor.u32 %v19036_v27, %v16401_v30  ;;  %v19220_v12 = vld [vmem:[#allocation15 + $0x6f4] sm:$0xf0]  ;;  %v19020_v11 = vld [vmem:[#allocation15 + $0xbc] sm:$0xf] }
 0x865   : > { %10315 = vmatpush.bf16.msra.mxu2 %v16264_v37  ;;  %v10097_v5 = vadd.f32 %v10096_v25, %v23879_v54  ;;  %v16528_v37 = vor.u32 %v19076_v62, %v16527_v31  ;;  %v19212_v15 = vld [vmem:[#allocation15 + $0x6bc] sm:$0xf]  ;;  %v16336_v62 = vor.u32 %v19028_v6, %v16335_v44 }
 0x866   : > { %10324 = vmatpush.bf16.msra.mxu3 %v17032_v0  ;;  %10341 = vmatpush.bf16.msra.mxu0 %v16268_v35  ;;  %v16777_v0 = vld [vmem:[#allocation15 + $0x470] sm:$0xf0]  ;;  %v17105_v40 = vld [vmem:[#allocation15 + $0x6f8] sm:$0xf0] }
 0x867   : > { %10350 = vmatpush.bf16.msra.mxu1 %v17036_v55  ;;  %v19060_v55 = vld [vmem:[#allocation15 + $0x1f4] sm:$0xf0]  ;;  %v10438_v18 = vadd.f32 %v10434_v34, %v10097_v5  ;;  %v16780_v54 = vor.u32 %v19131_v26, %v16777_v0  ;;  %v10449_v34 = vld [vmem:[#allocation17] sm:$0x3]  ;;  %v17108_v5 = vor.u32 %v19212_v15, %v17105_v40  ;;  %v19004_v26 = vld [vmem:[#allocation15 + $0x3c] sm:$0xf] }
 0x868   : > { %10316 = vmatmul.bf16.vlgmr.msra.gmra.mxu2 %v23843_v56  ;;  %v23899_v35 = vpop.f32.mrf.mxu0  ;;  %v16464_v59 = vor.u32 %v19060_v55, %v16463_v13  ;;  %v16273_v0 = vld [vmem:[#allocation15 + $0x78] sm:$0xf0]  ;;  %v10467_v40 = vld [vmem:[#allocation17] sm:$0x3] }
 0x869   : > { %10360 = vmatpush.bf16.msrb.mxu2 %v16720_v49  ;;  %10342 = vmatmul.bf16.vlgmr.msra.gmra.mxu0 %v23843_v56  ;;  %v17231_v49 = vld [vmem:[#allocation15 + $0x7b8] sm:$0xf]  ;;  %v19196_v13 = vld [vmem:[#allocation15 + $0x63c] sm:$0xf]  ;;  %v16276_v63 = vor.u32 %v19004_v26, %v16273_v0 }
 0x86a   : > { %10386 = vmatpush.bf16.msrb.mxu0 %v16724_v1  ;;  %10325 = vmatpush.bf16.msra.mxu3 %v16968_v29  ;;  %v19244_v1 = vld [vmem:[#allocation15 + $0x7bc] sm:$0xf]  ;;  %v17232_v48 = vor.u32 %v19252_v32, %v17231_v49  ;;  %v10070_v14 = vpop.f32.mrf.mxu3  ;;  %v19044_v29 = vld [vmem:[#allocation15 + $0x174] sm:$0xf0] }
 0x86b   : > { %10351 = vmatpush.bf16.msra.mxu1 %v16972_v3  ;;  %v10440_v3 = vmax.f32 %v10438_v18, 0.0  ;;  %v10071_v43 = vadd.f32 %v10070_v14, %v23883_v41  ;;  %v23903_v20 = vpop.f32.mrf.mxu2  ;;  %v16400_v39 = vor.u32 %v19044_v29, %v16399_v28  ;;  %v17103_v41 = vld [vmem:[#allocation15 + $0x6b8] sm:$0xf]  ;;  %v17041_v55 = vld [vmem:[#allocation15 + $0x678] sm:$0xf0]  ;;  %v16272_v18 = vor.u32 %v19012_v4, %v16271_v38 }
 0x86c   : > { %v10098_v21 = vpop.f32.mrf.mxu1  ;;  %v10451_v28 = vperm.slane %v10449_v34, 0  ;;  %v19148_v44 = vld [vmem:[#allocation15 + $0x4bc] sm:$0xf] }
 0x86d   : > { %10361 = vmatpush.bf16.msrb.mxu2 %v16656_v9  ;;  %v17236_v9 = vor.u32 %v19244_v1, %v17233_v7  ;;  %v10437_v51 = vadd.f32 %v10433_v19, %v10071_v43  ;;  %v16975_v1 = vld [vmem:[#allocation15 + $0x5b8] sm:$0xf]  ;;  %v16977_v19 = vld [vmem:[#allocation15 + $0x5f8] sm:$0xf0] }
 0x86e   : > { %10387 = vmatpush.bf16.msrb.mxu0 %v16660_v60  ;;  %10326 = vmatpush.bf16.msra.mxu3 %v16904_v57  ;;  %v19228_v60 = vld [vmem:[#allocation15 + $0x73c] sm:$0xf]  ;;  %v17168_v57 = vor.u32 %v19236_v53, %v17167_v46  ;;  %v19188_v7 = vld [vmem:[#allocation15 + $0x5f4] sm:$0xf0] }
 0x86f   : > { %10352 = vmatpush.bf16.msra.mxu1 %v16908_v61  ;;  %v10443_v61 = vrot.slane %v10440_v3, 7  ;;  %v17172_v23 = vor.u32 %v19228_v60, %v17169_v8  ;;  %v16911_v46 = vld [vmem:[#allocation15 + $0x538] sm:$0xf]  ;;  %v19164_v3 = vld [vmem:[#allocation15 + $0x53c] sm:$0xf] }
 0x870   : > { %v10137_v58 = vpop.f32.mrf.mxu0  ;;  %v19172_v53 = vld [vmem:[#allocation15 + $0x574] sm:$0xf0] }
 0x871   : > { %10362 = vmatpush.bf16.msrb.mxu2 %v16592_v45  ;;  %v10439_v45 = vmax.f32 %v10437_v51, 0.0  ;;  %v16912_v30 = vor.u32 %v19172_v53, %v16911_v46  ;;  %v16847_v51 = vld [vmem:[#allocation15 + $0x4b8] sm:$0xf] }
 0x872   : > { %10388 = vmatpush.bf16.msrb.mxu0 %v16596_v2  ;;  %10327 = vmatpush.bf16.msra.mxu3 %v16840_v42  ;;  %v16337_v2 = vld [vmem:[#allocation15 + $0xf8] sm:$0xf0]  ;;  %v17104_v42 = vor.u32 %v19220_v12, %v17103_v41  ;;  %v10072_v36 = vpop.f32.mrf.mxu3  ;;  %v16783_v41 = vld [vmem:[#allocation15 + $0x438] sm:$0xf] }
 0x873   : > { %10353 = vmatpush.bf16.msra.mxu1 %v16844_v10  ;;  %v10444_v31 = vsel %vm7950_vm7, %v10439_v45, %v10443_v61  ;;  %v16340_v25 = vor.u32 %v19020_v11, %v16337_v2  ;;  %v17039_v10 = vld [vmem:[#allocation15 + $0x638] sm:$0xf]  ;;  %v19132_v61 = vld [vmem:[#allocation15 + $0x43c] sm:$0xf] }
 0x874   : > { %10447 = vst.msk [vmem:[#allocation6 + $0x1] ss:$8 sm:$0x3] %vm23886_vm11, %v10444_v31  ;;  %v17040_v50 = vor.u32 %v19204_v22, %v17039_v10  ;;  %v19140_v12 = vld [vmem:[#allocation15 + $0x474] sm:$0xf0] }
 0x875   : > { %10363 = vmatpush.bf16.msrb.mxu2 %v16528_v37  ;;  %v10111_v37 = vpop.f32.mrf.mxu2  ;;  %v16785_v45 = vld [vmem:[#allocation15 + $0x478] sm:$0xf0] }
 0x876   : > { %10389 = vmatpush.bf16.msrb.mxu0 %v16532_v47  ;;  %10328 = vmatpush.bf16.msra.mxu3 %v16776_v33  ;;  %v10452_v47 = vperm.slane %v10449_v34, 1  ;;  %v17044_v33 = vor.u32 %v19196_v13, %v17041_v55  ;;  %v16788_v11 = vor.u32 %v19132_v61, %v16785_v45  ;;  %v19315_v61 = vld [vmem:[#allocation18 + $0x1ec] sm:$0xf0]  ;;  %v19281_v45 = vld [vmem:[#allocation18 + $0xe4] sm:$0xf] }
 0x877   : > { %10354 = vmatpush.bf16.msra.mxu1 %v16780_v54 }
 0x878   : > { %v10148_v49 = vpop.f32.mrf.mxu1 }
 0x879   : > { %10364 = vmatpush.bf16.msrb.mxu2 %v16464_v59  ;;  %10329 = vmatmul.bf16.vlgmr.msra.gmra.mxu3 %v23847_v17  ;;  %v10149_v32 = vadd.f32 %v10148_v49, %v23899_v35  ;;  %v19180_v59 = vld [vmem:[#allocation15 + $0x5bc] sm:$0xf] }
 0x87a   : > { %10373 = vmatpush.bf16.msrb.mxu3 %v17232_v48  ;;  %10390 = vmatpush.bf16.msrb.mxu0 %v16468_v16  ;;  %v16976_v48 = vor.u32 %v19188_v7, %v16975_v1  ;;  %v16980_v29 = vor.u32 %v19180_v59, %v16977_v19 }
 0x87b   : > { %10399 = vmatpush.bf16.msrb.mxu1 %v17236_v9  ;;  %v10456_v54 = vadd.f32 %v10452_v47, %v10149_v32  ;;  %v10122_v16 = vpop.f32.mrf.mxu3  ;;  %v16913_v9 = vld [vmem:[#allocation15 + $0x578] sm:$0xf0] }
 0x87c   : > { %10355 = vmatmul.bf16.vlgmr.msra.gmra.mxu1 %v23847_v17  ;;  %v10123_v35 = vadd.f32 %v10122_v16, %v23903_v20  ;;  %v16916_v8 = vor.u32 %v19164_v3, %v16913_v9  ;;  %v16849_v20 = vld [vmem:[#allocation15 + $0x4f8] sm:$0xf0]  ;;  %v10503_v9 = vld [vmem:[#allocation17] sm:$0x3] }
 0x87d   : > { %10365 = vmatpush.bf16.msrb.mxu2 %v16400_v39  ;;  %v10458_v14 = vmax.f32 %v10456_v54, 0.0  ;;  %v19156_v39 = vld [vmem:[#allocation15 + $0x4f4] sm:$0xf0]  ;;  %v16852_v6 = vor.u32 %v19148_v44, %v16849_v20 }
 0x87e   : > { %10374 = vmatpush.bf16.msrb.mxu3 %v17168_v57  ;;  %10391 = vmatpush.bf16.msrb.mxu0 %v16404_v52  ;;  %v10455_v43 = vadd.f32 %v10451_v28, %v10123_v35 }
 0x87f   : > { %10400 = vmatpush.bf16.msrb.mxu1 %v17172_v23  ;;  %v10461_v21 = vrot.slane %v10458_v14, 7  ;;  %v16784_v23 = vor.u32 %v19140_v12, %v16783_v41 }
 0x880   : > { %v10150_v27 = vpop.f32.mrf.mxu1  ;;  %v10457_v60 = vmax.f32 %v10455_v43, 0.0  ;;  %v10506_v43 = vperm.slane %v10503_v9, 1 }
 0x881   : > { %10366 = vmatpush.bf16.msrb.mxu2 %v16336_v62  ;;  %v10470_v62 = vperm.slane %v10467_v40, 1 }
 0x882   : > { %10375 = vmatpush.bf16.msrb.mxu3 %v17104_v42  ;;  %10392 = vmatpush.bf16.msrb.mxu0 %v16340_v25  ;;  %v10462_v58 = vsel %vm7950_vm7, %v10457_v60, %v10461_v21  ;;  %v10469_v42 = vperm.slane %v10467_v40, 0  ;;  %v10505_v60 = vperm.slane %v10503_v9, 0 }
 0x883   : > { %10401 = vmatpush.bf16.msrb.mxu1 %v17108_v5  ;;  %10465 = vst.msk [vmem:[#allocation6 + $0x2] ss:$8 sm:$0x3] %vm23886_vm11, %v10462_v58  ;;  %v10124_v52 = vpop.f32.mrf.mxu3 }
 0x884   : > { %v19283_v52 = vld [vmem:[#allocation18 + $0xec] sm:$0xf0] }
 0x885   : > { %10367 = vmatpush.bf16.msrb.mxu2 %v16272_v18  ;;  %v10485_v18 = vld [vmem:[#allocation17] sm:$0x3] }
 0x886   : > { %10376 = vmatpush.bf16.msrb.mxu3 %v17040_v50  ;;  %10393 = vmatpush.bf16.msrb.mxu0 %v16276_v63  ;;  %v10187_v57 = vpop.f32.mrf.mxu0  ;;  %v10488_v32 = vperm.slane %v10485_v18, 1  ;;  %v10487_v1 = vperm.slane %v10485_v18, 0 }
 0x887   : > { %10402 = vmatpush.bf16.msrb.mxu1 %v17044_v33 }
 0x888   : > { %10368 = vmatmul.bf16.vlgmr.msrb.gmra.mxu2 %v23843_v56 }
 0x889   : > { %10394 = vmatmul.bf16.vlgmr.msrb.gmra.mxu0 %v23843_v56  ;;  %v16848_v56 = vor.u32 %v19156_v39, %v16847_v51 }
 0x88a   : > { %10377 = vmatpush.bf16.msrb.mxu3 %v16976_v48 }
 0x88b   : > { %10403 = vmatpush.bf16.msrb.mxu1 %v16980_v29  ;;  %v10161_v2 = vpop.f32.mrf.mxu2 }
 0x88e   : > { %10378 = vmatpush.bf16.msrb.mxu3 %v16912_v30  ;;  %v10189_v15 = vpop.f32.mrf.mxu0 }
 0x88f   : > { %10404 = vmatpush.bf16.msrb.mxu1 %v16916_v8 }
 0x892   : > { %10379 = vmatpush.bf16.msrb.mxu3 %v16848_v56  ;;  %v17351_v56 = vld [vmem:[#allocation18 + $0xe0] sm:$0xf] }
 0x893   : > { %10405 = vmatpush.bf16.msrb.mxu1 %v16852_v6  ;;  %v10163_v31 = vpop.f32.mrf.mxu2  ;;  %v17479_v6 = vld [vmem:[#allocation18 + $0x1e0] sm:$0xf]  ;;  %v17352_v12 = vor.u32 %v19283_v52, %v17351_v56  ;;  %v17417_v56 = vld [vmem:[#allocation18 + $0x170] sm:$0xf0] }
 0x894   : > { %v17480_v15 = vor.u32 %v19315_v61, %v17479_v6  ;;  %v19313_v31 = vld [vmem:[#allocation18 + $0x1e4] sm:$0xf] }
 0x895   : > { %10955 = vmatpush.bf16.msra.mxu2 %v17352_v12 }
 0x896   : > { %10380 = vmatpush.bf16.msrb.mxu3 %v16784_v23  ;;  %v17353_v23 = vld [vmem:[#allocation18 + $0xf0] sm:$0xf0] }
 0x897   : > { %10406 = vmatpush.bf16.msrb.mxu1 %v16788_v11  ;;  %v17356_v40 = vor.u32 %v19281_v45, %v17353_v23 }
 0x899   : > { %10381 = vmatmul.bf16.vlgmr.msrb.gmra.mxu3 %v23847_v17  ;;  %v10200_v34 = vpop.f32.mrf.mxu1  ;;  %10981 = vmatpush.bf16.msra.mxu0 %v17356_v40 }
 0x89a   : > { %10407 = vmatmul.bf16.vlgmr.msrb.gmra.mxu1 %v23847_v17  ;;  %v10201_v38 = vadd.f32 %v10200_v34, %v10187_v57  ;;  %v17335_v34 = vld [vmem:[#allocation18 + $0xc0] sm:$0xf]  ;;  %10968 = vmatpush.bf16.msra.mxu3 %v17480_v15 }
 0x89c   : > { %v10474_v4 = vadd.f32 %v10470_v62, %v10201_v38  ;;  %v10174_v25 = vpop.f32.mrf.mxu3  ;;  %v17481_v62 = vld [vmem:[#allocation18 + $0x1f0] sm:$0xf0]  ;;  %v19279_v38 = vld [vmem:[#allocation18 + $0xcc] sm:$0xf0] }
 0x89d   : > { %v10175_v10 = vadd.f32 %v10174_v25, %v10161_v2  ;;  %v17463_v25 = vld [vmem:[#allocation18 + $0x1c0] sm:$0xf] }
 0x89e   : > { %v10476_v36 = vmax.f32 %v10474_v4, 0.0  ;;  %v17484_v4 = vor.u32 %v19313_v31, %v17481_v62  ;;  %v17271_v31 = vld [vmem:[#allocation18 + $0x40] sm:$0xf]  ;;  %v19263_v62 = vld [vmem:[#allocation18 + $0x4c] sm:$0xf0] }
 0x89f   : > { %v10473_v5 = vadd.f32 %v10469_v42, %v10175_v10  ;;  %v17336_v42 = vor.u32 %v19279_v38, %v17335_v34  ;;  %v19277_v10 = vld [vmem:[#allocation18 + $0xc4] sm:$0xf]  ;;  %v17272_v38 = vor.u32 %v19263_v62, %v17271_v31  ;;  %v17345_v62 = vld [vmem:[#allocation18 + $0xd8] sm:$0xf0] }
 0x8a0   : > { %v10479_v22 = vrot.slane %v10476_v36, 7  ;;  %v19311_v36 = vld [vmem:[#allocation18 + $0x1cc] sm:$0xf0]  ;;  %10994 = vmatpush.bf16.msra.mxu1 %v17484_v4  ;;  %v17399_v4 = vld [vmem:[#allocation18 + $0x140] sm:$0xf] }
 0x8a1   : > { %v10202_v37 = vpop.f32.mrf.mxu1  ;;  %v10475_v26 = vmax.f32 %v10473_v5, 0.0  ;;  %v17464_v5 = vor.u32 %v19311_v36, %v17463_v25  ;;  %10956 = vmatpush.bf16.msra.mxu2 %v17336_v42  ;;  %v19295_v42 = vld [vmem:[#allocation18 + $0x14c] sm:$0xf0]  ;;  %v19261_v25 = vld [vmem:[#allocation18 + $0x44] sm:$0xf] }
 0x8a2   : > { %v17337_v37 = vld [vmem:[#allocation18 + $0xd0] sm:$0xf0]  ;;  %v17400_v36 = vor.u32 %v19295_v42, %v17399_v4 }
 0x8a3   : > { %v10480_v0 = vsel %vm7950_vm7, %v10475_v26, %v10479_v22  ;;  %v19309_v22 = vld [vmem:[#allocation18 + $0x1c4] sm:$0xf]  ;;  %v17465_v26 = vld [vmem:[#allocation18 + $0x1d0] sm:$0xf0]  ;;  %10969 = vmatpush.bf16.msra.mxu3 %v17464_v5 }
 0x8a4   : > { %10483 = vst.msk [vmem:[#allocation6 + $0x3] ss:$8 sm:$0x3] %vm23886_vm11, %v10480_v0  ;;  %v10176_v47 = vpop.f32.mrf.mxu3  ;;  %v17340_v0 = vor.u32 %v19277_v10, %v17337_v37  ;;  %v17273_v10 = vld [vmem:[#allocation18 + $0x50] sm:$0xf0] }
 0x8a5   : > { %v17319_v47 = vld [vmem:[#allocation18 + $0xa0] sm:$0xf]  ;;  %v19293_v5 = vld [vmem:[#allocation18 + $0x144] sm:$0xf] }
 0x8a6   : > { %v10239_v17 = vpop.f32.mrf.mxu0  ;;  %10982 = vmatpush.bf16.msra.mxu0 %v17340_v0  ;;  %v17255_v0 = vld [vmem:[#allocation18 + $0x20] sm:$0xf] }
 0x8ab   : > { %v10213_v13 = vpop.f32.mrf.mxu2 }
 0x8ae   : > { %v10241_v55 = vpop.f32.mrf.mxu0 }
 0x8af   : > { %v17447_v55 = vld [vmem:[#allocation18 + $0x1a0] sm:$0xf] }
 0x8b3   : > { %v10215_v49 = vpop.f32.mrf.mxu2 }
 0x8b9   : > { %v10252_v50 = vpop.f32.mrf.mxu1 }
 0x8ba   : > { %v10253_v63 = vadd.f32 %v10252_v50, %v10239_v17  ;;  %v17468_v17 = vor.u32 %v19309_v22, %v17465_v26  ;;  %v19273_v50 = vld [vmem:[#allocation18 + $0xa4] sm:$0xf]  ;;  %v17401_v26 = vld [vmem:[#allocation18 + $0x150] sm:$0xf0] }
 0x8bc   : > { %v10492_v33 = vadd.f32 %v10488_v32, %v10253_v63  ;;  %v10226_v7 = vpop.f32.mrf.mxu3  ;;  %v19307_v32 = vld [vmem:[#allocation18 + $0x1ac] sm:$0xf0]  ;;  %v17321_v63 = vld [vmem:[#allocation18 + $0xb0] sm:$0xf0]  ;;  %10995 = vmatpush.bf16.msra.mxu1 %v17468_v17 }
 0x8bd   : > { %v10227_v59 = vadd.f32 %v10226_v7, %v10213_v13  ;;  %v19275_v13 = vld [vmem:[#allocation18 + $0xac] sm:$0xf0]  ;;  %v19305_v7 = vld [vmem:[#allocation18 + $0x1a4] sm:$0xf] }
 0x8be   : > { %v10494_v54 = vmax.f32 %v10492_v33, 0.0  ;;  %v17320_v18 = vor.u32 %v19275_v13, %v17319_v47  ;;  %v17448_v33 = vor.u32 %v19307_v32, %v17447_v55  ;;  %v19259_v17 = vld [vmem:[#allocation18 + $0x2c] sm:$0xf0]  ;;  %v17404_v47 = vor.u32 %v19293_v5, %v17401_v26  ;;  %v17383_v55 = vld [vmem:[#allocation18 + $0x120] sm:$0xf] }
 0x8bf   : > { %v10491_v19 = vadd.f32 %v10487_v1, %v10227_v59  ;;  %v17324_v1 = vor.u32 %v19273_v50, %v17321_v63  ;;  %v17303_v59 = vld [vmem:[#allocation18 + $0x80] sm:$0xf]  ;;  %v17256_v13 = vor.u32 %v19259_v17, %v17255_v0  ;;  %v19306_v0 = vld [vmem:[#allocation18 + $0x1ac] sm:$0xf]  ;;  %v17457_v17 = vld [vmem:[#allocation18 + $0x1b8] sm:$0xf0] }
 0x8c0   : > { %v10497_v48 = vrot.slane %v10494_v54, 7  ;;  %v17449_v54 = vld [vmem:[#allocation18 + $0x1b0] sm:$0xf0]  ;;  %10957 = vmatpush.bf16.msra.mxu2 %v17320_v18  ;;  %10970 = vmatpush.bf16.msra.mxu3 %v17448_v33  ;;  %v19291_v18 = vld [vmem:[#allocation18 + $0x12c] sm:$0xf0] }
 0x8c1   : > { %v10254_v28 = vpop.f32.mrf.mxu1  ;;  %v10493_v16 = vmax.f32 %v10491_v19, 0.0  ;;  %v19271_v19 = vld [vmem:[#allocation18 + $0x8c] sm:$0xf0]  ;;  %10983 = vmatpush.bf16.msra.mxu0 %v17324_v1  ;;  %v17384_v63 = vor.u32 %v19291_v18, %v17383_v55  ;;  %v17257_v33 = vld [vmem:[#allocation18 + $0x30] sm:$0xf0] }
 0x8c2   : > { %v17431_v28 = vld [vmem:[#allocation18 + $0x180] sm:$0xf]  ;;  %v19289_v1 = vld [vmem:[#allocation18 + $0x124] sm:$0xf]  ;;  %v17311_v55 = vld [vmem:[#allocation18 + $0x88] sm:$0xf] }
 0x8c3   : > { %v10498_v14 = vsel %vm7950_vm7, %v10493_v16, %v10497_v48  ;;  %v19303_v48 = vld [vmem:[#allocation18 + $0x18c] sm:$0xf0]  ;;  %v19272_v18 = vld [vmem:[#allocation18 + $0x94] sm:$0xf0] }
 0x8c4   : > { %10501 = vst.msk [vmem:[#allocation6 + $0x4] ss:$8 sm:$0x3] %vm23886_vm11, %v10498_v14  ;;  %v10228_v35 = vpop.f32.mrf.mxu3  ;;  %v17452_v14 = vor.u32 %v19305_v7, %v17449_v54  ;;  %v17432_v9 = vor.u32 %v19303_v48, %v17431_v28  ;;  %v17385_v54 = vld [vmem:[#allocation18 + $0x130] sm:$0xf0] }
 0x8c5   : > { %v17305_v35 = vld [vmem:[#allocation18 + $0x90] sm:$0xf0]  ;;  %v17388_v48 = vor.u32 %v19289_v1, %v17385_v54  ;;  %v17313_v1 = vld [vmem:[#allocation18 + $0x98] sm:$0xf0] }
 0x8c6   : > { %v10291_v29 = vpop.f32.mrf.mxu0  ;;  %10996 = vmatpush.bf16.msra.mxu1 %v17452_v14  ;;  %10971 = vmatpush.bf16.msra.mxu3 %v17432_v9  ;;  %v17367_v14 = vld [vmem:[#allocation18 + $0x100] sm:$0xf]  ;;  %v17241_v9 = vld [vmem:[#allocation18 + $0x10] sm:$0xf0]  ;;  %v17441_v54 = vld [vmem:[#allocation18 + $0x198] sm:$0xf0] }
 0x8cb   : > { %v10265_v46 = vpop.f32.mrf.mxu2 }
 0x8ce   : > { %v10293_v53 = vpop.f32.mrf.mxu0 }
 0x8cf   : > { %v19301_v53 = vld [vmem:[#allocation18 + $0x184] sm:$0xf] }
 0x8d3   : > { %v10267_v3 = vpop.f32.mrf.mxu2 }
 0x8d4   : > { %v17433_v3 = vld [vmem:[#allocation18 + $0x190] sm:$0xf0] }
 0x8d9   : > { %v10304_v27 = vpop.f32.mrf.mxu1 }
 0x8da   : > { %v10305_v30 = vadd.f32 %v10304_v27, %v10291_v29  ;;  %v19269_v29 = vld [vmem:[#allocation18 + $0x84] sm:$0xf]  ;;  %v17287_v27 = vld [vmem:[#allocation18 + $0x60] sm:$0xf] }
 0x8dc   : > { %v10510_v21 = vadd.f32 %v10506_v43, %v10305_v30  ;;  %v10278_v8 = vpop.f32.mrf.mxu3  ;;  %v17308_v43 = vor.u32 %v19269_v29, %v17305_v35  ;;  %v19267_v30 = vld [vmem:[#allocation18 + $0x6c] sm:$0xf0]  ;;  %v19253_v35 = vld [vmem:[#allocation18 + $0x4] sm:$0xf] }
 0x8dd   : > { %v10279_v39 = vadd.f32 %v10278_v8, %v10265_v46  ;;  %v17304_v46 = vor.u32 %v19271_v19, %v17303_v59  ;;  %v19265_v8 = vld [vmem:[#allocation18 + $0x64] sm:$0xf]  ;;  %v17239_v59 = vld [vmem:[#allocation18] sm:$0xf]  ;;  %v19255_v19 = vld [vmem:[#allocation18 + $0xc] sm:$0xf0] }
 0x8de   : > { %v10512_v51 = vmax.f32 %v10510_v21, 0.0  ;;  %v17415_v21 = vld [vmem:[#allocation18 + $0x160] sm:$0xf]  ;;  %10984 = vmatpush.bf16.msra.mxu0 %v17308_v43  ;;  %v19287_v29 = vld [vmem:[#allocation18 + $0x10c] sm:$0xf0]  ;;  %v17244_v43 = vor.u32 %v19253_v35, %v17241_v9 }
 0x8df   : > { %v10509_v44 = vadd.f32 %v10505_v60, %v10279_v39  ;;  %v19299_v60 = vld [vmem:[#allocation18 + $0x16c] sm:$0xf0]  ;;  %v17436_v39 = vor.u32 %v19301_v53, %v17433_v3  ;;  %10958 = vmatpush.bf16.msra.mxu2 %v17304_v46  ;;  %v17368_v3 = vor.u32 %v19287_v29, %v17367_v14  ;;  %v19268_v14 = vld [vmem:[#allocation18 + $0x74] sm:$0xf0]  ;;  %v19266_v9 = vld [vmem:[#allocation18 + $0x6c] sm:$0xf] }
 0x8e0   : > { %v10515_v58 = vrot.slane %v10512_v51, 7  ;;  %v17289_v51 = vld [vmem:[#allocation18 + $0x70] sm:$0xf0]  ;;  %v17416_v52 = vor.u32 %v19299_v60, %v17415_v21  ;;  %v17359_v21 = vld [vmem:[#allocation18 + $0xe8] sm:$0xf] }
 0x8e1   : > { %v10306_v20 = vpop.f32.mrf.mxu1  ;;  %v10511_v57 = vmax.f32 %v10509_v44, 0.0  ;;  %v17292_v6 = vor.u32 %v19265_v8, %v17289_v51  ;;  %10997 = vmatpush.bf16.msra.mxu1 %v17436_v39  ;;  %v19284_v8 = vld [vmem:[#allocation18 + $0xf4] sm:$0xf0]  ;;  %v17487_v51 = vld [vmem:[#allocation18 + $0x1e8] sm:$0xf] }
 0x8e2   : > { %v10521_v20 = vld [vmem:[#allocation17] sm:$0x3]  ;;  %10972 = vmatpush.bf16.msra.mxu3 %v17416_v52  ;;  %v19316_v39 = vld [vmem:[#allocation18 + $0x1f4] sm:$0xf0] }
 0x8e3   : > { %v10516_v41 = vsel %vm7950_vm7, %v10511_v57, %v10515_v58  ;;  %v17288_v58 = vor.u32 %v19267_v30, %v17287_v27  ;;  %v19297_v57 = vld [vmem:[#allocation18 + $0x164] sm:$0xf]  ;;  %10985 = vmatpush.bf16.msra.mxu0 %v17292_v6  ;;  %v17369_v30 = vld [vmem:[#allocation18 + $0x110] sm:$0xf0]  ;;  %v17489_v6 = vld [vmem:[#allocation18 + $0x1f8] sm:$0xf0] }
 0x8e4   : > { %10519 = vst.msk [vmem:[#allocation6 + $0x5] ss:$8 sm:$0x3] %vm23886_vm11, %v10516_v41  ;;  %v10280_v2 = vpop.f32.mrf.mxu3  ;;  %v10524_v41 = vperm.slane %v10521_v20, 1  ;;  %v17420_v12 = vor.u32 %v19297_v57, %v17417_v56  ;;  %v19285_v27 = vld [vmem:[#allocation18 + $0x104] sm:$0xf] }
 0x8e5   : > { %10959 = vmatpush.bf16.msra.mxu2 %v17288_v58  ;;  %v10523_v2 = vperm.slane %v10521_v20, 0  ;;  %v17372_v60 = vor.u32 %v19285_v27, %v17369_v30  ;;  %v17488_v20 = vor.u32 %v19316_v39, %v17487_v51  ;;  %v19282_v58 = vld [vmem:[#allocation18 + $0xec] sm:$0xf]  ;;  %v17361_v57 = vld [vmem:[#allocation18 + $0xf8] sm:$0xf0] }
 0x8e6   : > { %v23928_v11 = vpop.f32.mrf.mxu0  ;;  %10998 = vmatpush.bf16.msra.mxu1 %v17420_v12  ;;  %10973 = vmatpush.bf16.msra.mxu3 %v17400_v36  ;;  %v19314_v56 = vld [vmem:[#allocation18 + $0x1ec] sm:$0xf]  ;;  %v17364_v52 = vor.u32 %v19282_v58, %v17361_v57  ;;  %v19280_v12 = vld [vmem:[#allocation18 + $0xd4] sm:$0xf0]  ;;  %v17425_v30 = vld [vmem:[#allocation18 + $0x178] sm:$0xf0] }
 0x8e7   : > { %v19276_v36 = vld [vmem:[#allocation18 + $0xb4] sm:$0xf0]  ;;  %v19298_v27 = vld [vmem:[#allocation18 + $0x16c] sm:$0xf]  ;;  %v17279_v39 = vld [vmem:[#allocation18 + $0x48] sm:$0xf] }
 0x8e8   : > { %v17428_v58 = vor.u32 %v19298_v27, %v17425_v30  ;;  %v17407_v57 = vld [vmem:[#allocation18 + $0x148] sm:$0xf]  ;;  %v19323_v27 = vld [vmem:[%s24391_s19 + $0x30] sm:$0xff] }
 0x8e9   : > { %10960 = vmatpush.bf16.msra.mxu2 %v17272_v38  ;;  %v17473_v38 = vld [vmem:[#allocation18 + $0x1d8] sm:$0xf0] }
 0x8ea   : > { %10999 = vmatpush.bf16.msra.mxu1 %v17404_v47  ;;  %10974 = vmatpush.bf16.msra.mxu3 %v17384_v63  ;;  %v23938_v47 = vld [vmem:[#allocation17] sm:$0x3]  ;;  %v19304_v63 = vld [vmem:[#allocation18 + $0x194] sm:$0xf0] }
 0x8eb   : > { %v10317_v49 = vpop.f32.mrf.mxu2  ;;  %v19347_v30 = vld [vmem:[%s24391_s19 + $0xf0] sm:$0xff] }
 0x8ed   : > { %10961 = vmatpush.bf16.msra.mxu2 %v17256_v13 }
 0x8ee   : > { %v10345_v16 = vpop.f32.mrf.mxu0  ;;  %11000 = vmatpush.bf16.msra.mxu1 %v17388_v48  ;;  %10975 = vmatpush.bf16.msra.mxu3 %v17368_v3  ;;  %v19300_v3 = vld [vmem:[#allocation18 + $0x174] sm:$0xf0] }
 0x8ef   : > { %v17240_v16 = vor.u32 %v19255_v19, %v17239_v59  ;;  %v17312_v19 = vor.u32 %v19272_v18, %v17311_v55 }
 0x8f1   : > { %10962 = vmatpush.bf16.msra.mxu2 %v17240_v16  ;;  %v17295_v16 = vld [vmem:[#allocation18 + $0x68] sm:$0xf] }
 0x8f2   : > { %11001 = vmatpush.bf16.msra.mxu1 %v17372_v60  ;;  %11020 = vmatpush.bf16.msrb.mxu3 %v17488_v20  ;;  %v17296_v60 = vor.u32 %v19268_v14, %v17295_v16 }
 0x8f3   : > { %v10319_v44 = vpop.f32.mrf.mxu2 }
 0x8f4   : > { %v17360_v44 = vor.u32 %v19284_v8, %v17359_v21 }
 0x8f6   : > { %11007 = vmatpush.bf16.msrb.mxu2 %v17360_v44  ;;  %v19264_v44 = vld [vmem:[#allocation18 + $0x54] sm:$0xf0] }
 0x8f9   : > { %v10356_v61 = vpop.f32.mrf.mxu1 }
 0x8fa   : > { %v10357_v45 = vadd.f32 %v10356_v61, %v23928_v11  ;;  %v17276_v11 = vor.u32 %v19261_v25, %v17273_v10  ;;  %v17327_v25 = vld [vmem:[#allocation18 + $0xa8] sm:$0xf] }
 0x8fb   : > { %v17455_v10 = vld [vmem:[#allocation18 + $0x1a8] sm:$0xf]  ;;  %v17328_v26 = vor.u32 %v19276_v36, %v17327_v25  ;;  %v19292_v25 = vld [vmem:[#allocation18 + $0x134] sm:$0xf0]  ;;  %v19258_v36 = vld [vmem:[#allocation18 + $0x2c] sm:$0xf] }
 0x8fc   : > { %v10528_v23 = vadd.f32 %v10524_v41, %v10357_v45  ;;  %v10330_v40 = vpop.f32.mrf.mxu3  ;;  %10986 = vmatpush.bf16.msra.mxu0 %v17276_v11  ;;  %v17343_v41 = vld [vmem:[#allocation18 + $0xc8] sm:$0xf]  ;;  %v17492_v45 = vor.u32 %v19314_v56, %v17489_v6  ;;  %v17329_v11 = vld [vmem:[#allocation18 + $0xb8] sm:$0xf0]  ;;  %v19296_v56 = vld [vmem:[#allocation18 + $0x154] sm:$0xf0] }
 0x8fd   : > { %v10331_v34 = vadd.f32 %v10330_v40, %v10317_v49  ;;  %v19257_v49 = vld [vmem:[#allocation18 + $0x24] sm:$0xf]  ;;  %v19278_v40 = vld [vmem:[#allocation18 + $0xcc] sm:$0xf] }
 0x8fe   : > { %v10530_v15 = vmax.f32 %v10528_v23, 0.0  ;;  %v17260_v7 = vor.u32 %v19257_v49, %v17257_v33  ;;  %v17344_v23 = vor.u32 %v19280_v12, %v17343_v41  ;;  %11046 = vmatpush.bf16.msrb.mxu1 %v17492_v45  ;;  %v17348_v4 = vor.u32 %v19278_v40, %v17345_v62  ;;  %v19270_v33 = vld [vmem:[#allocation18 + $0x8c] sm:$0xf]  ;;  %v17281_v41 = vld [vmem:[#allocation18 + $0x58] sm:$0xf0] }
 0x8ff   : > { %v10527_v37 = vadd.f32 %v10523_v2, %v10331_v34  ;;  %v17471_v2 = vld [vmem:[#allocation18 + $0x1c8] sm:$0xf]  ;;  %v19310_v34 = vld [vmem:[#allocation18 + $0x1cc] sm:$0xf]  ;;  %v17316_v29 = vor.u32 %v19270_v33, %v17313_v1  ;;  %v17409_v45 = vld [vmem:[#allocation18 + $0x158] sm:$0xf0] }
 0x900   : > { %v10533_v32 = vrot.slane %v10530_v15, 7  ;;  %10987 = vmatpush.bf16.msra.mxu0 %v17260_v7  ;;  %v19312_v15 = vld [vmem:[#allocation18 + $0x1d4] sm:$0xf0]  ;;  %v17476_v42 = vor.u32 %v19310_v34, %v17473_v38  ;;  %11008 = vmatpush.bf16.msrb.mxu2 %v17344_v23  ;;  %v19302_v7 = vld [vmem:[#allocation18 + $0x18c] sm:$0xf]  ;;  %v10541_v23 = vperm.slane %v23938_v47, 0 }
 0x901   : > { %v10358_v22 = vpop.f32.mrf.mxu1  ;;  %v10529_v50 = vmax.f32 %v10527_v37, 0.0  ;;  %v17472_v31 = vor.u32 %v19312_v15, %v17471_v2  ;;  %v19308_v37 = vld [vmem:[#allocation18 + $0x1b4] sm:$0xf0]  ;;  %v17444_v35 = vor.u32 %v19302_v7, %v17441_v54  ;;  %v19294_v12 = vld [vmem:[#allocation18 + $0x14c] sm:$0xf]  ;;  %v17280_v2 = vor.u32 %v19264_v44, %v17279_v39 }
 0x902   : > { %v19274_v22 = vld [vmem:[#allocation18 + $0xac] sm:$0xf]  ;;  %v17456_v13 = vor.u32 %v19308_v37, %v17455_v10  ;;  %11047 = vmatpush.bf16.msrb.mxu1 %v17476_v42  ;;  %v17408_v15 = vor.u32 %v19296_v56, %v17407_v57  ;;  %v17263_v40 = vld [vmem:[#allocation18 + $0x28] sm:$0xf]  ;;  %v17412_v42 = vor.u32 %v19294_v12, %v17409_v45  ;;  %v17265_v10 = vld [vmem:[#allocation18 + $0x38] sm:$0xf0] }
 0x903   : > { %v10534_v28 = vsel %vm7950_vm7, %v10529_v50, %v10533_v32  ;;  %11021 = vmatpush.bf16.msrb.mxu3 %v17472_v31  ;;  %v17332_v49 = vor.u32 %v19274_v22, %v17329_v11  ;;  %v17460_v32 = vor.u32 %v19306_v0, %v17457_v17  ;;  %v17439_v50 = vld [vmem:[#allocation18 + $0x188] sm:$0xf]  ;;  %v19260_v31 = vld [vmem:[#allocation18 + $0x34] sm:$0xf0]  ;;  %v17393_v37 = vld [vmem:[#allocation18 + $0x138] sm:$0xf0]  ;;  %v17268_v18 = vor.u32 %v19258_v36, %v17265_v10 }
 0x904   : > { %10537 = vst.msk [vmem:[#allocation6 + $0x6] ss:$8 sm:$0x3] %vm23886_vm11, %v10534_v28  ;;  %v10332_v53 = vpop.f32.mrf.mxu3  ;;  %10988 = vmatpush.bf16.msra.mxu0 %v17244_v43  ;;  %11009 = vmatpush.bf16.msrb.mxu2 %v17328_v26  ;;  %v10542_v28 = vperm.slane %v23938_v47, 1  ;;  %v17440_v48 = vor.u32 %v19304_v63, %v17439_v50  ;;  %v17297_v43 = vld [vmem:[#allocation18 + $0x78] sm:$0xf0]  ;;  %v17264_v26 = vor.u32 %v19260_v31, %v17263_v40 }
 0x905   : > { %v17423_v53 = vld [vmem:[#allocation18 + $0x168] sm:$0xf]  ;;  %v17300_v20 = vor.u32 %v19266_v9, %v17297_v43  ;;  %v19256_v47 = vld [vmem:[#allocation18 + $0x14] sm:$0xf0]  ;;  %v19254_v50 = vld [vmem:[#allocation18 + $0xc] sm:$0xf] }
 0x906   : > { %v23934_v46 = vpop.f32.mrf.mxu0  ;;  %11048 = vmatpush.bf16.msrb.mxu1 %v17460_v32  ;;  %v17424_v51 = vor.u32 %v19300_v3, %v17423_v53  ;;  %v17391_v62 = vld [vmem:[#allocation18 + $0x128] sm:$0xf]  ;;  %v19288_v32 = vld [vmem:[#allocation18 + $0x114] sm:$0xf0]  ;;  %v17249_v63 = vld [vmem:[#allocation18 + $0x18] sm:$0xf0] }
 0x907   : > { %11022 = vmatpush.bf16.msrb.mxu3 %v17456_v13  ;;  %v17392_v0 = vor.u32 %v19292_v25, %v17391_v62  ;;  %v17247_v17 = vld [vmem:[#allocation18 + $0x8] sm:$0xf]  ;;  %v19286_v33 = vld [vmem:[#allocation18 + $0x10c] sm:$0xf]  ;;  %v17377_v1 = vld [vmem:[#allocation18 + $0x118] sm:$0xf0] }
 0x908   : > { %11033 = vmatpush.bf16.msrb.mxu0 %v17364_v52  ;;  %11010 = vmatpush.bf16.msrb.mxu2 %v17312_v19  ;;  %v19262_v52 = vld [vmem:[#allocation18 + $0x4c] sm:$0xf]  ;;  %v17375_v13 = vld [vmem:[#allocation18 + $0x108] sm:$0xf]  ;;  %v17248_v54 = vor.u32 %v19256_v47, %v17247_v17  ;;  %v19331_v43 = vld [vmem:[%s24391_s19 + $0x70] sm:$0xff] }
 0x909   : > { %v17376_v19 = vor.u32 %v19288_v32, %v17375_v13  ;;  %v19324_v53 = vld [vmem:[%s24391_s19 + $0x38] sm:$0xff]  ;;  %v19338_v39 = vld [vmem:[%s24391_s19 + $0xa8] sm:$0xff]  ;;  %v19329_v44 = vld [vmem:[%s24391_s19 + $0x60] sm:$0xff] }
 0x90a   : > { %11049 = vmatpush.bf16.msrb.mxu1 %v17444_v35  ;;  %v19348_v3 = vld [vmem:[%s24391_s19 + $0xf8] sm:$0xff]  ;;  %v19337_v57 = vld [vmem:[%s24391_s19 + $0xa0] sm:$0xff]  ;;  %v19327_v12 = vld [vmem:[%s24391_s19 + $0x50] sm:$0xff] }
 0x90b   : > { %v23936_v61 = vpop.f32.mrf.mxu2  ;;  %11023 = vmatpush.bf16.msrb.mxu3 %v17440_v48  ;;  %v17380_v48 = vor.u32 %v19286_v33, %v17377_v1  ;;  %v19340_v9 = vld [vmem:[%s24391_s19 + $0xb8] sm:$0xff]  ;;  %v19319_v45 = vld [vmem:[%s24391_s19 + $0x10] sm:$0xff]  ;;  %v19342_v40 = vld [vmem:[%s24391_s19 + $0xc8] sm:$0xff] }
 0x90c   : > { %11034 = vmatpush.bf16.msrb.mxu0 %v17348_v4  ;;  %11011 = vmatpush.bf16.msrb.mxu2 %v17296_v60  ;;  %v17284_v4 = vor.u32 %v19262_v52, %v17281_v41  ;;  %v19330_v60 = vld [vmem:[%s24391_s19 + $0x68] sm:$0xff]  ;;  %v19328_v56 = vld [vmem:[%s24391_s19 + $0x58] sm:$0xff]  ;;  %v19325_v62 = vld [vmem:[%s24391_s19 + $0x40] sm:$0xff] }
 0x90d   : > { %v19320_v52 = vld [vmem:[%s24391_s19 + $0x18] sm:$0xff]  ;;  %v19334_v31 = vld [vmem:[%s24391_s19 + $0x88] sm:$0xff]  ;;  %v19363_v36 = vld [vmem:[%s24391_s19 + $0x170] sm:$0xff] }
 0x90e   : > { %v10397_v5 = vpop.f32.mrf.mxu0  ;;  %11050 = vmatpush.bf16.msrb.mxu1 %v17428_v58  ;;  %v19345_v58 = vld [vmem:[%s24391_s19 + $0xe0] sm:$0xff]  ;;  %v19336_v41 = vld [vmem:[%s24391_s19 + $0x98] sm:$0xff]  ;;  %v19355_v10 = vld [vmem:[%s24391_s19 + $0x130] sm:$0xff] }
 0x90f   : > { %11024 = vmatpush.bf16.msrb.mxu3 %v17424_v51  ;;  %v19290_v5 = vld [vmem:[#allocation18 + $0x12c] sm:$0xf]  ;;  %v19346_v51 = vld [vmem:[%s24391_s19 + $0xe8] sm:$0xff]  ;;  %v19380_v25 = vld [vmem:[%s24391_s19 + $0x1f8] sm:$0xff] }
 0x910   : > { %11035 = vmatpush.bf16.msrb.mxu0 %v17332_v49  ;;  %11012 = vmatpush.bf16.msrb.mxu2 %v17280_v2  ;;  %v17396_v49 = vor.u32 %v19290_v5, %v17393_v37  ;;  %v19335_v2 = vld [vmem:[%s24391_s19 + $0x90] sm:$0xff]  ;;  %v19362_v5 = vld [vmem:[%s24391_s19 + $0x168] sm:$0xff]  ;;  %v19333_v47 = vld [vmem:[%s24391_s19 + $0x80] sm:$0xff] }
 0x911   : > { %v19354_v37 = vld [vmem:[%s24391_s19 + $0x128] sm:$0xff]  ;;  %v19379_v17 = vld [vmem:[%s24391_s19 + $0x1f0] sm:$0xff]  ;;  %v19352_v13 = vld [vmem:[%s24391_s19 + $0x118] sm:$0xff] }
 0x912   : > { %11051 = vmatpush.bf16.msrb.mxu1 %v17412_v42  ;;  %v19341_v42 = vld [vmem:[%s24391_s19 + $0xc0] sm:$0xff]  ;;  %v19371_v32 = vld [vmem:[%s24391_s19 + $0x1b0] sm:$0xff]  ;;  %v19350_v33 = vld [vmem:[%s24391_s19 + $0x108] sm:$0xff] }
 0x913   : > { %v10371_v59 = vpop.f32.mrf.mxu2  ;;  %11025 = vmatpush.bf16.msrb.mxu3 %v17408_v15  ;;  %v19318_v15 = vld [vmem:[%s24391_s19 + $0x8] sm:$0xff] }
 0x914   : > { %11036 = vmatpush.bf16.msrb.mxu0 %v17316_v29  ;;  %11013 = vmatpush.bf16.msrb.mxu2 %v17264_v26  ;;  %v19360_v26 = vld [vmem:[%s24391_s19 + $0x158] sm:$0xff]  ;;  %v19370_v1 = vld [vmem:[%s24391_s19 + $0x1a8] sm:$0xff] }
 0x916   : > { %11052 = vmatpush.bf16.msrb.mxu1 %v17396_v49  ;;  %v19351_v49 = vld [vmem:[%s24391_s19 + $0x110] sm:$0xff] }
 0x917   : > { %v10408_v21 = vpop.f32.mrf.mxu1  ;;  %11026 = vmatpush.bf16.msrb.mxu3 %v17392_v0  ;;  %v19359_v0 = vld [vmem:[%s24391_s19 + $0x150] sm:$0xff] }
 0x918   : > { %v10409_v8 = vadd.f32 %v10408_v21, %v23934_v46  ;;  %11037 = vmatpush.bf16.msrb.mxu0 %v17300_v20  ;;  %11014 = vmatpush.bf16.msrb.mxu2 %v17248_v54  ;;  %v19339_v21 = vld [vmem:[%s24391_s19 + $0xb0] sm:$0xff]  ;;  %v19321_v20 = vld [vmem:[%s24391_s19 + $0x20] sm:$0xff] }
 0x919   : > { %v19349_v54 = vld [vmem:[%s24391_s19 + $0x100] sm:$0xff] }
 0x91a   : > { %v10546_v6 = vadd.f32 %v10542_v28, %v10409_v8  ;;  %v17252_v28 = vor.u32 %v19254_v50, %v17249_v63  ;;  %11053 = vmatpush.bf16.msrb.mxu1 %v17380_v48  ;;  %v19322_v8 = vld [vmem:[%s24391_s19 + $0x28] sm:$0xff]  ;;  %v19357_v50 = vld [vmem:[%s24391_s19 + $0x140] sm:$0xff] }
 0x91b   : > { %11027 = vmatpush.bf16.msrb.mxu3 %v17376_v19  ;;  %v19377_v63 = vld [vmem:[%s24391_s19 + $0x1e0] sm:$0xff]  ;;  %v19375_v19 = vld [vmem:[%s24391_s19 + $0x1d0] sm:$0xff]  ;;  %v19374_v48 = vld [vmem:[%s24391_s19 + $0x1c8] sm:$0xff] }
 0x91c   : > { %v10382_v46 = vpop.f32.mrf.mxu3  ;;  %v10548_v34 = vmax.f32 %v10546_v6, 0.0  ;;  %11038 = vmatpush.bf16.msrb.mxu0 %v17284_v4  ;;  %v19344_v6 = vld [vmem:[%s24391_s19 + $0xd8] sm:$0xff] }
 0x91d   : > { %v10383_v38 = vadd.f32 %v10382_v46, %v23936_v61  ;;  %v19326_v46 = vld [vmem:[%s24391_s19 + $0x48] sm:$0xff]  ;;  %v19356_v4 = vld [vmem:[%s24391_s19 + $0x138] sm:$0xff] }
 0x91e   : > { %v10551_v55 = vrot.slane %v10548_v34, 7  ;;  %v19317_v34 = vld [vmem:[%s24391_s19] sm:$0xff] }
 0x91f   : > { %v10545_v22 = vadd.f32 %v10541_v23, %v10383_v38  ;;  %v10410_v11 = vpop.f32.mrf.mxu1  ;;  %v19343_v23 = vld [vmem:[%s24391_s19 + $0xd0] sm:$0xff]  ;;  %v19364_v38 = vld [vmem:[%s24391_s19 + $0x178] sm:$0xff] }
 0x920   : > { %11039 = vmatpush.bf16.msrb.mxu0 %v17268_v18  ;;  %v19353_v11 = vld [vmem:[%s24391_s19 + $0x120] sm:$0xff]  ;;  %v19378_v18 = vld [vmem:[%s24391_s19 + $0x1e8] sm:$0xff] }
 0x921   : > { %v10547_v61 = vmax.f32 %v10545_v22, 0.0  ;;  %v19361_v22 = vld [vmem:[%s24391_s19 + $0x160] sm:$0xff] }
 0x923   : > { %v10552_v7 = vsel %vm7950_vm7, %v10547_v61, %v10551_v55  ;;  %v19372_v55 = vld [vmem:[%s24391_s19 + $0x1b8] sm:$0xff]  ;;  %v19358_v61 = vld [vmem:[%s24391_s19 + $0x148] sm:$0xff] }
 0x924   : > { %10555 = vst.msk [vmem:[#allocation6 + $0x7] ss:$8 sm:$0x3] %vm23886_vm11, %v10552_v7  ;;  %v10384_v59 = vpop.f32.mrf.mxu3  ;;  %11040 = vmatpush.bf16.msrb.mxu0 %v17252_v28  ;;  %v19376_v7 = vld [vmem:[%s24391_s19 + $0x1d8] sm:$0xff] }
 0x925   : > { %v19369_v59 = vld [vmem:[%s24391_s19 + $0x1a0] sm:$0xff]  ;;  %v19368_v28 = vld [vmem:[%s24391_s19 + $0x198] sm:$0xff] }
 0x92b   : > { %v10557_v16 = vld [vmem:[#allocation6] sm:$0xff]  ;;  %v10558_v14 = vld [vmem:[#allocation6 + $0x8] sm:$0xff] }
 0x92c   : > { %v10559_v29 = vpack.c.bf16 %v10557_v16, %v10557_v16  ;;  %v10560_v35 = vpack.c.bf16 %v10558_v14, %v10558_v14  ;;  %v10625_v16 = vld [vmem:[#allocation20] sm:$0xf] }
 0x92d   : > { %v19367_v14 = vld [vmem:[%s24391_s19 + $0x190] sm:$0xff] }
 0x92e   : > { %10963 = vmatmul.bf16.vlgmr.msra.gmra.mxu2 %v10559_v29  ;;  %10976 = vmatmul.bf16.vlgmr.msra.gmra.mxu3 %v10560_v35 }
 0x92f   : > { %10989 = vmatmul.bf16.vlgmr.msra.gmra.mxu0 %v10559_v29  ;;  %11002 = vmatmul.bf16.vlgmr.msra.gmra.mxu1 %v10560_v35 }
 0x930   : > { %11340 = vmatpush.bf16.msra.mxu3 %v19332_v24  ;;  %11327 = vmatpush.bf16.msra.mxu2 %v19324_v53  ;;  %v19366_v24 = vld [vmem:[%s24391_s19 + $0x188] sm:$0xff] }
 0x931   : > { %11366 = vmatpush.bf16.msra.mxu1 %v19348_v3  ;;  %11353 = vmatpush.bf16.msra.mxu0 %v19340_v9 }
 0x934   : > { %11341 = vmatpush.bf16.msra.mxu3 %v19331_v43  ;;  %11328 = vmatpush.bf16.msra.mxu2 %v19323_v27  ;;  %v10627_v43 = vperm.slane %v10625_v16, 0 }
 0x935   : > { %11367 = vmatpush.bf16.msra.mxu1 %v19347_v30  ;;  %11354 = vmatpush.bf16.msra.mxu0 %v19339_v21  ;;  %v19365_v30 = vld [vmem:[%s24391_s19 + $0x180] sm:$0xff] }
 0x938   : > { %11342 = vmatpush.bf16.msra.mxu3 %v19330_v60  ;;  %11329 = vmatpush.bf16.msra.mxu2 %v19322_v8 }
 0x939   : > { %11368 = vmatpush.bf16.msra.mxu1 %v19346_v51  ;;  %11355 = vmatpush.bf16.msra.mxu0 %v19338_v39  ;;  %v19396_v39 = vld [vmem:[%s24391_s19 + $0x278] sm:$0xff] }
 0x93c   : > { %11343 = vmatpush.bf16.msra.mxu3 %v19329_v44  ;;  %11330 = vmatpush.bf16.msra.mxu2 %v19321_v20 }
 0x93d   : > { %11369 = vmatpush.bf16.msra.mxu1 %v19345_v58  ;;  %11356 = vmatpush.bf16.msra.mxu0 %v19337_v57 }
 0x93e   : > { %11015 = vmatmul.bf16.vlgmr.msrb.gmra.mxu2 %v10559_v29  ;;  %11028 = vmatmul.bf16.vlgmr.msrb.gmra.mxu3 %v10560_v35 }
 0x93f   : > { %11041 = vmatmul.bf16.vlgmr.msrb.gmra.mxu0 %v10559_v29  ;;  %11054 = vmatmul.bf16.vlgmr.msrb.gmra.mxu1 %v10560_v35  ;;  %v10628_v29 = vperm.slane %v10625_v16, 1  ;;  %v19373_v35 = vld [vmem:[%s24391_s19 + $0x1c0] sm:$0xff] }
 0x940   : > { %11344 = vmatpush.bf16.msra.mxu3 %v19328_v56  ;;  %11331 = vmatpush.bf16.msra.mxu2 %v19320_v52  ;;  %v19395_v52 = vld [vmem:[%s24391_s19 + $0x270] sm:$0xff] }
 0x941   : > { %11370 = vmatpush.bf16.msra.mxu1 %v19344_v6  ;;  %11357 = vmatpush.bf16.msra.mxu0 %v19336_v41  ;;  %v19388_v6 = vld [vmem:[%s24391_s19 + $0x238] sm:$0xff] }
 0x944   : > { %11345 = vmatpush.bf16.msra.mxu3 %v19327_v12  ;;  %11332 = vmatpush.bf16.msra.mxu2 %v19319_v45 }
 0x945   : > { %11371 = vmatpush.bf16.msra.mxu1 %v19343_v23  ;;  %11358 = vmatpush.bf16.msra.mxu0 %v19335_v2  ;;  %v10630_v23 = vperm.slane %v10625_v16, 3  ;;  %v19394_v2 = vld [vmem:[%s24391_s19 + $0x268] sm:$0xff] }
 0x948   : > { %11346 = vmatpush.bf16.msra.mxu3 %v19326_v46  ;;  %11333 = vmatpush.bf16.msra.mxu2 %v19318_v15  ;;  %v19387_v46 = vld [vmem:[%s24391_s19 + $0x230] sm:$0xff] }
 0x949   : > { %11372 = vmatpush.bf16.msra.mxu1 %v19342_v40  ;;  %11359 = vmatpush.bf16.msra.mxu0 %v19334_v31 }
 0x94c   : > { %11347 = vmatpush.bf16.msra.mxu3 %v19325_v62  ;;  %11334 = vmatpush.bf16.msra.mxu2 %v19317_v34  ;;  %v19393_v62 = vld [vmem:[%s24391_s19 + $0x260] sm:$0xff]  ;;  %v10629_v34 = vperm.slane %v10625_v16, 2  ;;  %v19408_v16 = vld [vmem:[%s24391_s19 + $0x2d8] sm:$0xff] }
 0x94d   : > { %11373 = vmatpush.bf16.msra.mxu1 %v19341_v42  ;;  %11360 = vmatpush.bf16.msra.mxu0 %v19333_v47 }
 0x950   : > { %11673 = vmatpush.bf16.msrb.mxu3 %v19364_v38  ;;  %11660 = vmatpush.bf16.msrb.mxu2 %v19356_v4  ;;  %v19386_v4 = vld [vmem:[%s24391_s19 + $0x228] sm:$0xff] }
 0x951   : > { %11699 = vmatpush.bf16.msrb.mxu1 %v19380_v25  ;;  %11686 = vmatpush.bf16.msrb.mxu0 %v19372_v55  ;;  %v19411_v55 = vld [vmem:[%s24391_s19 + $0x2f0] sm:$0xff] }
 0x954   : > { %11674 = vmatpush.bf16.msrb.mxu3 %v19363_v36  ;;  %11661 = vmatpush.bf16.msrb.mxu2 %v19355_v10 }
 0x955   : > { %11700 = vmatpush.bf16.msrb.mxu1 %v19379_v17  ;;  %11687 = vmatpush.bf16.msrb.mxu0 %v19371_v32 }
 0x958   : > { %11675 = vmatpush.bf16.msrb.mxu3 %v19362_v5  ;;  %11662 = vmatpush.bf16.msrb.mxu2 %v19354_v37  ;;  %v19392_v5 = vld [vmem:[%s24391_s19 + $0x258] sm:$0xff] }
 0x959   : > { %11701 = vmatpush.bf16.msrb.mxu1 %v19378_v18  ;;  %11688 = vmatpush.bf16.msrb.mxu0 %v19370_v1  ;;  %v19412_v37 = vld [vmem:[%s24391_s19 + $0x2f8] sm:$0xff]  ;;  %v19383_v1 = vld [vmem:[%s24391_s19 + $0x210] sm:$0xff] }
 0x95a   : > { %v19384_v18 = vld [vmem:[%s24391_s19 + $0x218] sm:$0xff] }
 0x95c   : > { %11676 = vmatpush.bf16.msrb.mxu3 %v19361_v22  ;;  %11663 = vmatpush.bf16.msrb.mxu2 %v19353_v11  ;;  %v19385_v11 = vld [vmem:[%s24391_s19 + $0x220] sm:$0xff] }
 0x95d   : > { %11702 = vmatpush.bf16.msrb.mxu1 %v19377_v63  ;;  %11689 = vmatpush.bf16.msrb.mxu0 %v19369_v59  ;;  %v19390_v63 = vld [vmem:[%s24391_s19 + $0x248] sm:$0xff]  ;;  %v19409_v59 = vld [vmem:[%s24391_s19 + $0x2e0] sm:$0xff] }
 0x960   : > { %11677 = vmatpush.bf16.msrb.mxu3 %v19360_v26  ;;  %11664 = vmatpush.bf16.msrb.mxu2 %v19352_v13  ;;  %v19391_v13 = vld [vmem:[%s24391_s19 + $0x250] sm:$0xff] }
 0x961   : > { %11703 = vmatpush.bf16.msrb.mxu1 %v19376_v7  ;;  %11690 = vmatpush.bf16.msrb.mxu0 %v19368_v28  ;;  %v19403_v7 = vld [vmem:[%s24391_s19 + $0x2b0] sm:$0xff]  ;;  %v19382_v28 = vld [vmem:[%s24391_s19 + $0x208] sm:$0xff] }
 0x964   : > { %11678 = vmatpush.bf16.msrb.mxu3 %v19359_v0  ;;  %11665 = vmatpush.bf16.msrb.mxu2 %v19351_v49  ;;  %v19404_v49 = vld [vmem:[%s24391_s19 + $0x2b8] sm:$0xff] }
 0x965   : > { %11704 = vmatpush.bf16.msrb.mxu1 %v19375_v19  ;;  %11691 = vmatpush.bf16.msrb.mxu0 %v19367_v14  ;;  %v19428_v19 = vld [vmem:[%s24391_s19 + $0x378] sm:$0xff]  ;;  %v19427_v14 = vld [vmem:[%s24391_s19 + $0x370] sm:$0xff] }
 0x968   : > { %11679 = vmatpush.bf16.msrb.mxu3 %v19358_v61  ;;  %11666 = vmatpush.bf16.msrb.mxu2 %v19350_v33  ;;  %v19410_v33 = vld [vmem:[%s24391_s19 + $0x2e8] sm:$0xff] }
 0x969   : > { %11705 = vmatpush.bf16.msrb.mxu1 %v19374_v48  ;;  %11692 = vmatpush.bf16.msrb.mxu0 %v19366_v24  ;;  %v19402_v48 = vld [vmem:[%s24391_s19 + $0x2a8] sm:$0xff]  ;;  %v19420_v24 = vld [vmem:[%s24391_s19 + $0x338] sm:$0xff] }
 0x96c   : > { %11680 = vmatpush.bf16.msrb.mxu3 %v19357_v50  ;;  %11667 = vmatpush.bf16.msrb.mxu2 %v19349_v54  ;;  %v19389_v54 = vld [vmem:[%s24391_s19 + $0x240] sm:$0xff] }
 0x96d   : > { %11706 = vmatpush.bf16.msrb.mxu1 %v19373_v35  ;;  %11693 = vmatpush.bf16.msrb.mxu0 %v19365_v30  ;;  %v19401_v35 = vld [vmem:[%s24391_s19 + $0x2a0] sm:$0xff] }
 0x96e   : > { %v19425_v30 = vld [vmem:[%s24391_s19 + $0x360] sm:$0xff] }
 0x9ac   : > { %v10990_v53 = vpop.f32.mrf.mxu0  ;;  %v11003_v3 = vpop.f32.mrf.mxu1 }
 0x9ad   : > { %v10991_v9 = vadd.f32 %v10990_v53, %v10628_v29  ;;  %v19381_v29 = vld [vmem:[%s24391_s19 + $0x200] sm:$0xff]  ;;  %v19407_v53 = vld [vmem:[%s24391_s19 + $0x2d0] sm:$0xff] }
 0x9af   : > { %v11004_v27 = vadd.f32 %v11003_v3, %v10991_v9  ;;  %v19426_v3 = vld [vmem:[%s24391_s19 + $0x368] sm:$0xff]  ;;  %v19400_v9 = vld [vmem:[%s24391_s19 + $0x298] sm:$0xff] }
 0x9b1   : > { %v11060_v21 = vmax.f32 %v11004_v27, 0.0  ;;  %v10964_v60 = vpop.f32.mrf.mxu2  ;;  %v10977_v8 = vpop.f32.mrf.mxu3  ;;  %v19406_v27 = vld [vmem:[%s24391_s19 + $0x2c8] sm:$0xff] }
 0x9b2   : > { %v10965_v51 = vadd.f32 %v10964_v60, %v10627_v43  ;;  %v19419_v43 = vld [vmem:[%s24391_s19 + $0x330] sm:$0xff]  ;;  %v19418_v60 = vld [vmem:[%s24391_s19 + $0x328] sm:$0xff] }
 0x9b3   : > { %v24142_v44 = vpack.c.bf16 %v11060_v21, %v11060_v21  ;;  %v19399_v21 = vld [vmem:[%s24391_s19 + $0x290] sm:$0xff] }
 0x9b4   : > { %v10978_v20 = vadd.f32 %v10977_v8, %v10965_v51  ;;  %v10992_v58 = vpop.f32.mrf.mxu0  ;;  %v11005_v57 = vpop.f32.mrf.mxu1  ;;  %v19405_v8 = vld [vmem:[%s24391_s19 + $0x2c0] sm:$0xff]  ;;  %v19424_v51 = vld [vmem:[%s24391_s19 + $0x358] sm:$0xff] }
 0x9b5   : > { %11348 = vmatmul.bf16.vlgmr.msra.gmra.mxu3 %v24142_v44  ;;  %v19417_v58 = vld [vmem:[%s24391_s19 + $0x320] sm:$0xff]  ;;  %v19423_v57 = vld [vmem:[%s24391_s19 + $0x350] sm:$0xff] }
 0x9b6   : > { %v11059_v56 = vmax.f32 %v10978_v20, 0.0  ;;  %12007 = vmatpush.bf16.msra.mxu3 %v19396_v39  ;;  %v19444_v39 = vld [vmem:[%s24391_s19 + $0x3f8] sm:$0xff]  ;;  %v19398_v20 = vld [vmem:[%s24391_s19 + $0x288] sm:$0xff] }
 0x9b8   : > { %v24151_v41 = vpack.c.bf16 %v11059_v56, %v11059_v56  ;;  %v19443_v56 = vld [vmem:[%s24391_s19 + $0x3f0] sm:$0xff] }
 0x9b9   : > { %v10966_v12 = vpop.f32.mrf.mxu2  ;;  %v10979_v45 = vpop.f32.mrf.mxu3 }
 0x9ba   : > { %12008 = vmatpush.bf16.msra.mxu3 %v19395_v52  ;;  %11335 = vmatmul.bf16.vlgmr.msra.gmra.mxu2 %v24151_v41  ;;  %v19397_v52 = vld [vmem:[%s24391_s19 + $0x280] sm:$0xff]  ;;  %v19436_v12 = vld [vmem:[%s24391_s19 + $0x3b8] sm:$0xff]  ;;  %v19422_v45 = vld [vmem:[%s24391_s19 + $0x348] sm:$0xff] }
 0x9bb   : > { %11994 = vmatpush.bf16.msra.mxu2 %v19388_v6  ;;  %v19416_v6 = vld [vmem:[%s24391_s19 + $0x318] sm:$0xff] }
 0x9bc   : > { %v11042_v15 = vpop.f32.mrf.mxu0  ;;  %v11055_v40 = vpop.f32.mrf.mxu1 }
 0x9bd   : > { %v11043_v31 = vadd.f32 %v11042_v15, %v10630_v23  ;;  %v19442_v23 = vld [vmem:[%s24391_s19 + $0x3e8] sm:$0xff]  ;;  %v19421_v15 = vld [vmem:[%s24391_s19 + $0x340] sm:$0xff] }
 0x9be   : > { %12009 = vmatpush.bf16.msra.mxu3 %v19394_v2  ;;  %v19415_v2 = vld [vmem:[%s24391_s19 + $0x310] sm:$0xff] }
 0x9bf   : > { %v11056_v38 = vadd.f32 %v11055_v40, %v11043_v31  ;;  %11995 = vmatpush.bf16.msra.mxu2 %v19387_v46  ;;  %v19435_v46 = vld [vmem:[%s24391_s19 + $0x3b0] sm:$0xff]  ;;  %v19441_v40 = vld [vmem:[%s24391_s19 + $0x3e0] sm:$0xff]  ;;  %v19414_v31 = vld [vmem:[%s24391_s19 + $0x308] sm:$0xff] }
 0x9c1   : > { %v11062_v42 = vmax.f32 %v11056_v38, 0.0  ;;  %v11016_v25 = vpop.f32.mrf.mxu2  ;;  %v11029_v36 = vpop.f32.mrf.mxu3  ;;  %v19413_v38 = vld [vmem:[%s24391_s19 + $0x300] sm:$0xff] }
 0x9c2   : > { %12010 = vmatpush.bf16.msra.mxu3 %v19393_v62  ;;  %v11017_v10 = vadd.f32 %v11016_v25, %v10629_v34  ;;  %v19434_v62 = vld [vmem:[%s24391_s19 + $0x3a8] sm:$0xff]  ;;  %v19440_v34 = vld [vmem:[%s24391_s19 + $0x3d8] sm:$0xff] }
 0x9c3   : > { %v24172_v22 = vpack.c.bf16 %v11062_v42, %v11062_v42  ;;  %11996 = vmatpush.bf16.msra.mxu2 %v19386_v4  ;;  %v19433_v4 = vld [vmem:[%s24391_s19 + $0x3a0] sm:$0xff]  ;;  %v19439_v42 = vld [vmem:[%s24391_s19 + $0x3d0] sm:$0xff]  ;;  %v19432_v25 = vld [vmem:[%s24391_s19 + $0x398] sm:$0xff] }
 0x9c4   : > { %v11030_v26 = vadd.f32 %v11029_v36, %v11017_v10  ;;  %v11044_v0 = vpop.f32.mrf.mxu0  ;;  %v11057_v17 = vpop.f32.mrf.mxu1  ;;  %v19438_v36 = vld [vmem:[%s24391_s19 + $0x3c8] sm:$0xff]  ;;  %v19437_v10 = vld [vmem:[%s24391_s19 + $0x3c0] sm:$0xff] }
 0x9c5   : > { %11374 = vmatmul.bf16.vlgmr.msra.gmra.mxu1 %v24172_v22  ;;  %11681 = vmatmul.bf16.vlgmr.msrb.gmra.mxu3 %v24142_v44 }
 0x9c6   : > { %v11061_v47 = vmax.f32 %v11030_v26, 0.0  ;;  %12011 = vmatpush.bf16.msra.mxu3 %v19392_v5  ;;  %12033 = vmatpush.bf16.msra.mxu1 %v19412_v37  ;;  %v19430_v5 = vld [vmem:[%s24391_s19 + $0x388] sm:$0xff]  ;;  %v19565_v26 = vld [vmem:[#allocation21] ss:$0 sm:$0xff] }
 0x9c7   : > { %11997 = vmatpush.bf16.msra.mxu2 %v19385_v11 }
 0x9c8   : > { %v24185_v61 = vpack.c.bf16 %v11061_v47, %v11061_v47 }
 0x9c9   : > { %v11018_v32 = vpop.f32.mrf.mxu2  ;;  %v11031_v50 = vpop.f32.mrf.mxu3 }
 0x9ca   : > { %12012 = vmatpush.bf16.msra.mxu3 %v19391_v13  ;;  %12034 = vmatpush.bf16.msra.mxu1 %v19411_v55 }
 0x9cb   : > { %11361 = vmatmul.bf16.vlgmr.msra.gmra.mxu0 %v24185_v61  ;;  %11668 = vmatmul.bf16.vlgmr.msrb.gmra.mxu2 %v24151_v41 }
 0x9cc   : > { %11998 = vmatpush.bf16.msra.mxu2 %v19384_v18  ;;  %12020 = vmatpush.bf16.msra.mxu0 %v19404_v49 }
 0x9ce   : > { %12013 = vmatpush.bf16.msra.mxu3 %v19390_v63  ;;  %12035 = vmatpush.bf16.msra.mxu1 %v19410_v33 }
 0x9d0   : > { %11999 = vmatpush.bf16.msra.mxu2 %v19383_v1  ;;  %12021 = vmatpush.bf16.msra.mxu0 %v19403_v7 }
 0x9d2   : > { %12014 = vmatpush.bf16.msra.mxu3 %v19389_v54  ;;  %12036 = vmatpush.bf16.msra.mxu1 %v19409_v59 }
 0x9d4   : > { %12000 = vmatpush.bf16.msra.mxu2 %v19382_v28  ;;  %12022 = vmatpush.bf16.msra.mxu0 %v19402_v48 }
 0x9d5   : > { %11707 = vmatmul.bf16.vlgmr.msrb.gmra.mxu1 %v24172_v22  ;;  %12015 = vmatmul.bf16.vlgmr.msra.gmra.mxu3 %v24142_v44 }
 0x9d6   : > { %12341 = vmatpush.bf16.msrb.mxu3 %v19428_v19  ;;  %12037 = vmatpush.bf16.msra.mxu1 %v19408_v16 }
 0x9d8   : > { %12001 = vmatpush.bf16.msra.mxu2 %v19381_v29  ;;  %12023 = vmatpush.bf16.msra.mxu0 %v19401_v35 }
 0x9da   : > { %12342 = vmatpush.bf16.msrb.mxu3 %v19427_v14  ;;  %12038 = vmatpush.bf16.msra.mxu1 %v19407_v53 }
 0x9db   : > { %11694 = vmatmul.bf16.vlgmr.msrb.gmra.mxu0 %v24185_v61  ;;  %12002 = vmatmul.bf16.vlgmr.msra.gmra.mxu2 %v24151_v41 }
 0x9dc   : > { %12328 = vmatpush.bf16.msrb.mxu2 %v19420_v24  ;;  %12024 = vmatpush.bf16.msra.mxu0 %v19400_v9 }
 0x9de   : > { %12343 = vmatpush.bf16.msrb.mxu3 %v19426_v3  ;;  %12039 = vmatpush.bf16.msra.mxu1 %v19406_v27 }
 0x9e0   : > { %12329 = vmatpush.bf16.msrb.mxu2 %v19419_v43  ;;  %12025 = vmatpush.bf16.msra.mxu0 %v19399_v21 }
 0x9e2   : > { %12344 = vmatpush.bf16.msrb.mxu3 %v19425_v30  ;;  %12040 = vmatpush.bf16.msra.mxu1 %v19405_v8  ;;  %v19567_v30 = vld [vmem:[#allocation21] ss:$0 sm:$0xff] }
 0x9e4   : > { %12330 = vmatpush.bf16.msrb.mxu2 %v19418_v60  ;;  %12026 = vmatpush.bf16.msra.mxu0 %v19398_v20 }
 0x9e5   : > { %12041 = vmatmul.bf16.vlgmr.msra.gmra.mxu1 %v24172_v22 }
 0x9e6   : > { %12345 = vmatpush.bf16.msrb.mxu3 %v19424_v51  ;;  %12367 = vmatpush.bf16.msrb.mxu1 %v19444_v39 }
 0x9e8   : > { %12331 = vmatpush.bf16.msrb.mxu2 %v19417_v58  ;;  %12027 = vmatpush.bf16.msra.mxu0 %v19397_v52 }
 0x9ea   : > { %12346 = vmatpush.bf16.msrb.mxu3 %v19423_v57  ;;  %12368 = vmatpush.bf16.msrb.mxu1 %v19443_v56 }
 0x9eb   : > { %12028 = vmatmul.bf16.vlgmr.msra.gmra.mxu0 %v24185_v61 }
 0x9ec   : > { %12332 = vmatpush.bf16.msrb.mxu2 %v19416_v6  ;;  %12354 = vmatpush.bf16.msrb.mxu0 %v19436_v12 }
 0x9ee   : > { %12347 = vmatpush.bf16.msrb.mxu3 %v19422_v45  ;;  %12369 = vmatpush.bf16.msrb.mxu1 %v19442_v23 }
 0x9f0   : > { %12333 = vmatpush.bf16.msrb.mxu2 %v19415_v2  ;;  %12355 = vmatpush.bf16.msrb.mxu0 %v19435_v46 }
 0x9f2   : > { %12348 = vmatpush.bf16.msrb.mxu3 %v19421_v15  ;;  %12370 = vmatpush.bf16.msrb.mxu1 %v19441_v40 }
 0x9f4   : > { %12334 = vmatpush.bf16.msrb.mxu2 %v19414_v31  ;;  %12356 = vmatpush.bf16.msrb.mxu0 %v19434_v62 }
 0x9f5   : > { %12349 = vmatmul.bf16.vlgmr.msrb.gmra.mxu3 %v24142_v44  ;;  %v19431_v44 = vld [vmem:[%s24391_s19 + $0x390] sm:$0xff] }
 0x9f6   : > { %12371 = vmatpush.bf16.msrb.mxu1 %v19440_v34 }
 0x9f8   : > { %12335 = vmatpush.bf16.msrb.mxu2 %v19413_v38  ;;  %12357 = vmatpush.bf16.msrb.mxu0 %v19433_v4 }
 0x9fa   : > { %12372 = vmatpush.bf16.msrb.mxu1 %v19439_v42 }
 0x9fb   : > { %12336 = vmatmul.bf16.vlgmr.msrb.gmra.mxu2 %v24151_v41  ;;  %v19429_v41 = vld [vmem:[%s24391_s19 + $0x380] sm:$0xff] }
 0x9fc   : > { %12358 = vmatpush.bf16.msrb.mxu0 %v19432_v25 }
 0x9fe   : > { %12373 = vmatpush.bf16.msrb.mxu1 %v19438_v36 }
 0xa00   : > { %12359 = vmatpush.bf16.msrb.mxu0 %v19431_v44 }
 0xa02   : > { %12374 = vmatpush.bf16.msrb.mxu1 %v19437_v10 }
 0xa04   : > { %12360 = vmatpush.bf16.msrb.mxu0 %v19430_v5 }
 0xa05   : > { %12375 = vmatmul.bf16.vlgmr.msrb.gmra.mxu1 %v24172_v22  ;;  %v19566_v22 = vld [vmem:[#allocation21] ss:$0 sm:$0xff] }
 0xa08   : > { %12361 = vmatpush.bf16.msrb.mxu0 %v19429_v41 }
 0xa0b   : > { %12362 = vmatmul.bf16.vlgmr.msrb.gmra.mxu0 %v24185_v61 }
 0xa38   : > { %v11349_v37 = vpop.f32.mrf.mxu3 }
 0xa3d   : > { %v11336_v11 = vpop.f32.mrf.mxu2 }
 0xa3e   : > { %v11337_v47 = vadd.f32 %v19565_v26, %v11336_v11 }
 0xa40   : > { %v11351_v0 = vpop.f32.mrf.mxu3  ;;  %v11350_v55 = vadd.f32 %v11349_v37, %v11337_v47 }
 0xa42   : > { %v11375_v17 = vpop.f32.mrf.mxu1 }
 0xa45   : > { %v11338_v13 = vpop.f32.mrf.mxu2 }
 0xa46   : > { %v19568_v13 = vld [vmem:[#allocation21] ss:$0 sm:$0xff] }
 0xa48   : > { %v11362_v18 = vpop.f32.mrf.mxu0  ;;  %v11682_v32 = vpop.f32.mrf.mxu3 }
 0xa49   : > { %v11363_v49 = vadd.f32 %v11362_v18, %v11350_v55 }
 0xa4a   : > { %v11377_v50 = vpop.f32.mrf.mxu1 }
 0xa4b   : > { %v11376_v63 = vadd.f32 %v11375_v17, %v11363_v49 }
 0xa4d   : > { %v17621_v33 = vmul.f32 -1.442695, %v11376_v63 }
 0xa4e   : > { %v11669_v1 = vpop.f32.mrf.mxu2 }
 0xa4f   : > { %19569 = vpow2.f32 %v17621_v33  ;;  %v11670_v59 = vadd.f32 %v19566_v22, %v11669_v1 }
 0xa50   : > { %v11364_v7 = vpop.f32.mrf.mxu0  ;;  %v11684_v54 = vpop.f32.mrf.mxu3 }
 0xa51   : > { %v11683_v16 = vadd.f32 %v11682_v32, %v11670_v59 }
 0xa52   : > { %v11708_v61 = vpop.f32.mrf.mxu1 }
 0xa55   : > { %v19570_v19 = vpop.eup %19569 }
 0xa56   : > { %v11382_v28 = vadd.f32 1.0, %v19570_v19  ;;  %v11671_v48 = vpop.f32.mrf.mxu2 }
 0xa58   : > { %19571 = vrcp.f32 %v11382_v28  ;;  %v11695_v14 = vpop.f32.mrf.mxu0  ;;  %v12016_v35 = vpop.f32.mrf.mxu3  ;;  %v11394_v51 = vand.u32 2147483648, %v11382_v28  ;;  %v11392_v58 = vand.u32 2147483647, %v11382_v28  ;;  %vm11388_vm13 = vweird.f32 %v11382_v28 }
 0xa59   : > { %v11696_v29 = vadd.f32 %v11695_v14, %v11683_v16 }
 0xa5a   : > { %v11710_v24 = vpop.f32.mrf.mxu1  ;;  %v11395_v6 = vor.u32 1.1754944e-38, %v11394_v51  ;;  %vm11393_vm15 = vcmp.eq.f32.partialorder %v11392_v58, 8.507059e+37 }
 0xa5b   : > { %v11709_v53 = vadd.f32 %v11708_v61, %v11696_v29 }
 0xa5d   : > { %v17814_v3 = vmul.f32 -1.442695, %v11709_v53 }
 0xa5e   : > { %v19572_v9 = vpop.eup %19571  ;;  %v12003_v27 = vpop.f32.mrf.mxu2 }
 0xa5f   : > { %v11384_v43 = vmul.f32 %v19572_v9, %v11382_v28  ;;  %19573 = vpow2.f32 %v17814_v3  ;;  %vm11389_vm12 = vweird.f32 %v19572_v9  ;;  %v12004_v57 = vadd.f32 %v19567_v30, %v12003_v27 }
 0xa60   : > { %v11697_v21 = vpop.f32.mrf.mxu0  ;;  %v12018_v8 = vpop.f32.mrf.mxu3  ;;  %vm11390_vm14 = vmor %vm11388_vm13, %vm11389_vm12 }
 0xa61   : > { %v11385_v60 = vsub.f32 1.0, %v11384_v43  ;;  %v12017_v46 = vadd.f32 %v12016_v35, %v12004_v57 }
 0xa62   : > { %v12042_v39 = vpop.f32.mrf.mxu1 }
 0xa63   : > { %v11386_v20 = vmul.f32 %v19572_v9, %v11385_v60 }
 0xa65   : > { %v19574_v56 = vpop.eup %19573  ;;  %v11387_v52 = vadd.f32 %v19572_v9, %v11386_v20 }
 0xa66   : > { %v11715_v12 = vadd.f32 1.0, %v19574_v56  ;;  %v12005_v23 = vpop.f32.mrf.mxu2 }
 0xa67   : > { %v11391_v45 = vsel %vm11390_vm14, %v19572_v9, %v11387_v52 }
 0xa68   : > { %v11396_v2 = vsel %vm11393_vm15, %v11395_v6, %v11391_v45  ;;  %19575 = vrcp.f32 %v11715_v12  ;;  %v12029_v15 = vpop.f32.mrf.mxu0  ;;  %v11727_v36 = vand.u32 2147483648, %v11715_v12  ;;  %v11725_v10 = vand.u32 2147483647, %v11715_v12 }
 0xa69   : > { %11398 = vst.msk [vmem:[%s24359_s5] sm:$0xff] %vm1052_vm1, %v11396_v2  ;;  %v12030_v40 = vadd.f32 %v12029_v15, %v12017_v46  ;;  %vm11721_vm2 = vweird.f32 %v11715_v12 }
 0xa6a   : > { %v12044_v31 = vpop.f32.mrf.mxu1  ;;  %v11728_v11 = vor.u32 1.1754944e-38, %v11727_v36  ;;  %vm11726_vm4 = vcmp.eq.f32.partialorder %v11725_v10, 8.507059e+37 }
 0xa6b   : > { %v12043_v62 = vadd.f32 %v12042_v39, %v12030_v40 }
 0xa6d   : > { %v18008_v38 = vmul.f32 -1.442695, %v12043_v62 }
 0xa6e   : > { %v19576_v34 = vpop.eup %19575 }
 0xa6f   : > { %v11717_v4 = vmul.f32 %v19576_v34, %v11715_v12  ;;  %19577 = vpow2.f32 %v18008_v38  ;;  %vm11722_vm0 = vweird.f32 %v19576_v34 }
 0xa70   : > { %v12031_v25 = vpop.f32.mrf.mxu0  ;;  %vm11723_vm3 = vmor %vm11721_vm2, %vm11722_vm0 }
 0xa71   : > { %v11718_v42 = vsub.f32 1.0, %v11717_v4 }
 0xa73   : > { %v11719_v44 = vmul.f32 %v19576_v34, %v11718_v42 }
 0xa75   : > { %v11720_v5 = vadd.f32 %v19576_v34, %v11719_v44  ;;  %v19578_v37 = vpop.eup %19577 }
 0xa76   : > { %v12049_v0 = vadd.f32 1.0, %v19578_v37 }
 0xa77   : > { %v11724_v26 = vsel %vm11723_vm3, %v19576_v34, %v11720_v5 }
 0xa78   : > { %v12350_v41 = vpop.f32.mrf.mxu3  ;;  %v11729_v17 = vsel %vm11726_vm4, %v11728_v11, %v11724_v26  ;;  %19579 = vrcp.f32 %v12049_v0  ;;  %v12061_v33 = vand.u32 2147483648, %v12049_v0  ;;  %v12059_v7 = vand.u32 2147483647, %v12049_v0 }
 0xa79   : > { %17815 = vst.msk [vmem:[%s24359_s5 + $0x8] sm:$0xff] %vm1052_vm1, %v11729_v17  ;;  %vm12055_vm6 = vweird.f32 %v12049_v0 }
 0xa7a   : > { %v12062_v28 = vor.u32 1.1754944e-38, %v12061_v33  ;;  %vm12060_vm8 = vcmp.eq.f32.partialorder %v12059_v7, 8.507059e+37 }
 0xa7e   : > { %v12337_v47 = vpop.f32.mrf.mxu2  ;;  %v19580_v18 = vpop.eup %19579 }
 0xa7f   : > { %v12051_v32 = vmul.f32 %v19580_v18, %v12049_v0  ;;  %v12338_v50 = vadd.f32 %v19568_v13, %v12337_v47  ;;  %vm12056_vm5 = vweird.f32 %v19580_v18 }
 0xa80   : > { %v12352_v55 = vpop.f32.mrf.mxu3  ;;  %vm12057_vm7 = vmor %vm12055_vm6, %vm12056_vm5 }
 0xa81   : > { %v12052_v63 = vsub.f32 1.0, %v12051_v32  ;;  %v12351_v54 = vadd.f32 %v12350_v41, %v12338_v50 }
 0xa82   : > { %v12376_v49 = vpop.f32.mrf.mxu1 }
 0xa83   : > { %v12053_v22 = vmul.f32 %v19580_v18, %v12052_v63 }
 0xa85   : > { %v12054_v59 = vadd.f32 %v19580_v18, %v12053_v22 }
 0xa86   : > { %v12339_v1 = vpop.f32.mrf.mxu2 }
 0xa87   : > { %v12058_v16 = vsel %vm12057_vm7, %v19580_v18, %v12054_v59 }
 0xa88   : > { %v12363_v61 = vpop.f32.mrf.mxu0  ;;  %v12063_v29 = vsel %vm12060_vm8, %v12062_v28, %v12058_v16 }
 0xa89   : > { %v12364_v19 = vadd.f32 %v12363_v61, %v12351_v54  ;;  %18009 = vst.msk [vmem:[%s24359_s5 + $0x10] sm:$0xff] %vm1052_vm1, %v12063_v29 }
 0xa8a   : > { %v12378_v48 = vpop.f32.mrf.mxu1 }
 0xa8b   : > { %v12377_v14 = vadd.f32 %v12376_v49, %v12364_v19 }
 0xa8d   : > { %v18202_v35 = vmul.f32 -1.442695, %v12377_v14 }
 0xa8f   : > { %19581 = vpow2.f32 %v18202_v35 }
 0xa90   : > { %v12365_v24 = vpop.f32.mrf.mxu0 }
 0xa95   : > { %v19582_v53 = vpop.eup %19581 }
 0xa96   : > { %v12383_v3 = vadd.f32 1.0, %v19582_v53 }
 0xa98   : > { %19583 = vrcp.f32 %v12383_v3  ;;  %v12395_v30 = vand.u32 2147483648, %v12383_v3  ;;  %v12393_v60 = vand.u32 2147483647, %v12383_v3  ;;  %vm12389_vm10 = vweird.f32 %v12383_v3 }
 0xa9a   : > { %v12396_v51 = vor.u32 1.1754944e-38, %v12395_v30  ;;  %vm12394_vm12 = vcmp.eq.f32.partialorder %v12393_v60, 8.507059e+37 }
 0xa9e   : > { %v19584_v9 = vpop.eup %19583 }
 0xa9f   : > { %v12385_v43 = vmul.f32 %v19584_v9, %v12383_v3  ;;  %vm12390_vm9 = vweird.f32 %v19584_v9 }
 0xaa0   : > { %vm12391_vm11 = vmor %vm12389_vm10, %vm12390_vm9 }
 0xaa1   : > { %v12386_v27 = vsub.f32 1.0, %v12385_v43 }
 0xaa3   : > { %v12387_v21 = vmul.f32 %v19584_v9, %v12386_v27 }
 0xaa5   : > { %v12388_v8 = vadd.f32 %v19584_v9, %v12387_v21 }
 0xaa7   : > { %v12392_v39 = vsel %vm12391_vm11, %v19584_v9, %v12388_v8 }
 0xaa8   : > { %v12397_v20 = vsel %vm12394_vm12, %v12396_v51, %v12392_v39 }
 0xaa9   : > { %18203 = vst.msk [vmem:[%s24359_s5 + $0x18] sm:$0xff] %vm1052_vm1, %v12397_v20 }
 0xaaa PF: > { %s24432_s4 = sld [smem:[#allocation29_spill]] }
 0xab0   : > { %s39_s3 = sadd.s32 1, %s24432_s4  }
 0xab1   : > { %p36_p7 = scmp.ge.s32.totalorder %s39_s3, 4  }
 0xab3   :  { %38 = sbr.rel (!%p36_p7) target bundleno = 18 (0x12), region = 278 }
 0xab8   :  { %12436 = vsyncpa [#allocation8], 1 }
 0xab9   :  { %12438 = vsyncpa [#allocation8 + $0x1], 1 }
 0xaba   :  { %12439 = vsyncpa [#allocation10], 1 }
 0xabb   :  { %12440 = vsyncpa [#allocation13], 1 }
 0xabc   :  { %12441 = vsyncpa [#allocation16], 1 }
 0xabd   :  { %12442 = vsyncpa [#allocation19], 1 }
 0xabe   :  { %12443 = vsyncpa [#allocation22], 1 }

</bundles_post_ra>
